<compile_context>
chip_gen: v7x
topology: tpu7x:2x2x1
jax: 0.10.0
libtpu: 0.0.40
codegen_flags: <defaults>
</compile_context>

<pallas_src>
import jax
import jax.numpy as jnp
import numpy as np
from jax import lax
from jax.experimental import pallas as pl
from jax.experimental.pallas import tpu as pltpu

# Full-precision f32 matmuls everywhere (kernel trace, reference, packing).
jax.config.update("jax_default_matmul_precision", "highest")

# ---------------- static sizes ----------------
N = 8               # nodes per graph (both graphs)
IN_DIM = 16         # input node feature dim
D0, D1 = 32, 32     # gcn_size
T = 16              # tensor_neurons
BN = 16             # bottle_neck_neurons
B_PAIRS = 64        # total graph pairs
PB = 8              # pairs per grid step (chunk)
HN = PB * N         # stacked rows per graph side = 64
M2 = 2 * HN         # stacked rows per chunk = 128

# w32 packed buffer row offsets (all 8-aligned), 32 columns
WGA0, WBC0, WC0 = 0, 16, 32          # layer 0: wg0@wa0, wb0+wc0, wc0   (16 rows each)
WGA1, WBC1, WC1 = 48, 80, 112        # layer 1: wg1@wa1, wb1+wc1, wc1   (32 rows each)
BU0, BU1 = 144, 152                  # update biases (1 row each, padded to 8)
W32_ROWS = 160

# w16 packed buffer row offsets (all 8-aligned), 16 columns
WBLK1, WBLK2, WF1 = 0, 32, 64        # wblk1.T (32), wblk2.T (32), wf1.T (16)
BNTN, BF1, WF2, BF2 = 80, 88, 96, 104
SEG = 112                            # (T*D1, T) 0/1 segment-sum matrix
W16_ROWS = SEG + T * D1              # 624


# ---------------- Pallas kernel ----------------
def gmn_kernel(adj_ref,     # (1, M2, M2)   block-diag normalized adjacency (chunk)
               feats_ref,   # (1, M2, IN_DIM) stacked [F1 pairs ; F2 pairs]
               avgv_ref,    # (1, 1, PB)    per-pair avg_v row
               mask_ref,    # (M2, M2)      resident cross-graph block-diag mask
               w32_ref,     # (W32_ROWS, 32) packed GCN/update weights
               wntn_ref,    # (D1, T*D1)    NTN bilinear weights, lane-dense
               w16_ref,     # (W16_ROWS, 16) packed tail weights + segment matrix
               out_ref):    # (1, 2, PB) -> rows [score ; pre_ged]
    A = adj_ref[0]                          # (M2, M2)
    F = feats_ref[0]                        # (M2, IN_DIM)
    mask = mask_ref[...]                    # (M2, M2)  0/1

    def layer(F, din, wga_off, wbc_off, wc_off, bu_off, apply_tanh):
        wga = w32_ref[wga_off:wga_off + din, :]      # (din, 32) = wg @ wa
        wbc = w32_ref[wbc_off:wbc_off + din, :]      # (din, 32) = wb + wc
        wc = w32_ref[wc_off:wc_off + din, :]         # (din, 32)
        bu = w32_ref[bu_off:bu_off + 1, :]           # (1, 32)

        # --- chunk-wide cross-graph attention ('dot' similarity) ---
        # S[r, c] = <F[r], F[c]>; only the per-pair cross-graph blocks matter.
        S = lax.dot_general(F, F, (((1,), (1,)), ((), ())),
                            preferred_element_type=jnp.float32)        # (M2, M2)
        Sm = jnp.where(mask > 0.0, S, -1e30)
        m = jnp.max(Sm, axis=1, keepdims=True)                          # per-row max
        e = jnp.exp(Sm - m)                                             # 0 off-block
        inv = 1.0 / jnp.sum(e, axis=1, keepdims=True)                   # exact
        # Row r (graph-1 node): row-softmax @ F2 ; row r (graph-2 node):
        # column-softmax.T @ F1 -- both realized by one stacked matmul.
        att = jnp.dot(e * inv, F, preferred_element_type=jnp.float32)   # (M2, din)

        # GCNConv folded into the update:  conv @ wa == A @ (F @ (wg @ wa))
        conv_wa = jnp.dot(A, jnp.dot(F, wga, preferred_element_type=jnp.float32),
                          preferred_element_type=jnp.float32)           # (M2, 32)
        new = (conv_wa
               + jnp.dot(F, wbc, preferred_element_type=jnp.float32)
               - jnp.dot(att, wc, preferred_element_type=jnp.float32)
               + bu)
        if apply_tanh:
            new = jnp.tanh(new)
        # dropout: eval mode -> identity
        return new

    # layer 0 (tanh), layer 1 (final layer: no tanh)
    F = layer(F, IN_DIM, WGA0, WBC0, WC0, BU0, True)
    F = layer(F, D0, WGA1, WBC1, WC1, BU1, False)

    # readout = 'max': per-graph max (tile-aligned (2*PB, N, D1) reshape, N=8)
    pooled = jnp.max(F.reshape(2 * PB, N, D1), axis=1)   # (2*PB, D1)
    p1 = pooled[:PB]                                     # (PB, D1) graph-1 per pair
    p2 = pooled[PB:]                                     # (PB, D1) graph-2 per pair

    # ---- TensorNetworkModule, MXU-formulated for the whole chunk ----
    # tmp[b, t*D1+i] = sum_j W[t,i,j] * p2[b,j]
    tmp = jnp.dot(p2, wntn_ref[...], preferred_element_type=jnp.float32)   # (PB, T*D1)
    prod = tmp * jnp.tile(p1, (1, T))                                       # (PB, T*D1)
    seg = w16_ref[SEG:SEG + T * D1, :]                                      # (T*D1, T)
    scoring = jnp.dot(prod, seg, preferred_element_type=jnp.float32)        # (PB, T)
    block = (jnp.dot(p1, w16_ref[WBLK1:WBLK1 + D1, :],
                     preferred_element_type=jnp.float32)
             + jnp.dot(p2, w16_ref[WBLK2:WBLK2 + D1, :],
                       preferred_element_type=jnp.float32))                 # (PB, T)
    s = jnp.maximum(scoring + block + w16_ref[BNTN:BNTN + 1, :], 0.0)       # (PB, T)

    # fully_connected_first (tanh) + scoring_layer (sigmoid), lane-dense tail
    h = jnp.tanh(jnp.dot(s, w16_ref[WF1:WF1 + T, :],
                         preferred_element_type=jnp.float32)
                 + w16_ref[BF1:BF1 + 1, :])                                 # (PB, BN)
    logit = lax.dot_general(w16_ref[WF2:WF2 + 1, :], h,
                            (((1,), (1,)), ((), ())),
                            preferred_element_type=jnp.float32) \
        + w16_ref[BF2:BF2 + 1, 0:PB]                                        # (1, PB)
    score = 1.0 / (1.0 + jnp.exp(-logit))                                   # (1, PB)

    # target_mode = 'exp': pre_ged = -log(score) * avg_v
    pre_ged = -jnp.log(score) * avgv_ref[0]                                 # (1, PB)

    out_ref[0] = jnp.concatenate([score, pre_ged], axis=0)                  # (2, PB)


def gmn_forward_pallas(adj_chunks, feats_chunks, avgv_chunks, mask, w32, wntn2d, w16):
    """adj_chunks: (C, M2, M2), feats_chunks: (C, M2, IN_DIM), avgv_chunks: (C, 1, PB)."""
    nchunks = adj_chunks.shape[0]
    grid_spec = pltpu.PrefetchScalarGridSpec(
        num_scalar_prefetch=0,
        grid=(nchunks,),
        in_specs=[
            pl.BlockSpec((1, M2, M2), lambda c: (c, 0, 0)),        # adjacency (streamed)
            pl.BlockSpec((1, M2, IN_DIM), lambda c: (c, 0, 0)),    # features  (streamed)
            pl.BlockSpec((1, 1, PB), lambda c: (c, 0, 0)),         # avg_v     (streamed)
            pl.BlockSpec((M2, M2), lambda c: (0, 0)),              # attention mask (resident)
            pl.BlockSpec((W32_ROWS, 32), lambda c: (0, 0)),        # GCN weights (resident)
            pl.BlockSpec((D1, T * D1), lambda c: (0, 0)),          # NTN weights (resident)
            pl.BlockSpec((W16_ROWS, 16), lambda c: (0, 0)),        # tail weights (resident)
        ],
        out_specs=pl.BlockSpec((1, 2, PB), lambda c: (c, 0, 0)),
    )
    out = pl.pallas_call(
        gmn_kernel,
        out_shape=jax.ShapeDtypeStruct((nchunks, 2, PB), jnp.float32),
        grid_spec=grid_spec,
        compiler_params=pltpu.CompilerParams(
            dimension_semantics=("parallel",)),
    )(adj_chunks, feats_chunks, avgv_chunks, mask, w32, wntn2d, w16)
    scores = out[:, 0, :].reshape(-1)
    pre_ged = out[:, 1, :].reshape(-1)
    return scores, pre_ged


# ---------------- pure-JAX reference (original unfused math) ----------------
def gmn_reference_single(A1, A2, F1, F2, p, avg_v):
    def layer(F1, F2, wg, wa, wb, wc, bu, apply_tanh):
        c1 = A1 @ (F1 @ wg)
        c2 = A2 @ (F2 @ wg)
        sim = F1 @ F2.T
        a1 = jax.nn.softmax(sim, axis=1)
        a2 = jax.nn.softmax(sim, axis=0)
        att1 = a1 @ F2
        att2 = a2.T @ F1
        n1 = c1 @ wa + F1 @ wb + (F1 - att1) @ wc + bu
        n2 = c2 @ wa + F2 @ wb + (F2 - att2) @ wc + bu
        if apply_tanh:
            n1, n2 = jnp.tanh(n1), jnp.tanh(n2)
        return n1, n2

    F1, F2 = layer(F1, F2, p['wg0'], p['wa0'], p['wb0'], p['wc0'], p['bu0'], True)
    F1, F2 = layer(F1, F2, p['wg1'], p['wa1'], p['wb1'], p['wc1'], p['bu1'], False)
    p1 = jnp.max(F1, axis=0)
    p2 = jnp.max(F2, axis=0)
    scoring = jnp.einsum('tij,i,j->t', p['wntn'], p1, p2)
    block = p['wblk1'] @ p1 + p['wblk2'] @ p2
    s = jax.nn.relu(scoring + block + p['bntn'])
    h = jnp.tanh(p['wf1'] @ s + p['bf1'])
    logit = p['wf2'] @ h + p['bf2']
    score = jax.nn.sigmoid(logit)
    pre_ged = -jnp.log(score) * avg_v
    return score, pre_ged


# ---------------- glue: params, packing, graph preprocessing ----------------
def init_params(key):
    ks = jax.random.split(key, 18)
    s = 0.2
    p = {}
    p['wg0'] = s * jax.random.normal(ks[0], (IN_DIM, D0), jnp.float32)
    p['wa0'] = s * jax.random.normal(ks[1], (D0, D0), jnp.float32)
    p['wb0'] = s * jax.random.normal(ks[2], (IN_DIM, D0), jnp.float32)
    p['wc0'] = s * jax.random.normal(ks[3], (IN_DIM, D0), jnp.float32)
    p['bu0'] = s * jax.random.normal(ks[4], (D0,), jnp.float32)
    p['wg1'] = s * jax.random.normal(ks[5], (D0, D1), jnp.float32)
    p['wa1'] = s * jax.random.normal(ks[6], (D1, D1), jnp.float32)
    p['wb1'] = s * jax.random.normal(ks[7], (D0, D1), jnp.float32)
    p['wc1'] = s * jax.random.normal(ks[8], (D0, D1), jnp.float32)
    p['bu1'] = s * jax.random.normal(ks[9], (D1,), jnp.float32)
    p['wntn'] = s * jax.random.normal(ks[10], (T, D1, D1), jnp.float32)
    p['wblk1'] = s * jax.random.normal(ks[11], (T, D1), jnp.float32)
    p['wblk2'] = s * jax.random.normal(ks[12], (T, D1), jnp.float32)
    p['bntn'] = s * jax.random.normal(ks[13], (T,), jnp.float32)
    p['wf1'] = s * jax.random.normal(ks[14], (BN, T), jnp.float32)
    p['bf1'] = s * jax.random.normal(ks[15], (BN,), jnp.float32)
    p['wf2'] = s * jax.random.normal(ks[16], (BN,), jnp.float32)
    p['bf2'] = s * jax.random.normal(ks[17], (), jnp.float32)
    return p


def pack_params(p):
    """Fold + pack the many small weights into 3 DMA-friendly resident buffers."""
    w32 = jnp.zeros((W32_ROWS, 32), jnp.float32)
    w32 = w32.at[WGA0:WGA0 + IN_DIM].set(p['wg0'] @ p['wa0'])
    w32 = w32.at[WBC0:WBC0 + IN_DIM].set(p['wb0'] + p['wc0'])
    w32 = w32.at[WC0:WC0 + IN_DIM].set(p['wc0'])
    w32 = w32.at[WGA1:WGA1 + D0].set(p['wg1'] @ p['wa1'])
    w32 = w32.at[WBC1:WBC1 + D0].set(p['wb1'] + p['wc1'])
    w32 = w32.at[WC1:WC1 + D0].set(p['wc1'])
    w32 = w32.at[BU0].set(p['bu0'])
    w32 = w32.at[BU1].set(p['bu1'])

    # NTN bilinear weight, lane-dense: wntn2d[j, t*D1 + i] = W[t, i, j]
    wntn2d = jnp.transpose(p['wntn'], (2, 0, 1)).reshape(D1, T * D1)

    w16 = jnp.zeros((W16_ROWS, 16), jnp.float32)
    w16 = w16.at[WBLK1:WBLK1 + D1].set(p['wblk1'].T)
    w16 = w16.at[WBLK2:WBLK2 + D1].set(p['wblk2'].T)
    w16 = w16.at[WF1:WF1 + T].set(p['wf1'].T)
    w16 = w16.at[BNTN].set(p['bntn'])
    w16 = w16.at[BF1].set(p['bf1'])
    w16 = w16.at[WF2].set(p['wf2'])
    w16 = w16.at[BF2].set(jnp.full((16,), p['bf2'], jnp.float32))
    # 0/1 segment-sum matrix: seg[t*D1 + i, t'] = (t == t')
    seg = np.kron(np.eye(T, dtype=np.float32), np.ones((D1, 1), np.float32))
    w16 = w16.at[SEG:SEG + T * D1].set(jnp.asarray(seg))
    return w32, wntn2d, w16


def pack_pairs(A1n, A2n, feats1, feats2, avg_v):
    """Chunk PB pairs per grid step: stacked features, block-diag adjacency,
    resident cross-graph attention mask, per-pair avg_v rows."""
    B = feats1.shape[0]
    assert B % PB == 0
    nchunks = B // PB

    f1 = np.asarray(feats1).reshape(nchunks, HN, IN_DIM)
    f2 = np.asarray(feats2).reshape(nchunks, HN, IN_DIM)
    feats_chunks = np.concatenate([f1, f2], axis=1)                  # (C, M2, IN_DIM)

    A1 = np.asarray(A1n)
    A2 = np.asarray(A2n)
    adj_chunks = np.zeros((nchunks, M2, M2), np.float32)
    for c in range(nchunks):
        for p in range(PB):
            b = c * PB + p
            adj_chunks[c, p * N:(p + 1) * N, p * N:(p + 1) * N] = A1[b]
            adj_chunks[c, HN + p * N:HN + (p + 1) * N,
                       HN + p * N:HN + (p + 1) * N] = A2[b]

    blk = np.kron(np.eye(PB, dtype=np.float32), np.ones((N, N), np.float32))
    mask = np.zeros((M2, M2), np.float32)
    mask[:HN, HN:] = blk
    mask[HN:, :HN] = blk

    avgv_chunks = np.asarray(avg_v, dtype=np.float32).reshape(nchunks, 1, PB)

    return (jnp.asarray(adj_chunks), jnp.asarray(feats_chunks),
            jnp.asarray(avgv_chunks), jnp.asarray(mask))


def random_norm_adj(key):
    # random symmetric graph, PyG GCNConv normalization: D^-1/2 (A + I) D^-1/2
    u = jax.random.uniform(key, (N, N))
    a = (u < 0.4).astype(jnp.float32)
    a = jnp.triu(a, 1)
    a = a + a.T + jnp.eye(N, dtype=jnp.float32)
    deg = jnp.sum(a, axis=1)
    dinv = 1.0 / jnp.sqrt(deg)
    return a * dinv[:, None] * dinv[None, :]


if __name__ == "__main__":
    key = jax.random.PRNGKey(0)
    kf1, kf2, ka1, ka2, kp = jax.random.split(key, 5)

    B = B_PAIRS
    feats1 = jax.random.normal(kf1, (B, N, IN_DIM), jnp.float32)
    feats2 = jax.random.normal(kf2, (B, N, IN_DIM), jnp.float32)
    A1n = jax.vmap(random_norm_adj)(jax.random.split(ka1, B))
    A2n = jax.vmap(random_norm_adj)(jax.random.split(ka2, B))
    avg_v = jnp.linspace(6.0, 14.0, B).astype(jnp.float32)

    params = init_params(kp)
    w32, wntn2d, w16 = pack_params(params)
    adj_chunks, feats_chunks, avgv_chunks, mask = pack_pairs(
        A1n, A2n, feats1, feats2, avg_v)

    scores, pre_ged = gmn_forward_pallas(
        adj_chunks, feats_chunks, avgv_chunks, mask, w32, wntn2d, w16)
    jax.block_until_ready((scores, pre_ged))

    ref_fn = jax.vmap(lambda a1, a2, f1, f2, av:
                      gmn_reference_single(a1, a2, f1, f2, params, av))
    ref_scores, ref_pre = ref_fn(A1n, A2n, feats1, feats2, avg_v)

    np.testing.assert_allclose(np.asarray(scores), np.asarray(ref_scores),
                               rtol=2e-3, atol=2e-3)
    np.testing.assert_allclose(np.asarray(pre_ged), np.asarray(ref_pre),
                               rtol=2e-3, atol=2e-3)
    print("KERNEL_OK")
</pallas_src>

<mosaic_0001>
module attributes {stable_mosaic.version = 11 : i64} {
  func.func @gmn_kernel(%arg0: i32, %arg1: memref<1x128x128xf32, #tpu.memory_space<vmem>>, %arg2: memref<1x128x16xf32, #tpu.memory_space<vmem>>, %arg3: memref<1x1x8xf32, #tpu.memory_space<vmem>>, %arg4: memref<128x128xf32, #tpu.memory_space<vmem>>, %arg5: memref<160x32xf32, #tpu.memory_space<vmem>>, %arg6: memref<32x512xf32, #tpu.memory_space<vmem>>, %arg7: memref<624x16xf32, #tpu.memory_space<vmem>>, %arg8: memref<1x2x8xf32, #tpu.memory_space<vmem>>) attributes {dimension_semantics = [#tpu.dimension_semantics<parallel>], iteration_bounds = array<i64: 8>, scalar_prefetch = 0 : i64, scratch_operands = 0 : i64, tpu.core_type = #tpu.core_type<tc>, window_params = [{transform_indices = @transform_0, window_bounds = array<i64: 1, 128, 128>}, {transform_indices = @transform_1, window_bounds = array<i64: 1, 128, 16>}, {transform_indices = @transform_2, window_bounds = array<i64: 1, 1, 8>}, {pipeline_mode = #tpu.pipeline_mode<synchronous>, transform_indices = @transform_3, window_bounds = array<i64: 128, 128>}, {pipeline_mode = #tpu.pipeline_mode<synchronous>, transform_indices = @transform_4, window_bounds = array<i64: 160, 32>}, {pipeline_mode = #tpu.pipeline_mode<synchronous>, transform_indices = @transform_5, window_bounds = array<i64: 32, 512>}, {pipeline_mode = #tpu.pipeline_mode<synchronous>, transform_indices = @transform_6, window_bounds = array<i64: 624, 16>}, {transform_indices = @transform_7, window_bounds = array<i64: 1, 2, 8>}]} {
    %c0 = arith.constant 0 : index
    %c0_0 = arith.constant 0 : index
    %c0_1 = arith.constant 0 : index
    %0 = vector.load %arg1[%c0, %c0_0, %c0_1] : memref<1x128x128xf32, #tpu.memory_space<vmem>>, vector<1x128x128xf32>
    %1 = vector.shape_cast %0 : vector<1x128x128xf32> to vector<128x128xf32>
    %c0_2 = arith.constant 0 : index
    %c0_3 = arith.constant 0 : index
    %c0_4 = arith.constant 0 : index
    %2 = vector.load %arg2[%c0_2, %c0_3, %c0_4] : memref<1x128x16xf32, #tpu.memory_space<vmem>>, vector<1x128x16xf32>
    %3 = vector.shape_cast %2 : vector<1x128x16xf32> to vector<128x16xf32>
    %c0_5 = arith.constant 0 : index
    %c0_6 = arith.constant 0 : index
    %4 = vector.load %arg4[%c0_5, %c0_6] : memref<128x128xf32, #tpu.memory_space<vmem>>, vector<128x128xf32>
    %c0_7 = arith.constant 0 : index
    %c0_8 = arith.constant 0 : index
    %5 = vector.load %arg5[%c0_7, %c0_8] : memref<160x32xf32, #tpu.memory_space<vmem>>, vector<16x32xf32>
    %c16 = arith.constant 16 : index
    %c0_9 = arith.constant 0 : index
    %6 = vector.load %arg5[%c16, %c0_9] : memref<160x32xf32, #tpu.memory_space<vmem>>, vector<16x32xf32>
    %c32 = arith.constant 32 : index
    %c0_10 = arith.constant 0 : index
    %7 = vector.load %arg5[%c32, %c0_10] : memref<160x32xf32, #tpu.memory_space<vmem>>, vector<16x32xf32>
    %c144 = arith.constant 144 : index
    %c0_11 = arith.constant 0 : index
    %8 = vector.load %arg5[%c144, %c0_11] : memref<160x32xf32, #tpu.memory_space<vmem>>, vector<1x32xf32>
    %cst = arith.constant dense<0.000000e+00> : vector<128x128xf32>
    %9 = tpu.matmul %3, %3, %cst {dimension_numbers = #tpu.dot_dimension_numbers<[1], [1], [0], [0], [0, 0, 1, 0], [], []>, precision = #tpu.contract_precision<fp32>} : vector<128x16xf32>, vector<128x16xf32>, vector<128x128xf32> -> vector<128x128xf32>
    %cst_12 = arith.constant 0.000000e+00 : f32
    %10 = vector.broadcast %cst_12 : f32 to vector<128x128xf32>
    %11 = arith.cmpf ogt, %4, %10 : vector<128x128xf32>
    %cst_13 = arith.constant -1.000000e+30 : f32
    %12 = vector.broadcast %cst_13 : f32 to vector<128x128xf32>
    %13 = arith.select %11, %9, %12 : vector<128x128xi1>, vector<128x128xf32>
    %cst_14 = arith.constant dense<0xFF800000> : vector<128xf32>
    %14 = vector.multi_reduction <maximumf>, %13, %cst_14 [1] : vector<128x128xf32> to vector<128xf32>
    %15 = vector.shape_cast %14 : vector<128xf32> to vector<128x1xf32>
    %16 = vector.broadcast %15 : vector<128x1xf32> to vector<128x128xf32>
    %17 = arith.subf %13, %16 : vector<128x128xf32>
    %18 = math.exp %17 : vector<128x128xf32>
    %cst_15 = arith.constant dense<0.000000e+00> : vector<128xf32>
    %19 = vector.multi_reduction <add>, %18, %cst_15 [1] : vector<128x128xf32> to vector<128xf32>
    %20 = vector.shape_cast %19 : vector<128xf32> to vector<128x1xf32>
    %cst_16 = arith.constant 1.000000e+00 : f32
    %21 = vector.broadcast %cst_16 : f32 to vector<128x1xf32>
    %22 = arith.divf %21, %20 : vector<128x1xf32>
    %23 = vector.broadcast %22 : vector<128x1xf32> to vector<128x128xf32>
    %24 = arith.mulf %18, %23 : vector<128x128xf32>
    %cst_17 = arith.constant dense<0.000000e+00> : vector<128x16xf32>
    %25 = tpu.matmul %24, %3, %cst_17 {dimension_numbers = #tpu.dot_dimension_numbers<[1], [0], [0], [1], [0, 0, 1, 1], [], []>, precision = #tpu.contract_precision<fp32>} : vector<128x128xf32>, vector<128x16xf32>, vector<128x16xf32> -> vector<128x16xf32>
    %cst_18 = arith.constant dense<0.000000e+00> : vector<128x32xf32>
    %26 = tpu.matmul %3, %5, %cst_18 {dimension_numbers = #tpu.dot_dimension_numbers<[1], [0], [0], [1], [0, 0, 1, 1], [], []>, precision = #tpu.contract_precision<fp32>} : vector<128x16xf32>, vector<16x32xf32>, vector<128x32xf32> -> vector<128x32xf32>
    %cst_19 = arith.constant dense<0.000000e+00> : vector<128x32xf32>
    %27 = tpu.matmul %1, %26, %cst_19 {dimension_numbers = #tpu.dot_dimension_numbers<[1], [0], [0], [1], [0, 0, 1, 1], [], []>, precision = #tpu.contract_precision<fp32>} : vector<128x128xf32>, vector<128x32xf32>, vector<128x32xf32> -> vector<128x32xf32>
    %cst_20 = arith.constant dense<0.000000e+00> : vector<128x32xf32>
    %28 = tpu.matmul %3, %6, %cst_20 {dimension_numbers = #tpu.dot_dimension_numbers<[1], [0], [0], [1], [0, 0, 1, 1], [], []>, precision = #tpu.contract_precision<fp32>} : vector<128x16xf32>, vector<16x32xf32>, vector<128x32xf32> -> vector<128x32xf32>
    %29 = arith.addf %27, %28 : vector<128x32xf32>
    %cst_21 = arith.constant dense<0.000000e+00> : vector<128x32xf32>
    %30 = tpu.matmul %25, %7, %cst_21 {dimension_numbers = #tpu.dot_dimension_numbers<[1], [0], [0], [1], [0, 0, 1, 1], [], []>, precision = #tpu.contract_precision<fp32>} : vector<128x16xf32>, vector<16x32xf32>, vector<128x32xf32> -> vector<128x32xf32>
    %31 = arith.subf %29, %30 : vector<128x32xf32>
    %32 = vector.broadcast %8 : vector<1x32xf32> to vector<128x32xf32>
    %33 = arith.addf %31, %32 : vector<128x32xf32>
    %34 = math.tanh %33 : vector<128x32xf32>
    %c48 = arith.constant 48 : index
    %c0_22 = arith.constant 0 : index
    %35 = vector.load %arg5[%c48, %c0_22] : memref<160x32xf32, #tpu.memory_space<vmem>>, vector<32x32xf32>
    %c80 = arith.constant 80 : index
    %c0_23 = arith.constant 0 : index
    %36 = vector.load %arg5[%c80, %c0_23] : memref<160x32xf32, #tpu.memory_space<vmem>>, vector<32x32xf32>
    %c112 = arith.constant 112 : index
    %c0_24 = arith.constant 0 : index
    %37 = vector.load %arg5[%c112, %c0_24] : memref<160x32xf32, #tpu.memory_space<vmem>>, vector<32x32xf32>
    %c152 = arith.constant 152 : index
    %c0_25 = arith.constant 0 : index
    %38 = vector.load %arg5[%c152, %c0_25] : memref<160x32xf32, #tpu.memory_space<vmem>>, vector<1x32xf32>
    %cst_26 = arith.constant dense<0.000000e+00> : vector<128x128xf32>
    %39 = tpu.matmul %34, %34, %cst_26 {dimension_numbers = #tpu.dot_dimension_numbers<[1], [1], [0], [0], [0, 0, 1, 0], [], []>, precision = #tpu.contract_precision<fp32>} : vector<128x32xf32>, vector<128x32xf32>, vector<128x128xf32> -> vector<128x128xf32>
    %cst_27 = arith.constant 0.000000e+00 : f32
    %40 = vector.broadcast %cst_27 : f32 to vector<128x128xf32>
    %41 = arith.cmpf ogt, %4, %40 : vector<128x128xf32>
    %cst_28 = arith.constant -1.000000e+30 : f32
    %42 = vector.broadcast %cst_28 : f32 to vector<128x128xf32>
    %43 = arith.select %41, %39, %42 : vector<128x128xi1>, vector<128x128xf32>
    %cst_29 = arith.constant dense<0xFF800000> : vector<128xf32>
    %44 = vector.multi_reduction <maximumf>, %43, %cst_29 [1] : vector<128x128xf32> to vector<128xf32>
    %45 = vector.shape_cast %44 : vector<128xf32> to vector<128x1xf32>
    %46 = vector.broadcast %45 : vector<128x1xf32> to vector<128x128xf32>
    %47 = arith.subf %43, %46 : vector<128x128xf32>
    %48 = math.exp %47 : vector<128x128xf32>
    %cst_30 = arith.constant dense<0.000000e+00> : vector<128xf32>
    %49 = vector.multi_reduction <add>, %48, %cst_30 [1] : vector<128x128xf32> to vector<128xf32>
    %50 = vector.shape_cast %49 : vector<128xf32> to vector<128x1xf32>
    %cst_31 = arith.constant 1.000000e+00 : f32
    %51 = vector.broadcast %cst_31 : f32 to vector<128x1xf32>
    %52 = arith.divf %51, %50 : vector<128x1xf32>
    %53 = vector.broadcast %52 : vector<128x1xf32> to vector<128x128xf32>
    %54 = arith.mulf %48, %53 : vector<128x128xf32>
    %cst_32 = arith.constant dense<0.000000e+00> : vector<128x32xf32>
    %55 = tpu.matmul %54, %34, %cst_32 {dimension_numbers = #tpu.dot_dimension_numbers<[1], [0], [0], [1], [0, 0, 1, 1], [], []>, precision = #tpu.contract_precision<fp32>} : vector<128x128xf32>, vector<128x32xf32>, vector<128x32xf32> -> vector<128x32xf32>
    %cst_33 = arith.constant dense<0.000000e+00> : vector<128x32xf32>
    %56 = tpu.matmul %34, %35, %cst_33 {dimension_numbers = #tpu.dot_dimension_numbers<[1], [0], [0], [1], [0, 0, 1, 1], [], []>, precision = #tpu.contract_precision<fp32>} : vector<128x32xf32>, vector<32x32xf32>, vector<128x32xf32> -> vector<128x32xf32>
    %cst_34 = arith.constant dense<0.000000e+00> : vector<128x32xf32>
    %57 = tpu.matmul %1, %56, %cst_34 {dimension_numbers = #tpu.dot_dimension_numbers<[1], [0], [0], [1], [0, 0, 1, 1], [], []>, precision = #tpu.contract_precision<fp32>} : vector<128x128xf32>, vector<128x32xf32>, vector<128x32xf32> -> vector<128x32xf32>
    %cst_35 = arith.constant dense<0.000000e+00> : vector<128x32xf32>
    %58 = tpu.matmul %34, %36, %cst_35 {dimension_numbers = #tpu.dot_dimension_numbers<[1], [0], [0], [1], [0, 0, 1, 1], [], []>, precision = #tpu.contract_precision<fp32>} : vector<128x32xf32>, vector<32x32xf32>, vector<128x32xf32> -> vector<128x32xf32>
    %59 = arith.addf %57, %58 : vector<128x32xf32>
    %cst_36 = arith.constant dense<0.000000e+00> : vector<128x32xf32>
    %60 = tpu.matmul %55, %37, %cst_36 {dimension_numbers = #tpu.dot_dimension_numbers<[1], [0], [0], [1], [0, 0, 1, 1], [], []>, precision = #tpu.contract_precision<fp32>} : vector<128x32xf32>, vector<32x32xf32>, vector<128x32xf32> -> vector<128x32xf32>
    %61 = arith.subf %59, %60 : vector<128x32xf32>
    %62 = vector.broadcast %38 : vector<1x32xf32> to vector<128x32xf32>
    %63 = arith.addf %61, %62 : vector<128x32xf32>
    %64 = vector.shape_cast %63 : vector<128x32xf32> to vector<16x8x32xf32>
    %cst_37 = arith.constant dense<0xFF800000> : vector<16x32xf32>
    %65 = vector.multi_reduction <maximumf>, %64, %cst_37 [1] : vector<16x8x32xf32> to vector<16x32xf32>
    %66 = vector.extract_strided_slice %65 {offsets = [0, 0], sizes = [8, 32], strides = [1, 1]} : vector<16x32xf32> to vector<8x32xf32>
    %67 = vector.extract_strided_slice %65 {offsets = [8, 0], sizes = [8, 32], strides = [1, 1]} : vector<16x32xf32> to vector<8x32xf32>
    %c0_38 = arith.constant 0 : index
    %c0_39 = arith.constant 0 : index
    %68 = vector.load %arg6[%c0_38, %c0_39] : memref<32x512xf32, #tpu.memory_space<vmem>>, vector<32x512xf32>
    %cst_40 = arith.constant dense<0.000000e+00> : vector<8x512xf32>
    %69 = tpu.matmul %67, %68, %cst_40 {dimension_numbers = #tpu.dot_dimension_numbers<[1], [0], [0], [1], [0, 0, 1, 1], [], []>, precision = #tpu.contract_precision<fp32>} : vector<8x32xf32>, vector<32x512xf32>, vector<8x512xf32> -> vector<8x512xf32>
    %70 = tpu.concatenate %66, %66, %66, %66, %66, %66, %66, %66, %66, %66, %66, %66, %66, %66, %66, %66 in 1 : vector<8x32xf32>, vector<8x32xf32>, vector<8x32xf32>, vector<8x32xf32>, vector<8x32xf32>, vector<8x32xf32>, vector<8x32xf32>, vector<8x32xf32>, vector<8x32xf32>, vector<8x32xf32>, vector<8x32xf32>, vector<8x32xf32>, vector<8x32xf32>, vector<8x32xf32>, vector<8x32xf32>, vector<8x32xf32> -> vector<8x512xf32>
    %71 = arith.mulf %69, %70 : vector<8x512xf32>
    %c112_41 = arith.constant 112 : index
    %c0_42 = arith.constant 0 : index
    %72 = vector.load %arg7[%c112_41, %c0_42] : memref<624x16xf32, #tpu.memory_space<vmem>>, vector<512x16xf32>
    %cst_43 = arith.constant dense<0.000000e+00> : vector<8x16xf32>
    %73 = tpu.matmul %71, %72, %cst_43 {dimension_numbers = #tpu.dot_dimension_numbers<[1], [0], [0], [1], [0, 0, 1, 1], [], []>, precision = #tpu.contract_precision<fp32>} : vector<8x512xf32>, vector<512x16xf32>, vector<8x16xf32> -> vector<8x16xf32>
    %c0_44 = arith.constant 0 : index
    %c0_45 = arith.constant 0 : index
    %74 = vector.load %arg7[%c0_44, %c0_45] : memref<624x16xf32, #tpu.memory_space<vmem>>, vector<32x16xf32>
    %cst_46 = arith.constant dense<0.000000e+00> : vector<8x16xf32>
    %75 = tpu.matmul %66, %74, %cst_46 {dimension_numbers = #tpu.dot_dimension_numbers<[1], [0], [0], [1], [0, 0, 1, 1], [], []>, precision = #tpu.contract_precision<fp32>} : vector<8x32xf32>, vector<32x16xf32>, vector<8x16xf32> -> vector<8x16xf32>
    %c32_47 = arith.constant 32 : index
    %c0_48 = arith.constant 0 : index
    %76 = vector.load %arg7[%c32_47, %c0_48] : memref<624x16xf32, #tpu.memory_space<vmem>>, vector<32x16xf32>
    %cst_49 = arith.constant dense<0.000000e+00> : vector<8x16xf32>
    %77 = tpu.matmul %67, %76, %cst_49 {dimension_numbers = #tpu.dot_dimension_numbers<[1], [0], [0], [1], [0, 0, 1, 1], [], []>, precision = #tpu.contract_precision<fp32>} : vector<8x32xf32>, vector<32x16xf32>, vector<8x16xf32> -> vector<8x16xf32>
    %78 = arith.addf %75, %77 : vector<8x16xf32>
    %79 = arith.addf %73, %78 : vector<8x16xf32>
    %c80_50 = arith.constant 80 : index
    %c0_51 = arith.constant 0 : index
    %80 = vector.load %arg7[%c80_50, %c0_51] : memref<624x16xf32, #tpu.memory_space<vmem>>, vector<1x16xf32>
    %81 = vector.broadcast %80 : vector<1x16xf32> to vector<8x16xf32>
    %82 = arith.addf %79, %81 : vector<8x16xf32>
    %cst_52 = arith.constant 0.000000e+00 : f32
    %83 = vector.broadcast %cst_52 : f32 to vector<8x16xf32>
    %84 = arith.maximumf %82, %83 : vector<8x16xf32>
    %c64 = arith.constant 64 : index
    %c0_53 = arith.constant 0 : index
    %85 = vector.load %arg7[%c64, %c0_53] : memref<624x16xf32, #tpu.memory_space<vmem>>, vector<16x16xf32>
    %cst_54 = arith.constant dense<0.000000e+00> : vector<8x16xf32>
    %86 = tpu.matmul %84, %85, %cst_54 {dimension_numbers = #tpu.dot_dimension_numbers<[1], [0], [0], [1], [0, 0, 1, 1], [], []>, precision = #tpu.contract_precision<fp32>} : vector<8x16xf32>, vector<16x16xf32>, vector<8x16xf32> -> vector<8x16xf32>
    %c88 = arith.constant 88 : index
    %c0_55 = arith.constant 0 : index
    %87 = vector.load %arg7[%c88, %c0_55] : memref<624x16xf32, #tpu.memory_space<vmem>>, vector<1x16xf32>
    %88 = vector.broadcast %87 : vector<1x16xf32> to vector<8x16xf32>
    %89 = arith.addf %86, %88 : vector<8x16xf32>
    %90 = math.tanh %89 : vector<8x16xf32>
    %c96 = arith.constant 96 : index
    %c0_56 = arith.constant 0 : index
    %91 = vector.load %arg7[%c96, %c0_56] : memref<624x16xf32, #tpu.memory_space<vmem>>, vector<1x16xf32>
    %cst_57 = arith.constant dense<0.000000e+00> : vector<1x8xf32>
    %92 = tpu.matmul %91, %90, %cst_57 {dimension_numbers = #tpu.dot_dimension_numbers<[1], [1], [0], [0], [0, 0, 1, 0], [], []>, precision = #tpu.contract_precision<fp32>} : vector<1x16xf32>, vector<8x16xf32>, vector<1x8xf32> -> vector<1x8xf32>
    %c104 = arith.constant 104 : index
    %c0_58 = arith.constant 0 : index
    %93 = vector.load %arg7[%c104, %c0_58] : memref<624x16xf32, #tpu.memory_space<vmem>>, vector<1x8xf32>
    %94 = arith.addf %92, %93 : vector<1x8xf32>
    %cst_59 = arith.constant 0.000000e+00 : f32
    %95 = vector.broadcast %cst_59 : f32 to vector<1x8xf32>
    %96 = arith.subf %95, %94 : vector<1x8xf32>
    %97 = math.exp %96 : vector<1x8xf32>
    %cst_60 = arith.constant 1.000000e+00 : f32
    %98 = vector.broadcast %cst_60 : f32 to vector<1x8xf32>
    %99 = arith.addf %98, %97 : vector<1x8xf32>
    %cst_61 = arith.constant 1.000000e+00 : f32
    %100 = vector.broadcast %cst_61 : f32 to vector<1x8xf32>
    %101 = arith.divf %100, %99 : vector<1x8xf32>
    %102 = math.log %101 : vector<1x8xf32>
    %cst_62 = arith.constant 0.000000e+00 : f32
    %103 = vector.broadcast %cst_62 : f32 to vector<1x8xf32>
    %104 = arith.subf %103, %102 : vector<1x8xf32>
    %c0_63 = arith.constant 0 : index
    %c0_64 = arith.constant 0 : index
    %c0_65 = arith.constant 0 : index
    %105 = vector.load %arg3[%c0_63, %c0_64, %c0_65] : memref<1x1x8xf32, #tpu.memory_space<vmem>>, vector<1x1x8xf32>
    %106 = vector.shape_cast %105 : vector<1x1x8xf32> to vector<1x8xf32>
    %107 = arith.mulf %104, %106 : vector<1x8xf32>
    %108 = tpu.concatenate %101, %107 in 0 : vector<1x8xf32>, vector<1x8xf32> -> vector<2x8xf32>
    %c0_66 = arith.constant 0 : index
    %c0_67 = arith.constant 0 : index
    %c0_68 = arith.constant 0 : index
    %109 = vector.load %arg8[%c0_66, %c0_67, %c0_68] : memref<1x2x8xf32, #tpu.memory_space<vmem>>, vector<1x2x8xf32>
    %110 = vector.shape_cast %109 : vector<1x2x8xf32> to vector<2x8xf32>
    %111 = vector.shape_cast %108 : vector<2x8xf32> to vector<1x2x8xf32>
    tpu.vector_store %arg8[%c0_66, %c0_67, %c0_68], %111 {strides = array<i32>} : memref<1x2x8xf32, #tpu.memory_space<vmem>>, vector<1x2x8xf32>,
    return
  }
  func.func @transform_0(%arg0: i32) -> (i32, i32, i32) {
    %c0_i32 = arith.constant 0 : i32
    %c0_i32_0 = arith.constant 0 : i32
    %c0_i32_1 = arith.constant 0 : i32
    return %arg0, %c0_i32, %c0_i32_0 : i32, i32, i32
  }
  func.func @transform_1(%arg0: i32) -> (i32, i32, i32) {
    %c0_i32 = arith.constant 0 : i32
    %c0_i32_0 = arith.constant 0 : i32
    %c0_i32_1 = arith.constant 0 : i32
    return %arg0, %c0_i32, %c0_i32_0 : i32, i32, i32
  }
  func.func @transform_2(%arg0: i32) -> (i32, i32, i32) {
    %c0_i32 = arith.constant 0 : i32
    %c0_i32_0 = arith.constant 0 : i32
    %c0_i32_1 = arith.constant 0 : i32
    return %arg0, %c0_i32, %c0_i32_0 : i32, i32, i32
  }
  func.func @transform_3(%arg0: i32) -> (i32, i32) {
    %c0_i32 = arith.constant 0 : i32
    %c0_i32_0 = arith.constant 0 : i32
    %c0_i32_1 = arith.constant 0 : i32
    return %c0_i32, %c0_i32_0 : i32, i32
  }
  func.func @transform_4(%arg0: i32) -> (i32, i32) {
    %c0_i32 = arith.constant 0 : i32
    %c0_i32_0 = arith.constant 0 : i32
    %c0_i32_1 = arith.constant 0 : i32
    return %c0_i32, %c0_i32_0 : i32, i32
  }
  func.func @transform_5(%arg0: i32) -> (i32, i32) {
    %c0_i32 = arith.constant 0 : i32
    %c0_i32_0 = arith.constant 0 : i32
    %c0_i32_1 = arith.constant 0 : i32
    return %c0_i32, %c0_i32_0 : i32, i32
  }
  func.func @transform_6(%arg0: i32) -> (i32, i32) {
    %c0_i32 = arith.constant 0 : i32
    %c0_i32_0 = arith.constant 0 : i32
    %c0_i32_1 = arith.constant 0 : i32
    return %c0_i32, %c0_i32_0 : i32, i32
  }
  func.func @transform_7(%arg0: i32) -> (i32, i32, i32) {
    %c0_i32 = arith.constant 0 : i32
    %c0_i32_0 = arith.constant 0 : i32
    %c0_i32_1 = arith.constant 0 : i32
    return %arg0, %c0_i32, %c0_i32_0 : i32, i32, i32
  }
}

</mosaic_0001>

<bundles_post_ra>
// kernel: tpu_custom_call.1
= control target key start
LH: loop header
LB: loop body
LE: loop exit
PB: predicated region body
PF: predicated region fallthrough
CT: control target
= control target key end

     0   :  { %12 = vsyncpa [#allocation3], 0  ;;  %s36467_s0 = inlined_call_operand.vmem [shape: f32[8,128,128], index: 0, kind: input, shape index: {}]   ;;  %s36468_s1 = inlined_call_operand.vmem [shape: f32[8,128,16], index: 1, kind: input, shape index: {}]   ;;  %s36469_s2 = inlined_call_operand.vmem [shape: f32[8,1,8], index: 2, kind: input, shape index: {}]   ;;  %s36470_s3 = inlined_call_operand.vmem [shape: f32[128,128], index: 3, kind: input, shape index: {}]   ;;  %s36471_s4 = inlined_call_operand.vmem [shape: f32[160,32], index: 4, kind: input, shape index: {}]   ;;  %s36472_s5 = inlined_call_operand.vmem [shape: f32[32,512], index: 5, kind: input, shape index: {}]   ;;  %s36473_s6 = inlined_call_operand.vmem [shape: f32[624,16], index: 6, kind: input, shape index: {}]   ;;  %s36474_s7 = inlined_call_operand.hbm [shape: f32[8,2,8], index: 7, kind: output, shape index: {}]  }
   0x1   :  { %14 = vsyncpa [#allocation3 + $0x1], 0  ;;  %s29507_s24 = smov 0   ;;  %s29509_s25 = smov 0  }
   0x2   :  { %s29511_s26 = smov 0   ;;  %s29513_s27 = smov 0  }
   0x3 LB: > { %s29528_s28 = sadd.s32 4294967295, %s29458_s27   ;;  %s20530_s29 = sadd.s32 4294967294, %s29458_s27   ;;  %s29458_s27 = sphi %s29513_s27, %s38356_s27   ;;  %s29454_s26 = sphi %s29511_s26, %s38355_s26   ;;  %s29450_s25 = sphi %s29509_s25, %s38354_s25   ;;  %s29446_s24 = sphi %s29507_s24, %s38353_s24  }
   0x4   : > { %s29532_s30 = sadd.s32 1, %s29458_s27   ;;  %s189_s8 = sadd.s32 1, %s29454_s26 }
   0x5   : > { %s186_s9 = ssub.s32 %s29458_s27, %s29532_s30  ;;  %p199_p0 = scmp.ne.s32.totalorder %s29454_s26, %s29450_s25 }
   0x6   : > { %p187_p1 = scmp.eq.s32.totalorder %s186_s9, 0  ;;  %p200_p2 = scmp.eq.s32.totalorder %s29528_s28, 7 }
   0x7   : > { %p205_p3 = scmp.ne.s32.totalorder %s29450_s25, %s29446_s24  ;;  %p206_p4 = scmp.eq.s32.totalorder %s20530_s29, 7 }
   0x8   : > { %s29543_s10 = scalar_select %p187_p1, %s29454_s26, %s189_s8  }
   0x9   : > { %p29545_p5 = por %p200_p2, %p199_p0  ;;  %p29549_p6 = por %p206_p4, %p205_p3 }
   0xa   : > { %p20533_p7 = scmp.ge.s32.totalorder %s29458_s27, 1  ;;  %p258_p8 = scmp.lt.s32.totalorder %s29458_s27, 9 }
   0xc   : > { %p259_p9 = pnand %p20533_p7, %p258_p8 }
   0xe   : > { %262 = sbr.rel (%p259_p9) target bundleno = 5164 (0x142c), region = 48 }
  0x15   : > { %p298_p10 = scmp.lt.s32.totalorder %s29528_s28, 7  ;;  %vm36780_vm0 = vcmask 130048   ;;  %s29461_s9 = smov 64  }
  0x16   : > { %s29462_s15 = smov 32   ;;  %s295_s16 = sand.u32 1, %s29450_s25  }
  0x17   : > { %s29557_s13 = scalar_select %p298_p10, %s29528_s28, 7 }
  0x18   : > { %s20544_s21 = sshll.u32 %s29528_s28, 5  ;;  %s29466_s28 = smov [#allocation2]  }
  0x19   : > { %s20547_s14 = sshll.u32 %s29557_s13, 7  ;;  %s310_s20 = scalar_lea.vmem %s36469_s2, %s29557_s13 }
  0x1a   : > { %s29565_s17 = scalar_lea.vmem %s36468_s1, %s20547_s14  ;;  %s31458_s18 = scalar_lea.vmem %s36467_s0, %s20547_s14 }
  0x1b   : > { %v29568_v0 = vld [vmem:[%s29565_s17] sm:$0xff]  ;;  %v29571_v1 = vld [vmem:[%s29565_s17 + $0x8] sm:$0xff]  ;;  %v29574_v2 = vld [vmem:[%s29565_s17 + $0x10] sm:$0xff]  ;;  %s20437_s13 = scalar_lea.sflag [#allocation3], %s295_s16 }
  0x1c   : > { %37201 = vst [vmem:[#allocation5_spill] sm:$0xff] %v29568_v0  ;;  %37202 = vst [vmem:[#allocation6_spill] sm:$0xff] %v29571_v1  ;;  %v368_v3 = vsel %vm36780_vm0, %v29568_v0, 0  ;;  %v29580_v4 = vsel %vm36780_vm0, %v29571_v1, 0  ;;  %v29583_v5 = vld [vmem:[%s29565_s17 + $0x18] sm:$0xff]  ;;  %v29587_v6 = vsel %vm36780_vm0, %v29574_v2, 0 }
  0x1d   : > { %37203 = vst [vmem:[#allocation7_spill] sm:$0xff] %v29574_v2  ;;  %37204 = vst [vmem:[#allocation8_spill] sm:$0xff] %v29583_v5  ;;  %v29589_v7 = vand.u32 4294901760, %v368_v3  ;;  %v29592_v8 = vand.u32 4294901760, %v29580_v4  ;;  %v29596_v9 = vsel %vm36780_vm0, %v29583_v5, 0  ;;  %v29599_v10 = vand.u32 4294901760, %v29587_v6 }
  0x1e   : > { %v29602_v11 = vld [vmem:[%s29565_s17 + $0x20] sm:$0xff]  ;;  %v29605_v12 = vld [vmem:[%s29565_s17 + $0x28] sm:$0xff]  ;;  %v29608_v13 = vand.u32 4294901760, %v29596_v9  ;;  %v29636_v20 = vld [vmem:[%s29565_s17 + $0x30] sm:$0xff] }
  0x1f   : > { %37205 = vst [vmem:[#allocation9_spill] sm:$0xff] %v29589_v7  ;;  %37206 = vst [vmem:[#allocation10_spill] sm:$0xff] %v29592_v8  ;;  %v29612_v14 = vpack.c.bf16 %v29592_v8, %v29589_v7  ;;  %v29620_v16 = vsel %vm36780_vm0, %v29602_v11, 0  ;;  %v29624_v17 = vsel %vm36780_vm0, %v29605_v12, 0  ;;  %v29639_v21 = vld [vmem:[%s29565_s17 + $0x38] sm:$0xff]  ;;  %v29642_v22 = vsub.f32 %v368_v3, %v29589_v7  ;;  %v29672_v31 = vld [vmem:[%s29565_s17 + $0x40] sm:$0xff] }
  0x20   : > { %37207 = vst [vmem:[#allocation11_spill] sm:$0xff] %v29599_v10  ;;  %37208 = vst [vmem:[#allocation12_spill] sm:$0xff] %v29602_v11  ;;  %v29616_v15 = vpack.c.bf16 %v29608_v13, %v29599_v10  ;;  %v29630_v18 = vand.u32 4294901760, %v29620_v16  ;;  %v29633_v19 = vand.u32 4294901760, %v29624_v17  ;;  %v29653_v25 = vsel %vm36780_vm0, %v29636_v20, 0  ;;  %v29675_v32 = vld [vmem:[%s29565_s17 + $0x48] sm:$0xff] }
  0x21   : > { %37209 = vst [vmem:[#allocation13_spill] sm:$0xff] %v29605_v12  ;;  %37210 = vst [vmem:[#allocation14_spill] sm:$0xff] %v29608_v13  ;;  %26196 = vmatprep.subr.bf16.mxu0 %v29612_v14  ;;  %v29649_v24 = vand.u32 4294901760, %v29642_v22  ;;  %v29657_v26 = vsel %vm36780_vm0, %v29639_v21, 0  ;;  %v29664_v28 = vand.u32 4294901760, %v29653_v25  ;;  %v392_v34 = vsel %vm36780_vm0, %v29672_v31, 0 }
  0x22   : > { %26198 = vmatpush3.bf16.xpose.msra.mxu0 %v29612_v14  ;;  %37211 = vst [vmem:[#allocation15_spill] sm:$0xff] %v29630_v18  ;;  %37212 = vst [vmem:[#allocation16_spill] sm:$0xff] %v29633_v19  ;;  %v29646_v23 = vpack.c.bf16 %v29633_v19, %v29630_v18  ;;  %v29667_v29 = vand.u32 4294901760, %v29657_v26  ;;  %v29686_v35 = vsel %vm36780_vm0, %v29675_v32, 0  ;;  %v29690_v36 = vand.u32 4294901760, %v392_v34  ;;  %v29696_v38 = vld [vmem:[%s29565_s17 + $0x50] sm:$0xff] }
  0x23   : > { %26200 = vmatprep.subr.bf16.mxu0 %v29616_v15  ;;  %37213 = vst [vmem:[#allocation17_spill] sm:$0xff] %v29636_v20  ;;  %37214 = vst [vmem:[#allocation18_spill] sm:$0xff] %v29639_v21  ;;  %v499_v27 = vsub.f32 %v29642_v22, %v29649_v24  ;;  %v29693_v37 = vand.u32 4294901760, %v29686_v35  ;;  %v29699_v39 = vld [vmem:[%s29565_s17 + $0x58] sm:$0xff]  ;;  %v29707_v41 = vsel %vm36780_vm0, %v29696_v38, 0  ;;  %v29722_v45 = vld [vmem:[%s29565_s17 + $0x60] sm:$0xff]  ;;  %v29759_v55 = vsub.f32 %v29580_v4, %v29592_v8 }
  0x24   : > { %37215 = vst [vmem:[#allocation19_spill] sm:$0xff] %v29642_v22  ;;  %37216 = vst [vmem:[#allocation20_spill] sm:$0xff] %v29649_v24  ;;  %v29680_v33 = vpack.c.bf16 %v29667_v29, %v29664_v28  ;;  %v29711_v42 = vsel %vm36780_vm0, %v29699_v39, 0  ;;  %v29716_v43 = vand.u32 4294901760, %v29707_v41  ;;  %v29725_v46 = vld [vmem:[%s29565_s17 + $0x68] sm:$0xff]  ;;  %v29733_v48 = vsel %vm36780_vm0, %v29722_v45, 0 }
  0x25   : > { %37217 = vst [vmem:[#allocation21_spill] sm:$0xff] %v29664_v28  ;;  %37218 = vst [vmem:[#allocation22_spill] sm:$0xff] %v29667_v29  ;;  %v29669_v30 = vand.u32 4294901760, %v499_v27  ;;  %v29703_v40 = vpack.c.bf16 %v29693_v37, %v29690_v36  ;;  %v29719_v44 = vand.u32 4294901760, %v29711_v42  ;;  %v29737_v49 = vsel %vm36780_vm0, %v29725_v46, 0  ;;  %v29748_v52 = vld [vmem:[%s29565_s17 + $0x70] sm:$0xff] }
  0x26   : > { %37220 = vst [vmem:[#allocation24_spill] sm:$0xff] %v29672_v31  ;;  %37221 = vst [vmem:[#allocation25_spill] sm:$0xff] %v29675_v32  ;;  %v29742_v50 = vand.u32 4294901760, %v29733_v48  ;;  %v29745_v51 = vand.u32 4294901760, %v29737_v49  ;;  %v29751_v53 = vld [vmem:[%s29565_s17 + $0x78] sm:$0xff]  ;;  %v29763_v56 = vsel %vm36780_vm0, %v29748_v52, 0  ;;  %v29788_v63 = vsub.f32 %v29587_v6, %v29599_v10 }
  0x27   : > { %37219 = vst [vmem:[#allocation23_spill] sm:$0xff] %v29669_v30  ;;  %22927 = vmatprep.mubr.f32.mxu0 %v29669_v30  ;;  %37222 = vst [vmem:[#allocation26_spill] sm:$0xff] %v29690_v36  ;;  %v29729_v47 = vpack.c.bf16 %v29719_v44, %v29716_v43  ;;  %v29767_v57 = vsel %vm36780_vm0, %v29751_v53, 0  ;;  %v29772_v58 = vand.u32 4294901760, %v29763_v56  ;;  %v29778_v60 = vand.u32 4294901760, %v29759_v55 }
  0x28   : > { %37223 = vst [vmem:[#allocation27_spill] sm:$0xff] %v29693_v37  ;;  %37224 = vst [vmem:[#allocation28_spill] sm:$0xff] %v29696_v38  ;;  %v29755_v54 = vpack.c.bf16 %v29745_v51, %v29742_v50  ;;  %v29775_v59 = vand.u32 4294901760, %v29767_v57  ;;  %v29792_v3 = vsub.f32 %v29596_v9, %v29608_v13  ;;  %v29799_v27 = vand.u32 4294901760, %v29788_v63 }
  0x29   : > { %37225 = vst [vmem:[#allocation29_spill] sm:$0xff] %v29699_v39  ;;  %37226 = vst [vmem:[#allocation30_spill] sm:$0xff] %v29716_v43  ;;  %v509_v62 = vsub.f32 %v29759_v55, %v29778_v60  ;;  %v29806_v6 = vsub.f32 %v29620_v16, %v29630_v18  ;;  %v29831_v32 = vsub.f32 %v29653_v25, %v29664_v28 }
  0x2a   : > { %26202 = vmatpush3.bf16.xpose.msra.mxu0 %v29616_v15  ;;  %37227 = vst [vmem:[#allocation31_spill] sm:$0xff] %v29719_v44  ;;  %37228 = vst [vmem:[#allocation32_spill] sm:$0xff] %v29722_v45  ;;  %v29782_v61 = vpack.c.bf16 %v29775_v59, %v29772_v58  ;;  %v29847_v20 = vsub.f32 %v392_v34, %v29690_v36  ;;  %v29860_v11 = vsub.f32 %v29686_v35, %v29693_v37 }
  0x2b   : > { %26204 = vmatprep.subr.bf16.mxu0 %v29646_v23  ;;  %37229 = vst [vmem:[#allocation33_spill] sm:$0xff] %v29725_v46  ;;  %37230 = vst [vmem:[#allocation34_spill] sm:$0xff] %v29742_v50  ;;  %v29796_v4 = vand.u32 4294901760, %v509_v62  ;;  %v29816_v46 = vsub.f32 %v29624_v17, %v29633_v19  ;;  %v29824_v39 = vand.u32 4294901760, %v29806_v6  ;;  %v29835_v17 = vsub.f32 %v29657_v26, %v29667_v29 }
  0x2c   : > { %37231 = vst [vmem:[#allocation35_spill] sm:$0xff] %v29745_v51  ;;  %37232 = vst [vmem:[#allocation36_spill] sm:$0xff] %v29748_v52  ;;  %v519_v52 = vsub.f32 %v29788_v63, %v29799_v27  ;;  %v29844_v21 = vand.u32 4294901760, %v29831_v32  ;;  %v29893_v2 = vsub.f32 %v29733_v48, %v29742_v50  ;;  %v29906_v1 = vsub.f32 %v29737_v49, %v29745_v51 }
  0x2d   : > { %37233 = vst [vmem:[#allocation37_spill] sm:$0xff] %v29751_v53  ;;  %37234 = vst [vmem:[#allocation38_spill] sm:$0xff] %v29759_v55  ;;  %v29802_v53 = vand.u32 4294901760, %v29792_v3  ;;  %v26227_v9 = vpack.c.bf16 %v29796_v4, %v29669_v30  ;;  %v29827_v38 = vand.u32 4294901760, %v29816_v46  ;;  %v29851_v25 = vand.u32 4294901760, %v29835_v17 }
  0x2e   : > { %37235 = vst [vmem:[#allocation39_spill] sm:$0xff] %v29772_v58  ;;  %37236 = vst [vmem:[#allocation40_spill] sm:$0xff] %v29775_v59  ;;  %v29819_v45 = vand.u32 4294901760, %v519_v52  ;;  %v559_v34 = vsub.f32 %v29831_v32, %v29844_v21  ;;  %v29928_v30 = vand.u32 4294901760, %v29906_v1 }
  0x2f   : > { %37237 = vst [vmem:[#allocation41_spill] sm:$0xff] %v29778_v60  ;;  %37238 = vst [vmem:[#allocation42_spill] sm:$0xff] %v29788_v63  ;;  %v529_v62 = vsub.f32 %v29792_v3, %v29802_v53  ;;  %v549_v31 = vsub.f32 %v29816_v46, %v29827_v38 }
  0x30   : > { %37239 = vst [vmem:[#allocation43_spill] sm:$0xff] %v29792_v3  ;;  %37240 = vst [vmem:[#allocation44_spill] sm:$0xff] %v29796_v4  ;;  %v29884_v5 = vand.u32 4294901760, %v559_v34 }
  0x31   : > { %37241 = vst [vmem:[#allocation45_spill] sm:$0xff] %v29799_v27  ;;  %37242 = vst [vmem:[#allocation46_spill] sm:$0xff] %v29802_v53  ;;  %v29821_v16 = vand.u32 4294901760, %v529_v62  ;;  %v539_v62 = vsub.f32 %v29806_v6, %v29824_v39  ;;  %v29856_v12 = vand.u32 4294901760, %v549_v31  ;;  %v569_v31 = vsub.f32 %v29835_v17, %v29851_v25 }
  0x32   : > { %26206 = vmatpush3.bf16.xpose.msra.mxu0 %v29646_v23  ;;  %37243 = vst [vmem:[#allocation47_spill] sm:$0xff] %v29806_v6  ;;  %37244 = vst [vmem:[#allocation48_spill] sm:$0xff] %v29816_v46 }
  0x33   : > { %26208 = vmatprep.subr.bf16.mxu0 %v29680_v33  ;;  %37245 = vst [vmem:[#allocation49_spill] sm:$0xff] %v29819_v45  ;;  %37246 = vst [vmem:[#allocation50_spill] sm:$0xff] %v29821_v16  ;;  %v26231_v52 = vpack.c.bf16 %v29821_v16, %v29819_v45  ;;  %v29854_v26 = vand.u32 4294901760, %v539_v62  ;;  %v29878_v62 = vand.u32 4294901760, %v29860_v11 }
  0x34   : > { %37247 = vst [vmem:[#allocation51_spill] sm:$0xff] %v29824_v39  ;;  %37248 = vst [vmem:[#allocation52_spill] sm:$0xff] %v29827_v38 }
  0x35   : > { %37249 = vst [vmem:[#allocation53_spill] sm:$0xff] %v29831_v32  ;;  %37250 = vst [vmem:[#allocation54_spill] sm:$0xff] %v29835_v17  ;;  %v26235_v35 = vpack.c.bf16 %v29856_v12, %v29854_v26 }
  0x36   : > { %37251 = vst [vmem:[#allocation55_spill] sm:$0xff] %v29844_v21  ;;  %37252 = vst [vmem:[#allocation56_spill] sm:$0xff] %v29847_v20 }
  0x37   : > { %37253 = vst [vmem:[#allocation57_spill] sm:$0xff] %v29851_v25  ;;  %37254 = vst [vmem:[#allocation58_spill] sm:$0xff] %v29854_v26 }
  0x38   : > { %37255 = vst [vmem:[#allocation59_spill] sm:$0xff] %v29856_v12  ;;  %37256 = vst [vmem:[#allocation60_spill] sm:$0xff] %v29860_v11 }
  0x39   : > { %37259 = vst [vmem:[#allocation63_spill] sm:$0xff] %v29878_v62  ;;  %37261 = vst [vmem:[#allocation65_spill] sm:$0xff] %v29884_v5 }
  0x3a   : > { %26210 = vmatpush3.bf16.xpose.msra.mxu0 %v29680_v33  ;;  %37263 = vst [vmem:[#allocation67_spill] sm:$0xff] %v29893_v2  ;;  %37266 = vst [vmem:[#allocation70_spill] sm:$0xff] %v29906_v1 }
  0x3b   : > { %26212 = vmatprep.subr.bf16.mxu0 %v29703_v40  ;;  %37271 = vst [vmem:[#allocation75_spill] sm:$0xff] %v29928_v30 }
  0x42   : > { %26214 = vmatpush3.bf16.xpose.msra.mxu0 %v29703_v40 }
  0x43   : > { %26216 = vmatprep.subr.bf16.mxu0 %v29729_v47 }
  0x4a   : > { %26218 = vmatpush3.bf16.xpose.msra.mxu0 %v29729_v47 }
  0x4b   : > { %26220 = vmatprep.subr.bf16.mxu0 %v29755_v54 }
  0x52   : > { %26222 = vmatpush3.bf16.xpose.msra.mxu0 %v29755_v54 }
  0x53   : > { %26224 = vmatprep.subr.bf16.mxu0 %v29782_v61 }
  0x5a   : > { %26226 = vmatpush3.bf16.xpose.msra.mxu0 %v29782_v61 }
  0x5b   : > { %26228 = vmatprep.subr.bf16.mxu0 %v26227_v9 }
  0x61   : > { %22928 = vmatmul.mubr.f32.vlgmr.msra.gmra.mrb[0].mxu0 %v29796_v4  ;;  %v29865_v4 = vand.u32 4294901760, %v29847_v20 }
  0x62   : > { %26230 = vmatpush3.bf16.xpose.msra.mxu0 %v26227_v9  ;;  %22930 = vmatprep.mubr.f32.mxu0 %v29819_v45  ;;  %v29869_v9 = vsub.f32 %v29707_v41, %v29716_v43  ;;  %v29882_v45 = vsub.f32 %v29711_v42, %v29719_v44  ;;  %v589_v42 = vsub.f32 %v29860_v11, %v29878_v62 }
  0x63   : > { %26232 = vmatprep.subr.bf16.mxu0 %v26231_v52  ;;  %37257 = vst [vmem:[#allocation61_spill] sm:$0xff] %v29865_v4  ;;  %v579_v41 = vsub.f32 %v29847_v20, %v29865_v4 }
  0x64   : > { %37258 = vst [vmem:[#allocation62_spill] sm:$0xff] %v29869_v9  ;;  %37260 = vst [vmem:[#allocation64_spill] sm:$0xff] %v29882_v45  ;;  %v29902_v34 = vand.u32 4294901760, %v29882_v45  ;;  %v29923_v49 = vand.u32 4294901760, %v589_v42 }
  0x65   : > { %22931 = vmatmul.mubr.f32.gmra.mrb[2].mxu0 %v29821_v16  ;;  %v29889_v16 = vand.u32 4294901760, %v29869_v9  ;;  %v29908_v48 = vand.u32 4294901760, %v579_v41 }
  0x66   : > { %22933 = vmatprep.mubr.f32.mxu0 %v29854_v26  ;;  %v29896_v26 = vand.u32 4294901760, %v569_v31  ;;  %37265 = vst [vmem:[#allocation69_spill] sm:$0xff] %v29902_v34  ;;  %v29913_v31 = vand.u32 4294901760, %v29893_v2  ;;  %37270 = vst [vmem:[#allocation74_spill] sm:$0xff] %v29923_v49  ;;  %v609_v41 = vsub.f32 %v29882_v45, %v29902_v34 }
  0x67   : > { %37262 = vst [vmem:[#allocation66_spill] sm:$0xff] %v29889_v16  ;;  %37267 = vst [vmem:[#allocation71_spill] sm:$0xff] %v29908_v48 }
  0x68   : > { %37264 = vst [vmem:[#allocation68_spill] sm:$0xff] %v29896_v26  ;;  %37268 = vst [vmem:[#allocation72_spill] sm:$0xff] %v29913_v31  ;;  %v26239_v0 = vpack.c.bf16 %v29896_v26, %v29884_v5  ;;  %v619_v62 = vsub.f32 %v29893_v2, %v29913_v31  ;;  %v29943_v42 = vand.u32 4294901760, %v609_v41 }
  0x69   : > { %22934 = vmatmul.mubr.f32.gmra.mrb[4].mxu0 %v29856_v12  ;;  %v29917_v12 = vsub.f32 %v29763_v56, %v29772_v58 }
  0x6a   : > { %26234 = vmatpush3.bf16.xpose.msra.mxu0 %v26231_v52  ;;  %22936 = vmatprep.mubr.f32.mxu0 %v29884_v5  ;;  %v599_v52 = vsub.f32 %v29869_v9, %v29889_v16  ;;  %v29932_v16 = vsub.f32 %v29767_v57, %v29775_v59  ;;  %37275 = vst [vmem:[#allocation79_spill] sm:$0xff] %v29943_v42  ;;  %v29950_v5 = vand.u32 4294901760, %v619_v62 }
  0x6b   : > { %26236 = vmatprep.subr.bf16.mxu0 %v26235_v35  ;;  %37269 = vst [vmem:[#allocation73_spill] sm:$0xff] %v29917_v12  ;;  %v629_v57 = vsub.f32 %v29906_v1, %v29928_v30 }
  0x6c   : > { %37272 = vst [vmem:[#allocation76_spill] sm:$0xff] %v29932_v16  ;;  %v29934_v56 = vand.u32 4294901760, %v599_v52  ;;  %v29948_v52 = vand.u32 4294901760, %v29932_v16  ;;  %37277 = vst [vmem:[#allocation81_spill] sm:$0xff] %v29950_v5 }
  0x6d   : > { %22937 = vmatmul.mubr.f32.gmra.mrb[6].mxu0 %v29896_v26  ;;  %v29939_v26 = vand.u32 4294901760, %v29917_v12  ;;  %v29958_v41 = vand.u32 4294901760, %v629_v57 }
  0x6e   : > { %22939 = vmatprep.mubr.f32.mxu0 %v29908_v48  ;;  %37273 = vst [vmem:[#allocation77_spill] sm:$0xff] %v29934_v56  ;;  %37276 = vst [vmem:[#allocation80_spill] sm:$0xff] %v29948_v52  ;;  %v649_v30 = vsub.f32 %v29932_v16, %v29948_v52  ;;  %v26247_v57 = vpack.c.bf16 %v29943_v42, %v29934_v56 }
  0x6f   : > { %37274 = vst [vmem:[#allocation78_spill] sm:$0xff] %v29939_v26  ;;  %v639_v31 = vsub.f32 %v29917_v12, %v29939_v26  ;;  %37278 = vst [vmem:[#allocation82_spill] sm:$0xff] %v29958_v41 }
  0x70   : > { %v29966_v62 = vand.u32 4294901760, %v649_v30  ;;  %v26259_v30 = vpack.c.bf16 %v29759_v55, %v29642_v22 }
  0x71   : > { %22940 = vmatmul.mubr.f32.gmra.mrb[8].mxu0 %v29923_v49  ;;  %v29962_v34 = vand.u32 4294901760, %v639_v31  ;;  %v26251_v31 = vpack.c.bf16 %v29958_v41, %v29950_v5 }
  0x72   : > { %26238 = vmatpush3.bf16.xpose.msra.mxu0 %v26235_v35  ;;  %22942 = vmatprep.mubr.f32.mxu0 %v29934_v56  ;;  %v26243_v35 = vpack.c.bf16 %v29923_v49, %v29908_v48  ;;  %37280 = vst [vmem:[#allocation84_spill] sm:$0xff] %v29966_v62  ;;  %v29395_v49 = vld [vmem:[%s29565_s17 + $0x18] sm:$0xff] }
  0x73   : > { %26240 = vmatprep.subr.bf16.mxu0 %v26239_v0  ;;  %37279 = vst [vmem:[#allocation83_spill] sm:$0xff] %v29962_v34 }
  0x75   : > { %22943 = vmatmul.mubr.f32.gmra.mrb[10].mxu0 %v29943_v42  ;;  %v26263_v42 = vpack.c.bf16 %v29792_v3, %v29788_v63 }
  0x76   : > { %22945 = vmatprep.mubr.f32.mxu0 %v29950_v5 }
  0x79   : > { %22946 = vmatmul.mubr.f32.gmra.mrb[12].mxu0 %v29958_v41 }
  0x7a   : > { %26242 = vmatpush3.bf16.xpose.msra.mxu0 %v26239_v0  ;;  %22948 = vmatprep.mubr.f32.mxu0 %v29962_v34  ;;  %v26255_v0 = vpack.c.bf16 %v29966_v62, %v29962_v34 }
  0x7b   : > { %26244 = vmatprep.subr.bf16.mxu0 %v26243_v35 }
  0x7d   : > { %22949 = vmatmul.mubr.f32.gmra.mrb[14].mxu0 %v29966_v62 }
  0x7e   : > { %22983 = vmatprep.mubr.f32.mxu0 %v29589_v7 }
  0x82   : > { %26246 = vmatpush3.bf16.xpose.msra.mxu0 %v26243_v35  ;;  %v26267_v35 = vpack.c.bf16 %v29816_v46, %v29806_v6 }
  0x83   : > { %26248 = vmatprep.subr.bf16.mxu0 %v26247_v57 }
  0x8a   : > { %26250 = vmatpush3.bf16.xpose.msra.mxu0 %v26247_v57  ;;  %v26271_v57 = vpack.c.bf16 %v29835_v17, %v29831_v32 }
  0x8b   : > { %26252 = vmatprep.subr.bf16.mxu0 %v26251_v31 }
  0x92   : > { %26254 = vmatpush3.bf16.xpose.msra.mxu0 %v26251_v31  ;;  %v26279_v31 = vpack.c.bf16 %v29882_v45, %v29869_v9 }
  0x93   : > { %26256 = vmatprep.subr.bf16.mxu0 %v26255_v0 }
  0x9a   : > { %26258 = vmatpush3.bf16.xpose.msra.mxu0 %v26255_v0  ;;  %v26283_v0 = vpack.c.bf16 %v29906_v1, %v29893_v2 }
  0x9b   : > { %26260 = vmatprep.subr.bf16.mxu0 %v26259_v30 }
  0xa1   : > { %22984 = vmatmul.mubr.f32.vlgmr.msra.gmra.mrb[0].mxu0 %v29592_v8 }
  0xa2   : > { %26262 = vmatpush3.bf16.xpose.msra.mxu0 %v26259_v30  ;;  %22986 = vmatprep.mubr.f32.mxu0 %v29599_v10  ;;  %v26287_v30 = vpack.c.bf16 %v29932_v16, %v29917_v12 }
  0xa3   : > { %26264 = vmatprep.subr.bf16.mxu0 %v26263_v42 }
  0xa5   : > { %22987 = vmatmul.mubr.f32.gmra.mrb[2].mxu0 %v29608_v13 }
  0xa6   : > { %22989 = vmatprep.mubr.f32.mxu0 %v29630_v18 }
  0xa9   : > { %22990 = vmatmul.mubr.f32.gmra.mrb[4].mxu0 %v29633_v19 }
  0xaa   : > { %26266 = vmatpush3.bf16.xpose.msra.mxu0 %v26263_v42  ;;  %22992 = vmatprep.mubr.f32.mxu0 %v29664_v28  ;;  %v26275_v42 = vpack.c.bf16 %v29860_v11, %v29847_v20 }
  0xab   : > { %26268 = vmatprep.subr.bf16.mxu0 %v26267_v35 }
  0xad   : > { %22993 = vmatmul.mubr.f32.gmra.mrb[6].mxu0 %v29667_v29 }
  0xae   : > { %22995 = vmatprep.mubr.f32.mxu0 %v29690_v36 }
  0xb1   : > { %22996 = vmatmul.mubr.f32.gmra.mrb[8].mxu0 %v29693_v37 }
  0xb2   : > { %26270 = vmatpush3.bf16.xpose.msra.mxu0 %v26267_v35  ;;  %22998 = vmatprep.mubr.f32.mxu0 %v29716_v43  ;;  %v26323_v35 = vpack.c.bf16 %v29778_v60, %v29649_v24 }
  0xb3   : > { %26272 = vmatprep.subr.bf16.mxu0 %v26271_v57 }
  0xb5   : > { %22999 = vmatmul.mubr.f32.gmra.mrb[10].mxu0 %v29719_v44 }
  0xb6   : > { %23001 = vmatprep.mubr.f32.mxu0 %v29742_v50 }
  0xb9   : > { %23002 = vmatmul.mubr.f32.gmra.mrb[12].mxu0 %v29745_v51 }
  0xba   : > { %26274 = vmatpush3.bf16.xpose.msra.mxu0 %v26271_v57  ;;  %23004 = vmatprep.mubr.f32.mxu0 %v29772_v58  ;;  %v26327_v57 = vpack.c.bf16 %v29802_v53, %v29799_v27 }
  0xbb   : > { %26276 = vmatprep.subr.bf16.mxu0 %v26275_v42 }
  0xbd   : > { %23005 = vmatmul.mubr.f32.gmra.mrb[14].mxu0 %v29775_v59 }
  0xbe   : > { %23039 = vmatprep.mubr.f32.mxu0 %v29642_v22 }
  0xc2   : > { %26278 = vmatpush3.bf16.xpose.msra.mxu0 %v26275_v42  ;;  %v26331_v42 = vpack.c.bf16 %v29827_v38, %v29824_v39 }
  0xc3   : > { %26280 = vmatprep.subr.bf16.mxu0 %v26279_v31 }
  0xca   : > { %26282 = vmatpush3.bf16.xpose.msra.mxu0 %v26279_v31  ;;  %v26335_v31 = vpack.c.bf16 %v29851_v25, %v29844_v21 }
  0xcb   : > { %26284 = vmatprep.subr.bf16.mxu0 %v26283_v0 }
  0xd2   : > { %26286 = vmatpush3.bf16.xpose.msra.mxu0 %v26283_v0  ;;  %v37281_v0 = vld [vmem:[#allocation63_spill] sm:$0xff] }
  0xd3   : > { %26288 = vmatprep.subr.bf16.mxu0 %v26287_v30 }
  0xda   : > { %26290 = vmatpush3.bf16.xpose.msra.mxu0 %v26287_v30  ;;  %v37282_v30 = vld [vmem:[#allocation66_spill] sm:$0xff] }
  0xdb   : > { %26292 = vmatprep.subr.bf16.mxu0 %v29612_v14 }
  0xe1   : > { %23040 = vmatmul.mubr.f32.vlgmr.msra.gmra.mrb[0].mxu0 %v29759_v55 }
  0xe2   : > { %26294 = vmatpush3.bf16.xpose.msra.mxu0 %v29612_v14  ;;  %23042 = vmatprep.mubr.f32.mxu0 %v29788_v63  ;;  %v37316_v63 = vld [vmem:[#allocation33_spill] sm:$0xff] }
  0xe3   : > { %26296 = vmatprep.subr.bf16.mxu0 %v29616_v15  ;;  %v36641_v55 = vand.u32 4294901760, %v37316_v63 }
  0xe5   : > { %23043 = vmatmul.mubr.f32.gmra.mrb[2].mxu0 %v29792_v3 }
  0xe6   : > { %23045 = vmatprep.mubr.f32.mxu0 %v29806_v6 }
  0xe9   : > { %23046 = vmatmul.mubr.f32.gmra.mrb[4].mxu0 %v29816_v46 }
  0xea   : > { %26298 = vmatpush3.bf16.xpose.msra.mxu0 %v29616_v15  ;;  %23048 = vmatprep.mubr.f32.mxu0 %v29831_v32 }
  0xeb   : > { %26300 = vmatprep.subr.bf16.mxu0 %v29646_v23 }
  0xed   : > { %23049 = vmatmul.mubr.f32.gmra.mrb[6].mxu0 %v29835_v17 }
  0xee   : > { %23051 = vmatprep.mubr.f32.mxu0 %v29847_v20 }
  0xf1   : > { %23052 = vmatmul.mubr.f32.gmra.mrb[8].mxu0 %v29860_v11 }
  0xf2   : > { %26302 = vmatpush3.bf16.xpose.msra.mxu0 %v29646_v23  ;;  %23054 = vmatprep.mubr.f32.mxu0 %v29869_v9 }
  0xf3   : > { %26304 = vmatprep.subr.bf16.mxu0 %v29680_v33 }
  0xf5   : > { %23055 = vmatmul.mubr.f32.gmra.mrb[10].mxu0 %v29882_v45 }
  0xf6   : > { %23057 = vmatprep.mubr.f32.mxu0 %v29893_v2 }
  0xf9   : > { %23058 = vmatmul.mubr.f32.gmra.mrb[12].mxu0 %v29906_v1 }
  0xfa   : > { %26306 = vmatpush3.bf16.xpose.msra.mxu0 %v29680_v33  ;;  %23060 = vmatprep.mubr.f32.mxu0 %v29917_v12 }
  0xfb   : > { %26308 = vmatprep.subr.bf16.mxu0 %v29703_v40 }
  0xfd   : > { %23061 = vmatmul.mubr.f32.gmra.mrb[14].mxu0 %v29932_v16  ;;  %v37305_v16 = vld [vmem:[#allocation7_spill] sm:$0xff] }
  0xfe   : > { %23095 = vmatprep.mubr.f32.mxu0 %v29649_v24 }
 0x102   : > { %26310 = vmatpush3.bf16.xpose.msra.mxu0 %v29703_v40 }
 0x103   : > { %26312 = vmatprep.subr.bf16.mxu0 %v29729_v47 }
 0x10a   : > { %26314 = vmatpush3.bf16.xpose.msra.mxu0 %v29729_v47 }
 0x10b   : > { %26316 = vmatprep.subr.bf16.mxu0 %v29755_v54 }
 0x112   : > { %26318 = vmatpush3.bf16.xpose.msra.mxu0 %v29755_v54 }
 0x113   : > { %26320 = vmatprep.subr.bf16.mxu0 %v29782_v61 }
 0x11a   : > { %26322 = vmatpush3.bf16.xpose.msra.mxu0 %v29782_v61 }
 0x11b   : > { %26324 = vmatprep.subr.bf16.mxu0 %v26323_v35 }
 0x121   : > { %23096 = vmatmul.mubr.f32.vlgmr.msra.gmra.mrb[0].mxu0 %v29778_v60  ;;  %v37303_v60 = vld [vmem:[#allocation5_spill] sm:$0xff] }
 0x122   : > { %26326 = vmatpush3.bf16.xpose.msra.mxu0 %v26323_v35  ;;  %23098 = vmatprep.mubr.f32.mxu0 %v29799_v27  ;;  %v37283_v35 = vld [vmem:[#allocation69_spill] sm:$0xff]  ;;  %v30278_v27 = vld [vmem:[%s36470_s3 + $0x78] sm:$0xff] }
 0x123   : > { %26328 = vmatprep.subr.bf16.mxu0 %v26327_v57  ;;  %37302 = vst [vmem:[#allocation100_spill] sm:$0xff] %v30278_v27 }
 0x125   : > { %23099 = vmatmul.mubr.f32.gmra.mrb[2].mxu0 %v29802_v53 }
 0x126   : > { %23101 = vmatprep.mubr.f32.mxu0 %v29824_v39  ;;  %v37285_v39 = vld [vmem:[#allocation75_spill] sm:$0xff] }
 0x129   : > { %23102 = vmatmul.mubr.f32.gmra.mrb[4].mxu0 %v29827_v38  ;;  %v37284_v38 = vld [vmem:[#allocation72_spill] sm:$0xff] }
 0x12a   : > { %26330 = vmatpush3.bf16.xpose.msra.mxu0 %v26327_v57  ;;  %23104 = vmatprep.mubr.f32.mxu0 %v29844_v21  ;;  %v26339_v57 = vpack.c.bf16 %v37281_v0, %v29865_v4  ;;  %v30256_v21 = vld [vmem:[%s36470_s3 + $0x68] sm:$0xff] }
 0x12b   : > { %26332 = vmatprep.subr.bf16.mxu0 %v26331_v42  ;;  %37300 = vst [vmem:[#allocation98_spill] sm:$0xff] %v30256_v21  ;;  %vm1714_vm14 = vcmp.gt.f32.partialorder %v30256_v21, 0.0  ;;  %v36590_v21 = vand.u32 4294901760, %v37303_v60 }
 0x12d   : > { %23105 = vmatmul.mubr.f32.gmra.mrb[6].mxu0 %v29851_v25  ;;  %v26347_v25 = vpack.c.bf16 %v37285_v39, %v37284_v38 }
 0x12e   : > { %23107 = vmatprep.mubr.f32.mxu0 %v29865_v4 }
 0x131   : > { %23108 = vmatmul.mubr.f32.gmra.mrb[8].mxu0 %v37281_v0  ;;  %v30234_v0 = vld [vmem:[%s36470_s3 + $0x58] sm:$0xff] }
 0x132   : > { %26334 = vmatpush3.bf16.xpose.msra.mxu0 %v26331_v42  ;;  %23110 = vmatprep.mubr.f32.mxu0 %v37282_v30  ;;  %v26343_v42 = vpack.c.bf16 %v37283_v35, %v37282_v30  ;;  %37298 = vst [vmem:[#allocation96_spill] sm:$0xff] %v30234_v0  ;;  %vm1712_vm12 = vcmp.gt.f32.partialorder %v30234_v0, 0.0 }
 0x133   : > { %26336 = vmatprep.subr.bf16.mxu0 %v26335_v31 }
 0x135   : > { %23111 = vmatmul.mubr.f32.gmra.mrb[10].mxu0 %v37283_v35  ;;  %v30212_v35 = vld [vmem:[%s36470_s3 + $0x48] sm:$0xff] }
 0x136   : > { %23113 = vmatprep.mubr.f32.mxu0 %v37284_v38  ;;  %37296 = vst [vmem:[#allocation94_spill] sm:$0xff] %v30212_v35  ;;  %vm1710_vm10 = vcmp.gt.f32.partialorder %v30212_v35, 0.0 }
 0x139   : > { %23114 = vmatmul.mubr.f32.gmra.mrb[12].mxu0 %v37285_v39  ;;  %v30190_v39 = vld [vmem:[%s36470_s3 + $0x38] sm:$0xff] }
 0x13a   : > { %26338 = vmatpush3.bf16.xpose.msra.mxu0 %v26335_v31  ;;  %23116 = vmatprep.mubr.f32.mxu0 %v29939_v26  ;;  %v26351_v31 = vpack.c.bf16 %v29948_v52, %v29939_v26  ;;  %37294 = vst [vmem:[#allocation92_spill] sm:$0xff] %v30190_v39  ;;  %vm1708_vm8 = vcmp.gt.f32.partialorder %v30190_v39, 0.0 }
 0x13b   : > { %26340 = vmatprep.subr.bf16.mxu0 %v26339_v57 }
 0x13d   : > { %23117 = vmatmul.mubr.f32.gmra.mrb[14].mxu0 %v29948_v52  ;;  %v30168_v52 = vld [vmem:[%s36470_s3 + $0x28] sm:$0xff] }
 0x13e   : > { %23151 = vmatprep.mubr.f32.mxu0 %v29589_v7  ;;  %37292 = vst [vmem:[#allocation90_spill] sm:$0xff] %v30168_v52  ;;  %vm1706_vm6 = vcmp.gt.f32.partialorder %v30168_v52, 0.0 }
 0x142   : > { %26342 = vmatpush3.bf16.xpose.msra.mxu0 %v26339_v57  ;;  %v30151_v57 = vld [vmem:[%s36470_s3 + $0x20] sm:$0xff] }
 0x143   : > { %26344 = vmatprep.subr.bf16.mxu0 %v26343_v42  ;;  %37291 = vst [vmem:[#allocation89_spill] sm:$0xff] %v30151_v57  ;;  %vm1705_vm5 = vcmp.gt.f32.partialorder %v30151_v57, 0.0 }
 0x14a   : > { %26346 = vmatpush3.bf16.xpose.msra.mxu0 %v26343_v42 }
 0x14b   : > { %26348 = vmatprep.subr.bf16.mxu0 %v26347_v25 }
 0x152   : > { %26350 = vmatpush3.bf16.xpose.msra.mxu0 %v26347_v25  ;;  %v30146_v25 = vld [vmem:[%s36470_s3 + $0x18] sm:$0xff] }
 0x153   : > { %26352 = vmatprep.subr.bf16.mxu0 %v26351_v31  ;;  %37290 = vst [vmem:[#allocation88_spill] sm:$0xff] %v30146_v25  ;;  %vm1704_vm4 = vcmp.gt.f32.partialorder %v30146_v25, 0.0 }
 0x15a   : > { %26354 = vmatpush3.bf16.xpose.msra.mxu0 %v26351_v31 }
 0x15b   : > { %26356 = vmatprep.subr.bf16.mxu0 %v29612_v14 }
 0x161   : > { %23152 = vmatmul.mubr.f32.vlgmr.msra.gmra.mrb[0].mxu0 %v29592_v8 }
 0x162   : > { %26358 = vmatpush3.bf16.xpose.msra.mxu0 %v29612_v14  ;;  %23154 = vmatprep.mubr.f32.mxu0 %v29599_v10  ;;  %v37286_v14 = vld [vmem:[#allocation23_spill] sm:$0xff] }
 0x163   : > { %26360 = vmatprep.subr.bf16.mxu0 %v29616_v15 }
 0x165   : > { %23155 = vmatmul.mubr.f32.gmra.mrb[2].mxu0 %v29608_v13 }
 0x166   : > { %23157 = vmatprep.mubr.f32.mxu0 %v29630_v18 }
 0x169   : > { %23158 = vmatmul.mubr.f32.gmra.mrb[4].mxu0 %v29633_v19 }
 0x16a   : > { %26362 = vmatpush3.bf16.xpose.msra.mxu0 %v29616_v15  ;;  %23160 = vmatprep.mubr.f32.mxu0 %v29664_v28  ;;  %v30123_v15 = vld [vmem:[%s36470_s3] sm:$0xff] }
 0x16b   : > { %26364 = vmatprep.subr.bf16.mxu0 %v29646_v23  ;;  %37287 = vst [vmem:[#allocation85_spill] sm:$0xff] %v30123_v15  ;;  %vm1701_vm1 = vcmp.gt.f32.partialorder %v30123_v15, 0.0 }
 0x16d   : > { %23161 = vmatmul.mubr.f32.gmra.mrb[6].mxu0 %v29667_v29 }
 0x16e   : > { %23163 = vmatprep.mubr.f32.mxu0 %v29690_v36 }
 0x171   : > { %23164 = vmatmul.mubr.f32.gmra.mrb[8].mxu0 %v29693_v37 }
 0x172   : > { %26366 = vmatpush3.bf16.xpose.msra.mxu0 %v29646_v23  ;;  %23166 = vmatprep.mubr.f32.mxu0 %v29716_v43 }
 0x173   : > { %26368 = vmatprep.subr.bf16.mxu0 %v29680_v33 }
 0x175   : > { %23167 = vmatmul.mubr.f32.gmra.mrb[10].mxu0 %v29719_v44 }
 0x176   : > { %23169 = vmatprep.mubr.f32.mxu0 %v29742_v50 }
 0x179   : > { %23170 = vmatmul.mubr.f32.gmra.mrb[12].mxu0 %v29745_v51 }
 0x17a   : > { %26370 = vmatpush3.bf16.xpose.msra.mxu0 %v29680_v33  ;;  %23172 = vmatprep.mubr.f32.mxu0 %v29772_v58  ;;  %v30129_v33 = vld [vmem:[%s36470_s3 + $0x8] sm:$0xff] }
 0x17b   : > { %26372 = vmatprep.subr.bf16.mxu0 %v29703_v40  ;;  %37288 = vst [vmem:[#allocation86_spill] sm:$0xff] %v30129_v33  ;;  %vm1702_vm2 = vcmp.gt.f32.partialorder %v30129_v33, 0.0 }
 0x17d   : > { %23173 = vmatmul.mubr.f32.gmra.mrb[14].mxu0 %v29775_v59 }
 0x17e   : > { %23207 = vmatprep.mubr.f32.mxu0 %v29589_v7 }
 0x182   : > { %26374 = vmatpush3.bf16.xpose.msra.mxu0 %v29703_v40  ;;  %v30134_v40 = vld [vmem:[%s36470_s3 + $0x10] sm:$0xff] }
 0x183   : > { %26376 = vmatprep.subr.bf16.mxu0 %v29729_v47  ;;  %37289 = vst [vmem:[#allocation87_spill] sm:$0xff] %v30134_v40  ;;  %vm1703_vm3 = vcmp.gt.f32.partialorder %v30134_v40, 0.0 }
 0x18a   : > { %26378 = vmatpush3.bf16.xpose.msra.mxu0 %v29729_v47 }
 0x18b   : > { %26380 = vmatprep.subr.bf16.mxu0 %v29755_v54 }
 0x192   : > { %26382 = vmatpush3.bf16.xpose.msra.mxu0 %v29755_v54 }
 0x193   : > { %26384 = vmatprep.subr.bf16.mxu0 %v29782_v61 }
 0x19a   : > { %26386 = vmatpush3.bf16.xpose.msra.mxu0 %v29782_v61 }
 0x1a1   : > { %23208 = vmatmul.mubr.f32.vlgmr.msra.gmra.mrb[0].mxu0 %v29592_v8 }
 0x1a2   : > { %23210 = vmatprep.mubr.f32.mxu0 %v29599_v10 }
 0x1a5   : > { %23211 = vmatmul.mubr.f32.gmra.mrb[2].mxu0 %v29608_v13 }
 0x1a6   : > { %23213 = vmatprep.mubr.f32.mxu0 %v29630_v18 }
 0x1a9   : > { %23214 = vmatmul.mubr.f32.gmra.mrb[4].mxu0 %v29633_v19 }
 0x1aa   : > { %23216 = vmatprep.mubr.f32.mxu0 %v29664_v28 }
 0x1ad   : > { %23217 = vmatmul.mubr.f32.gmra.mrb[6].mxu0 %v29667_v29 }
 0x1ae   : > { %23219 = vmatprep.mubr.f32.mxu0 %v29690_v36  ;;  %v37321_v36 = vld [vmem:[#allocation37_spill] sm:$0xff] }
 0x1af   : > { %v36643_v29 = vand.u32 4294901760, %v37321_v36 }
 0x1b1   : > { %23220 = vmatmul.mubr.f32.gmra.mrb[8].mxu0 %v29693_v37 }
 0x1b2   : > { %23222 = vmatprep.mubr.f32.mxu0 %v29716_v43  ;;  %v37320_v43 = vld [vmem:[#allocation36_spill] sm:$0xff] }
 0x1b3   : > { %v36644_v37 = vand.u32 4294901760, %v37320_v43 }
 0x1b5   : > { %23223 = vmatmul.mubr.f32.gmra.mrb[10].mxu0 %v29719_v44 }
 0x1b6   : > { %23225 = vmatprep.mubr.f32.mxu0 %v29742_v50 }
 0x1b9   : > { %23226 = vmatmul.mubr.f32.gmra.mrb[12].mxu0 %v29745_v51  ;;  %v29381_v51 = vld [vmem:[%s29565_s17 + $0x8] sm:$0xff] }
 0x1ba   : > { %23228 = vmatprep.mubr.f32.mxu0 %v29772_v58 }
 0x1bd   : > { %23229 = vmatmul.mubr.f32.gmra.mrb[14].mxu0 %v29775_v59  ;;  %v37317_v59 = vand.u32 4294901760, %v37303_v60 }
 0x1be   : > { %23739 = vmatprep.mubr.f32.mxu0 %v37286_v14 }
 0x274   : > { %v23209_v23 = vpop.f32.mrb[0].mxu0 }
 0x275   : > { %v1607_v47 = vpop.f32.mrb[1].mxu0  ;;  %v30155_v31 = vsel %vm1702_vm2, %v23209_v23, -1e+30  ;;  %v30173_v23 = vld [vmem:[%s36470_s3 + $0x30] sm:$0xff] }
 0x276   : > { %v30138_v54 = vsel %vm1701_vm1, %v1607_v47, -1e+30  ;;  %37293 = vst [vmem:[#allocation91_spill] sm:$0xff] %v30173_v23  ;;  %vm1707_vm7 = vcmp.gt.f32.partialorder %v30173_v23, 0.0 }
 0x277   : > { %1733 = vmax.xlane.f32.xlu0 %v30138_v54 }
 0x278   : > { %v23212_v61 = vpop.f32.mrb[2].mxu0 }
 0x279   : > { %v1619_v42 = vpop.f32.mrb[3].mxu0  ;;  %v30177_v40 = vsel %vm1704_vm4, %v23212_v61, -1e+30  ;;  %v30195_v61 = vld [vmem:[%s36470_s3 + $0x40] sm:$0xff] }
 0x27a   : > { %v30159_v47 = vsel %vm1703_vm3, %v1619_v42, -1e+30  ;;  %37295 = vst [vmem:[#allocation93_spill] sm:$0xff] %v30195_v61  ;;  %vm1709_vm9 = vcmp.gt.f32.partialorder %v30195_v61, 0.0 }
 0x27b   : > { %1735 = vmax.xlane.f32.xlu0 %v30155_v31  ;;  %1737 = vmax.xlane.f32.xlu1 %v30159_v47 }
 0x27c   : > { %v23215_v15 = vpop.f32.mrb[4].mxu0 }
 0x27d   : > { %v1631_v42 = vpop.f32.mrb[5].mxu0  ;;  %v30199_v57 = vsel %vm1706_vm6, %v23215_v15, -1e+30  ;;  %v30217_v15 = vld [vmem:[%s36470_s3 + $0x50] sm:$0xff] }
 0x27e   : > { %v30181_v33 = vsel %vm1705_vm5, %v1631_v42, -1e+30  ;;  %37297 = vst [vmem:[#allocation95_spill] sm:$0xff] %v30217_v15  ;;  %vm1711_vm11 = vcmp.gt.f32.partialorder %v30217_v15, 0.0 }
 0x27f   : > { %1739 = vmax.xlane.f32.xlu1 %v30177_v40  ;;  %1741 = vmax.xlane.f32.xlu0 %v30181_v33 }
 0x280   : > { %v23218_v26 = vpop.f32.mrb[6].mxu0 }
 0x281   : > { %v1643_v42 = vpop.f32.mrb[7].mxu0  ;;  %v30221_v23 = vsel %vm1708_vm8, %v23218_v26, -1e+30  ;;  %v30239_v26 = vld [vmem:[%s36470_s3 + $0x60] sm:$0xff] }
 0x282   : > { %v30203_v25 = vsel %vm1707_vm7, %v1643_v42, -1e+30  ;;  %37299 = vst [vmem:[#allocation97_spill] sm:$0xff] %v30239_v26  ;;  %vm36570_vm13 = vcmp.gt.f32.partialorder %v30239_v26, 0.0 }
 0x283   : > { %1743 = vmax.xlane.f32.xlu1 %v30199_v57  ;;  %1745 = vmax.xlane.f32.xlu0 %v30203_v25 }
 0x284   : > { %v23221_v38 = vpop.f32.mrb[8].mxu0 }
 0x285   : > { %v1655_v42 = vpop.f32.mrb[9].mxu0  ;;  %v30243_v61 = vsel %vm1710_vm10, %v23221_v38, -1e+30  ;;  %v30261_v38 = vld [vmem:[%s36470_s3 + $0x70] sm:$0xff] }
 0x286   : > { %v30225_v52 = vsel %vm1709_vm9, %v1655_v42, -1e+30  ;;  %37301 = vst [vmem:[#allocation99_spill] sm:$0xff] %v30261_v38  ;;  %vm1715_vm15 = vcmp.gt.f32.partialorder %v30261_v38, 0.0  ;;  %v36594_v38 = vand.u32 4294901760, %v37305_v16 }
 0x287   : > { %1747 = vmax.xlane.f32.xlu1 %v30221_v23  ;;  %1749 = vmax.xlane.f32.xlu0 %v30225_v52 }
 0x288   : > { %v23224_v30 = vpop.f32.mrb[10].mxu0 }
 0x289   : > { %v1667_v42 = vpop.f32.mrb[11].mxu0  ;;  %v30265_v15 = vsel %vm1712_vm12, %v23224_v30, -1e+30 }
 0x28a   : > { %v30247_v39 = vsel %vm1711_vm11, %v1667_v42, -1e+30 }
 0x28b   : > { %1751 = vmax.xlane.f32.xlu1 %v30243_v61  ;;  %1753 = vmax.xlane.f32.xlu0 %v30247_v39 }
 0x28c   : > { %v23227_v4 = vpop.f32.mrb[12].mxu0 }
 0x28d   : > { %v1679_v42 = vpop.f32.mrb[13].mxu0  ;;  %v30282_v26 = vsel %vm1714_vm14, %v23227_v4, -1e+30  ;;  %v37304_v4 = vld [vmem:[#allocation6_spill] sm:$0xff] }
 0x28e   : > { %v30269_v35 = vsel %vm36570_vm13, %v1679_v42, -1e+30  ;;  %vm1716_vm13 = vcmp.gt.f32.partialorder %v30278_v27, 0.0  ;;  %v36589_v24 = vand.u32 4294901760, %v37304_v4  ;;  %v37318_v50 = vand.u32 4294901760, %v37304_v4 }
 0x28f   : > { %1755 = vmax.xlane.f32.xlu1 %v30265_v15  ;;  %1757 = vmax.xlane.f32.xlu0 %v30269_v35 }
 0x290   : > { %v23230_v53 = vpop.f32.mrb[14].mxu0  ;;  %v30304_v1 = vpack.c.bf16 %v36589_v24, %v36590_v21  ;;  %v30436_v44 = vsub.f32 %v29381_v51, %v37318_v50 }
 0x291   : > { %v1691_v30 = vpop.f32.mrb[15].mxu0  ;;  %v30293_v0 = vsel %vm1716_vm13, %v23230_v53, -1e+30 }
 0x292   : > { %v30286_v42 = vsel %vm1715_vm15, %v1691_v30, -1e+30  ;;  %v37306_v30 = vld [vmem:[#allocation8_spill] sm:$0xff]  ;;  %26388 = vmatprep.subr.bf16.mxu1 %v30304_v1  ;;  %37319 = vst [vmem:[#allocation5_spill] sm:$0xff] %v30436_v44 }
 0x293   : > { %1759 = vmax.xlane.f32.xlu1 %v30282_v26  ;;  %1761 = vmax.xlane.f32.xlu0 %v30286_v42  ;;  %v36593_v12 = vand.u32 4294901760, %v37306_v30  ;;  %v37347_v48 = vand.u32 4294901760, %v37306_v30 }
 0x294   : > { %26390 = vmatpush3.bf16.msra.mxu1 %v30304_v1 }
 0x295   : > { %v30310_v53 = vpack.c.bf16 %v36593_v12, %v36594_v38  ;;  %v30617_v14 = vsub.f32 %v29395_v49, %v37347_v48 }
 0x297   : > { %1763 = vmax.xlane.f32.xlu1 %v30293_v0  ;;  %26392 = vmatprep.subr.bf16.mxu1 %v30310_v53 }
 0x298   : > { %26394 = vmatpush3.bf16.msra.mxu1 %v30310_v53 }
 0x304   : > { %v1734_v27 = vpop.xlane.xlu0 %1733 }
 0x305   : > { %v1765_v2 = vsub.f32 %v30138_v54, %v1734_v27 }
 0x307   : > { %v1781_v45 = vmul.f32 1.442695, %v1765_v2 }
 0x308   : > { %v1736_v24 = vpop.xlane.xlu0 %1735  ;;  %v1738_v21 = vpop.xlane.xlu1 %1737 }
 0x309   : > { %29212 = vpow2.f32 %v1781_v45  ;;  %v1766_v9 = vsub.f32 %v30155_v31, %v1736_v24  ;;  %v1767_v12 = vsub.f32 %v30159_v47, %v1738_v21 }
 0x30b   : > { %v1783_v38 = vmul.f32 1.442695, %v1766_v9  ;;  %v1785_v11 = vmul.f32 1.442695, %v1767_v12 }
 0x30c   : > { %v1740_v20 = vpop.xlane.xlu1 %1739  ;;  %v1742_v17 = vpop.xlane.xlu0 %1741 }
 0x30d   : > { %29214 = vpow2.f32 %v1783_v38  ;;  %v1768_v32 = vsub.f32 %v30177_v40, %v1740_v20  ;;  %v1769_v46 = vsub.f32 %v30181_v33, %v1742_v17 }
 0x30e   : > { %29216 = vpow2.f32 %v1785_v11 }
 0x30f   : > { %v1787_v6 = vmul.f32 1.442695, %v1768_v32  ;;  %v1789_v27 = vmul.f32 1.442695, %v1769_v46 }
 0x310   : > { %v1744_v2 = vpop.xlane.xlu1 %1743  ;;  %v1746_v54 = vpop.xlane.xlu0 %1745 }
 0x311   : > { %29218 = vpow2.f32 %v1787_v6  ;;  %v1770_v45 = vsub.f32 %v30199_v57, %v1744_v2  ;;  %v1771_v24 = vsub.f32 %v30203_v25, %v1746_v54 }
 0x312   : > { %29220 = vpow2.f32 %v1789_v27 }
 0x313   : > { %v30323_v21 = vpop.eup %29212  ;;  %v1791_v12 = vmul.f32 1.442695, %v1770_v45  ;;  %v1793_v9 = vmul.f32 1.442695, %v1771_v24 }
 0x314   : > { %v1748_v31 = vpop.xlane.xlu1 %1747  ;;  %v1750_v47 = vpop.xlane.xlu0 %1749  ;;  %1813 = vadd.xlane.f32.xlu0 %v30323_v21 }
 0x315   : > { %29222 = vpow2.f32 %v1791_v12  ;;  %v1772_v11 = vsub.f32 %v30221_v23, %v1748_v31  ;;  %v1773_v20 = vsub.f32 %v30225_v52, %v1750_v47 }
 0x316   : > { %29224 = vpow2.f32 %v1793_v9 }
 0x317   : > { %v30328_v32 = vpop.eup %29214  ;;  %v1795_v46 = vmul.f32 1.442695, %v1772_v11  ;;  %v1797_v6 = vmul.f32 1.442695, %v1773_v20 }
 0x318   : > { %v30330_v17 = vpop.eup %29216  ;;  %v1752_v33 = vpop.xlane.xlu1 %1751  ;;  %1815 = vadd.xlane.f32.xlu1 %v30328_v32 }
 0x319   : > { %v1754_v40 = vpop.xlane.xlu0 %1753  ;;  %29226 = vpow2.f32 %v1795_v46  ;;  %v1774_v25 = vsub.f32 %v30243_v61, %v1752_v33  ;;  %1817 = vadd.xlane.f32.xlu0 %v30330_v17  ;;  %v37308_v46 = vld [vmem:[#allocation13_spill] sm:$0xff] }
 0x31a   : > { %v1775_v57 = vsub.f32 %v30247_v39, %v1754_v40  ;;  %29228 = vpow2.f32 %v1797_v6  ;;  %v36609_v6 = vand.u32 4294901760, %v37308_v46  ;;  %v37324_v19 = vand.u32 4294901760, %v37308_v46 }
 0x31b   : > { %v30336_v52 = vpop.eup %29218  ;;  %v1799_v23 = vmul.f32 1.442695, %v1774_v25 }
 0x31c   : > { %v1801_v38 = vmul.f32 1.442695, %v1775_v57  ;;  %v30338_v27 = vpop.eup %29220  ;;  %v1756_v2 = vpop.xlane.xlu1 %1755  ;;  %1819 = vadd.xlane.f32.xlu1 %v30336_v52 }
 0x31d   : > { %v1758_v54 = vpop.xlane.xlu0 %1757  ;;  %29230 = vpow2.f32 %v1799_v23  ;;  %v1776_v45 = vsub.f32 %v30265_v15, %v1756_v2  ;;  %1821 = vadd.xlane.f32.xlu0 %v30338_v27  ;;  %v37307_v15 = vld [vmem:[#allocation12_spill] sm:$0xff] }
 0x31e   : > { %v1777_v61 = vsub.f32 %v30269_v35, %v1758_v54  ;;  %29232 = vpow2.f32 %v1801_v38  ;;  %v36610_v20 = vand.u32 4294901760, %v37307_v15  ;;  %v37309_v38 = vld [vmem:[#allocation17_spill] sm:$0xff]  ;;  %v37310_v54 = vld [vmem:[#allocation18_spill] sm:$0xff] }
 0x31f   : > { %v30344_v39 = vpop.eup %29222  ;;  %v1803_v24 = vmul.f32 1.442695, %v1776_v45  ;;  %v36608_v2 = vand.u32 4294901760, %v37309_v38  ;;  %v36607_v45 = vand.u32 4294901760, %v37310_v54  ;;  %v37328_v46 = vand.u32 4294901760, %v37310_v54 }
 0x320   : > { %v1805_v12 = vmul.f32 1.442695, %v1777_v61  ;;  %v30346_v9 = vpop.eup %29224  ;;  %v1760_v31 = vpop.xlane.xlu1 %1759  ;;  %1823 = vadd.xlane.f32.xlu1 %v30344_v39 }
 0x321   : > { %v1762_v47 = vpop.xlane.xlu0 %1761  ;;  %29234 = vpow2.f32 %v1803_v24  ;;  %v1778_v11 = vsub.f32 %v30282_v26, %v1760_v31  ;;  %1825 = vadd.xlane.f32.xlu0 %v30346_v9  ;;  %v30363_v26 = vpack.c.bf16 %v36609_v6, %v36610_v20  ;;  %v37311_v31 = vld [vmem:[#allocation24_spill] sm:$0xff] }
 0x322   : > { %v1779_v35 = vsub.f32 %v30286_v42, %v1762_v47  ;;  %29236 = vpow2.f32 %v1805_v12  ;;  %v36612_v47 = vand.u32 4294901760, %v37311_v31 }
 0x323   : > { %v30354_v33 = vpop.eup %29226  ;;  %v1807_v40 = vmul.f32 1.442695, %v1778_v11  ;;  %26396 = vmatprep.subr.bf16.mxu1 %v30363_v26  ;;  %v37312_v11 = vld [vmem:[#allocation25_spill] sm:$0xff] }
 0x324   : > { %v1809_v25 = vmul.f32 1.442695, %v1779_v35  ;;  %v30356_v57 = vpop.eup %29228  ;;  %1827 = vadd.xlane.f32.xlu1 %v30354_v33  ;;  %v1764_v23 = vpop.xlane.xlu1 %1763  ;;  %26398 = vmatpush3.bf16.msra.mxu1 %v30363_v26  ;;  %v36611_v35 = vand.u32 4294901760, %v37312_v11 }
 0x325   : > { %29238 = vpow2.f32 %v1807_v40  ;;  %v1780_v42 = vsub.f32 %v30293_v0, %v1764_v23  ;;  %1829 = vadd.xlane.f32.xlu0 %v30356_v57  ;;  %v30380_v0 = vpack.c.bf16 %v36607_v45, %v36608_v2  ;;  %v37314_v45 = vld [vmem:[#allocation29_spill] sm:$0xff] }
 0x326   : > { %29240 = vpow2.f32 %v1809_v25  ;;  %v30396_v23 = vpack.c.bf16 %v36611_v35, %v36612_v47  ;;  %v36621_v2 = vand.u32 4294901760, %v37314_v45  ;;  %v37315_v47 = vld [vmem:[#allocation32_spill] sm:$0xff] }
 0x327   : > { %v30370_v61 = vpop.eup %29230  ;;  %v1811_v24 = vmul.f32 1.442695, %v1780_v42  ;;  %26400 = vmatprep.subr.bf16.mxu1 %v30380_v0  ;;  %v37313_v42 = vld [vmem:[#allocation28_spill] sm:$0xff]  ;;  %v36642_v3 = vand.u32 4294901760, %v37315_v47 }
 0x328   : > { %v30373_v12 = vpop.eup %29232  ;;  %1831 = vadd.xlane.f32.xlu1 %v30370_v61  ;;  %26402 = vmatpush3.bf16.msra.mxu1 %v30380_v0 }
 0x329   : > { %29242 = vpow2.f32 %v1811_v24  ;;  %1833 = vadd.xlane.f32.xlu0 %v30373_v12  ;;  %26404 = vmatprep.subr.bf16.mxu1 %v30396_v23  ;;  %v36622_v24 = vand.u32 4294901760, %v37313_v42 }
 0x32b   : > { %v30386_v40 = vpop.eup %29234  ;;  %v30412_v35 = vpack.c.bf16 %v36621_v2, %v36622_v24  ;;  %v30426_v2 = vpack.c.bf16 %v36641_v55, %v36642_v3  ;;  %v29380_v24 = vld [vmem:[%s29565_s17] sm:$0xff]  ;;  %v36652_v3 = vand.u32 4294901760, %v30436_v44 }
 0x32c   : > { %v30389_v25 = vpop.eup %29236  ;;  %1835 = vadd.xlane.f32.xlu1 %v30386_v40  ;;  %26406 = vmatpush3.bf16.msra.mxu1 %v30396_v23  ;;  %v30431_v58 = vsub.f32 %v29380_v24, %v37317_v59  ;;  %v30448_v59 = vpack.c.bf16 %v36643_v29, %v36644_v37  ;;  %v29382_v29 = vld [vmem:[%s29565_s17 + $0x20] sm:$0xff]  ;;  %v37322_v37 = vand.u32 4294901760, %v37307_v15  ;;  %v29385_v15 = vld [vmem:[%s29565_s17 + $0x38] sm:$0xff] }
 0x32d   : > { %1837 = vadd.xlane.f32.xlu0 %v30389_v25  ;;  %26408 = vmatprep.subr.bf16.mxu1 %v30412_v35  ;;  %v2145_v51 = vsub.f32 %v30436_v44, %v36652_v3 }
 0x32e   : > { %v36647_v55 = vand.u32 4294901760, %v30431_v58  ;;  %v30463_v28 = vsub.f32 %v29382_v29, %v37322_v37  ;;  %v29384_v37 = vld [vmem:[%s29565_s17 + $0x30] sm:$0xff] }
 0x32f   : > { %v30402_v6 = vpop.eup %29238  ;;  %v2146_v4 = vand.u32 4294901760, %v2145_v51 }
 0x330   : > { %v30405_v20 = vpop.eup %29240  ;;  %1839 = vadd.xlane.f32.xlu1 %v30402_v6  ;;  %26410 = vmatpush3.bf16.msra.mxu1 %v30412_v35  ;;  %v2138_v50 = vsub.f32 %v30431_v58, %v36647_v55  ;;  %37323 = vst [vmem:[#allocation6_spill] sm:$0xff] %v30463_v28  ;;  %v29383_v55 = vld [vmem:[%s29565_s17 + $0x28] sm:$0xff] }
 0x331   : > { %1841 = vadd.xlane.f32.xlu0 %v30405_v20  ;;  %26412 = vmatprep.subr.bf16.mxu1 %v30426_v2  ;;  %v30468_v18 = vsub.f32 %v29383_v55, %v37324_v19  ;;  %v37326_v19 = vand.u32 4294901760, %v37309_v38 }
 0x332   : > { %v2139_v60 = vand.u32 4294901760, %v2138_v50  ;;  %v36657_v50 = vand.u32 4294901760, %v30463_v28 }
 0x333   : > { %v30418_v22 = vpop.eup %29242  ;;  %37325 = vst [vmem:[#allocation7_spill] sm:$0xff] %v30468_v18  ;;  %v36660_v51 = vand.u32 4294901760, %v30468_v18  ;;  %v30482_v55 = vsub.f32 %v29384_v37, %v37326_v19  ;;  %v29386_v37 = vld [vmem:[%s29565_s17 + $0x40] sm:$0xff]  ;;  %v29387_v19 = vld [vmem:[%s29565_s17 + $0x48] sm:$0xff] }
 0x334   : > { %1843 = vadd.xlane.f32.xlu1 %v30418_v22  ;;  %26414 = vmatpush3.bf16.msra.mxu1 %v30426_v2  ;;  %v30458_v24 = vpack.c.bf16 %v2146_v4, %v2139_v60  ;;  %v2166_v60 = vsub.f32 %v30463_v28, %v36657_v50  ;;  %v30487_v4 = vsub.f32 %v29385_v15, %v37328_v46  ;;  %v37332_v15 = vand.u32 4294901760, %v37312_v11 }
 0x335   : > { %26416 = vmatprep.subr.bf16.mxu1 %v30448_v59  ;;  %v2173_v29 = vsub.f32 %v30468_v18, %v36660_v51  ;;  %37327 = vst [vmem:[#allocation8_spill] sm:$0xff] %v30482_v55  ;;  %v36661_v10 = vand.u32 4294901760, %v30482_v55 }
 0x336   : > { %37329 = vst [vmem:[#allocation12_spill] sm:$0xff] %v30487_v4  ;;  %v2167_v3 = vand.u32 4294901760, %v2166_v60  ;;  %v36664_v50 = vand.u32 4294901760, %v30487_v4  ;;  %v37330_v60 = vand.u32 4294901760, %v37311_v31  ;;  %v30507_v46 = vsub.f32 %v29387_v19, %v37332_v15  ;;  %v29389_v19 = vld [vmem:[%s29565_s17 + $0x58] sm:$0xff] }
 0x337   : > { %v2174_v13 = vand.u32 4294901760, %v2173_v29  ;;  %v2180_v38 = vsub.f32 %v30482_v55, %v36661_v10 }
 0x338   : > { %26418 = vmatpush3.bf16.msra.mxu1 %v30448_v59  ;;  %v2187_v54 = vsub.f32 %v30487_v4, %v36664_v50  ;;  %v30502_v29 = vsub.f32 %v29386_v37, %v37330_v60  ;;  %37333 = vst [vmem:[#allocation17_spill] sm:$0xff] %v30507_v46  ;;  %v36666_v10 = vand.u32 4294901760, %v30507_v46  ;;  %v29388_v37 = vld [vmem:[%s29565_s17 + $0x50] sm:$0xff]  ;;  %v37334_v60 = vand.u32 4294901760, %v37313_v42 }
 0x339   : > { %26420 = vmatprep.subr.bf16.mxu1 %v30458_v24  ;;  %v30491_v8 = vpack.c.bf16 %v2174_v13, %v2167_v3  ;;  %v2181_v13 = vand.u32 4294901760, %v2180_v38  ;;  %v37336_v38 = vand.u32 4294901760, %v37314_v45 }
 0x33a   : > { %37331 = vst [vmem:[#allocation13_spill] sm:$0xff] %v30502_v29  ;;  %v2188_v3 = vand.u32 4294901760, %v2187_v54  ;;  %v36665_v51 = vand.u32 4294901760, %v30502_v29  ;;  %v30519_v11 = vsub.f32 %v29388_v37, %v37334_v60  ;;  %v2201_v15 = vsub.f32 %v30507_v46, %v36666_v10  ;;  %v29390_v37 = vld [vmem:[%s29565_s17 + $0x60] sm:$0xff] }
 0x33b   : > { %v30524_v54 = vsub.f32 %v29389_v19, %v37336_v38  ;;  %v37338_v60 = vand.u32 4294901760, %v37315_v47  ;;  %v37340_v38 = vand.u32 4294901760, %v37316_v63 }
 0x33c   : > { %v30511_v7 = vpack.c.bf16 %v2188_v3, %v2181_v13  ;;  %v2194_v31 = vsub.f32 %v30502_v29, %v36665_v51  ;;  %37335 = vst [vmem:[#allocation18_spill] sm:$0xff] %v30519_v11  ;;  %v36671_v3 = vand.u32 4294901760, %v30519_v11  ;;  %v2202_v51 = vand.u32 4294901760, %v2201_v15 }
 0x33d   : > { %37337 = vst [vmem:[#allocation24_spill] sm:$0xff] %v30524_v54  ;;  %v36680_v50 = vand.u32 4294901760, %v30524_v54  ;;  %v30540_v19 = vsub.f32 %v29390_v37, %v37338_v60  ;;  %v29392_v37 = vld [vmem:[%s29565_s17 + $0x70] sm:$0xff] }
 0x33e   : > { %v2195_v13 = vand.u32 4294901760, %v2194_v31  ;;  %v2208_v42 = vsub.f32 %v30519_v11, %v36671_v3  ;;  %v29391_v31 = vld [vmem:[%s29565_s17 + $0x68] sm:$0xff] }
 0x33f   : > { %v2215_v45 = vsub.f32 %v30524_v54, %v36680_v50  ;;  %37339 = vst [vmem:[#allocation25_spill] sm:$0xff] %v30540_v19  ;;  %v30545_v10 = vsub.f32 %v29391_v31, %v37340_v38  ;;  %v36676_v3 = vand.u32 4294901760, %v30540_v19 }
 0x340   : > { %v30547_v15 = vpack.c.bf16 %v2202_v51, %v2195_v13  ;;  %v2209_v62 = vand.u32 4294901760, %v2208_v42  ;;  %v37342_v51 = vand.u32 4294901760, %v37320_v43  ;;  %v29393_v42 = vld [vmem:[%s29565_s17 + $0x78] sm:$0xff] }
 0x341   : > { %37341 = vst [vmem:[#allocation28_spill] sm:$0xff] %v30545_v10  ;;  %v2216_v34 = vand.u32 4294901760, %v2215_v45  ;;  %v36677_v41 = vand.u32 4294901760, %v30545_v10  ;;  %v2222_v47 = vsub.f32 %v30540_v19, %v36676_v3  ;;  %v37344_v45 = vand.u32 4294901760, %v37321_v36 }
 0x342   : > { %v30562_v13 = vsub.f32 %v29392_v37, %v37342_v51 }
 0x343   : > { %v30551_v5 = vpack.c.bf16 %v2216_v34, %v2209_v62  ;;  %v2229_v63 = vsub.f32 %v30545_v10, %v36677_v41  ;;  %v30567_v60 = vsub.f32 %v29393_v42, %v37344_v45  ;;  %v2223_v34 = vand.u32 4294901760, %v2222_v47 }
 0x344   : > { %37343 = vst [vmem:[#allocation29_spill] sm:$0xff] %v30562_v13  ;;  %v36679_v31 = vand.u32 4294901760, %v30562_v13  ;;  %v30583_v47 = vpack.c.bf16 %v30436_v44, %v30431_v58  ;;  %v30591_v42 = vpack.c.bf16 %v30487_v4, %v30482_v55  ;;  %v30599_v45 = vpack.c.bf16 %v30524_v54, %v30519_v11 }
 0x345   : > { %37345 = vst [vmem:[#allocation32_spill] sm:$0xff] %v30567_v60  ;;  %v2230_v62 = vand.u32 4294901760, %v2229_v63  ;;  %v36678_v38 = vand.u32 4294901760, %v30567_v60  ;;  %v30587_v63 = vpack.c.bf16 %v30468_v18, %v30463_v28 }
 0x346   : > { %v2236_v41 = vsub.f32 %v30562_v13, %v36679_v31  ;;  %v37346_v31 = vand.u32 4294901760, %v37305_v16 }
 0x347   : > { %v30571_v3 = vpack.c.bf16 %v2230_v62, %v2223_v34  ;;  %v2243_v43 = vsub.f32 %v30567_v60, %v36678_v38  ;;  %v30603_v34 = vpack.c.bf16 %v30545_v10, %v30540_v19  ;;  %v30607_v62 = vpack.c.bf16 %v30567_v60, %v30562_v13  ;;  %v29394_v38 = vld [vmem:[%s29565_s17 + $0x10] sm:$0xff]  ;;  %s29463_s17 = smov 96  }
 0x348   : > { %v2237_v37 = vand.u32 4294901760, %v2236_v41  ;;  %v30595_v41 = vpack.c.bf16 %v30507_v46, %v30502_v29  ;;  %v30612_v50 = vsub.f32 %v29394_v38, %v37346_v31  ;;  %v36695_v10 = vand.u32 4294901760, %v30617_v14 }
 0x349   : > { %v2244_v36 = vand.u32 4294901760, %v2243_v43 }
 0x34b   : > { %v30579_v51 = vpack.c.bf16 %v2244_v36, %v2237_v37 }
 0x3a1   : > { %v1814_v43 = vpop.xlane.xlu0 %1813 }
 0x3a2   : > { %29244 = vrcp.f32 %v1814_v43  ;;  %v36691_v43 = vand.u32 4294901760, %v30612_v50 }
 0x3a4   : > { %v2152_v48 = vsub.f32 %v30612_v50, %v36691_v43 }
 0x3a5   : > { %v1816_v37 = vpop.xlane.xlu1 %1815 }
 0x3a6   : > { %29246 = vrcp.f32 %v1816_v37  ;;  %v1818_v36 = vpop.xlane.xlu0 %1817 }
 0x3a7   : > { %29248 = vrcp.f32 %v1818_v36 }
 0x3a9   : > { %v1820_v56 = vpop.xlane.xlu1 %1819 }
 0x3aa   : > { %29250 = vrcp.f32 %v1820_v56  ;;  %v1822_v60 = vpop.xlane.xlu0 %1821 }
 0x3ab   : > { %29252 = vrcp.f32 %v1822_v60 }
 0x3ac   : > { %v29245_v13 = vpop.eup %29244 }
 0x3ad   : > { %v1824_v37 = vpop.xlane.xlu1 %1823  ;;  %v1877_v36 = vmul.f32 %v29245_v13, %v30323_v21  ;;  %v2159_v21 = vsub.f32 %v30617_v14, %v36695_v10 }
 0x3ae   : > { %29254 = vrcp.f32 %v1824_v37  ;;  %v1826_v16 = vpop.xlane.xlu0 %1825 }
 0x3af   : > { %29256 = vrcp.f32 %v1826_v16  ;;  %v30622_v31 = vand.u32 4294901760, %v1877_v36 }
 0x3b0   : > { %v29247_v38 = vpop.eup %29246 }
 0x3b1   : > { %v29249_v49 = vpop.eup %29248  ;;  %v1828_v56 = vpop.xlane.xlu1 %1827  ;;  %v30628_v30 = vsub.f32 %v1877_v36, %v30622_v31  ;;  %v1878_v60 = vmul.f32 %v29247_v38, %v30328_v32  ;;  %v2153_v36 = vand.u32 4294901760, %v2152_v48 }
 0x3b2   : > { %29258 = vrcp.f32 %v1828_v56  ;;  %v1830_v13 = vpop.xlane.xlu0 %1829  ;;  %v1879_v37 = vmul.f32 %v29249_v49, %v30330_v17  ;;  %v2160_v49 = vand.u32 4294901760, %v2159_v21 }
 0x3b3   : > { %29260 = vrcp.f32 %v1830_v13  ;;  %v36698_v16 = vand.u32 4294901760, %v30628_v30  ;;  %v30636_v19 = vand.u32 4294901760, %v1878_v60 }
 0x3b4   : > { %v29251_v43 = vpop.eup %29250  ;;  %v30638_v54 = vand.u32 4294901760, %v1879_v37 }
 0x3b5   : > { %v29253_v11 = vpop.eup %29252  ;;  %v1832_v46 = vpop.xlane.xlu1 %1831  ;;  %v1977_v32 = vsub.f32 %v30628_v30, %v36698_v16  ;;  %v30644_v38 = vsub.f32 %v1878_v60, %v30636_v19  ;;  %v1880_v17 = vmul.f32 %v29251_v43, %v30336_v52 }
 0x3b6   : > { %29262 = vrcp.f32 %v1832_v46  ;;  %v1834_v56 = vpop.xlane.xlu0 %1833  ;;  %v30648_v13 = vsub.f32 %v1879_v37, %v30638_v54  ;;  %v1881_v10 = vmul.f32 %v29253_v11, %v30338_v27  ;;  %v26423_v11 = vpack.c.bf16 %v2160_v49, %v2153_v36 }
 0x3b7   : > { %29264 = vrcp.f32 %v1834_v56  ;;  %v1978_v48 = vand.u32 4294901760, %v1977_v32  ;;  %v36701_v29 = vand.u32 4294901760, %v30644_v38  ;;  %v30652_v4 = vand.u32 4294901760, %v1880_v17 }
 0x3b8   : > { %v29255_v16 = vpop.eup %29254  ;;  %v36704_v60 = vand.u32 4294901760, %v30648_v13  ;;  %v30655_v55 = vand.u32 4294901760, %v1881_v10 }
 0x3b9   : > { %v29257_v52 = vpop.eup %29256  ;;  %v1836_v43 = vpop.xlane.xlu1 %1835  ;;  %23263 = vmatprep.mubr.f32.mxu1 %v1978_v48  ;;  %v1987_v46 = vsub.f32 %v30644_v38, %v36701_v29  ;;  %v30661_v27 = vsub.f32 %v1880_v17, %v30652_v4  ;;  %v1882_v21 = vmul.f32 %v29255_v16, %v30344_v39 }
 0x3ba   : > { %29266 = vrcp.f32 %v1836_v43  ;;  %v1838_v37 = vpop.xlane.xlu0 %1837  ;;  %v1997_v32 = vsub.f32 %v30648_v13, %v36704_v60  ;;  %v30668_v56 = vsub.f32 %v1881_v10, %v30655_v55  ;;  %v1883_v48 = vmul.f32 %v29257_v52, %v30346_v9 }
 0x3bb   : > { %29268 = vrcp.f32 %v1838_v37  ;;  %v1988_v18 = vand.u32 4294901760, %v1987_v46  ;;  %v36703_v29 = vand.u32 4294901760, %v30661_v27  ;;  %v30672_v17 = vand.u32 4294901760, %v1882_v21 }
 0x3bc   : > { %v29259_v36 = vpop.eup %29258  ;;  %v1998_v49 = vand.u32 4294901760, %v1997_v32  ;;  %v36705_v39 = vand.u32 4294901760, %v30668_v56  ;;  %v30675_v16 = vand.u32 4294901760, %v1883_v48 }
 0x3bd   : > { %v29261_v43 = vpop.eup %29260  ;;  %v1840_v28 = vpop.xlane.xlu1 %1839  ;;  %23264 = vmatmul.mubr.f32.vlgmr.msra.gmra.mrb[0].mxu1 %v1988_v18  ;;  %v2007_v10 = vsub.f32 %v30661_v27, %v36703_v29  ;;  %v30681_v9 = vsub.f32 %v1882_v21, %v30672_v17  ;;  %v1884_v52 = vmul.f32 %v29259_v36, %v30354_v33 }
 0x3be   : > { %29270 = vrcp.f32 %v1840_v28  ;;  %v1842_v46 = vpop.xlane.xlu0 %1841  ;;  %23266 = vmatprep.mubr.f32.mxu1 %v1998_v49  ;;  %26422 = vmatpush3.bf16.msra.mxu1 %v30458_v24  ;;  %v2017_v37 = vsub.f32 %v30668_v56, %v36705_v39  ;;  %v30689_v18 = vsub.f32 %v1883_v48, %v30675_v16  ;;  %v1885_v32 = vmul.f32 %v29261_v43, %v30356_v57 }
 0x3bf   : > { %29272 = vrcp.f32 %v1842_v46  ;;  %v2008_v29 = vand.u32 4294901760, %v2007_v10  ;;  %26424 = vmatprep.subr.bf16.mxu1 %v26423_v11  ;;  %v36706_v21 = vand.u32 4294901760, %v30681_v9  ;;  %v30693_v33 = vand.u32 4294901760, %v1884_v52 }
 0x3c0   : > { %v29263_v28 = vpop.eup %29262  ;;  %v2018_v36 = vand.u32 4294901760, %v2017_v37  ;;  %v36707_v24 = vand.u32 4294901760, %v30689_v18  ;;  %v30696_v49 = vand.u32 4294901760, %v1885_v32 }
 0x3c1   : > { %v29265_v60 = vpop.eup %29264  ;;  %v1844_v39 = vpop.xlane.xlu1 %1843  ;;  %23267 = vmatmul.mubr.f32.gmra.mrb[2].mxu1 %v2008_v29  ;;  %v2027_v57 = vsub.f32 %v30681_v9, %v36706_v21  ;;  %v30702_v48 = vsub.f32 %v1884_v52, %v30693_v33  ;;  %v1886_v43 = vmul.f32 %v29263_v28, %v30370_v61 }
 0x3c2   : > { %29274 = vrcp.f32 %v1844_v39  ;;  %23269 = vmatprep.mubr.f32.mxu1 %v2018_v36  ;;  %26426 = vmatpush3.bf16.msra.mxu1 %v26423_v11  ;;  %v2037_v10 = vsub.f32 %v30689_v18, %v36707_v24  ;;  %v30709_v46 = vsub.f32 %v1885_v32, %v30696_v49  ;;  %v1887_v29 = vmul.f32 %v29265_v60, %v30373_v12 }
 0x3c3   : > { %v2028_v37 = vand.u32 4294901760, %v2027_v57  ;;  %26428 = vmatprep.subr.bf16.mxu1 %v30491_v8  ;;  %v36708_v52 = vand.u32 4294901760, %v30702_v48  ;;  %v30714_v21 = vand.u32 4294901760, %v1886_v43 }
 0x3c4   : > { %v29267_v61 = vpop.eup %29266  ;;  %v2038_v39 = vand.u32 4294901760, %v2037_v10  ;;  %v36710_v11 = vand.u32 4294901760, %v30709_v46  ;;  %v30717_v28 = vand.u32 4294901760, %v1887_v29 }
 0x3c5   : > { %v29269_v36 = vpop.eup %29268  ;;  %23270 = vmatmul.mubr.f32.gmra.mrb[4].mxu1 %v2028_v37  ;;  %v2047_v32 = vsub.f32 %v30702_v48, %v36708_v52  ;;  %v30723_v12 = vsub.f32 %v1886_v43, %v30714_v21  ;;  %v1888_v60 = vmul.f32 %v29267_v61, %v30386_v40 }
 0x3c6   : > { %23272 = vmatprep.mubr.f32.mxu1 %v2038_v39  ;;  %26430 = vmatpush3.bf16.msra.mxu1 %v30491_v8  ;;  %v2057_v57 = vsub.f32 %v30709_v46, %v36710_v11  ;;  %v30731_v10 = vsub.f32 %v1887_v29, %v30717_v28  ;;  %v1889_v37 = vmul.f32 %v29269_v36, %v30389_v25 }
 0x3c7   : > { %v2048_v24 = vand.u32 4294901760, %v2047_v32  ;;  %26432 = vmatprep.subr.bf16.mxu1 %v30511_v7  ;;  %v36711_v43 = vand.u32 4294901760, %v30723_v12  ;;  %v30736_v52 = vand.u32 4294901760, %v1888_v60 }
 0x3c8   : > { %v29271_v40 = vpop.eup %29270  ;;  %v2058_v61 = vand.u32 4294901760, %v2057_v57  ;;  %v36713_v8 = vand.u32 4294901760, %v30731_v10  ;;  %v30739_v39 = vand.u32 4294901760, %v1889_v37 }
 0x3c9   : > { %v29273_v44 = vpop.eup %29272  ;;  %23273 = vmatmul.mubr.f32.gmra.mrb[6].mxu1 %v2048_v24  ;;  %v2067_v29 = vsub.f32 %v30723_v12, %v36711_v43  ;;  %v30745_v25 = vsub.f32 %v1888_v60, %v30736_v52  ;;  %v1890_v36 = vmul.f32 %v29271_v40, %v30402_v6 }
 0x3ca   : > { %23275 = vmatprep.mubr.f32.mxu1 %v2058_v61  ;;  %26434 = vmatpush3.bf16.msra.mxu1 %v30511_v7  ;;  %v2077_v32 = vsub.f32 %v30731_v10, %v36713_v8  ;;  %v30753_v57 = vsub.f32 %v1889_v37, %v30739_v39  ;;  %v1891_v24 = vmul.f32 %v29273_v44, %v30405_v20 }
 0x3cb   : > { %v2068_v11 = vand.u32 4294901760, %v2067_v29  ;;  %26436 = vmatprep.subr.bf16.mxu1 %v30547_v15  ;;  %v36712_v60 = vand.u32 4294901760, %v30745_v25  ;;  %v30758_v43 = vand.u32 4294901760, %v1890_v36 }
 0x3cc   : > { %v29275_v6 = vpop.eup %29274  ;;  %v2078_v40 = vand.u32 4294901760, %v2077_v32  ;;  %v2096_v7 = vand.u32 4294901760, %v30753_v57  ;;  %v30761_v61 = vand.u32 4294901760, %v1891_v24 }
 0x3cd   : > { %23276 = vmatmul.mubr.f32.gmra.mrb[8].mxu1 %v2068_v11  ;;  %v2087_v37 = vsub.f32 %v30745_v25, %v36712_v60  ;;  %v30767_v44 = vsub.f32 %v1890_v36, %v30758_v43  ;;  %v1892_v20 = vmul.f32 %v29275_v6, %v30418_v22 }
 0x3ce   : > { %23278 = vmatprep.mubr.f32.mxu1 %v2078_v40  ;;  %26438 = vmatpush3.bf16.msra.mxu1 %v30547_v15  ;;  %v2097_v29 = vsub.f32 %v30753_v57, %v2096_v7  ;;  %v30775_v32 = vsub.f32 %v1891_v24, %v30761_v61 }
 0x3cf   : > { %v2088_v11 = vand.u32 4294901760, %v2087_v37  ;;  %26440 = vmatprep.subr.bf16.mxu1 %v30551_v5  ;;  %v2106_v60 = vand.u32 4294901760, %v30767_v44  ;;  %v30779_v8 = vand.u32 4294901760, %v1892_v20 }
 0x3d0   : > { %v2098_v36 = vand.u32 4294901760, %v2097_v29  ;;  %v2116_v22 = vand.u32 4294901760, %v30775_v32 }
 0x3d1   : > { %23279 = vmatmul.mubr.f32.gmra.mrb[10].mxu1 %v2088_v11  ;;  %v2107_v15 = vsub.f32 %v30767_v44, %v2106_v60  ;;  %v30786_v6 = vsub.f32 %v1892_v20, %v30779_v8 }
 0x3d2   : > { %23281 = vmatprep.mubr.f32.mxu1 %v2098_v36  ;;  %26442 = vmatpush3.bf16.msra.mxu1 %v30551_v5  ;;  %v2117_v24 = vsub.f32 %v30775_v32, %v2116_v22  ;;  %v26455_v5 = vpack.c.bf16 %v30617_v14, %v30612_v50  ;;  %v37356_v36 = vld [vmem:[#allocation6_spill] sm:$0xff] }
 0x3d3   : > { %v2108_v40 = vand.u32 4294901760, %v2107_v15  ;;  %26444 = vmatprep.subr.bf16.mxu1 %v30571_v3  ;;  %v2126_v37 = vand.u32 4294901760, %v30786_v6  ;;  %v37357_v15 = vand.u32 4294901760, %v37356_v36  ;;  %v37379_v36 = vand.u32 4294901760, %v30731_v10 }
 0x3d4   : > { %v2118_v29 = vand.u32 4294901760, %v2117_v24  ;;  %v37358_v24 = vld [vmem:[#allocation7_spill] sm:$0xff] }
 0x3d5   : > { %23282 = vmatmul.mubr.f32.gmra.mrb[12].mxu1 %v2108_v40  ;;  %v2127_v11 = vsub.f32 %v30786_v6, %v2126_v37  ;;  %v37359_v40 = vand.u32 4294901760, %v37358_v24  ;;  %v37382_v24 = vld [vmem:[#allocation28_spill] sm:$0xff] }
 0x3d6   : > { %23284 = vmatprep.mubr.f32.mxu1 %v2118_v29  ;;  %26446 = vmatpush3.bf16.msra.mxu1 %v30571_v3  ;;  %v37348_v3 = vand.u32 4294901760, %v30431_v58  ;;  %v37355_v58 = vand.u32 4294901760, %v30648_v13  ;;  %v37360_v29 = vand.u32 4294901760, %v30661_v27 }
 0x3d7   : > { %v2128_v20 = vand.u32 4294901760, %v2127_v11  ;;  %26448 = vmatprep.subr.bf16.mxu1 %v30579_v51  ;;  %v37364_v11 = vld [vmem:[#allocation12_spill] sm:$0xff] }
 0x3d9   : > { %23285 = vmatmul.mubr.f32.gmra.mrb[14].mxu1 %v2128_v20 }
 0x3da   : > { %26450 = vmatpush3.bf16.msra.mxu1 %v30579_v51  ;;  %23319 = vmatprep.mubr.f32.mxu1 %v30622_v31  ;;  %v37349_v51 = vld [vmem:[#allocation5_spill] sm:$0xff] }
 0x3db   : > { %26452 = vmatprep.subr.bf16.mxu1 %v30583_v47 }
 0x3dd   : > { %23320 = vmatmul.mubr.f32.vlgmr.msra.gmra.mrb[0].mxu1 %v30636_v19 }
 0x3de   : > { %23322 = vmatprep.mubr.f32.mxu1 %v30638_v54  ;;  %26454 = vmatpush3.bf16.msra.mxu1 %v30583_v47  ;;  %v37350_v47 = vand.u32 4294901760, %v37349_v51 }
 0x3df   : > { %26456 = vmatprep.subr.bf16.mxu1 %v26455_v5 }
 0x3e1   : > { %23323 = vmatmul.mubr.f32.gmra.mrb[2].mxu1 %v30652_v4 }
 0x3e2   : > { %23325 = vmatprep.mubr.f32.mxu1 %v30655_v55  ;;  %26458 = vmatpush3.bf16.msra.mxu1 %v26455_v5  ;;  %v37366_v5 = vand.u32 4294901760, %v30681_v9 }
 0x3e3   : > { %26460 = vmatprep.subr.bf16.mxu1 %v30587_v63 }
 0x3e5   : > { %23326 = vmatmul.mubr.f32.gmra.mrb[4].mxu1 %v30672_v17 }
 0x3e6   : > { %23328 = vmatprep.mubr.f32.mxu1 %v30675_v16  ;;  %26462 = vmatpush3.bf16.msra.mxu1 %v30587_v63  ;;  %v26515_v63 = vpack.c.bf16 %v37350_v47, %v37348_v3  ;;  %v37367_v3 = vand.u32 4294901760, %v30689_v18  ;;  %v37370_v47 = vld [vmem:[#allocation17_spill] sm:$0xff] }
 0x3e7   : > { %26464 = vmatprep.subr.bf16.mxu1 %v30591_v42 }
 0x3e9   : > { %23329 = vmatmul.mubr.f32.gmra.mrb[6].mxu1 %v30693_v33 }
 0x3ea   : > { %23331 = vmatprep.mubr.f32.mxu1 %v30696_v49  ;;  %26466 = vmatpush3.bf16.msra.mxu1 %v30591_v42  ;;  %v37351_v42 = vand.u32 4294901760, %v30628_v30 }
 0x3eb   : > { %26468 = vmatprep.subr.bf16.mxu1 %v30595_v41 }
 0x3ed   : > { %23332 = vmatmul.mubr.f32.gmra.mrb[8].mxu1 %v30714_v21 }
 0x3ee   : > { %23334 = vmatprep.mubr.f32.mxu1 %v30717_v28  ;;  %26470 = vmatpush3.bf16.msra.mxu1 %v30595_v41  ;;  %v37352_v41 = vand.u32 4294901760, %v30612_v50  ;;  %v37361_v50 = vand.u32 4294901760, %v30668_v56 }
 0x3ef   : > { %26472 = vmatprep.subr.bf16.mxu1 %v30599_v45 }
 0x3f1   : > { %23335 = vmatmul.mubr.f32.gmra.mrb[10].mxu1 %v30736_v52 }
 0x3f2   : > { %23337 = vmatprep.mubr.f32.mxu1 %v30739_v39  ;;  %26474 = vmatpush3.bf16.msra.mxu1 %v30599_v45  ;;  %v37353_v45 = vand.u32 4294901760, %v30617_v14  ;;  %v37362_v14 = vld [vmem:[#allocation8_spill] sm:$0xff] }
 0x3f3   : > { %26476 = vmatprep.subr.bf16.mxu1 %v30603_v34 }
 0x3f5   : > { %23338 = vmatmul.mubr.f32.gmra.mrb[12].mxu1 %v30758_v43 }
 0x3f6   : > { %23340 = vmatprep.mubr.f32.mxu1 %v30761_v61  ;;  %26478 = vmatpush3.bf16.msra.mxu1 %v30603_v34  ;;  %v26519_v34 = vpack.c.bf16 %v37353_v45, %v37352_v41  ;;  %v37373_v41 = vand.u32 4294901760, %v30709_v46 }
 0x3f7   : > { %26480 = vmatprep.subr.bf16.mxu1 %v30607_v62 }
 0x3f9   : > { %23341 = vmatmul.mubr.f32.gmra.mrb[14].mxu1 %v30779_v8 }
 0x3fa   : > { %26482 = vmatpush3.bf16.msra.mxu1 %v30607_v62  ;;  %23375 = vmatprep.mubr.f32.mxu1 %v30628_v30  ;;  %v37354_v62 = vand.u32 4294901760, %v30644_v38  ;;  %v26523_v30 = vpack.c.bf16 %v37359_v40, %v37357_v15 }
 0x3fb   : > { %26484 = vmatprep.subr.bf16.mxu1 %v30304_v1 }
 0x3fd   : > { %23376 = vmatmul.mubr.f32.vlgmr.msra.gmra.mrb[0].mxu1 %v30644_v38  ;;  %v37363_v38 = vand.u32 4294901760, %v37362_v14 }
 0x3fe   : > { %23378 = vmatprep.mubr.f32.mxu1 %v30648_v13  ;;  %26486 = vmatpush3.bf16.msra.mxu1 %v30304_v1  ;;  %v37365_v13 = vand.u32 4294901760, %v37364_v11  ;;  %v37408_v11 = vld [vmem:[#allocation14_spill] sm:$0xff] }
 0x3ff   : > { %26488 = vmatprep.subr.bf16.mxu1 %v30310_v53 }
 0x400   : > { %v26527_v20 = vpack.c.bf16 %v37365_v13, %v37363_v38  ;;  %v37407_v38 = vld [vmem:[#allocation11_spill] sm:$0xff] }
 0x401   : > { %23379 = vmatmul.mubr.f32.gmra.mrb[2].mxu1 %v30661_v27  ;;  %v37368_v27 = vld [vmem:[#allocation13_spill] sm:$0xff]  ;;  %v37409_v13 = vld [vmem:[#allocation15_spill] sm:$0xff] }
 0x402   : > { %23381 = vmatprep.mubr.f32.mxu1 %v30668_v56  ;;  %26490 = vmatpush3.bf16.msra.mxu1 %v30310_v53  ;;  %v37369_v51 = vand.u32 4294901760, %v37368_v27  ;;  %v37371_v56 = vand.u32 4294901760, %v37370_v47  ;;  %v37413_v27 = vld [vmem:[#allocation26_spill] sm:$0xff] }
 0x403   : > { %26492 = vmatprep.subr.bf16.mxu1 %v30363_v26  ;;  %v37415_v47 = vld [vmem:[#allocation30_spill] sm:$0xff] }
 0x405   : > { %23382 = vmatmul.mubr.f32.gmra.mrb[4].mxu1 %v30681_v9  ;;  %v37374_v9 = vld [vmem:[#allocation18_spill] sm:$0xff] }
 0x406   : > { %23384 = vmatprep.mubr.f32.mxu1 %v30689_v18  ;;  %26494 = vmatpush3.bf16.msra.mxu1 %v30363_v26  ;;  %v37375_v45 = vand.u32 4294901760, %v37374_v9  ;;  %v37420_v9 = vld [vmem:[#allocation40_spill] sm:$0xff] }
 0x407   : > { %26496 = vmatprep.subr.bf16.mxu1 %v30380_v0 }
 0x409   : > { %23385 = vmatmul.mubr.f32.gmra.mrb[6].mxu1 %v30702_v48 }
 0x40a   : > { %23387 = vmatprep.mubr.f32.mxu1 %v30709_v46  ;;  %26498 = vmatpush3.bf16.msra.mxu1 %v30380_v0  ;;  %v37383_v46 = vand.u32 4294901760, %v37382_v24  ;;  %v37424_v24 = vld [vmem:[#allocation43_spill] sm:$0xff] }
 0x40b   : > { %26500 = vmatprep.subr.bf16.mxu1 %v30396_v23 }
 0x40d   : > { %23388 = vmatmul.mubr.f32.gmra.mrb[8].mxu1 %v30723_v12 }
 0x40e   : > { %23390 = vmatprep.mubr.f32.mxu1 %v30731_v10  ;;  %26502 = vmatpush3.bf16.msra.mxu1 %v30396_v23 }
 0x40f   : > { %26504 = vmatprep.subr.bf16.mxu1 %v30412_v35 }
 0x411   : > { %23391 = vmatmul.mubr.f32.gmra.mrb[10].mxu1 %v30745_v25 }
 0x412   : > { %23393 = vmatprep.mubr.f32.mxu1 %v30753_v57  ;;  %26506 = vmatpush3.bf16.msra.mxu1 %v30412_v35 }
 0x413   : > { %26508 = vmatprep.subr.bf16.mxu1 %v30426_v2 }
 0x415   : > { %23394 = vmatmul.mubr.f32.gmra.mrb[12].mxu1 %v30767_v44 }
 0x416   : > { %23396 = vmatprep.mubr.f32.mxu1 %v30775_v32  ;;  %26510 = vmatpush3.bf16.msra.mxu1 %v30426_v2 }
 0x417   : > { %26512 = vmatprep.subr.bf16.mxu1 %v30448_v59 }
 0x419   : > { %23397 = vmatmul.mubr.f32.gmra.mrb[14].mxu1 %v30786_v6 }
 0x41a   : > { %26514 = vmatpush3.bf16.msra.mxu1 %v30448_v59  ;;  %23431 = vmatprep.mubr.f32.mxu1 %v37351_v42  ;;  %v37372_v42 = vand.u32 4294901760, %v30702_v48  ;;  %v37380_v48 = vld [vmem:[#allocation25_spill] sm:$0xff] }
 0x41b   : > { %26516 = vmatprep.subr.bf16.mxu1 %v26515_v63  ;;  %v37381_v15 = vand.u32 4294901760, %v37380_v48 }
 0x41d   : > { %23432 = vmatmul.mubr.f32.vlgmr.msra.gmra.mrb[0].mxu1 %v37354_v62  ;;  %v26539_v40 = vpack.c.bf16 %v37383_v46, %v37381_v15  ;;  %v37425_v46 = vld [vmem:[#allocation47_spill] sm:$0xff] }
 0x41e   : > { %23434 = vmatprep.mubr.f32.mxu1 %v37355_v58  ;;  %26518 = vmatpush3.bf16.msra.mxu1 %v26515_v63  ;;  %v26531_v63 = vpack.c.bf16 %v37371_v56, %v37369_v51  ;;  %v37378_v58 = vand.u32 4294901760, %v30723_v12  ;;  %v37385_v12 = vld [vmem:[#allocation29_spill] sm:$0xff]  ;;  %v37414_v51 = vld [vmem:[#allocation27_spill] sm:$0xff] }
 0x41f   : > { %26520 = vmatprep.subr.bf16.mxu1 %v26519_v34  ;;  %v37416_v56 = vld [vmem:[#allocation31_spill] sm:$0xff] }
 0x421   : > { %23435 = vmatmul.mubr.f32.gmra.mrb[2].mxu1 %v37360_v29  ;;  %v37386_v29 = vand.u32 4294901760, %v37385_v12  ;;  %v37427_v12 = vld [vmem:[#allocation53_spill] sm:$0xff] }
 0x422   : > { %23437 = vmatprep.mubr.f32.mxu1 %v37361_v50  ;;  %26522 = vmatpush3.bf16.msra.mxu1 %v26519_v34  ;;  %v37376_v34 = vld [vmem:[#allocation24_spill] sm:$0xff] }
 0x423   : > { %26524 = vmatprep.subr.bf16.mxu1 %v26523_v30  ;;  %v37377_v18 = vand.u32 4294901760, %v37376_v34  ;;  %v37387_v50 = vld [vmem:[#allocation32_spill] sm:$0xff] }
 0x424   : > { %v37388_v10 = vand.u32 4294901760, %v37387_v50  ;;  %v37429_v50 = vld [vmem:[#allocation56_spill] sm:$0xff] }
 0x425   : > { %23438 = vmatmul.mubr.f32.gmra.mrb[4].mxu1 %v37366_v5  ;;  %v26535_v62 = vpack.c.bf16 %v37377_v18, %v37375_v45  ;;  %v37411_v5 = vld [vmem:[#allocation21_spill] sm:$0xff]  ;;  %v37421_v45 = vld [vmem:[#allocation19_spill] sm:$0xff]  ;;  %v37422_v18 = vld [vmem:[#allocation38_spill] sm:$0xff] }
 0x426   : > { %23440 = vmatprep.mubr.f32.mxu1 %v37367_v3  ;;  %26526 = vmatpush3.bf16.msra.mxu1 %v26523_v30  ;;  %v37384_v30 = vand.u32 4294901760, %v30745_v25  ;;  %v26543_v14 = vpack.c.bf16 %v37388_v10, %v37386_v29  ;;  %v360_v25 = vld [vmem:[%s36471_s4 + $0x8] sm:$0xff]  ;;  %v37430_v10 = vld [vmem:[#allocation60_spill] sm:$0xff] }
 0x427   : > { %26528 = vmatprep.subr.bf16.mxu1 %v26527_v20  ;;  %v3183_v57 = vand.u32 4294901760, %v360_v25  ;;  %v37412_v3 = vld [vmem:[#allocation22_spill] sm:$0xff] }
 0x428   : > { %v37428_v29 = vld [vmem:[#allocation54_spill] sm:$0xff] }
 0x429   : > { %23441 = vmatmul.mubr.f32.gmra.mrb[6].mxu1 %v37372_v42  ;;  %v37418_v42 = vld [vmem:[#allocation35_spill] sm:$0xff] }
 0x42a   : > { %23443 = vmatprep.mubr.f32.mxu1 %v37373_v41  ;;  %26530 = vmatpush3.bf16.msra.mxu1 %v26527_v20  ;;  %v37410_v20 = vld [vmem:[#allocation16_spill] sm:$0xff]  ;;  %v37419_v41 = vld [vmem:[#allocation39_spill] sm:$0xff] }
 0x42b   : > { %26532 = vmatprep.subr.bf16.mxu1 %v26531_v63 }
 0x42d   : > { %23444 = vmatmul.mubr.f32.gmra.mrb[8].mxu1 %v37378_v58  ;;  %v361_v58 = vld [vmem:[%s36471_s4 + $0x10] sm:$0xff] }
 0x42e   : > { %23446 = vmatprep.mubr.f32.mxu1 %v37379_v36  ;;  %26534 = vmatpush3.bf16.msra.mxu1 %v26531_v63  ;;  %v37417_v63 = vld [vmem:[#allocation34_spill] sm:$0xff]  ;;  %v362_v36 = vld [vmem:[%s36471_s4 + $0x18] sm:$0xff]  ;;  %v4284_v48 = vand.u32 4294901760, %v361_v58 }
 0x42f   : > { %26536 = vmatprep.subr.bf16.mxu1 %v26535_v62  ;;  %v4287_v15 = vand.u32 4294901760, %v362_v36 }
 0x431   : > { %23447 = vmatmul.mubr.f32.gmra.mrb[10].mxu1 %v37384_v30  ;;  %v37426_v30 = vld [vmem:[#allocation48_spill] sm:$0xff] }
 0x432   : > { %23449 = vmatprep.mubr.f32.mxu1 %v2096_v7  ;;  %26538 = vmatpush3.bf16.msra.mxu1 %v26535_v62  ;;  %v37423_v62 = vld [vmem:[#allocation42_spill] sm:$0xff] }
 0x433   : > { %26540 = vmatprep.subr.bf16.mxu1 %v26539_v40 }
 0x435   : > { %23450 = vmatmul.mubr.f32.gmra.mrb[12].mxu1 %v2106_v60  ;;  %v30954_v60 = vsub.f32 %v360_v25, %v3183_v57  ;;  %v37433_v25 = vld [vmem:[#allocation67_spill] sm:$0xff] }
 0x436   : > { %23452 = vmatprep.mubr.f32.mxu1 %v2116_v22  ;;  %26542 = vmatpush3.bf16.msra.mxu1 %v26539_v40  ;;  %v31049_v40 = vpack.c.bf16 %v4287_v15, %v4284_v48 }
 0x437   : > { %26544 = vmatprep.subr.bf16.mxu1 %v26543_v14  ;;  %v3416_v44 = vand.u32 4294901760, %v30954_v60 }
 0x438   : > { %26604 = vmatprep.subr.bf16.mxu0 %v31049_v40 }
 0x439   : > { %23453 = vmatmul.mubr.f32.gmra.mrb[14].mxu1 %v2126_v37  ;;  %v37406_v37 = vld [vmem:[#allocation10_spill] sm:$0xff]  ;;  %26606 = vmatpush3.bf16.msra.mxu0 %v31049_v40 }
 0x43a   : > { %26546 = vmatpush3.bf16.msra.mxu1 %v26543_v14  ;;  %23487 = vmatprep.mubr.f32.mxu1 %v30622_v31  ;;  %v37431_v14 = vld [vmem:[#allocation62_spill] sm:$0xff] }
 0x43b   : > { %26548 = vmatprep.subr.bf16.mxu1 %v30304_v1 }
 0x43d   : > { %23488 = vmatmul.mubr.f32.vlgmr.msra.gmra.mrb[0].mxu1 %v30636_v19 }
 0x43e   : > { %23490 = vmatprep.mubr.f32.mxu1 %v30638_v54  ;;  %26550 = vmatpush3.bf16.msra.mxu1 %v30304_v1  ;;  %v359_v1 = vld [vmem:[%s36471_s4] sm:$0xff] }
 0x43f   : > { %26552 = vmatprep.subr.bf16.mxu1 %v30310_v53 }
 0x441   : > { %23491 = vmatmul.mubr.f32.gmra.mrb[2].mxu1 %v30652_v4 }
 0x442   : > { %23493 = vmatprep.mubr.f32.mxu1 %v30655_v55  ;;  %26554 = vmatpush3.bf16.msra.mxu1 %v30310_v53  ;;  %v3180_v53 = vand.u32 4294901760, %v359_v1 }
 0x443   : > { %26556 = vmatprep.subr.bf16.mxu1 %v30363_v26 }
 0x444   : > { %v30976_v32 = vpack.c.bf16 %v3183_v57, %v3180_v53  ;;  %v37435_v57 = vld [vmem:[#allocation73_spill] sm:$0xff] }
 0x445   : > { %23494 = vmatmul.mubr.f32.gmra.mrb[4].mxu1 %v30672_v17 }
 0x446   : > { %23496 = vmatprep.mubr.f32.mxu1 %v30675_v16  ;;  %26558 = vmatpush3.bf16.msra.mxu1 %v30363_v26  ;;  %v30952_v26 = vsub.f32 %v359_v1, %v3180_v53  ;;  %v37432_v1 = vld [vmem:[#allocation64_spill] sm:$0xff]  ;;  %v37434_v53 = vld [vmem:[#allocation70_spill] sm:$0xff] }
 0x447   : > { %26560 = vmatprep.subr.bf16.mxu1 %v30380_v0 }
 0x448   : > { %v3409_v7 = vand.u32 4294901760, %v30952_v26 }
 0x449   : > { %23497 = vmatmul.mubr.f32.gmra.mrb[6].mxu1 %v30693_v33 }
 0x44a   : > { %23499 = vmatprep.mubr.f32.mxu1 %v30696_v49  ;;  %26562 = vmatpush3.bf16.msra.mxu1 %v30380_v0  ;;  %v3410_v0 = vsub.f32 %v30952_v26, %v3409_v7  ;;  %v26595_v34 = vpack.c.bf16 %v3416_v44, %v3409_v7  ;;  %v31075_v7 = vsub.f32 %v362_v36, %v4287_v15  ;;  %v37452_v15 = vld [vmem:[#allocation80_spill] sm:$0xff] }
 0x44b   : > { %26564 = vmatprep.subr.bf16.mxu1 %v30396_v23 }
 0x44d   : > { %23500 = vmatmul.mubr.f32.gmra.mrb[8].mxu1 %v30714_v21 }
 0x44e   : > { %23502 = vmatprep.mubr.f32.mxu1 %v30717_v28  ;;  %26566 = vmatpush3.bf16.msra.mxu1 %v30396_v23  ;;  %v3417_v23 = vsub.f32 %v30954_v60, %v3416_v44  ;;  %v37437_v44 = vld [vmem:[#allocation20_spill] sm:$0xff] }
 0x44f   : > { %26568 = vmatprep.subr.bf16.mxu1 %v30412_v35 }
 0x450   : > { %v3418_v22 = vand.u32 4294901760, %v3417_v23  ;;  %v4520_v23 = vand.u32 4294901760, %v31075_v7 }
 0x451   : > { %23503 = vmatmul.mubr.f32.gmra.mrb[10].mxu1 %v30736_v52 }
 0x452   : > { %23505 = vmatprep.mubr.f32.mxu1 %v30739_v39  ;;  %26570 = vmatpush3.bf16.msra.mxu1 %v30412_v35  ;;  %v3411_v35 = vand.u32 4294901760, %v3410_v0 }
 0x453   : > { %26572 = vmatprep.subr.bf16.mxu1 %v30426_v2 }
 0x454   : > { %v26583_v6 = vpack.c.bf16 %v3418_v22, %v3411_v35  ;;  %v37438_v35 = vld [vmem:[#allocation41_spill] sm:$0xff] }
 0x455   : > { %23506 = vmatmul.mubr.f32.gmra.mrb[12].mxu1 %v30758_v43 }
 0x456   : > { %23508 = vmatprep.mubr.f32.mxu1 %v30761_v61  ;;  %26574 = vmatpush3.bf16.msra.mxu1 %v30426_v2  ;;  %v37389_v2 = vld [vmem:[#allocation23_spill] sm:$0xff] }
 0x457   : > { %26576 = vmatprep.subr.bf16.mxu1 %v30448_v59 }
 0x459   : > { %23509 = vmatmul.mubr.f32.gmra.mrb[14].mxu1 %v30779_v8 }
 0x45a   : > { %26578 = vmatpush3.bf16.msra.mxu1 %v30448_v59  ;;  %23543 = vmatprep.mubr.f32.mxu1 %v30622_v31  ;;  %v26587_v59 = vpack.c.bf16 %v30954_v60, %v30952_v26  ;;  %v37394_v31 = vld [vmem:[#allocation59_spill] sm:$0xff]  ;;  %v37436_v26 = vld [vmem:[#allocation76_spill] sm:$0xff]  ;;  %v31073_v60 = vsub.f32 %v361_v58, %v4284_v48 }
 0x45b   : > { %26580 = vmatprep.subr.bf16.mxu1 %v30976_v32 }
 0x45c   : > { %v4513_v0 = vand.u32 4294901760, %v31073_v60  ;;  %v26611_v48 = vpack.c.bf16 %v31075_v7, %v31073_v60 }
 0x45d   : > { %23544 = vmatmul.mubr.f32.vlgmr.msra.gmra.mrb[0].mxu1 %v30636_v19  ;;  %v37393_v19 = vld [vmem:[#allocation58_spill] sm:$0xff] }
 0x45e   : > { %23546 = vmatprep.mubr.f32.mxu1 %v30638_v54  ;;  %26582 = vmatpush3.bf16.msra.mxu1 %v30976_v32  ;;  %v37392_v54 = vld [vmem:[#allocation50_spill] sm:$0xff]  ;;  %v4514_v22 = vsub.f32 %v31073_v60, %v4513_v0 }
 0x45f   : > { %26584 = vmatprep.subr.bf16.mxu1 %v26583_v6 }
 0x461   : > { %23547 = vmatmul.mubr.f32.gmra.mrb[2].mxu1 %v30652_v4  ;;  %v37391_v4 = vld [vmem:[#allocation49_spill] sm:$0xff] }
 0x462   : > { %23549 = vmatprep.mubr.f32.mxu1 %v30655_v55  ;;  %v37390_v55 = vld [vmem:[#allocation44_spill] sm:$0xff] }
 0x463   : > { %23740 = vmatmul.mubr.f32.vlgmr.msra.gmra.mrb[16].mxu0 %v37390_v55 }
 0x464   : > { %23742 = vmatprep.mubr.f32.mxu0 %v37391_v4 }
 0x465   : > { %23550 = vmatmul.mubr.f32.gmra.mrb[4].mxu1 %v30672_v17  ;;  %v37395_v17 = vld [vmem:[#allocation65_spill] sm:$0xff] }
 0x466   : > { %23552 = vmatprep.mubr.f32.mxu1 %v30675_v16  ;;  %v37396_v16 = vld [vmem:[#allocation68_spill] sm:$0xff] }
 0x467   : > { %23743 = vmatmul.mubr.f32.gmra.mrb[18].mxu0 %v37392_v54 }
 0x468   : > { %23745 = vmatprep.mubr.f32.mxu0 %v37393_v19 }
 0x469   : > { %23553 = vmatmul.mubr.f32.gmra.mrb[6].mxu1 %v30693_v33  ;;  %v37398_v33 = vld [vmem:[#allocation74_spill] sm:$0xff] }
 0x46a   : > { %23555 = vmatprep.mubr.f32.mxu1 %v30696_v49  ;;  %v37399_v49 = vld [vmem:[#allocation77_spill] sm:$0xff] }
 0x46b   : > { %23746 = vmatmul.mubr.f32.gmra.mrb[20].mxu0 %v37394_v31 }
 0x46c   : > { %23748 = vmatprep.mubr.f32.mxu0 %v37395_v17 }
 0x46d   : > { %23556 = vmatmul.mubr.f32.gmra.mrb[8].mxu1 %v30714_v21  ;;  %v37397_v21 = vld [vmem:[#allocation71_spill] sm:$0xff] }
 0x46e   : > { %23558 = vmatprep.mubr.f32.mxu1 %v30717_v28  ;;  %v37401_v28 = vld [vmem:[#allocation81_spill] sm:$0xff] }
 0x46f   : > { %23749 = vmatmul.mubr.f32.gmra.mrb[22].mxu0 %v37396_v16 }
 0x470   : > { %23751 = vmatprep.mubr.f32.mxu0 %v37397_v21 }
 0x471   : > { %23559 = vmatmul.mubr.f32.gmra.mrb[10].mxu1 %v30736_v52  ;;  %v37400_v52 = vld [vmem:[#allocation79_spill] sm:$0xff] }
 0x472   : > { %23561 = vmatprep.mubr.f32.mxu1 %v30739_v39  ;;  %v37404_v39 = vld [vmem:[#allocation84_spill] sm:$0xff] }
 0x473   : > { %23752 = vmatmul.mubr.f32.gmra.mrb[24].mxu0 %v37398_v33 }
 0x474   : > { %23754 = vmatprep.mubr.f32.mxu0 %v37399_v49 }
 0x475   : > { %23562 = vmatmul.mubr.f32.gmra.mrb[12].mxu1 %v30758_v43  ;;  %v37402_v43 = vld [vmem:[#allocation82_spill] sm:$0xff] }
 0x476   : > { %23564 = vmatprep.mubr.f32.mxu1 %v30761_v61  ;;  %v37405_v61 = vld [vmem:[#allocation9_spill] sm:$0xff] }
 0x477   : > { %23755 = vmatmul.mubr.f32.gmra.mrb[26].mxu0 %v37400_v52 }
 0x478   : > { %23757 = vmatprep.mubr.f32.mxu0 %v37401_v28 }
 0x479   : > { %23565 = vmatmul.mubr.f32.gmra.mrb[14].mxu1 %v30779_v8  ;;  %v37403_v8 = vld [vmem:[#allocation83_spill] sm:$0xff] }
 0x47a   : > { %23571 = vmatprep.mubr.f32.mxu1 %v37389_v2  ;;  %v37439_v2 = vld [vmem:[#allocation45_spill] sm:$0xff] }
 0x47b   : > { %23758 = vmatmul.mubr.f32.gmra.mrb[28].mxu0 %v37402_v43 }
 0x47c   : > { %23760 = vmatprep.mubr.f32.mxu0 %v37403_v8 }
 0x47d   : > { %23572 = vmatmul.mubr.f32.vlgmr.msra.gmra.mrb[16].mxu1 %v37390_v55 }
 0x47e   : > { %23574 = vmatprep.mubr.f32.mxu1 %v37391_v4  ;;  %26586 = vmatpush3.bf16.msra.mxu1 %v26583_v6  ;;  %v4521_v6 = vsub.f32 %v31075_v7, %v4520_v23  ;;  %v37440_v4 = vld [vmem:[#allocation46_spill] sm:$0xff] }
 0x47f   : > { %26588 = vmatprep.subr.bf16.mxu1 %v26587_v59  ;;  %23761 = vmatmul.mubr.f32.gmra.mrb[30].mxu0 %v37404_v39 }
 0x480   : > { %v4522_v55 = vand.u32 4294901760, %v4521_v6  ;;  %23767 = vmatprep.mubr.f32.mxu0 %v37405_v61 }
 0x481   : > { %23575 = vmatmul.mubr.f32.gmra.mrb[18].mxu1 %v37392_v54 }
 0x482   : > { %23577 = vmatprep.mubr.f32.mxu1 %v37393_v19  ;;  %v37441_v19 = vld [vmem:[#allocation51_spill] sm:$0xff] }
 0x485   : > { %23578 = vmatmul.mubr.f32.gmra.mrb[20].mxu1 %v37394_v31  ;;  %v37442_v31 = vld [vmem:[#allocation52_spill] sm:$0xff] }
 0x486   : > { %23580 = vmatprep.mubr.f32.mxu1 %v37395_v17  ;;  %v37443_v17 = vld [vmem:[#allocation55_spill] sm:$0xff] }
 0x489   : > { %23581 = vmatmul.mubr.f32.gmra.mrb[22].mxu1 %v37396_v16  ;;  %v37444_v16 = vld [vmem:[#allocation57_spill] sm:$0xff] }
 0x48a   : > { %23583 = vmatprep.mubr.f32.mxu1 %v37397_v21  ;;  %v37445_v21 = vld [vmem:[#allocation61_spill] sm:$0xff] }
 0x48d   : > { %23584 = vmatmul.mubr.f32.gmra.mrb[24].mxu1 %v37398_v33  ;;  %v37446_v33 = vld [vmem:[#allocation63_spill] sm:$0xff] }
 0x48e   : > { %23586 = vmatprep.mubr.f32.mxu1 %v37399_v49  ;;  %v37447_v49 = vld [vmem:[#allocation66_spill] sm:$0xff] }
 0x491   : > { %23587 = vmatmul.mubr.f32.gmra.mrb[26].mxu1 %v37400_v52  ;;  %v37448_v52 = vld [vmem:[#allocation69_spill] sm:$0xff] }
 0x492   : > { %23589 = vmatprep.mubr.f32.mxu1 %v37401_v28  ;;  %v37449_v28 = vld [vmem:[#allocation72_spill] sm:$0xff] }
 0x495   : > { %23590 = vmatmul.mubr.f32.gmra.mrb[28].mxu1 %v37402_v43  ;;  %v363_v43 = vld [vmem:[%s36471_s4 + $0x20] sm:$0xff] }
 0x496   : > { %23592 = vmatprep.mubr.f32.mxu1 %v37403_v8  ;;  %v364_v8 = vld [vmem:[%s36471_s4 + $0x28] sm:$0xff]  ;;  %v6722_v58 = vand.u32 4294901760, %v363_v43 }
 0x497   : > { %v6725_v36 = vand.u32 4294901760, %v364_v8 }
 0x499   : > { %23593 = vmatmul.mubr.f32.gmra.mrb[30].mxu1 %v37404_v39  ;;  %v37450_v39 = vld [vmem:[#allocation75_spill] sm:$0xff]  ;;  %v31149_v6 = vsub.f32 %v364_v8, %v6725_v36 }
 0x49a   : > { %23599 = vmatprep.mubr.f32.mxu1 %v37405_v61 }
 0x49d   : > { %23600 = vmatmul.mubr.f32.vlgmr.msra.gmra.mrb[16].mxu1 %v37406_v37 }
 0x49e   : > { %23602 = vmatprep.mubr.f32.mxu1 %v37407_v38  ;;  %26590 = vmatpush3.bf16.msra.mxu1 %v26587_v59  ;;  %v4515_v59 = vand.u32 4294901760, %v4514_v22  ;;  %v31126_v22 = vpack.c.bf16 %v6725_v36, %v6722_v58 }
 0x49f   : > { %26592 = vmatprep.subr.bf16.mxu1 %v30976_v32 }
 0x4a0   : > { %v26607_v54 = vpack.c.bf16 %v4522_v55, %v4515_v59  ;;  %v36726_v59 = vand.u32 4294901760, %v31149_v6 }
 0x4a1   : > { %23603 = vmatmul.mubr.f32.gmra.mrb[18].mxu1 %v37408_v11 }
 0x4a2   : > { %23605 = vmatprep.mubr.f32.mxu1 %v37409_v13  ;;  %26608 = vmatprep.subr.bf16.mxu0 %v26607_v54 }
 0x4a3   : > { %26610 = vmatpush3.bf16.msra.mxu0 %v26607_v54 }
 0x4a4   : > { %26612 = vmatprep.subr.bf16.mxu0 %v26611_v48 }
 0x4a5   : > { %23606 = vmatmul.mubr.f32.gmra.mrb[20].mxu1 %v37410_v20 }
 0x4a6   : > { %23608 = vmatprep.mubr.f32.mxu1 %v37411_v5  ;;  %23768 = vmatmul.mubr.f32.vlgmr.msra.gmra.mrb[16].mxu0 %v37406_v37 }
 0x4a7   : > { %23770 = vmatprep.mubr.f32.mxu0 %v37407_v38  ;;  %26614 = vmatpush3.bf16.msra.mxu0 %v26611_v48 }
 0x4a8   : > { %26616 = vmatprep.subr.bf16.mxu0 %v31049_v40 }
 0x4a9   : > { %23609 = vmatmul.mubr.f32.gmra.mrb[22].mxu1 %v37412_v3 }
 0x4aa   : > { %23611 = vmatprep.mubr.f32.mxu1 %v37413_v27  ;;  %23771 = vmatmul.mubr.f32.gmra.mrb[18].mxu0 %v37408_v11 }
 0x4ab   : > { %23773 = vmatprep.mubr.f32.mxu0 %v37409_v13 }
 0x4ad   : > { %23612 = vmatmul.mubr.f32.gmra.mrb[24].mxu1 %v37414_v51 }
 0x4ae   : > { %23614 = vmatprep.mubr.f32.mxu1 %v37415_v47  ;;  %23774 = vmatmul.mubr.f32.gmra.mrb[20].mxu0 %v37410_v20 }
 0x4af   : > { %23776 = vmatprep.mubr.f32.mxu0 %v37411_v5 }
 0x4b1   : > { %23615 = vmatmul.mubr.f32.gmra.mrb[26].mxu1 %v37416_v56 }
 0x4b2   : > { %23617 = vmatprep.mubr.f32.mxu1 %v37417_v63  ;;  %23777 = vmatmul.mubr.f32.gmra.mrb[22].mxu0 %v37412_v3 }
 0x4b3   : > { %23779 = vmatprep.mubr.f32.mxu0 %v37413_v27 }
 0x4b5   : > { %23618 = vmatmul.mubr.f32.gmra.mrb[28].mxu1 %v37418_v42 }
 0x4b6   : > { %23620 = vmatprep.mubr.f32.mxu1 %v37419_v41  ;;  %23780 = vmatmul.mubr.f32.gmra.mrb[24].mxu0 %v37414_v51 }
 0x4b7   : > { %23782 = vmatprep.mubr.f32.mxu0 %v37415_v47 }
 0x4b9   : > { %23621 = vmatmul.mubr.f32.gmra.mrb[30].mxu1 %v37420_v9 }
 0x4ba   : > { %23627 = vmatprep.mubr.f32.mxu1 %v37421_v45  ;;  %23783 = vmatmul.mubr.f32.gmra.mrb[26].mxu0 %v37416_v56 }
 0x4bb   : > { %23785 = vmatprep.mubr.f32.mxu0 %v37417_v63 }
 0x4bd   : > { %23628 = vmatmul.mubr.f32.vlgmr.msra.gmra.mrb[16].mxu1 %v37422_v18 }
 0x4be   : > { %23630 = vmatprep.mubr.f32.mxu1 %v37423_v62  ;;  %26594 = vmatpush3.bf16.msra.mxu1 %v30976_v32 }
 0x4bf   : > { %26596 = vmatprep.subr.bf16.mxu1 %v26595_v34  ;;  %23786 = vmatmul.mubr.f32.gmra.mrb[28].mxu0 %v37418_v42 }
 0x4c0   : > { %23788 = vmatprep.mubr.f32.mxu0 %v37419_v41 }
 0x4c1   : > { %23631 = vmatmul.mubr.f32.gmra.mrb[18].mxu1 %v37424_v24 }
 0x4c2   : > { %23633 = vmatprep.mubr.f32.mxu1 %v37425_v46 }
 0x4c3   : > { %23789 = vmatmul.mubr.f32.gmra.mrb[30].mxu0 %v37420_v9 }
 0x4c4   : > { %23795 = vmatprep.mubr.f32.mxu0 %v37421_v45 }
 0x4c5   : > { %23634 = vmatmul.mubr.f32.gmra.mrb[20].mxu1 %v37426_v30 }
 0x4c6   : > { %23636 = vmatprep.mubr.f32.mxu1 %v37427_v12 }
 0x4c7   : > { %23796 = vmatmul.mubr.f32.vlgmr.msra.gmra.mrb[16].mxu0 %v37422_v18 }
 0x4c8   : > { %23798 = vmatprep.mubr.f32.mxu0 %v37423_v62  ;;  %26618 = vmatpush3.bf16.msra.mxu0 %v31049_v40  ;;  %v6959_v62 = vsub.f32 %v31149_v6, %v36726_v59 }
 0x4c9   : > { %23637 = vmatmul.mubr.f32.gmra.mrb[22].mxu1 %v37428_v29 }
 0x4ca   : > { %23639 = vmatprep.mubr.f32.mxu1 %v37429_v50 }
 0x4cb   : > { %23799 = vmatmul.mubr.f32.gmra.mrb[18].mxu0 %v37424_v24 }
 0x4cc   : > { %23801 = vmatprep.mubr.f32.mxu0 %v37425_v46  ;;  %v6960_v46 = vand.u32 4294901760, %v6959_v62 }
 0x4cd   : > { %23640 = vmatmul.mubr.f32.gmra.mrb[24].mxu1 %v37430_v10 }
 0x4ce   : > { %23642 = vmatprep.mubr.f32.mxu1 %v37431_v14 }
 0x4cf   : > { %23802 = vmatmul.mubr.f32.gmra.mrb[20].mxu0 %v37426_v30 }
 0x4d0   : > { %23804 = vmatprep.mubr.f32.mxu0 %v37427_v12 }
 0x4d1   : > { %23643 = vmatmul.mubr.f32.gmra.mrb[26].mxu1 %v37432_v1 }
 0x4d2   : > { %23645 = vmatprep.mubr.f32.mxu1 %v37433_v25 }
 0x4d3   : > { %23805 = vmatmul.mubr.f32.gmra.mrb[22].mxu0 %v37428_v29 }
 0x4d4   : > { %23807 = vmatprep.mubr.f32.mxu0 %v37429_v50 }
 0x4d5   : > { %23646 = vmatmul.mubr.f32.gmra.mrb[28].mxu1 %v37434_v53 }
 0x4d6   : > { %23648 = vmatprep.mubr.f32.mxu1 %v37435_v57 }
 0x4d7   : > { %23808 = vmatmul.mubr.f32.gmra.mrb[24].mxu0 %v37430_v10 }
 0x4d8   : > { %23810 = vmatprep.mubr.f32.mxu0 %v37431_v14 }
 0x4d9   : > { %23649 = vmatmul.mubr.f32.gmra.mrb[30].mxu1 %v37436_v26 }
 0x4da   : > { %23655 = vmatprep.mubr.f32.mxu1 %v37437_v44 }
 0x4db   : > { %23811 = vmatmul.mubr.f32.gmra.mrb[26].mxu0 %v37432_v1 }
 0x4dc   : > { %23813 = vmatprep.mubr.f32.mxu0 %v37433_v25 }
 0x4dd   : > { %23656 = vmatmul.mubr.f32.vlgmr.msra.gmra.mrb[16].mxu1 %v37438_v35 }
 0x4de   : > { %23658 = vmatprep.mubr.f32.mxu1 %v37439_v2  ;;  %26598 = vmatpush3.bf16.msra.mxu1 %v26595_v34  ;;  %v37451_v34 = vld [vmem:[#allocation78_spill] sm:$0xff] }
 0x4df   : > { %26600 = vmatprep.subr.bf16.mxu1 %v30976_v32  ;;  %23814 = vmatmul.mubr.f32.gmra.mrb[28].mxu0 %v37434_v53 }
 0x4e0   : > { %23816 = vmatprep.mubr.f32.mxu0 %v37435_v57 }
 0x4e1   : > { %23659 = vmatmul.mubr.f32.gmra.mrb[18].mxu1 %v37440_v4 }
 0x4e2   : > { %23661 = vmatprep.mubr.f32.mxu1 %v37441_v19 }
 0x4e3   : > { %23817 = vmatmul.mubr.f32.gmra.mrb[30].mxu0 %v37436_v26 }
 0x4e4   : > { %23823 = vmatprep.mubr.f32.mxu0 %v37437_v44 }
 0x4e5   : > { %23662 = vmatmul.mubr.f32.gmra.mrb[20].mxu1 %v37442_v31 }
 0x4e6   : > { %23664 = vmatprep.mubr.f32.mxu1 %v37443_v17 }
 0x4e7   : > { %23824 = vmatmul.mubr.f32.vlgmr.msra.gmra.mrb[16].mxu0 %v37438_v35 }
 0x4e8   : > { %23826 = vmatprep.mubr.f32.mxu0 %v37439_v2 }
 0x4e9   : > { %23665 = vmatmul.mubr.f32.gmra.mrb[22].mxu1 %v37444_v16 }
 0x4ea   : > { %23667 = vmatprep.mubr.f32.mxu1 %v37445_v21 }
 0x4eb   : > { %23827 = vmatmul.mubr.f32.gmra.mrb[18].mxu0 %v37440_v4 }
 0x4ec   : > { %23829 = vmatprep.mubr.f32.mxu0 %v37441_v19  ;;  %v26619_v19 = vpack.c.bf16 %v4520_v23, %v4513_v0 }
 0x4ed   : > { %23668 = vmatmul.mubr.f32.gmra.mrb[24].mxu1 %v37446_v33 }
 0x4ee   : > { %23670 = vmatprep.mubr.f32.mxu1 %v37447_v49  ;;  %26620 = vmatprep.subr.bf16.mxu0 %v26619_v19 }
 0x4ef   : > { %23830 = vmatmul.mubr.f32.gmra.mrb[20].mxu0 %v37442_v31 }
 0x4f0   : > { %23832 = vmatprep.mubr.f32.mxu0 %v37443_v17  ;;  %26622 = vmatpush3.bf16.msra.mxu0 %v26619_v19 }
 0x4f1   : > { %23671 = vmatmul.mubr.f32.gmra.mrb[26].mxu1 %v37448_v52  ;;  %26624 = vmatprep.subr.bf16.mxu0 %v31049_v40 }
 0x4f2   : > { %23673 = vmatprep.mubr.f32.mxu1 %v37449_v28 }
 0x4f3   : > { %23833 = vmatmul.mubr.f32.gmra.mrb[22].mxu0 %v37444_v16 }
 0x4f4   : > { %23835 = vmatprep.mubr.f32.mxu0 %v37445_v21 }
 0x4f5   : > { %23674 = vmatmul.mubr.f32.gmra.mrb[28].mxu1 %v37450_v39 }
 0x4f6   : > { %23676 = vmatprep.mubr.f32.mxu1 %v37451_v34 }
 0x4f7   : > { %23836 = vmatmul.mubr.f32.gmra.mrb[24].mxu0 %v37446_v33 }
 0x4f8   : > { %23838 = vmatprep.mubr.f32.mxu0 %v37447_v49 }
 0x4f9   : > { %23677 = vmatmul.mubr.f32.gmra.mrb[30].mxu1 %v37452_v15 }
 0x4fa   : > { %23683 = vmatprep.mubr.f32.mxu1 %v37405_v61 }
 0x4fb   : > { %23839 = vmatmul.mubr.f32.gmra.mrb[26].mxu0 %v37448_v52 }
 0x4fc   : > { %23841 = vmatprep.mubr.f32.mxu0 %v37449_v28 }
 0x4fd   : > { %23684 = vmatmul.mubr.f32.vlgmr.msra.gmra.mrb[16].mxu1 %v37406_v37 }
 0x4fe   : > { %23686 = vmatprep.mubr.f32.mxu1 %v37407_v38  ;;  %26602 = vmatpush3.bf16.msra.mxu1 %v30976_v32  ;;  %v31147_v32 = vsub.f32 %v363_v43, %v6722_v58 }
 0x4ff   : > { %26820 = vmatprep.subr.bf16.mxu1 %v31126_v22  ;;  %23842 = vmatmul.mubr.f32.gmra.mrb[28].mxu0 %v37450_v39 }
 0x500   : > { %v6951_v45 = vand.u32 4294901760, %v31147_v32  ;;  %23844 = vmatprep.mubr.f32.mxu0 %v37451_v34 }
 0x501   : > { %23687 = vmatmul.mubr.f32.gmra.mrb[18].mxu1 %v37408_v11 }
 0x502   : > { %23689 = vmatprep.mubr.f32.mxu1 %v37409_v13  ;;  %v6952_v18 = vsub.f32 %v31147_v32, %v6951_v45 }
 0x503   : > { %23845 = vmatmul.mubr.f32.gmra.mrb[30].mxu0 %v37452_v15 }
 0x504   : > { %v6953_v24 = vand.u32 4294901760, %v6952_v18  ;;  %23851 = vmatprep.mubr.f32.mxu0 %v37405_v61 }
 0x505   : > { %23690 = vmatmul.mubr.f32.gmra.mrb[20].mxu1 %v37410_v20 }
 0x506   : > { %23692 = vmatprep.mubr.f32.mxu1 %v37411_v5  ;;  %v31176_v55 = vpack.c.bf16 %v6960_v46, %v6953_v24 }
 0x507   : > { %23852 = vmatmul.mubr.f32.vlgmr.msra.gmra.mrb[16].mxu0 %v37406_v37 }
 0x508   : > { %23854 = vmatprep.mubr.f32.mxu0 %v37407_v38  ;;  %26626 = vmatpush3.bf16.msra.mxu0 %v31049_v40 }
 0x509   : > { %23693 = vmatmul.mubr.f32.gmra.mrb[22].mxu1 %v37412_v3 }
 0x50a   : > { %23695 = vmatprep.mubr.f32.mxu1 %v37413_v27 }
 0x50b   : > { %23855 = vmatmul.mubr.f32.gmra.mrb[18].mxu0 %v37408_v11 }
 0x50c   : > { %23857 = vmatprep.mubr.f32.mxu0 %v37409_v13 }
 0x50d   : > { %23696 = vmatmul.mubr.f32.gmra.mrb[24].mxu1 %v37414_v51 }
 0x50e   : > { %23698 = vmatprep.mubr.f32.mxu1 %v37415_v47 }
 0x50f   : > { %23858 = vmatmul.mubr.f32.gmra.mrb[20].mxu0 %v37410_v20 }
 0x510   : > { %23860 = vmatprep.mubr.f32.mxu0 %v37411_v5 }
 0x511   : > { %23699 = vmatmul.mubr.f32.gmra.mrb[26].mxu1 %v37416_v56 }
 0x512   : > { %23701 = vmatprep.mubr.f32.mxu1 %v37417_v63 }
 0x513   : > { %23861 = vmatmul.mubr.f32.gmra.mrb[22].mxu0 %v37412_v3 }
 0x514   : > { %23863 = vmatprep.mubr.f32.mxu0 %v37413_v27 }
 0x515   : > { %23702 = vmatmul.mubr.f32.gmra.mrb[28].mxu1 %v37418_v42 }
 0x516   : > { %23704 = vmatprep.mubr.f32.mxu1 %v37419_v41 }
 0x517   : > { %23864 = vmatmul.mubr.f32.gmra.mrb[24].mxu0 %v37414_v51 }
 0x518   : > { %23866 = vmatprep.mubr.f32.mxu0 %v37415_v47 }
 0x519   : > { %23705 = vmatmul.mubr.f32.gmra.mrb[30].mxu1 %v37420_v9 }
 0x51a   : > { %23711 = vmatprep.mubr.f32.mxu1 %v37405_v61 }
 0x51b   : > { %23867 = vmatmul.mubr.f32.gmra.mrb[26].mxu0 %v37416_v56 }
 0x51c   : > { %23869 = vmatprep.mubr.f32.mxu0 %v37417_v63 }
 0x51d   : > { %23712 = vmatmul.mubr.f32.vlgmr.msra.gmra.mrb[16].mxu1 %v37406_v37 }
 0x51e   : > { %23714 = vmatprep.mubr.f32.mxu1 %v37407_v38  ;;  %26822 = vmatpush3.bf16.msra.mxu1 %v31126_v22 }
 0x51f   : > { %26824 = vmatprep.subr.bf16.mxu1 %v31176_v55  ;;  %23870 = vmatmul.mubr.f32.gmra.mrb[28].mxu0 %v37418_v42 }
 0x520   : > { %23872 = vmatprep.mubr.f32.mxu0 %v37419_v41 }
 0x521   : > { %23715 = vmatmul.mubr.f32.gmra.mrb[18].mxu1 %v37408_v11 }
 0x522   : > { %23717 = vmatprep.mubr.f32.mxu1 %v37409_v13 }
 0x523   : > { %23873 = vmatmul.mubr.f32.gmra.mrb[30].mxu0 %v37420_v9 }
 0x524   : > { %23879 = vmatprep.mubr.f32.mxu0 %v37405_v61  ;;  %v37453_v61 = vand.u32 4294901760, %v31149_v6 }
 0x525   : > { %23718 = vmatmul.mubr.f32.gmra.mrb[20].mxu1 %v37410_v20 }
 0x526   : > { %23720 = vmatprep.mubr.f32.mxu1 %v37411_v5 }
 0x527   : > { %23880 = vmatmul.mubr.f32.vlgmr.msra.gmra.mrb[16].mxu0 %v37406_v37  ;;  %v26835_v37 = vpack.c.bf16 %v37453_v61, %v6951_v45 }
 0x528   : > { %23882 = vmatprep.mubr.f32.mxu0 %v37407_v38  ;;  %v311_v38 = vld [vmem:[%s31458_s18] sm:$0xff] }
 0x529   : > { %23721 = vmatmul.mubr.f32.gmra.mrb[22].mxu1 %v37412_v3 }
 0x52a   : > { %23723 = vmatprep.mubr.f32.mxu1 %v37413_v27 }
 0x52b   : > { %23883 = vmatmul.mubr.f32.gmra.mrb[18].mxu0 %v37408_v11  ;;  %v31462_v11 = vand.u32 4294901760, %v311_v38 }
 0x52c   : > { %23885 = vmatprep.mubr.f32.mxu0 %v37409_v13 }
 0x52d   : > { %23724 = vmatmul.mubr.f32.gmra.mrb[24].mxu1 %v37414_v51  ;;  %37454 = vst [vmem:[#allocation33_spill] sm:$0xff] %v31462_v11  ;;  %v31466_v13 = vsub.f32 %v311_v38, %v31462_v11 }
 0x52e   : > { %23726 = vmatprep.mubr.f32.mxu1 %v37415_v47 }
 0x52f   : > { %23886 = vmatmul.mubr.f32.gmra.mrb[20].mxu0 %v37410_v20  ;;  %37455 = vst [vmem:[#allocation36_spill] sm:$0xff] %v31466_v13  ;;  %v31470_v20 = vand.u32 4294901760, %v31466_v13 }
 0x530   : > { %v23545_v30 = vpop.f32.mrb[0].mxu1  ;;  %23888 = vmatprep.mubr.f32.mxu0 %v37411_v5 }
 0x531   : > { %v6677_v12 = vsel %vm36780_vm0, %v23545_v30, 0  ;;  %v3085_v29 = vpop.f32.mrb[1].mxu1  ;;  %23727 = vmatmul.mubr.f32.gmra.mrb[26].mxu1 %v37416_v56  ;;  %v31265_v30 = vpack.c.bf16 %v31149_v6, %v31147_v32  ;;  %37456 = vst [vmem:[#allocation37_spill] sm:$0xff] %v31470_v20  ;;  %v5471_v5 = vsub.f32 %v31466_v13, %v31470_v20 }
 0x532   : > { %v31204_v50 = vand.u32 4294901760, %v6677_v12  ;;  %v6674_v10 = vsel %vm36780_vm0, %v3085_v29, 0  ;;  %23729 = vmatprep.mubr.f32.mxu1 %v37417_v63 }
 0x533   : > { %v31208_v14 = vand.u32 4294901760, %v6674_v10  ;;  %23889 = vmatmul.mubr.f32.gmra.mrb[22].mxu0 %v37412_v3  ;;  %v31476_v3 = vand.u32 4294901760, %v5471_v5 }
 0x534   : > { %v31212_v1 = vsub.f32 %v6677_v12, %v31204_v50  ;;  %v23548_v25 = vpop.f32.mrb[2].mxu1  ;;  %23891 = vmatprep.mubr.f32.mxu0 %v37413_v27 }
 0x535   : > { %v31216_v53 = vsub.f32 %v6674_v10, %v31208_v14  ;;  %v6683_v57 = vsel %vm36780_vm0, %v23548_v25, 0  ;;  %v3097_v26 = vpop.f32.mrb[3].mxu1  ;;  %23730 = vmatmul.mubr.f32.gmra.mrb[28].mxu1 %v37418_v42  ;;  %37457 = vst [vmem:[#allocation5_spill] sm:$0xff] %v31476_v3 }
 0x536   : > { %v36722_v44 = vand.u32 4294901760, %v31212_v1  ;;  %v31221_v35 = vand.u32 4294901760, %v6683_v57  ;;  %v6680_v2 = vsel %vm36780_vm0, %v3097_v26, 0  ;;  %23732 = vmatprep.mubr.f32.mxu1 %v37419_v41 }
 0x537   : > { %v36724_v4 = vand.u32 4294901760, %v31216_v53  ;;  %v31226_v54 = vand.u32 4294901760, %v6680_v2  ;;  %23892 = vmatmul.mubr.f32.gmra.mrb[24].mxu0 %v37414_v51  ;;  %v37458_v27 = vand.u32 4294901760, %v31216_v53  ;;  %v37459_v51 = vand.u32 4294901760, %v31212_v1 }
 0x538   : > { %v6801_v31 = vsub.f32 %v31212_v1, %v36722_v44  ;;  %v31237_v17 = vsub.f32 %v6683_v57, %v31221_v35  ;;  %v23551_v43 = vpop.f32.mrb[4].mxu1  ;;  %23894 = vmatprep.mubr.f32.mxu0 %v37415_v47 }
 0x539   : > { %v31241_v8 = vsub.f32 %v6680_v2, %v31226_v54  ;;  %v6689_v60 = vsel %vm36780_vm0, %v23551_v43, 0  ;;  %v3109_v58 = vpop.f32.mrb[5].mxu1  ;;  %23733 = vmatmul.mubr.f32.gmra.mrb[30].mxu1 %v37420_v9  ;;  %v6791_v7 = vsub.f32 %v31216_v53, %v36724_v4 }
 0x53a   : > { %v36719_v0 = vand.u32 4294901760, %v31237_v17  ;;  %v31249_v23 = vand.u32 4294901760, %v6689_v60  ;;  %v6686_v16 = vsel %vm36780_vm0, %v3109_v58, 0  ;;  %v6802_v18 = vand.u32 4294901760, %v6801_v31 }
 0x53b   : > { %v36720_v21 = vand.u32 4294901760, %v31241_v8  ;;  %v31253_v36 = vand.u32 4294901760, %v6686_v16  ;;  %v6792_v48 = vand.u32 4294901760, %v6791_v7  ;;  %23895 = vmatmul.mubr.f32.gmra.mrb[26].mxu0 %v37416_v56  ;;  %v37460_v47 = vand.u32 4294901760, %v31241_v8 }
 0x53c   : > { %v31258_v62 = vsub.f32 %v6689_v60, %v31249_v23  ;;  %v23554_v24 = vpop.f32.mrb[6].mxu1  ;;  %v6821_v46 = vsub.f32 %v31237_v17, %v36719_v0  ;;  %23897 = vmatprep.mubr.f32.mxu0 %v37417_v63  ;;  %v37461_v56 = vand.u32 4294901760, %v31237_v17 }
 0x53d   : > { %v31269_v12 = vsub.f32 %v6686_v16, %v31253_v36  ;;  %v6695_v33 = vsel %vm36780_vm0, %v23554_v24, 0  ;;  %v3121_v29 = vpop.f32.mrb[7].mxu1  ;;  %24243 = vmatprep.mubr.f32.mxu1 %v6792_v48  ;;  %v6811_v10 = vsub.f32 %v31241_v8, %v36720_v21 }
 0x53e   : > { %v36715_v25 = vand.u32 4294901760, %v31258_v62  ;;  %v31276_v57 = vand.u32 4294901760, %v6695_v33  ;;  %v6692_v26 = vsel %vm36780_vm0, %v3121_v29, 0  ;;  %24244 = vmatmul.mubr.f32.vlgmr.msra.gmra.mrb[32].mxu1 %v6802_v18  ;;  %v6822_v60 = vand.u32 4294901760, %v6821_v46 }
 0x53f   : > { %v36717_v49 = vand.u32 4294901760, %v31269_v12  ;;  %v31280_v2 = vand.u32 4294901760, %v6692_v26  ;;  %v6812_v19 = vand.u32 4294901760, %v6811_v10  ;;  %26826 = vmatpush3.bf16.msra.mxu1 %v31176_v55  ;;  %23898 = vmatmul.mubr.f32.gmra.mrb[28].mxu0 %v37418_v42  ;;  %v37462_v63 = vand.u32 4294901760, %v31269_v12 }
 0x540   : > { %v31285_v31 = vsub.f32 %v6695_v33, %v31276_v57  ;;  %v23557_v43 = vpop.f32.mrb[8].mxu1  ;;  %v6841_v58 = vsub.f32 %v31258_v62, %v36715_v25  ;;  %26828 = vmatprep.subr.bf16.mxu1 %v31265_v30  ;;  %23900 = vmatprep.mubr.f32.mxu0 %v37419_v41  ;;  %v37463_v42 = vand.u32 4294901760, %v31258_v62 }
 0x541   : > { %v31293_v7 = vsub.f32 %v6692_v26, %v31280_v2  ;;  %v6701_v55 = vsel %vm36780_vm0, %v23557_v43, 0  ;;  %v3133_v16 = vpop.f32.mrb[9].mxu1  ;;  %24246 = vmatprep.mubr.f32.mxu1 %v6812_v19  ;;  %v6831_v52 = vsub.f32 %v31269_v12, %v36717_v49 }
 0x542   : > { %v36714_v48 = vand.u32 4294901760, %v31285_v31  ;;  %v31300_v18 = vand.u32 4294901760, %v6701_v55  ;;  %v6698_v24 = vsel %vm36780_vm0, %v3133_v16, 0  ;;  %24247 = vmatmul.mubr.f32.gmra.mrb[34].mxu1 %v6822_v60  ;;  %v6842_v26 = vand.u32 4294901760, %v6841_v58 }
 0x543   : > { %v36716_v28 = vand.u32 4294901760, %v31293_v7  ;;  %v31304_v46 = vand.u32 4294901760, %v6698_v24  ;;  %v6832_v33 = vand.u32 4294901760, %v6831_v52  ;;  %23901 = vmatmul.mubr.f32.gmra.mrb[30].mxu0 %v37420_v9  ;;  %v37464_v41 = vand.u32 4294901760, %v31293_v7 }
 0x544   : > { %v31308_v29 = vsub.f32 %v6701_v55, %v31300_v18  ;;  %v23560_v10 = vpop.f32.mrb[10].mxu1  ;;  %v6861_v19 = vsub.f32 %v31285_v31, %v36714_v48  ;;  %23935 = vmatprep.mubr.f32.mxu0 %v31476_v3  ;;  %v37465_v9 = vand.u32 4294901760, %v31285_v31 }
 0x545   : > { %v31315_v43 = vsub.f32 %v6698_v24, %v31304_v46  ;;  %v6707_v60 = vsel %vm36780_vm0, %v23560_v10, 0  ;;  %v3145_v16 = vpop.f32.mrb[11].mxu1  ;;  %24249 = vmatprep.mubr.f32.mxu1 %v6832_v33  ;;  %v6851_v39 = vsub.f32 %v31293_v7, %v36716_v28 }
 0x546   : > { %v36718_v55 = vand.u32 4294901760, %v31308_v29  ;;  %v31322_v58 = vand.u32 4294901760, %v6707_v60  ;;  %v6704_v52 = vsel %vm36780_vm0, %v3145_v16, 0  ;;  %24250 = vmatmul.mubr.f32.gmra.mrb[36].mxu1 %v6842_v26  ;;  %v6862_v25 = vand.u32 4294901760, %v6861_v19 }
 0x547   : > { %v36721_v34 = vand.u32 4294901760, %v31315_v43  ;;  %v31326_v48 = vand.u32 4294901760, %v6704_v52  ;;  %v6852_v24 = vand.u32 4294901760, %v6851_v39  ;;  %v37466_v32 = vand.u32 4294901760, %v31315_v43 }
 0x548   : > { %v31330_v33 = vsub.f32 %v6707_v60, %v31322_v58  ;;  %v23563_v10 = vpop.f32.mrb[12].mxu1  ;;  %v6881_v28 = vsub.f32 %v31308_v29, %v36718_v55  ;;  %v37467_v6 = vand.u32 4294901760, %v31308_v29 }
 0x549   : > { %v31337_v26 = vsub.f32 %v6704_v52, %v31326_v48  ;;  %v6713_v16 = vsel %vm36780_vm0, %v23563_v10, 0  ;;  %v3157_v49 = vpop.f32.mrb[13].mxu1  ;;  %24252 = vmatprep.mubr.f32.mxu1 %v6852_v24  ;;  %v6871_v15 = vsub.f32 %v31315_v43, %v36721_v34 }
 0x54a   : > { %v36723_v60 = vand.u32 4294901760, %v31330_v33  ;;  %v31344_v19 = vand.u32 4294901760, %v6713_v16  ;;  %v6710_v39 = vsel %vm36780_vm0, %v3157_v49, 0  ;;  %24253 = vmatmul.mubr.f32.gmra.mrb[38].mxu1 %v6862_v25  ;;  %v6882_v21 = vand.u32 4294901760, %v6881_v28 }
 0x54b   : > { %v36725_v55 = vand.u32 4294901760, %v31337_v26  ;;  %v31348_v0 = vand.u32 4294901760, %v6710_v39  ;;  %v6872_v52 = vand.u32 4294901760, %v6871_v15  ;;  %v37468_v45 = vand.u32 4294901760, %v31337_v26 }
 0x54c   : > { %v31352_v24 = vsub.f32 %v6713_v16, %v31344_v19  ;;  %v23566_v10 = vpop.f32.mrb[14].mxu1  ;;  %v6901_v34 = vsub.f32 %v31330_v33, %v36723_v60 }
 0x54d   : > { %v31360_v25 = vsub.f32 %v6710_v39, %v31348_v0  ;;  %v6719_v49 = vsel %vm36780_vm0, %v23566_v10, 0  ;;  %v3169_v15 = vpop.f32.mrb[15].mxu1  ;;  %24255 = vmatprep.mubr.f32.mxu1 %v6872_v52  ;;  %v6891_v16 = vsub.f32 %v31337_v26, %v36725_v55 }
 0x54e   : > { %v36727_v28 = vand.u32 4294901760, %v31352_v24  ;;  %v31367_v44 = vand.u32 4294901760, %v6719_v49  ;;  %v6716_v60 = vsel %vm36780_vm0, %v3169_v15, 0  ;;  %24256 = vmatmul.mubr.f32.gmra.mrb[40].mxu1 %v6882_v21  ;;  %v6902_v10 = vand.u32 4294901760, %v6901_v34 }
 0x54f   : > { %v6910_v40 = vand.u32 4294901760, %v31360_v25  ;;  %v31371_v4 = vand.u32 4294901760, %v6716_v60  ;;  %v6892_v39 = vand.u32 4294901760, %v6891_v16  ;;  %vm7890_vm0 = vcmask 261120  }
 0x550   : > { %v31375_v52 = vsub.f32 %v6719_v49, %v31367_v44  ;;  %v6921_v55 = vsub.f32 %v31352_v24, %v36727_v28 }
 0x551   : > { %v31382_v15 = vsub.f32 %v6716_v60, %v31371_v4  ;;  %24258 = vmatprep.mubr.f32.mxu1 %v6892_v39  ;;  %v6911_v21 = vsub.f32 %v31360_v25, %v6910_v40 }
 0x552   : > { %v6940_v16 = vand.u32 4294901760, %v31375_v52  ;;  %24259 = vmatmul.mubr.f32.gmra.mrb[42].mxu1 %v6902_v10  ;;  %v6922_v59 = vand.u32 4294901760, %v6921_v55 }
 0x553   : > { %v6930_v49 = vand.u32 4294901760, %v31382_v15  ;;  %v6912_v34 = vand.u32 4294901760, %v6911_v21 }
 0x554   : > { %v6941_v28 = vsub.f32 %v31375_v52, %v6940_v16 }
 0x555   : > { %24261 = vmatprep.mubr.f32.mxu1 %v6912_v34  ;;  %v6931_v60 = vsub.f32 %v31382_v15, %v6930_v49 }
 0x556   : > { %24262 = vmatmul.mubr.f32.gmra.mrb[44].mxu1 %v6922_v59  ;;  %v6942_v10 = vand.u32 4294901760, %v6941_v28  ;;  %v37469_v59 = vand.u32 4294901760, %v31330_v33 }
 0x557   : > { %v6932_v39 = vand.u32 4294901760, %v6931_v60 }
 0x559   : > { %24264 = vmatprep.mubr.f32.mxu1 %v6932_v39 }
 0x55a   : > { %24265 = vmatmul.mubr.f32.gmra.mrb[46].mxu1 %v6942_v10 }
 0x55b   : > { %24271 = vmatprep.mubr.f32.mxu1 %v31208_v14 }
 0x55e   : > { %24272 = vmatmul.mubr.f32.vlgmr.msra.gmra.mrb[32].mxu1 %v31204_v50 }
 0x55f   : > { %24274 = vmatprep.mubr.f32.mxu1 %v31226_v54  ;;  %26830 = vmatpush3.bf16.msra.mxu1 %v31265_v30 }
 0x560   : > { %26832 = vmatprep.subr.bf16.mxu1 %v31126_v22 }
 0x562   : > { %24275 = vmatmul.mubr.f32.gmra.mrb[34].mxu1 %v31221_v35 }
 0x563   : > { %24277 = vmatprep.mubr.f32.mxu1 %v31253_v36 }
 0x566   : > { %24278 = vmatmul.mubr.f32.gmra.mrb[36].mxu1 %v31249_v23 }
 0x567   : > { %24280 = vmatprep.mubr.f32.mxu1 %v31280_v2 }
 0x56a   : > { %24281 = vmatmul.mubr.f32.gmra.mrb[38].mxu1 %v31276_v57 }
 0x56b   : > { %24283 = vmatprep.mubr.f32.mxu1 %v31304_v46 }
 0x56e   : > { %24284 = vmatmul.mubr.f32.gmra.mrb[40].mxu1 %v31300_v18 }
 0x56f   : > { %24286 = vmatprep.mubr.f32.mxu1 %v31326_v48 }
 0x572   : > { %24287 = vmatmul.mubr.f32.gmra.mrb[42].mxu1 %v31322_v58 }
 0x573   : > { %24289 = vmatprep.mubr.f32.mxu1 %v31348_v0 }
 0x576   : > { %24290 = vmatmul.mubr.f32.gmra.mrb[44].mxu1 %v31344_v19 }
 0x577   : > { %24292 = vmatprep.mubr.f32.mxu1 %v31371_v4 }
 0x57a   : > { %24293 = vmatmul.mubr.f32.gmra.mrb[46].mxu1 %v31367_v44 }
 0x57b   : > { %24299 = vmatprep.mubr.f32.mxu1 %v31216_v53 }
 0x57e   : > { %24300 = vmatmul.mubr.f32.vlgmr.msra.gmra.mrb[32].mxu1 %v31212_v1  ;;  %v37470_v1 = vand.u32 4294901760, %v31352_v24 }
 0x57f   : > { %24302 = vmatprep.mubr.f32.mxu1 %v31241_v8  ;;  %26834 = vmatpush3.bf16.msra.mxu1 %v31126_v22 }
 0x580   : > { %26836 = vmatprep.subr.bf16.mxu1 %v26835_v37 }
 0x582   : > { %24303 = vmatmul.mubr.f32.gmra.mrb[34].mxu1 %v31237_v17  ;;  %v313_v17 = vld [vmem:[%s31458_s18 + $0x10] sm:$0xff] }
 0x583   : > { %24305 = vmatprep.mubr.f32.mxu1 %v31269_v12 }
 0x586   : > { %24306 = vmatmul.mubr.f32.gmra.mrb[36].mxu1 %v31258_v62 }
 0x587   : > { %24308 = vmatprep.mubr.f32.mxu1 %v31293_v7  ;;  %v315_v7 = vld [vmem:[%s31458_s18 + $0x20] sm:$0xff] }
 0x58a   : > { %24309 = vmatmul.mubr.f32.gmra.mrb[38].mxu1 %v31285_v31 }
 0x58b   : > { %24311 = vmatprep.mubr.f32.mxu1 %v31315_v43 }
 0x58e   : > { %24312 = vmatmul.mubr.f32.gmra.mrb[40].mxu1 %v31308_v29 }
 0x58f   : > { %24314 = vmatprep.mubr.f32.mxu1 %v31337_v26  ;;  %v31576_v26 = vand.u32 4294901760, %v315_v7 }
 0x591   : > { %37479 = vst [vmem:[#allocation25_spill] sm:$0xff] %v31576_v26 }
 0x592   : > { %24315 = vmatmul.mubr.f32.gmra.mrb[42].mxu1 %v31330_v33 }
 0x593   : > { %24317 = vmatprep.mubr.f32.mxu1 %v31360_v25 }
 0x596   : > { %24318 = vmatmul.mubr.f32.gmra.mrb[44].mxu1 %v31352_v24  ;;  %v316_v24 = vld [vmem:[%s31458_s18 + $0x28] sm:$0xff] }
 0x597   : > { %24320 = vmatprep.mubr.f32.mxu1 %v31382_v15 }
 0x59a   : > { %24321 = vmatmul.mubr.f32.gmra.mrb[46].mxu1 %v31375_v52 }
 0x59b   : > { %24327 = vmatprep.mubr.f32.mxu1 %v37458_v27 }
 0x59e   : > { %24328 = vmatmul.mubr.f32.vlgmr.msra.gmra.mrb[32].mxu1 %v37459_v51 }
 0x59f   : > { %24330 = vmatprep.mubr.f32.mxu1 %v37460_v47  ;;  %26838 = vmatpush3.bf16.msra.mxu1 %v26835_v37  ;;  %v31592_v37 = vand.u32 4294901760, %v316_v24 }
 0x5a0   : > { %26840 = vmatprep.subr.bf16.mxu1 %v31126_v22 }
 0x5a1   : > { %37483 = vst [vmem:[#allocation23_spill] sm:$0xff] %v31592_v37 }
 0x5a2   : > { %24331 = vmatmul.mubr.f32.gmra.mrb[34].mxu1 %v37461_v56 }
 0x5a3   : > { %24333 = vmatprep.mubr.f32.mxu1 %v37462_v63  ;;  %v31602_v63 = vsub.f32 %v315_v7, %v31576_v26 }
 0x5a5   : > { %37484 = vst [vmem:[#allocation44_spill] sm:$0xff] %v31602_v63 }
 0x5a6   : > { %24334 = vmatmul.mubr.f32.gmra.mrb[36].mxu1 %v37463_v42 }
 0x5a7   : > { %24336 = vmatprep.mubr.f32.mxu1 %v37464_v41 }
 0x5aa   : > { %24337 = vmatmul.mubr.f32.gmra.mrb[38].mxu1 %v37465_v9 }
 0x5ab   : > { %24339 = vmatprep.mubr.f32.mxu1 %v37466_v32 }
 0x5ae   : > { %24340 = vmatmul.mubr.f32.gmra.mrb[40].mxu1 %v37467_v6 }
 0x5af   : > { %24342 = vmatprep.mubr.f32.mxu1 %v37468_v45 }
 0x5b2   : > { %24343 = vmatmul.mubr.f32.gmra.mrb[42].mxu1 %v37469_v59 }
 0x5b3   : > { %24345 = vmatprep.mubr.f32.mxu1 %v6910_v40 }
 0x5b6   : > { %24346 = vmatmul.mubr.f32.gmra.mrb[44].mxu1 %v37470_v1 }
 0x5b7   : > { %24348 = vmatprep.mubr.f32.mxu1 %v6930_v49 }
 0x5ba   : > { %24349 = vmatmul.mubr.f32.gmra.mrb[46].mxu1 %v6940_v16 }
 0x5bb   : > { %24355 = vmatprep.mubr.f32.mxu1 %v31208_v14 }
 0x5be   : > { %24356 = vmatmul.mubr.f32.vlgmr.msra.gmra.mrb[32].mxu1 %v31204_v50 }
 0x5bf   : > { %24358 = vmatprep.mubr.f32.mxu1 %v31226_v54  ;;  %26842 = vmatpush3.bf16.msra.mxu1 %v31126_v22  ;;  %v312_v22 = vld [vmem:[%s31458_s18 + $0x8] sm:$0xff] }
 0x5c0   : > { %v31540_v53 = vand.u32 4294901760, %v312_v22 }
 0x5c2   : > { %24359 = vmatmul.mubr.f32.gmra.mrb[34].mxu1 %v31221_v35  ;;  %37471 = vst [vmem:[#allocation6_spill] sm:$0xff] %v31540_v53 }
 0x5c3   : > { %24361 = vmatprep.mubr.f32.mxu1 %v31253_v36 }
 0x5c6   : > { %24362 = vmatmul.mubr.f32.gmra.mrb[36].mxu1 %v31249_v23 }
 0x5c7   : > { %24364 = vmatprep.mubr.f32.mxu1 %v31280_v2 }
 0x5ca   : > { %24365 = vmatmul.mubr.f32.gmra.mrb[38].mxu1 %v31276_v57 }
 0x5cb   : > { %24367 = vmatprep.mubr.f32.mxu1 %v31304_v46 }
 0x5ce   : > { %24368 = vmatmul.mubr.f32.gmra.mrb[40].mxu1 %v31300_v18 }
 0x5cf   : > { %24370 = vmatprep.mubr.f32.mxu1 %v31326_v48 }
 0x5d2   : > { %24371 = vmatmul.mubr.f32.gmra.mrb[42].mxu1 %v31322_v58 }
 0x5d3   : > { %24373 = vmatprep.mubr.f32.mxu1 %v31348_v0 }
 0x5d6   : > { %24374 = vmatmul.mubr.f32.gmra.mrb[44].mxu1 %v31344_v19 }
 0x5d7   : > { %24376 = vmatprep.mubr.f32.mxu1 %v31371_v4 }
 0x5da   : > { %24377 = vmatmul.mubr.f32.gmra.mrb[46].mxu1 %v31367_v44 }
 0x5db   : > { %24383 = vmatprep.mubr.f32.mxu1 %v31208_v14  ;;  %v314_v14 = vld [vmem:[%s31458_s18 + $0x18] sm:$0xff] }
 0x5dc   : > { %v31556_v8 = vand.u32 4294901760, %v314_v14 }
 0x5de   : > { %24384 = vmatmul.mubr.f32.vlgmr.msra.gmra.mrb[32].mxu1 %v31204_v50  ;;  %v31546_v50 = vsub.f32 %v312_v22, %v31540_v53  ;;  %37475 = vst [vmem:[#allocation13_spill] sm:$0xff] %v31556_v8  ;;  %v31566_v31 = vsub.f32 %v314_v14, %v31556_v8 }
 0x5df   : > { %24386 = vmatprep.mubr.f32.mxu1 %v31226_v54 }
 0x5e0   : > { %37472 = vst [vmem:[#allocation7_spill] sm:$0xff] %v31546_v50  ;;  %v31554_v54 = vand.u32 4294901760, %v31546_v50  ;;  %37477 = vst [vmem:[#allocation18_spill] sm:$0xff] %v31566_v31  ;;  %v31586_v15 = vand.u32 4294901760, %v31566_v31 }
 0x5e2   : > { %24387 = vmatmul.mubr.f32.gmra.mrb[34].mxu1 %v31221_v35  ;;  %v31549_v35 = vand.u32 4294901760, %v313_v17  ;;  %37474 = vst [vmem:[#allocation12_spill] sm:$0xff] %v31554_v54  ;;  %37481 = vst [vmem:[#allocation29_spill] sm:$0xff] %v31586_v15 }
 0x5e3   : > { %24389 = vmatprep.mubr.f32.mxu1 %v31253_v36 }
 0x5e4   : > { %37473 = vst [vmem:[#allocation8_spill] sm:$0xff] %v31549_v35  ;;  %v31559_v30 = vsub.f32 %v313_v17, %v31549_v35 }
 0x5e6   : > { %24390 = vmatmul.mubr.f32.gmra.mrb[36].mxu1 %v31249_v23  ;;  %37476 = vst [vmem:[#allocation17_spill] sm:$0xff] %v31559_v30 }
 0x5e7   : > { %24392 = vmatprep.mubr.f32.mxu1 %v31280_v2  ;;  %v5481_v2 = vsub.f32 %v31546_v50, %v31554_v54 }
 0x5e9   : > { %v31583_v52 = vand.u32 4294901760, %v5481_v2  ;;  %v31617_v2 = vsub.f32 %v316_v24, %v31592_v37 }
 0x5ea   : > { %24393 = vmatmul.mubr.f32.gmra.mrb[38].mxu1 %v31276_v57 }
 0x5eb   : > { %24395 = vmatprep.mubr.f32.mxu1 %v31304_v46  ;;  %37480 = vst [vmem:[#allocation28_spill] sm:$0xff] %v31583_v52  ;;  %37486 = vst [vmem:[#allocation50_spill] sm:$0xff] %v31617_v2 }
 0x5ee   : > { %24396 = vmatmul.mubr.f32.gmra.mrb[40].mxu1 %v31300_v18 }
 0x5ef   : > { %24398 = vmatprep.mubr.f32.mxu1 %v31326_v48 }
 0x5f0   : > { %v23713_v23 = vpop.f32.mrb[16].mxu1 }
 0x5f1   : > { %v5391_v36 = vand.u32 4294901760, %v23713_v23  ;;  %v4189_v62 = vpop.f32.mrb[17].mxu1 }
 0x5f2   : > { %v5388_v12 = vand.u32 4294901760, %v4189_v62  ;;  %24399 = vmatmul.mubr.f32.gmra.mrb[42].mxu1 %v31322_v58  ;;  %v31572_v58 = vand.u32 4294901760, %v31559_v30 }
 0x5f3   : > { %v5637_v57 = vsub.f32 %v23713_v23, %v5391_v36  ;;  %24401 = vmatprep.mubr.f32.mxu1 %v31348_v0 }
 0x5f4   : > { %v31569_v48 = vpack.c.bf16 %v5391_v36, %v5388_v12  ;;  %v5630_v18 = vsub.f32 %v4189_v62, %v5388_v12  ;;  %v23716_v46 = vpop.f32.mrb[18].mxu1  ;;  %37478 = vst [vmem:[#allocation24_spill] sm:$0xff] %v31572_v58  ;;  %v5491_v56 = vsub.f32 %v31559_v30, %v31572_v58 }
 0x5f5   : > { %v5638_v29 = vand.u32 4294901760, %v5637_v57  ;;  %v5397_v43 = vand.u32 4294901760, %v23716_v46  ;;  %v4201_v55 = vpop.f32.mrb[19].mxu1 }
 0x5f6   : > { %v5631_v33 = vand.u32 4294901760, %v5630_v18  ;;  %v5394_v0 = vand.u32 4294901760, %v4201_v55  ;;  %26628 = vmatprep.subr.bf16.mxu0 %v31569_v48  ;;  %24402 = vmatmul.mubr.f32.gmra.mrb[44].mxu1 %v31344_v19  ;;  %v31579_v25 = vpack.c.bf16 %v5637_v57, %v5630_v18 }
 0x5f7   : > { %v5639_v28 = vsub.f32 %v5637_v57, %v5638_v29  ;;  %v5651_v40 = vsub.f32 %v23716_v46, %v5397_v43  ;;  %26630 = vmatpush3.bf16.msra.mxu0 %v31569_v48  ;;  %24404 = vmatprep.mubr.f32.mxu1 %v31371_v4 }
 0x5f8   : > { %v5632_v21 = vsub.f32 %v5630_v18, %v5631_v33  ;;  %v31588_v16 = vpack.c.bf16 %v5397_v43, %v5394_v0  ;;  %v5644_v19 = vsub.f32 %v4201_v55, %v5394_v0  ;;  %v23719_v49 = vpop.f32.mrb[20].mxu1  ;;  %v31590_v34 = vpack.c.bf16 %v5638_v29, %v5631_v33 }
 0x5f9   : > { %v5652_v60 = vand.u32 4294901760, %v5651_v40  ;;  %v5403_v39 = vand.u32 4294901760, %v23719_v49  ;;  %v4213_v10 = vpop.f32.mrb[21].mxu1  ;;  %v5640_v61 = vand.u32 4294901760, %v5639_v28 }
 0x5fa   : > { %37482 = vst [vmem:[#allocation32_spill] sm:$0xff] %v31590_v34  ;;  %v5645_v38 = vand.u32 4294901760, %v5644_v19  ;;  %v5400_v4 = vand.u32 4294901760, %v4213_v10  ;;  %26632 = vmatprep.subr.bf16.mxu0 %v31588_v16  ;;  %24405 = vmatmul.mubr.f32.gmra.mrb[46].mxu1 %v31367_v44  ;;  %v5633_v5 = vand.u32 4294901760, %v5632_v21  ;;  %v31596_v27 = vpack.c.bf16 %v5651_v40, %v5644_v19 }
 0x5fb   : > { %v5653_v51 = vsub.f32 %v5651_v40, %v5652_v60  ;;  %v5665_v47 = vsub.f32 %v23719_v49, %v5403_v39  ;;  %26634 = vmatpush3.bf16.msra.mxu0 %v31588_v16 }
 0x5fc   : > { %v5646_v42 = vsub.f32 %v5644_v19, %v5645_v38  ;;  %v31604_v41 = vpack.c.bf16 %v5403_v39, %v5400_v4  ;;  %v5658_v9 = vsub.f32 %v4213_v10, %v5400_v4  ;;  %v23722_v32 = vpop.f32.mrb[22].mxu1  ;;  %v31606_v6 = vpack.c.bf16 %v5640_v61, %v5633_v5 }
 0x5fd   : > { %v5666_v44 = vand.u32 4294901760, %v5665_v47  ;;  %v5409_v45 = vand.u32 4294901760, %v23722_v32  ;;  %v4225_v59 = vpop.f32.mrb[23].mxu1  ;;  %v5654_v1 = vand.u32 4294901760, %v5653_v51  ;;  %v31608_v22 = vpack.c.bf16 %v5652_v60, %v5645_v38 }
 0x5fe   : > { %v5659_v17 = vand.u32 4294901760, %v5658_v9  ;;  %v5406_v14 = vand.u32 4294901760, %v4225_v59  ;;  %26636 = vmatprep.subr.bf16.mxu0 %v31604_v41  ;;  %v5647_v23 = vand.u32 4294901760, %v5646_v42  ;;  %v31611_v36 = vpack.c.bf16 %v5665_v47, %v5658_v9  ;;  %v317_v42 = vld [vmem:[%s31458_s18 + $0x30] sm:$0xff] }
 0x5ff   : > { %37485 = vst [vmem:[#allocation49_spill] sm:$0xff] %v31608_v22  ;;  %v5667_v62 = vsub.f32 %v5665_v47, %v5666_v44  ;;  %v5679_v12 = vsub.f32 %v23722_v32, %v5409_v45  ;;  %26638 = vmatpush3.bf16.msra.mxu0 %v31604_v41  ;;  %v31629_v10 = vand.u32 4294901760, %v5491_v56  ;;  %v31632_v61 = vand.u32 4294901760, %v31602_v63 }
 0x600   : > { %v5660_v7 = vsub.f32 %v5658_v9, %v5659_v17  ;;  %v31619_v18 = vpack.c.bf16 %v5409_v45, %v5406_v14  ;;  %v5672_v46 = vsub.f32 %v4225_v59, %v5406_v14  ;;  %v23725_v29 = vpop.f32.mrb[24].mxu1  ;;  %v31621_v43 = vpack.c.bf16 %v5654_v1, %v5647_v23 }
 0x601   : > { %v5680_v55 = vand.u32 4294901760, %v5679_v12  ;;  %v5415_v33 = vand.u32 4294901760, %v23725_v29  ;;  %v4237_v0 = vpop.f32.mrb[25].mxu1  ;;  %v5668_v28 = vand.u32 4294901760, %v5667_v62  ;;  %v31623_v40 = vpack.c.bf16 %v5666_v44, %v5659_v17  ;;  %37488 = vst [vmem:[#allocation59_spill] sm:$0xff] %v31629_v10  ;;  %37489 = vst [vmem:[#allocation65_spill] sm:$0xff] %v31632_v61 }
 0x602   : > { %v5673_v21 = vand.u32 4294901760, %v5672_v46  ;;  %v5412_v19 = vand.u32 4294901760, %v4237_v0  ;;  %26640 = vmatprep.subr.bf16.mxu0 %v31619_v18  ;;  %v5661_v24 = vand.u32 4294901760, %v5660_v7  ;;  %v31626_v49 = vpack.c.bf16 %v5679_v12, %v5672_v46 }
 0x603   : > { %37487 = vst [vmem:[#allocation58_spill] sm:$0xff] %v31623_v40  ;;  %v5681_v60 = vsub.f32 %v5679_v12, %v5680_v55  ;;  %v5693_v39 = vsub.f32 %v23725_v29, %v5415_v33  ;;  %26642 = vmatpush3.bf16.msra.mxu0 %v31619_v18  ;;  %v31646_v12 = vand.u32 4294901760, %v31617_v2  ;;  %v31648_v7 = vand.u32 4294901760, %v317_v42 }
 0x604   : > { %v5674_v38 = vsub.f32 %v5672_v46, %v5673_v21  ;;  %v31634_v4 = vpack.c.bf16 %v5415_v33, %v5412_v19  ;;  %v5686_v5 = vsub.f32 %v4237_v0, %v5412_v19  ;;  %v23728_v51 = vpop.f32.mrb[26].mxu1  ;;  %v31636_v47 = vpack.c.bf16 %v5668_v28, %v5661_v24  ;;  %v318_v28 = vld [vmem:[%s31458_s18 + $0x38] sm:$0xff] }
 0x605   : > { %v5694_v9 = vand.u32 4294901760, %v5693_v39  ;;  %v5421_v32 = vand.u32 4294901760, %v23728_v51  ;;  %v4249_v44 = vpop.f32.mrb[27].mxu1  ;;  %v5682_v45 = vand.u32 4294901760, %v5681_v60  ;;  %v31639_v59 = vpack.c.bf16 %v5680_v55, %v5673_v21  ;;  %37491 = vst [vmem:[#allocation71_spill] sm:$0xff] %v31646_v12  ;;  %37492 = vst [vmem:[#allocation74_spill] sm:$0xff] %v31648_v7 }
 0x606   : > { %v5687_v56 = vand.u32 4294901760, %v5686_v5  ;;  %v5418_v1 = vand.u32 4294901760, %v4249_v44  ;;  %26644 = vmatprep.subr.bf16.mxu0 %v31634_v4  ;;  %v5675_v17 = vand.u32 4294901760, %v5674_v38  ;;  %v31642_v14 = vpack.c.bf16 %v5693_v39, %v5686_v5 }
 0x607   : > { %37490 = vst [vmem:[#allocation68_spill] sm:$0xff] %v31639_v59  ;;  %v5695_v23 = vsub.f32 %v5693_v39, %v5694_v9  ;;  %v5707_v62 = vsub.f32 %v23728_v51, %v5421_v32  ;;  %26646 = vmatpush3.bf16.msra.mxu0 %v31634_v4 }
 0x608   : > { %v5688_v46 = vsub.f32 %v5686_v5, %v5687_v56  ;;  %v31650_v29 = vpack.c.bf16 %v5421_v32, %v5418_v1  ;;  %v5700_v55 = vsub.f32 %v4249_v44, %v5418_v1  ;;  %v23731_v33 = vpop.f32.mrb[28].mxu1  ;;  %v31652_v0 = vpack.c.bf16 %v5682_v45, %v5675_v17 }
 0x609   : > { %v5708_v21 = vand.u32 4294901760, %v5707_v62  ;;  %v5427_v19 = vand.u32 4294901760, %v23731_v33  ;;  %v4261_v24 = vpop.f32.mrb[29].mxu1  ;;  %v5696_v60 = vand.u32 4294901760, %v5695_v23  ;;  %v31655_v39 = vpack.c.bf16 %v5694_v9, %v5687_v56 }
 0x60a   : > { %v5701_v38 = vand.u32 4294901760, %v5700_v55  ;;  %v5424_v51 = vand.u32 4294901760, %v4261_v24  ;;  %26648 = vmatprep.subr.bf16.mxu0 %v31650_v29  ;;  %v5689_v57 = vand.u32 4294901760, %v5688_v46  ;;  %v31658_v5 = vpack.c.bf16 %v5707_v62, %v5700_v55 }
 0x60b   : > { %37493 = vst [vmem:[#allocation77_spill] sm:$0xff] %v31655_v39  ;;  %v5709_v32 = vsub.f32 %v5707_v62, %v5708_v21  ;;  %v5721_v44 = vsub.f32 %v23731_v33, %v5427_v19  ;;  %26650 = vmatpush3.bf16.msra.mxu0 %v31650_v29  ;;  %v31662_v45 = vsub.f32 %v317_v42, %v31648_v7  ;;  %v31664_v1 = vand.u32 4294901760, %v318_v28  ;;  %v319_v39 = vld [vmem:[%s31458_s18 + $0x40] sm:$0xff] }
 0x60c   : > { %v5702_v17 = vsub.f32 %v5700_v55, %v5701_v38  ;;  %v31666_v9 = vpack.c.bf16 %v5427_v19, %v5424_v51  ;;  %v5714_v56 = vsub.f32 %v4261_v24, %v5424_v51  ;;  %v23734_v23 = vpop.f32.mrb[30].mxu1  ;;  %v31668_v3 = vpack.c.bf16 %v5696_v60, %v5689_v57 }
 0x60d   : > { %37494 = vst [vmem:[#allocation79_spill] sm:$0xff] %v31662_v45  ;;  %37495 = vst [vmem:[#allocation81_spill] sm:$0xff] %v31664_v1  ;;  %v5722_v46 = vand.u32 4294901760, %v5721_v44  ;;  %v5433_v59 = vand.u32 4294901760, %v23734_v23  ;;  %v4273_v62 = vpop.f32.mrb[31].mxu1  ;;  %v5710_v33 = vand.u32 4294901760, %v5709_v32  ;;  %v31671_v40 = vpack.c.bf16 %v5708_v21, %v5701_v38 }
 0x60e   : > { %v5715_v42 = vand.u32 4294901760, %v5714_v56  ;;  %v5430_v22 = vand.u32 4294901760, %v4273_v62  ;;  %26652 = vmatprep.subr.bf16.mxu0 %v31666_v9  ;;  %v5703_v55 = vand.u32 4294901760, %v5702_v17  ;;  %v31674_v19 = vpack.c.bf16 %v5721_v44, %v5714_v56  ;;  %v320_v32 = vld [vmem:[%s31458_s18 + $0x48] sm:$0xff]  ;;  %v321_v17 = vld [vmem:[%s31458_s18 + $0x50] sm:$0xff] }
 0x60f   : > { %37496 = vst [vmem:[#allocation82_spill] sm:$0xff] %v31671_v40  ;;  %v5723_v24 = vsub.f32 %v5721_v44, %v5722_v46  ;;  %v5735_v51 = vsub.f32 %v23734_v23, %v5433_v59  ;;  %26654 = vmatpush3.bf16.msra.mxu0 %v31666_v9  ;;  %v31678_v57 = vsub.f32 %v318_v28, %v31664_v1  ;;  %v31680_v60 = vand.u32 4294901760, %v319_v39 }
 0x610   : > { %v5716_v21 = vsub.f32 %v5714_v56, %v5715_v42  ;;  %v31683_v38 = vpack.c.bf16 %v5433_v59, %v5430_v22  ;;  %v5728_v40 = vsub.f32 %v4273_v62, %v5430_v22  ;;  %v31685_v58 = vpack.c.bf16 %v5710_v33, %v5703_v55 }
 0x611   : > { %37497 = vst [vmem:[#allocation83_spill] sm:$0xff] %v31678_v57  ;;  %37498 = vst [vmem:[#allocation84_spill] sm:$0xff] %v31680_v60  ;;  %v5736_v54 = vand.u32 4294901760, %v5735_v51  ;;  %v31689_v44 = vand.u32 4294901760, %v31662_v45  ;;  %v5724_v23 = vand.u32 4294901760, %v5723_v24  ;;  %v31691_v34 = vpack.c.bf16 %v5722_v46, %v5715_v42  ;;  %v322_v46 = vld [vmem:[%s31458_s18 + $0x58] sm:$0xff] }
 0x612   : > { %37499 = vst [vmem:[#allocation9_spill] sm:$0xff] %v31683_v38  ;;  %v5729_v28 = vand.u32 4294901760, %v5728_v40  ;;  %26656 = vmatprep.subr.bf16.mxu0 %v31683_v38  ;;  %v31694_v20 = vand.u32 4294901760, %v320_v32  ;;  %v5717_v59 = vand.u32 4294901760, %v5716_v21  ;;  %v31696_v56 = vpack.c.bf16 %v5735_v51, %v5728_v40  ;;  %v323_v21 = vld [vmem:[%s31458_s18 + $0x60] sm:$0xff] }
 0x613   : > { %37500 = vst [vmem:[#allocation10_spill] sm:$0xff] %v31689_v44  ;;  %37501 = vst [vmem:[#allocation11_spill] sm:$0xff] %v31691_v34  ;;  %v5737_v22 = vsub.f32 %v5735_v51, %v5736_v54  ;;  %26658 = vmatpush3.bf16.msra.mxu0 %v31683_v38  ;;  %v5511_v62 = vsub.f32 %v31602_v63, %v31632_v61  ;;  %v31702_v33 = vsub.f32 %v319_v39, %v31680_v60 }
 0x614   : > { %37502 = vst [vmem:[#allocation14_spill] sm:$0xff] %v31694_v20  ;;  %v31704_v55 = vand.u32 4294901760, %v321_v17  ;;  %v5730_v42 = vsub.f32 %v5728_v40, %v5729_v28  ;;  %26660 = vmatprep.subr.bf16.mxu0 %v31606_v6  ;;  %v31708_v24 = vpack.c.bf16 %v5724_v23, %v5717_v59  ;;  %v31711_v34 = vpack.c.bf16 %v5736_v54, %v5729_v28 }
 0x615   : > { %37503 = vst [vmem:[#allocation15_spill] sm:$0xff] %v31702_v33  ;;  %v37506_v51 = vsub.f32 %v31566_v31, %v31586_v15  ;;  %v5521_v39 = vsub.f32 %v31617_v2, %v31646_v12  ;;  %v31721_v61 = vand.u32 4294901760, %v31678_v57  ;;  %v5738_v40 = vand.u32 4294901760, %v5737_v22 }
 0x616   : > { %37504 = vst [vmem:[#allocation16_spill] sm:$0xff] %v31704_v55  ;;  %37505 = vst [vmem:[#allocation21_spill] sm:$0xff] %v31711_v34  ;;  %23936 = vmatmul.mubr.f32.vlgmr.msra.gmra.mrb[16].mxu0 %v31583_v52  ;;  %v5531_v54 = vsub.f32 %v31662_v45, %v31689_v44  ;;  %v31727_v23 = vsub.f32 %v320_v32, %v31694_v20  ;;  %v31729_v28 = vand.u32 4294901760, %v322_v46  ;;  %v5731_v59 = vand.u32 4294901760, %v5730_v42  ;;  %v324_v44 = vld [vmem:[%s31458_s18 + $0x68] sm:$0xff]  ;;  %v325_v42 = vld [vmem:[%s31458_s18 + $0x70] sm:$0xff] }
 0x617   : > { %v31716_v38 = vand.u32 4294901760, %v37506_v51  ;;  %37508 = vst [vmem:[#allocation26_spill] sm:$0xff] %v31721_v61  ;;  %26662 = vmatpush3.bf16.msra.mxu0 %v31606_v6  ;;  %23938 = vmatprep.mubr.f32.mxu0 %v31629_v10  ;;  %v31733_v51 = vand.u32 4294901760, %v5511_v62  ;;  %v31736_v34 = vand.u32 4294901760, %v31702_v33  ;;  %v31739_v22 = vsub.f32 %v321_v17, %v31704_v55 }
 0x618   : > { %37509 = vst [vmem:[#allocation27_spill] sm:$0xff] %v31727_v23  ;;  %37510 = vst [vmem:[#allocation30_spill] sm:$0xff] %v31729_v28  ;;  %v31741_v52 = vand.u32 4294901760, %v323_v21  ;;  %26664 = vmatprep.subr.bf16.mxu0 %v31621_v43  ;;  %v26687_v32 = vpack.c.bf16 %v5738_v40, %v5731_v59  ;;  %v31746_v12 = vand.u32 4294901760, %v5521_v39  ;;  %v5541_v6 = vsub.f32 %v31678_v57, %v31721_v61 }
 0x619   : > { %37507 = vst [vmem:[#allocation22_spill] sm:$0xff] %v31716_v38  ;;  %37511 = vst [vmem:[#allocation31_spill] sm:$0xff] %v31733_v51  ;;  %v31751_v62 = vand.u32 4294901760, %v5531_v54  ;;  %v31754_v17 = vand.u32 4294901760, %v31727_v23  ;;  %v31757_v10 = vsub.f32 %v322_v46, %v31729_v28  ;;  %v31759_v15 = vand.u32 4294901760, %v324_v44 }
 0x61a   : > { %37512 = vst [vmem:[#allocation34_spill] sm:$0xff] %v31736_v34  ;;  %37513 = vst [vmem:[#allocation35_spill] sm:$0xff] %v31739_v22  ;;  %23939 = vmatmul.mubr.f32.gmra.mrb[18].mxu0 %v31716_v38  ;;  %v5551_v39 = vsub.f32 %v31702_v33, %v31736_v34  ;;  %v31766_v40 = vand.u32 4294901760, %v31739_v22  ;;  %v31769_v54 = vsub.f32 %v323_v21, %v31741_v52  ;;  %v31771_v59 = vand.u32 4294901760, %v325_v42  ;;  %v326_v38 = vld [vmem:[%s31458_s18 + $0x78] sm:$0xff]  ;;  %s20534_s18 = sshll.u32 %s295_s16, 1 }
 0x61b   : > { %37514 = vst [vmem:[#allocation39_spill] sm:$0xff] %v31741_v52  ;;  %37515 = vst [vmem:[#allocation40_spill] sm:$0xff] %v31746_v12  ;;  %26666 = vmatpush3.bf16.msra.mxu0 %v31621_v43  ;;  %23941 = vmatprep.mubr.f32.mxu0 %v31733_v51  ;;  %v31775_v46 = vand.u32 4294901760, %v5541_v6  ;;  %v5561_v43 = vsub.f32 %v31727_v23, %v31754_v17  ;;  %v31781_v51 = vand.u32 4294901760, %v31757_v10  ;;  %v31786_v21 = vand.u32 4294901760, %v326_v38  ;;  %s297_s22 = scalar_lea.vmem [#allocation2], %s20534_s18 }
 0x61c   : > { %37516 = vst [vmem:[#allocation19_spill] sm:$0xff] %v31751_v62  ;;  %37517 = vst [vmem:[#allocation38_spill] sm:$0xff] %v31754_v17  ;;  %26668 = vmatprep.subr.bf16.mxu0 %v31636_v47  ;;  %v31784_v34 = vsub.f32 %v324_v44, %v31759_v15  ;;  %v31790_v61 = vand.u32 4294901760, %v5551_v39  ;;  %v5571_v6 = vsub.f32 %v31739_v22, %v31766_v40  ;;  %s20450_s23 = sshll.u32 %s297_s22, 4  ;;  %s36427_s23 = int_to_ptr.vmem [resolvable:$true] %s20450_s23 }
 0x61d   : > { %37518 = vst [vmem:[#allocation42_spill] sm:$0xff] %v31757_v10  ;;  %37519 = vst [vmem:[#allocation43_spill] sm:$0xff] %v31759_v15  ;;  %v31798_v17 = vsub.f32 %v325_v42, %v31771_v59  ;;  %v31802_v44 = vand.u32 4294901760, %v5561_v43 }
 0x61e   : > { %37520 = vst [vmem:[#allocation47_spill] sm:$0xff] %v31766_v40  ;;  %37521 = vst [vmem:[#allocation48_spill] sm:$0xff] %v31769_v54  ;;  %23942 = vmatmul.mubr.f32.gmra.mrb[20].mxu0 %v31746_v12  ;;  %v31795_v12 = vand.u32 4294901760, %v31769_v54  ;;  %v31807_v39 = vand.u32 4294901760, %v31784_v34  ;;  %v31814_v42 = vand.u32 4294901760, %v5571_v6 }
 0x61f   : > { %37522 = vst [vmem:[#allocation53_spill] sm:$0xff] %v31771_v59  ;;  %37523 = vst [vmem:[#allocation54_spill] sm:$0xff] %v31775_v46  ;;  %26670 = vmatpush3.bf16.msra.mxu0 %v31636_v47  ;;  %23944 = vmatprep.mubr.f32.mxu0 %v31751_v62  ;;  %v5581_v47 = vsub.f32 %v31757_v10, %v31781_v51  ;;  %v31810_v62 = vsub.f32 %v326_v38, %v31786_v21  ;;  %v31819_v43 = vand.u32 4294901760, %v31798_v17 }
 0x620   : > { %37524 = vst [vmem:[#allocation56_spill] sm:$0xff] %v31781_v51  ;;  %37525 = vst [vmem:[#allocation60_spill] sm:$0xff] %v31784_v34  ;;  %26672 = vmatprep.subr.bf16.mxu0 %v31652_v0  ;;  %v5601_v38 = vsub.f32 %v31784_v34, %v31807_v39 }
 0x621   : > { %37526 = vst [vmem:[#allocation62_spill] sm:$0xff] %v31786_v21  ;;  %37527 = vst [vmem:[#allocation64_spill] sm:$0xff] %v31790_v61  ;;  %v31823_v51 = vand.u32 4294901760, %v5581_v47 }
 0x622   : > { %37528 = vst [vmem:[#allocation67_spill] sm:$0xff] %v31795_v12  ;;  %37529 = vst [vmem:[#allocation70_spill] sm:$0xff] %v31798_v17  ;;  %23945 = vmatmul.mubr.f32.gmra.mrb[22].mxu0 %v31775_v46  ;;  %v5591_v46 = vsub.f32 %v31769_v54, %v31795_v12  ;;  %v31838_v47 = vand.u32 4294901760, %v5601_v38  ;;  %v37554_v38 = vld [vmem:[#allocation34_spill] sm:$0xff] }
 0x623   : > { %37530 = vst [vmem:[#allocation73_spill] sm:$0xff] %v31802_v44  ;;  %37531 = vst [vmem:[#allocation76_spill] sm:$0xff] %v31807_v39  ;;  %26674 = vmatpush3.bf16.msra.mxu0 %v31652_v0  ;;  %23947 = vmatprep.mubr.f32.mxu0 %v31790_v61  ;;  %v31828_v0 = vand.u32 4294901760, %v31810_v62  ;;  %v5611_v61 = vsub.f32 %v31798_v17, %v31819_v43 }
 0x624   : > { %37532 = vst [vmem:[#allocation20_spill] sm:$0xff] %v31810_v62  ;;  %37533 = vst [vmem:[#allocation41_spill] sm:$0xff] %v31814_v42  ;;  %26676 = vmatprep.subr.bf16.mxu0 %v31668_v3  ;;  %v31832_v6 = vand.u32 4294901760, %v5591_v46 }
 0x625   : > { %37534 = vst [vmem:[#allocation45_spill] sm:$0xff] %v31819_v43  ;;  %37535 = vst [vmem:[#allocation46_spill] sm:$0xff] %v31823_v51 }
 0x626   : > { %23948 = vmatmul.mubr.f32.gmra.mrb[24].mxu0 %v31802_v44  ;;  %37536 = vst [vmem:[#allocation51_spill] sm:$0xff] %v31828_v0  ;;  %37537 = vst [vmem:[#allocation52_spill] sm:$0xff] %v31832_v6  ;;  %v5621_v44 = vsub.f32 %v31810_v62, %v31828_v0 }
 0x627   : > { %26678 = vmatpush3.bf16.msra.mxu0 %v31668_v3  ;;  %23950 = vmatprep.mubr.f32.mxu0 %v31814_v42  ;;  %37538 = vst [vmem:[#allocation55_spill] sm:$0xff] %v31838_v47  ;;  %v31844_v3 = vand.u32 4294901760, %v5611_v61  ;;  %v37546_v61 = vld [vmem:[#allocation49_spill] sm:$0xff] }
 0x628   : > { %26680 = vmatprep.subr.bf16.mxu0 %v31685_v58  ;;  %v31848_v46 = vand.u32 4294901760, %v5621_v44  ;;  %v37553_v44 = vld [vmem:[#allocation26_spill] sm:$0xff] }
 0x629   : > { %37539 = vst [vmem:[#allocation57_spill] sm:$0xff] %v31844_v3 }
 0x62a   : > { %23951 = vmatmul.mubr.f32.gmra.mrb[26].mxu0 %v31823_v51  ;;  %37540 = vst [vmem:[#allocation61_spill] sm:$0xff] %v31848_v46 }
 0x62b   : > { %26682 = vmatpush3.bf16.msra.mxu0 %v31685_v58  ;;  %23953 = vmatprep.mubr.f32.mxu0 %v31832_v6  ;;  %v37541_v58 = vld [vmem:[#allocation9_spill] sm:$0xff] }
 0x62c   : > { %26684 = vmatprep.subr.bf16.mxu0 %v31708_v24 }
 0x62e   : > { %23954 = vmatmul.mubr.f32.gmra.mrb[28].mxu0 %v31838_v47 }
 0x62f   : > { %26686 = vmatpush3.bf16.msra.mxu0 %v31708_v24  ;;  %23956 = vmatprep.mubr.f32.mxu0 %v31844_v3  ;;  %v37551_v24 = vld [vmem:[#allocation10_spill] sm:$0xff] }
 0x630   : > { %26688 = vmatprep.subr.bf16.mxu0 %v26687_v32 }
 0x632   : > { %23957 = vmatmul.mubr.f32.gmra.mrb[30].mxu0 %v31848_v46 }
 0x633   : > { %26690 = vmatpush3.bf16.msra.mxu0 %v26687_v32  ;;  %23991 = vmatprep.mubr.f32.mxu0 %v31462_v11  ;;  %v37552_v32 = vld [vmem:[#allocation68_spill] sm:$0xff] }
 0x634   : > { %26692 = vmatprep.subr.bf16.mxu0 %v31579_v25 }
 0x636   : > { %23992 = vmatmul.mubr.f32.vlgmr.msra.gmra.mrb[16].mxu0 %v31540_v53 }
 0x637   : > { %26694 = vmatpush3.bf16.msra.mxu0 %v31579_v25  ;;  %23994 = vmatprep.mubr.f32.mxu0 %v31549_v35  ;;  %v37542_v25 = vld [vmem:[#allocation37_spill] sm:$0xff] }
 0x638   : > { %26696 = vmatprep.subr.bf16.mxu0 %v31596_v27 }
 0x63a   : > { %23995 = vmatmul.mubr.f32.gmra.mrb[18].mxu0 %v31556_v8 }
 0x63b   : > { %26698 = vmatpush3.bf16.msra.mxu0 %v31596_v27  ;;  %23997 = vmatprep.mubr.f32.mxu0 %v31576_v26  ;;  %v37543_v27 = vld [vmem:[#allocation32_spill] sm:$0xff] }
 0x63c   : > { %26700 = vmatprep.subr.bf16.mxu0 %v31611_v36 }
 0x63e   : > { %23998 = vmatmul.mubr.f32.gmra.mrb[20].mxu0 %v31592_v37 }
 0x63f   : > { %26702 = vmatpush3.bf16.msra.mxu0 %v31611_v36  ;;  %24000 = vmatprep.mubr.f32.mxu0 %v31648_v7  ;;  %v37544_v36 = vld [vmem:[#allocation12_spill] sm:$0xff] }
 0x640   : > { %26704 = vmatprep.subr.bf16.mxu0 %v31626_v49 }
 0x642   : > { %24001 = vmatmul.mubr.f32.gmra.mrb[22].mxu0 %v31664_v1 }
 0x643   : > { %26706 = vmatpush3.bf16.msra.mxu0 %v31626_v49  ;;  %24003 = vmatprep.mubr.f32.mxu0 %v31680_v60  ;;  %v37545_v49 = vld [vmem:[#allocation24_spill] sm:$0xff] }
 0x644   : > { %26708 = vmatprep.subr.bf16.mxu0 %v31642_v14 }
 0x646   : > { %24004 = vmatmul.mubr.f32.gmra.mrb[24].mxu0 %v31694_v20 }
 0x647   : > { %26710 = vmatpush3.bf16.msra.mxu0 %v31642_v14  ;;  %24006 = vmatprep.mubr.f32.mxu0 %v31704_v55  ;;  %v37547_v14 = vld [vmem:[#allocation29_spill] sm:$0xff] }
 0x648   : > { %26712 = vmatprep.subr.bf16.mxu0 %v31658_v5 }
 0x64a   : > { %24007 = vmatmul.mubr.f32.gmra.mrb[26].mxu0 %v31729_v28 }
 0x64b   : > { %26714 = vmatpush3.bf16.msra.mxu0 %v31658_v5  ;;  %24009 = vmatprep.mubr.f32.mxu0 %v31741_v52  ;;  %v37548_v5 = vld [vmem:[#allocation65_spill] sm:$0xff] }
 0x64c   : > { %26716 = vmatprep.subr.bf16.mxu0 %v31674_v19 }
 0x64e   : > { %24010 = vmatmul.mubr.f32.gmra.mrb[28].mxu0 %v31759_v15 }
 0x64f   : > { %26718 = vmatpush3.bf16.msra.mxu0 %v31674_v19  ;;  %24012 = vmatprep.mubr.f32.mxu0 %v31771_v59  ;;  %v37549_v19 = vld [vmem:[#allocation58_spill] sm:$0xff] }
 0x650   : > { %26720 = vmatprep.subr.bf16.mxu0 %v31696_v56 }
 0x652   : > { %24013 = vmatmul.mubr.f32.gmra.mrb[30].mxu0 %v31786_v21 }
 0x653   : > { %26722 = vmatpush3.bf16.msra.mxu0 %v31696_v56  ;;  %24047 = vmatprep.mubr.f32.mxu0 %v31466_v13  ;;  %v37550_v56 = vld [vmem:[#allocation71_spill] sm:$0xff] }
 0x654   : > { %26724 = vmatprep.subr.bf16.mxu0 %v31569_v48 }
 0x656   : > { %24048 = vmatmul.mubr.f32.vlgmr.msra.gmra.mrb[16].mxu0 %v31546_v50 }
 0x657   : > { %26726 = vmatpush3.bf16.msra.mxu0 %v31569_v48  ;;  %24050 = vmatprep.mubr.f32.mxu0 %v31559_v30 }
 0x658   : > { %26728 = vmatprep.subr.bf16.mxu0 %v31588_v16 }
 0x65a   : > { %24051 = vmatmul.mubr.f32.gmra.mrb[18].mxu0 %v31566_v31 }
 0x65b   : > { %26730 = vmatpush3.bf16.msra.mxu0 %v31588_v16  ;;  %24053 = vmatprep.mubr.f32.mxu0 %v31602_v63 }
 0x65c   : > { %26732 = vmatprep.subr.bf16.mxu0 %v31604_v41 }
 0x65e   : > { %24054 = vmatmul.mubr.f32.gmra.mrb[20].mxu0 %v31617_v2 }
 0x65f   : > { %26734 = vmatpush3.bf16.msra.mxu0 %v31604_v41  ;;  %24056 = vmatprep.mubr.f32.mxu0 %v31662_v45 }
 0x660   : > { %26736 = vmatprep.subr.bf16.mxu0 %v31619_v18 }
 0x662   : > { %24057 = vmatmul.mubr.f32.gmra.mrb[22].mxu0 %v31678_v57 }
 0x663   : > { %26738 = vmatpush3.bf16.msra.mxu0 %v31619_v18  ;;  %24059 = vmatprep.mubr.f32.mxu0 %v31702_v33 }
 0x664   : > { %26740 = vmatprep.subr.bf16.mxu0 %v31634_v4 }
 0x666   : > { %24060 = vmatmul.mubr.f32.gmra.mrb[24].mxu0 %v31727_v23 }
 0x667   : > { %26742 = vmatpush3.bf16.msra.mxu0 %v31634_v4  ;;  %24062 = vmatprep.mubr.f32.mxu0 %v31739_v22 }
 0x668   : > { %26744 = vmatprep.subr.bf16.mxu0 %v31650_v29 }
 0x66a   : > { %24063 = vmatmul.mubr.f32.gmra.mrb[26].mxu0 %v31757_v10 }
 0x66b   : > { %26746 = vmatpush3.bf16.msra.mxu0 %v31650_v29  ;;  %24065 = vmatprep.mubr.f32.mxu0 %v31769_v54 }
 0x66c   : > { %26748 = vmatprep.subr.bf16.mxu0 %v31666_v9 }
 0x66e   : > { %24066 = vmatmul.mubr.f32.gmra.mrb[28].mxu0 %v31784_v34 }
 0x66f   : > { %26750 = vmatpush3.bf16.msra.mxu0 %v31666_v9  ;;  %24068 = vmatprep.mubr.f32.mxu0 %v31798_v17 }
 0x670   : > { %26752 = vmatprep.subr.bf16.mxu0 %v37541_v58 }
 0x672   : > { %24069 = vmatmul.mubr.f32.gmra.mrb[30].mxu0 %v31810_v62 }
 0x673   : > { %26754 = vmatpush3.bf16.msra.mxu0 %v37541_v58  ;;  %24103 = vmatprep.mubr.f32.mxu0 %v37542_v25 }
 0x674   : > { %26756 = vmatprep.subr.bf16.mxu0 %v37543_v27 }
 0x676   : > { %24104 = vmatmul.mubr.f32.vlgmr.msra.gmra.mrb[16].mxu0 %v37544_v36 }
 0x677   : > { %26758 = vmatpush3.bf16.msra.mxu0 %v37543_v27  ;;  %24106 = vmatprep.mubr.f32.mxu0 %v37545_v49  ;;  %v37555_v27 = vld [vmem:[#allocation77_spill] sm:$0xff] }
 0x678   : > { %26760 = vmatprep.subr.bf16.mxu0 %v37546_v61 }
 0x67a   : > { %24107 = vmatmul.mubr.f32.gmra.mrb[18].mxu0 %v37547_v14 }
 0x67b   : > { %26762 = vmatpush3.bf16.msra.mxu0 %v37546_v61  ;;  %24109 = vmatprep.mubr.f32.mxu0 %v37548_v5  ;;  %v37556_v61 = vld [vmem:[#allocation38_spill] sm:$0xff] }
 0x67c   : > { %26764 = vmatprep.subr.bf16.mxu0 %v37549_v19 }
 0x67e   : > { %24110 = vmatmul.mubr.f32.gmra.mrb[20].mxu0 %v37550_v56  ;;  %v37557_v56 = vld [vmem:[#allocation82_spill] sm:$0xff] }
 0x67f   : > { %26766 = vmatpush3.bf16.msra.mxu0 %v37549_v19  ;;  %24112 = vmatprep.mubr.f32.mxu0 %v37551_v24  ;;  %v37558_v19 = vld [vmem:[#allocation56_spill] sm:$0xff] }
 0x680   : > { %26768 = vmatprep.subr.bf16.mxu0 %v37552_v32 }
 0x682   : > { %24113 = vmatmul.mubr.f32.gmra.mrb[22].mxu0 %v37553_v44  ;;  %v37559_v44 = vld [vmem:[#allocation11_spill] sm:$0xff] }
 0x683   : > { %26770 = vmatpush3.bf16.msra.mxu0 %v37552_v32  ;;  %24115 = vmatprep.mubr.f32.mxu0 %v37554_v38  ;;  %v37560_v32 = vld [vmem:[#allocation21_spill] sm:$0xff] }
 0x684   : > { %26772 = vmatprep.subr.bf16.mxu0 %v37555_v27 }
 0x686   : > { %24116 = vmatmul.mubr.f32.gmra.mrb[24].mxu0 %v37556_v61 }
 0x687   : > { %26774 = vmatpush3.bf16.msra.mxu0 %v37555_v27  ;;  %24118 = vmatprep.mubr.f32.mxu0 %v31766_v40 }
 0x688   : > { %26776 = vmatprep.subr.bf16.mxu0 %v37557_v56 }
 0x68a   : > { %24119 = vmatmul.mubr.f32.gmra.mrb[26].mxu0 %v37558_v19  ;;  %v32016_v19 = vld [vmem:[%s36471_s4 + $0x90] ss:$0 sm:$0xff] }
 0x68b   : > { %26778 = vmatpush3.bf16.msra.mxu0 %v37557_v56  ;;  %24121 = vmatprep.mubr.f32.mxu0 %v31795_v12 }
 0x68c   : > { %26780 = vmatprep.subr.bf16.mxu0 %v37559_v44 }
 0x68e   : > { %24122 = vmatmul.mubr.f32.gmra.mrb[28].mxu0 %v31807_v39 }
 0x68f   : > { %26782 = vmatpush3.bf16.msra.mxu0 %v37559_v44  ;;  %24124 = vmatprep.mubr.f32.mxu0 %v31819_v43 }
 0x690   : > { %26784 = vmatprep.subr.bf16.mxu0 %v37560_v32 }
 0x692   : > { %24125 = vmatmul.mubr.f32.gmra.mrb[30].mxu0 %v31828_v0 }
 0x693   : > { %26786 = vmatpush3.bf16.msra.mxu0 %v37560_v32  ;;  %24159 = vmatprep.mubr.f32.mxu0 %v31462_v11 }
 0x694   : > { %26788 = vmatprep.subr.bf16.mxu0 %v31569_v48 }
 0x696   : > { %24160 = vmatmul.mubr.f32.vlgmr.msra.gmra.mrb[16].mxu0 %v31540_v53 }
 0x697   : > { %26790 = vmatpush3.bf16.msra.mxu0 %v31569_v48  ;;  %24162 = vmatprep.mubr.f32.mxu0 %v31549_v35 }
 0x698   : > { %26792 = vmatprep.subr.bf16.mxu0 %v31588_v16 }
 0x69a   : > { %24163 = vmatmul.mubr.f32.gmra.mrb[18].mxu0 %v31556_v8 }
 0x69b   : > { %26794 = vmatpush3.bf16.msra.mxu0 %v31588_v16  ;;  %24165 = vmatprep.mubr.f32.mxu0 %v31576_v26 }
 0x69c   : > { %26796 = vmatprep.subr.bf16.mxu0 %v31604_v41 }
 0x69e   : > { %24166 = vmatmul.mubr.f32.gmra.mrb[20].mxu0 %v31592_v37 }
 0x69f   : > { %26798 = vmatpush3.bf16.msra.mxu0 %v31604_v41  ;;  %24168 = vmatprep.mubr.f32.mxu0 %v31648_v7 }
 0x6a0   : > { %26800 = vmatprep.subr.bf16.mxu0 %v31619_v18 }
 0x6a2   : > { %24169 = vmatmul.mubr.f32.gmra.mrb[22].mxu0 %v31664_v1 }
 0x6a3   : > { %26802 = vmatpush3.bf16.msra.mxu0 %v31619_v18  ;;  %24171 = vmatprep.mubr.f32.mxu0 %v31680_v60 }
 0x6a4   : > { %26804 = vmatprep.subr.bf16.mxu0 %v31634_v4 }
 0x6a6   : > { %24172 = vmatmul.mubr.f32.gmra.mrb[24].mxu0 %v31694_v20 }
 0x6a7   : > { %26806 = vmatpush3.bf16.msra.mxu0 %v31634_v4  ;;  %24174 = vmatprep.mubr.f32.mxu0 %v31704_v55 }
 0x6a8   : > { %26808 = vmatprep.subr.bf16.mxu0 %v31650_v29 }
 0x6aa   : > { %24175 = vmatmul.mubr.f32.gmra.mrb[26].mxu0 %v31729_v28 }
 0x6ab   : > { %26810 = vmatpush3.bf16.msra.mxu0 %v31650_v29  ;;  %24177 = vmatprep.mubr.f32.mxu0 %v31741_v52 }
 0x6ac   : > { %26812 = vmatprep.subr.bf16.mxu0 %v31666_v9 }
 0x6ae   : > { %24178 = vmatmul.mubr.f32.gmra.mrb[28].mxu0 %v31759_v15 }
 0x6af   : > { %26814 = vmatpush3.bf16.msra.mxu0 %v31666_v9  ;;  %24180 = vmatprep.mubr.f32.mxu0 %v31771_v59 }
 0x6b0   : > { %26816 = vmatprep.subr.bf16.mxu0 %v37541_v58 }
 0x6b1   : > { %v24385_v48 = vpop.f32.mrb[32].mxu1 }
 0x6b2   : > { %24181 = vmatmul.mubr.f32.gmra.mrb[30].mxu0 %v31786_v21  ;;  %v7731_v16 = vpop.f32.mrb[33].mxu1 }
 0x6b3   : > { %26818 = vmatpush3.bf16.msra.mxu0 %v37541_v58  ;;  %24215 = vmatprep.mubr.f32.mxu0 %v31462_v11 }
 0x6b5   : > { %v24388_v41 = vpop.f32.mrb[34].mxu1 }
 0x6b6   : > { %24216 = vmatmul.mubr.f32.vlgmr.msra.gmra.mrb[16].mxu0 %v31540_v53  ;;  %v7743_v18 = vpop.f32.mrb[35].mxu1 }
 0x6b7   : > { %24218 = vmatprep.mubr.f32.mxu0 %v31549_v35 }
 0x6b9   : > { %v24391_v4 = vpop.f32.mrb[36].mxu1 }
 0x6ba   : > { %24219 = vmatmul.mubr.f32.gmra.mrb[18].mxu0 %v31556_v8  ;;  %v7755_v29 = vpop.f32.mrb[37].mxu1 }
 0x6bb   : > { %24221 = vmatprep.mubr.f32.mxu0 %v31576_v26 }
 0x6bd   : > { %v24394_v9 = vpop.f32.mrb[38].mxu1 }
 0x6be   : > { %24222 = vmatmul.mubr.f32.gmra.mrb[20].mxu0 %v31592_v37  ;;  %v7767_v56 = vpop.f32.mrb[39].mxu1 }
 0x6bf   : > { %24224 = vmatprep.mubr.f32.mxu0 %v31648_v7 }
 0x6c1   : > { %v31988_v58 = vpop.f32.mrb[40].mxu1 }
 0x6c2   : > { %24225 = vmatmul.mubr.f32.gmra.mrb[22].mxu0 %v31664_v1  ;;  %v31991_v44 = vpop.f32.mrb[41].mxu1 }
 0x6c3   : > { %24227 = vmatprep.mubr.f32.mxu0 %v31680_v60 }
 0x6c5   : > { %v31994_v27 = vpop.f32.mrb[42].mxu1 }
 0x6c6   : > { %24228 = vmatmul.mubr.f32.gmra.mrb[24].mxu0 %v31694_v20  ;;  %v31997_v32 = vpop.f32.mrb[43].mxu1 }
 0x6c7   : > { %24230 = vmatprep.mubr.f32.mxu0 %v31704_v55 }
 0x6c9   : > { %v32000_v0 = vpop.f32.mrb[44].mxu1 }
 0x6ca   : > { %24231 = vmatmul.mubr.f32.gmra.mrb[26].mxu0 %v31729_v28  ;;  %v32003_v43 = vpop.f32.mrb[45].mxu1 }
 0x6cb   : > { %24233 = vmatprep.mubr.f32.mxu0 %v31741_v52 }
 0x6cd   : > { %v32006_v39 = vpop.f32.mrb[46].mxu1 }
 0x6ce   : > { %24234 = vmatmul.mubr.f32.gmra.mrb[28].mxu0 %v31759_v15  ;;  %v32009_v12 = vpop.f32.mrb[47].mxu1 }
 0x6cf   : > { %24236 = vmatprep.mubr.f32.mxu0 %v31771_v59 }
 0x6d2   : > { %24237 = vmatmul.mubr.f32.gmra.mrb[30].mxu0 %v31786_v21 }
 0x789   : > { %v24217_v40 = vpop.f32.mrb[16].mxu0 }
 0x78a   : > { %v7826_v61 = vsub.f32 %v24217_v40, %v24385_v48  ;;  %v6579_v38 = vpop.f32.mrb[17].mxu0 }
 0x78b   : > { %v7825_v24 = vsub.f32 %v6579_v38, %v7731_v16 }
 0x78c   : > { %v7846_v5 = vadd.f32 %v32016_v19, %v7826_v61 }
 0x78d   : > { %v7845_v14 = vadd.f32 %v32016_v19, %v7825_v24  ;;  %v24220_v49 = vpop.f32.mrb[18].mxu0 }
 0x78e   : > { %29276 = vtanh.f32 %v7846_v5  ;;  %v7828_v36 = vsub.f32 %v24220_v49, %v24388_v41  ;;  %v6591_v25 = vpop.f32.mrb[19].mxu0 }
 0x78f   : > { %29278 = vtanh.f32 %v7845_v14  ;;  %v7827_v62 = vsub.f32 %v6591_v25, %v7743_v18 }
 0x790   : > { %v7848_v17 = vadd.f32 %v32016_v19, %v7828_v36 }
 0x791   : > { %v7847_v34 = vadd.f32 %v32016_v19, %v7827_v62  ;;  %v24223_v54 = vpop.f32.mrb[20].mxu0 }
 0x792   : > { %29280 = vtanh.f32 %v7848_v17  ;;  %v7830_v10 = vsub.f32 %v24223_v54, %v24391_v4  ;;  %v6603_v40 = vpop.f32.mrb[21].mxu0 }
 0x793   : > { %29282 = vtanh.f32 %v7847_v34  ;;  %v7829_v38 = vsub.f32 %v6603_v40, %v7755_v29 }
 0x794   : > { %v7850_v61 = vadd.f32 %v32016_v19, %v7830_v10 }
 0x795   : > { %v7849_v24 = vadd.f32 %v32016_v19, %v7829_v38  ;;  %v24226_v48 = vpop.f32.mrb[22].mxu0 }
 0x796   : > { %29284 = vtanh.f32 %v7850_v61  ;;  %v7832_v49 = vsub.f32 %v24226_v48, %v24394_v9  ;;  %v6615_v14 = vpop.f32.mrb[23].mxu0 }
 0x797   : > { %29286 = vtanh.f32 %v7849_v24  ;;  %v7831_v25 = vsub.f32 %v6615_v14, %v7767_v56 }
 0x798   : > { %v32024_v36 = vpop.eup %29276  ;;  %v7852_v62 = vadd.f32 %v32016_v19, %v7832_v49 }
 0x799   : > { %v29279_v17 = vpop.eup %29278  ;;  %v32029_v34 = vsel %vm7890_vm0, %v32024_v36, 0  ;;  %v7851_v10 = vadd.f32 %v32016_v19, %v7831_v25  ;;  %v24229_v54 = vpop.f32.mrb[24].mxu0  ;;  %v9405_v5 = vand.u32 4294901760, %v32024_v36 }
 0x79a   : > { %v32034_v16 = vand.u32 4294901760, %v32029_v34  ;;  %v7892_v41 = vsel %vm7890_vm0, %v29279_v17, 0  ;;  %29288 = vtanh.f32 %v7852_v62  ;;  %v7834_v18 = vsub.f32 %v24229_v54, %v31988_v58  ;;  %v6627_v4 = vpop.f32.mrb[25].mxu0 }
 0x79b   : > { %v32038_v29 = vand.u32 4294901760, %v7892_v41  ;;  %29290 = vtanh.f32 %v7851_v10  ;;  %v7833_v9 = vsub.f32 %v6627_v4, %v31991_v44  ;;  %v9402_v56 = vand.u32 4294901760, %v29279_v17 }
 0x79c   : > { %37561 = vst [vmem:[#allocation63_spill] sm:$0xff] %v32034_v16  ;;  %v32041_v40 = vpop.eup %29280  ;;  %v7854_v38 = vadd.f32 %v32016_v19, %v7834_v18  ;;  %v32252_v35 = vsub.f32 %v32029_v34, %v32034_v16 }
 0x79d   : > { %37562 = vst [vmem:[#allocation66_spill] sm:$0xff] %v32038_v29  ;;  %v32044_v61 = vpop.eup %29282  ;;  %v32048_v24 = vsel %vm7890_vm0, %v32041_v40, 0  ;;  %v7853_v48 = vadd.f32 %v32016_v19, %v7833_v9  ;;  %v24232_v58 = vpop.f32.mrb[26].mxu0  ;;  %v32051_v49 = vpack.c.bf16 %v9405_v5, %v9402_v56  ;;  %v32055_v14 = vpack.c.bf16 %v32034_v16, %v32038_v29 }
 0x79e   : > { %v32058_v44 = vand.u32 4294901760, %v32048_v24  ;;  %v32062_v25 = vsel %vm7890_vm0, %v32044_v61, 0  ;;  %29292 = vtanh.f32 %v7854_v38  ;;  %v7836_v62 = vsub.f32 %v24232_v58, %v31994_v27  ;;  %v6639_v10 = vpop.f32.mrb[27].mxu0  ;;  %37591 = vst [vmem:[#allocation110_spill] sm:$0xff] %v32252_v35 }
 0x79f   : > { %37563 = vst [vmem:[#allocation69_spill] sm:$0xff] %v32051_v49  ;;  %37564 = vst [vmem:[#allocation72_spill] sm:$0xff] %v32055_v14  ;;  %v32066_v54 = vand.u32 4294901760, %v32062_v25  ;;  %29294 = vtanh.f32 %v7853_v48  ;;  %v7835_v18 = vsub.f32 %v6639_v10, %v31997_v32  ;;  %27036 = vmatprep.subr.bf16.mxu0 %v32051_v49  ;;  %26844 = vmatprep.subr.bf16.mxu1 %v32055_v14  ;;  %v37571_v45 = vand.u32 4294901760, %v32044_v61 }
 0x7a0   : > { %37565 = vst [vmem:[#allocation75_spill] sm:$0xff] %v32058_v44  ;;  %v32072_v9 = vpop.eup %29284  ;;  %v7856_v22 = vadd.f32 %v32016_v19, %v7836_v62  ;;  %27038 = vmatpush3.bf16.msra.mxu0 %v32051_v49  ;;  %26846 = vmatpush3.bf16.xpose.msra.mxu1 %v32055_v14  ;;  %v32079_v38 = vsub.f32 %v7892_v41, %v32038_v29  ;;  %v37572_v4 = vand.u32 4294901760, %v32041_v40  ;;  %v32278_v53 = vand.u32 4294901760, %v32252_v35 }
 0x7a1   : > { %37566 = vst [vmem:[#allocation78_spill] sm:$0xff] %v32066_v54  ;;  %v32081_v32 = vpop.eup %29286  ;;  %v32085_v48 = vsel %vm7890_vm0, %v32072_v9, 0  ;;  %v7855_v58 = vadd.f32 %v32016_v19, %v7835_v18  ;;  %v24235_v10 = vpop.f32.mrb[28].mxu0  ;;  %v32090_v62 = vpack.c.bf16 %v32058_v44, %v32066_v54  ;;  %v37577_v30 = vand.u32 4294901760, %v32072_v9 }
 0x7a2   : > { %37567 = vst [vmem:[#allocation80_spill] sm:$0xff] %v32079_v38  ;;  %v32094_v27 = vand.u32 4294901760, %v32085_v48  ;;  %v32098_v41 = vsel %vm7890_vm0, %v32081_v32, 0  ;;  %29296 = vtanh.f32 %v7856_v22  ;;  %v7838_v23 = vsub.f32 %v24235_v10, %v32000_v0  ;;  %v6651_v33 = vpop.f32.mrb[29].mxu0  ;;  %37594 = vst [vmem:[#allocation113_spill] sm:$0xff] %v32278_v53 }
 0x7a3   : > { %37568 = vst [vmem:[#allocation9_spill] sm:$0xff] %v32090_v62  ;;  %v32102_v18 = vand.u32 4294901760, %v32098_v41  ;;  %29298 = vtanh.f32 %v7855_v58  ;;  %v7837_v57 = vsub.f32 %v6651_v33, %v32003_v43  ;;  %v32109_v2 = vpack.c.bf16 %v37572_v4, %v37571_v45  ;;  %26848 = vmatprep.subr.bf16.mxu1 %v32090_v62 }
 0x7a4   : > { %37569 = vst [vmem:[#allocation32_spill] sm:$0xff] %v32094_v27  ;;  %v32112_v63 = vpop.eup %29288  ;;  %v7858_v22 = vadd.f32 %v32016_v19, %v7838_v23  ;;  %v32116_v0 = vand.u32 4294901760, %v32079_v38  ;;  %v32119_v58 = vsub.f32 %v29279_v17, %v9402_v56  ;;  %v32130_v23 = vsub.f32 %v32024_v36, %v9405_v5 }
 0x7a5   : > { %37570 = vst [vmem:[#allocation49_spill] sm:$0xff] %v32102_v18  ;;  %37573 = vst [vmem:[#allocation58_spill] sm:$0xff] %v32109_v2  ;;  %v32121_v33 = vpop.eup %29290  ;;  %v32125_v43 = vsel %vm7890_vm0, %v32112_v63, 0  ;;  %v7857_v45 = vadd.f32 %v32016_v19, %v7837_v57  ;;  %27040 = vmatprep.subr.bf16.mxu0 %v32109_v2  ;;  %v24238_v4 = vpop.f32.mrb[30].mxu0  ;;  %v32136_v10 = vpack.c.bf16 %v32094_v27, %v32102_v18 }
 0x7a6   : > { %37574 = vst [vmem:[#allocation68_spill] sm:$0xff] %v32116_v0  ;;  %29300 = vtanh.f32 %v7858_v22  ;;  %27042 = vmatpush3.bf16.msra.mxu0 %v32109_v2  ;;  %v7840_v17 = vsub.f32 %v24238_v4, %v32006_v39  ;;  %v6663_v56 = vpop.f32.mrb[31].mxu0  ;;  %v32141_v57 = vsel %vm7890_vm0, %v32121_v33, 0  ;;  %v8023_v36 = vsub.f32 %v32079_v38, %v32116_v0 }
 0x7a7   : > { %37575 = vst [vmem:[#allocation77_spill] sm:$0xff] %v32136_v10  ;;  %29302 = vtanh.f32 %v7857_v45  ;;  %v7839_v5 = vsub.f32 %v6663_v56, %v32009_v12  ;;  %v37576_v4 = vand.u32 4294901760, %v32081_v32  ;;  %v36794_v31 = vand.u32 4294901760, %v32121_v33 }
 0x7a8   : > { %v32146_v22 = vpop.eup %29292  ;;  %v7860_v39 = vadd.f32 %v32016_v19, %v7840_v17  ;;  %26850 = vmatpush3.bf16.xpose.msra.mxu1 %v32090_v62  ;;  %v36801_v45 = vand.u32 4294901760, %v32119_v58  ;;  %v32160_v21 = vand.u32 4294901760, %v8023_v36  ;;  %v32176_v36 = vand.u32 4294901760, %v32141_v57 }
 0x7a9   : > { %v32153_v50 = vpack.c.bf16 %v37577_v30, %v37576_v4  ;;  %v32158_v13 = vpop.eup %29294  ;;  %v7859_v12 = vadd.f32 %v32016_v19, %v7839_v5  ;;  %26852 = vmatprep.subr.bf16.mxu1 %v32136_v10  ;;  %v36806_v17 = vand.u32 4294901760, %v32146_v22  ;;  %v37580_v30 = vand.u32 4294901760, %v32112_v63 }
 0x7aa   : > { %37579 = vst [vmem:[#allocation11_spill] sm:$0xff] %v32160_v21  ;;  %29304 = vtanh.f32 %v7860_v39  ;;  %v32173_v4 = vand.u32 4294901760, %v32125_v43  ;;  %37583 = vst [vmem:[#allocation102_spill] sm:$0xff] %v32176_v36  ;;  %24439 = vmatprep.mubr.f32.mxu1 %v32160_v21  ;;  %v36807_v19 = vand.u32 4294901760, %v32158_v13  ;;  %v9646_v39 = vsub.f32 %v32119_v58, %v36801_v45 }
 0x7ab   : > { %37578 = vst [vmem:[#allocation82_spill] sm:$0xff] %v32153_v50  ;;  %27044 = vmatprep.subr.bf16.mxu0 %v32153_v50  ;;  %v32170_v56 = vpack.c.bf16 %v37580_v30, %v36794_v31  ;;  %29306 = vtanh.f32 %v7859_v12  ;;  %v36808_v30 = vand.u32 4294901760, %v32130_v23  ;;  %v32289_v3 = vsub.f32 %v32062_v25, %v32066_v54 }
 0x7ac   : > { %37582 = vst [vmem:[#allocation101_spill] sm:$0xff] %v32173_v4  ;;  %27046 = vmatpush3.bf16.msra.mxu0 %v32153_v50  ;;  %v32181_v5 = vpop.eup %29296  ;;  %v32194_v12 = vpack.c.bf16 %v36806_v17, %v36807_v19  ;;  %v32201_v52 = vpack.c.bf16 %v32173_v4, %v32176_v36  ;;  %v9647_v45 = vand.u32 4294901760, %v9646_v39  ;;  %v32210_v17 = vsel %vm7890_vm0, %v32146_v22, 0 }
 0x7ad   : > { %37581 = vst [vmem:[#allocation21_spill] sm:$0xff] %v32170_v56  ;;  %27048 = vmatprep.subr.bf16.mxu0 %v32170_v56  ;;  %v32188_v31 = vpop.eup %29298  ;;  %v36821_v59 = vand.u32 4294901760, %v32181_v5  ;;  %v9653_v28 = vsub.f32 %v32130_v23, %v36808_v30  ;;  %v32214_v19 = vsel %vm7890_vm0, %v32158_v13, 0  ;;  %v32230_v7 = vand.u32 4294901760, %v32210_v17  ;;  %37597 = vst [vmem:[#allocation116_spill] sm:$0xff] %v32289_v3 }
 0x7ae   : > { %37584 = vst [vmem:[#allocation103_spill] sm:$0xff] %v32194_v12  ;;  %v36822_v15 = vand.u32 4294901760, %v32188_v31  ;;  %37585 = vst [vmem:[#allocation104_spill] sm:$0xff] %v32201_v52  ;;  %v32233_v37 = vand.u32 4294901760, %v32214_v19  ;;  %v32308_v25 = vand.u32 4294901760, %v32289_v3 }
 0x7af   : > { %v9654_v60 = vand.u32 4294901760, %v9653_v28  ;;  %37587 = vst [vmem:[#allocation106_spill] sm:$0xff] %v32230_v7 }
 0x7b0   : > { %27050 = vmatpush3.bf16.msra.mxu0 %v32170_v56  ;;  %v32206_v55 = vpop.eup %29300  ;;  %26854 = vmatpush3.bf16.xpose.msra.mxu1 %v32136_v10  ;;  %v32222_v39 = vpack.c.bf16 %v36821_v59, %v36822_v15  ;;  %37588 = vst [vmem:[#allocation107_spill] sm:$0xff] %v32233_v37  ;;  %37600 = vst [vmem:[#allocation119_spill] sm:$0xff] %v32308_v25 }
 0x7b1   : > { %27052 = vmatprep.subr.bf16.mxu0 %v32194_v12  ;;  %v32224_v30 = vpop.eup %29302  ;;  %26856 = vmatprep.subr.bf16.mxu1 %v32201_v52  ;;  %v36827_v20 = vand.u32 4294901760, %v32206_v55  ;;  %v32236_v26 = vpack.c.bf16 %v9654_v60, %v9647_v45  ;;  %v32258_v45 = vpack.c.bf16 %v32230_v7, %v32233_v37  ;;  %v32300_v47 = vsel %vm7890_vm0, %v32206_v55, 0 }
 0x7b2   : > { %37586 = vst [vmem:[#allocation105_spill] sm:$0xff] %v32222_v39  ;;  %v36828_v1 = vand.u32 4294901760, %v32224_v30  ;;  %v32321_v42 = vand.u32 4294901760, %v32300_v47 }
 0x7b3   : > { %37589 = vst [vmem:[#allocation108_spill] sm:$0xff] %v32236_v26  ;;  %37592 = vst [vmem:[#allocation111_spill] sm:$0xff] %v32258_v45 }
 0x7b4   : > { %27054 = vmatpush3.bf16.msra.mxu0 %v32194_v12  ;;  %v32238_v59 = vpop.eup %29304  ;;  %v32245_v28 = vpack.c.bf16 %v36827_v20, %v36828_v1  ;;  %v32262_v20 = vsel %vm7890_vm0, %v32181_v5, 0  ;;  %v32266_v1 = vsel %vm7890_vm0, %v32188_v31, 0  ;;  %37602 = vst [vmem:[#allocation121_spill] sm:$0xff] %v32321_v42 }
 0x7b5   : > { %27056 = vmatprep.subr.bf16.mxu0 %v32222_v39  ;;  %v32247_v15 = vpop.eup %29306  ;;  %v36835_v8 = vand.u32 4294901760, %v32238_v59  ;;  %v32281_v11 = vand.u32 4294901760, %v32262_v20  ;;  %v32284_v46 = vand.u32 4294901760, %v32266_v1  ;;  %v32338_v56 = vsel %vm7890_vm0, %v32238_v59, 0 }
 0x7b6   : > { %37590 = vst [vmem:[#allocation109_spill] sm:$0xff] %v32245_v28  ;;  %v36836_v60 = vand.u32 4294901760, %v32247_v15  ;;  %37606 = vst [vmem:[#allocation125_spill] sm:$0xff] %v32338_v56  ;;  %v32342_v50 = vsel %vm7890_vm0, %v32247_v15, 0 }
 0x7b7   : > { %37595 = vst [vmem:[#allocation114_spill] sm:$0xff] %v32281_v11  ;;  %37596 = vst [vmem:[#allocation115_spill] sm:$0xff] %v32284_v46  ;;  %v32305_v6 = vpack.c.bf16 %v32281_v11, %v32284_v46  ;;  %v32352_v2 = vand.u32 4294901760, %v32342_v50 }
 0x7b8   : > { %27058 = vmatpush3.bf16.msra.mxu0 %v32222_v39  ;;  %26858 = vmatpush3.bf16.xpose.msra.mxu1 %v32201_v52  ;;  %v32274_v34 = vpack.c.bf16 %v36835_v8, %v36836_v60  ;;  %v32293_v8 = vsub.f32 %v32048_v24, %v32058_v44  ;;  %v8033_v60 = vsub.f32 %v32252_v35, %v32278_v53  ;;  %v32312_v24 = vsel %vm7890_vm0, %v32224_v30, 0 }
 0x7b9   : > { %27060 = vmatprep.subr.bf16.mxu0 %v32245_v28  ;;  %26860 = vmatprep.subr.bf16.mxu1 %v32258_v45  ;;  %37599 = vst [vmem:[#allocation118_spill] sm:$0xff] %v32305_v6  ;;  %v32331_v39 = vsub.f32 %v32085_v48, %v32094_v27  ;;  %v32334_v12 = vand.u32 4294901760, %v32312_v24  ;;  %v32349_v48 = vand.u32 4294901760, %v32338_v56  ;;  %37608 = vst [vmem:[#allocation127_spill] sm:$0xff] %v32352_v2 }
 0x7ba   : > { %37593 = vst [vmem:[#allocation112_spill] sm:$0xff] %v32274_v34  ;;  %37598 = vst [vmem:[#allocation117_spill] sm:$0xff] %v32293_v8  ;;  %v32317_v51 = vand.u32 4294901760, %v32293_v8 }
 0x7bb   : > { %37604 = vst [vmem:[#allocation123_spill] sm:$0xff] %v32331_v39  ;;  %37605 = vst [vmem:[#allocation124_spill] sm:$0xff] %v32334_v12  ;;  %v32410_v14 = vpack.c.bf16 %v32349_v48, %v32352_v2 }
 0x7bc   : > { %27062 = vmatpush3.bf16.msra.mxu0 %v32245_v28  ;;  %37601 = vst [vmem:[#allocation120_spill] sm:$0xff] %v32317_v51  ;;  %v32327_v28 = vsub.f32 %v32098_v41, %v32102_v18  ;;  %v8053_v41 = vsub.f32 %v32293_v8, %v32317_v51  ;;  %37607 = vst [vmem:[#allocation126_spill] sm:$0xff] %v32349_v48  ;;  %v32368_v51 = vand.u32 4294901760, %v32331_v39 }
 0x7bd   : > { %27064 = vmatprep.subr.bf16.mxu0 %v32274_v34  ;;  %37619 = vst [vmem:[#allocation132_spill] sm:$0xff] %v32410_v14 }
 0x7be   : > { %37603 = vst [vmem:[#allocation122_spill] sm:$0xff] %v32327_v28  ;;  %37611 = vst [vmem:[#allocation130_spill] sm:$0xff] %v32368_v51  ;;  %v32371_v0 = vand.u32 4294901760, %v8053_v41 }
 0x7c0   : > { %27066 = vmatpush3.bf16.msra.mxu0 %v32274_v34  ;;  %26862 = vmatpush3.bf16.xpose.msra.mxu1 %v32258_v45  ;;  %v32323_v34 = vand.u32 4294901760, %v8033_v60  ;;  %v8043_v60 = vsub.f32 %v32289_v3, %v32308_v25  ;;  %v32365_v25 = vand.u32 4294901760, %v32327_v28  ;;  %v37613_v45 = vand.u32 4294901760, %v32044_v61 }
 0x7c1   : > { %27068 = vmatprep.subr.bf16.mxu0 %v32236_v26  ;;  %26864 = vmatprep.subr.bf16.mxu1 %v32305_v6  ;;  %v32360_v26 = vpack.c.bf16 %v32321_v42, %v32334_v12 }
 0x7c2   : > { %v32356_v49 = vpack.c.bf16 %v32323_v34, %v32160_v21  ;;  %v32362_v53 = vand.u32 4294901760, %v8043_v60  ;;  %37610 = vst [vmem:[#allocation129_spill] sm:$0xff] %v32365_v25  ;;  %v32375_v21 = vsub.f32 %v32141_v57, %v32176_v36  ;;  %v32380_v52 = vsub.f32 %v32044_v61, %v37613_v45 }
 0x7c3   : > { %37609 = vst [vmem:[#allocation128_spill] sm:$0xff] %v32360_v26  ;;  %v37614_v60 = vand.u32 4294901760, %v32041_v40  ;;  %v37616_v57 = vand.u32 4294901760, %v32072_v9  ;;  %v37617_v61 = vand.u32 4294901760, %v32121_v33 }
 0x7c4   : > { %37612 = vst [vmem:[#allocation131_spill] sm:$0xff] %v32375_v21 }
 0x7c5   : > { %v32385_v10 = vsub.f32 %v32041_v40, %v37614_v60  ;;  %v32396_v62 = vsub.f32 %v32072_v9, %v37616_v57  ;;  %v32401_v45 = vsub.f32 %v32121_v33, %v37617_v61  ;;  %v37618_v40 = vand.u32 4294901760, %v32112_v63 }
 0x7c6   : > { %v37620_v9 = vand.u32 4294901760, %v32158_v13 }
 0x7c7   : > { %v32406_v60 = vsub.f32 %v32112_v63, %v37618_v40  ;;  %v36901_v61 = vand.u32 4294901760, %v32396_v62 }
 0x7c8   : > { %26866 = vmatpush3.bf16.xpose.msra.mxu1 %v32305_v6  ;;  %v37615_v6 = vand.u32 4294901760, %v32081_v32  ;;  %v32417_v57 = vsub.f32 %v32158_v13, %v37620_v9  ;;  %v37621_v13 = vand.u32 4294901760, %v32146_v22 }
 0x7c9   : > { %26868 = vmatprep.subr.bf16.mxu1 %v32360_v26  ;;  %v9681_v40 = vsub.f32 %v32396_v62, %v36901_v61 }
 0x7ca   : > { %v32391_v41 = vsub.f32 %v32081_v32, %v37615_v6  ;;  %v36886_v6 = vand.u32 4294901760, %v32380_v52  ;;  %v36889_v32 = vand.u32 4294901760, %v32385_v10  ;;  %v32433_v9 = vsub.f32 %v32146_v22, %v37621_v13 }
 0x7cb   : > { %v37624_v22 = vand.u32 4294901760, %v32417_v57  ;;  %v9682_v16 = vand.u32 4294901760, %v9681_v40 }
 0x7cc   : > { %v36894_v33 = vand.u32 4294901760, %v32391_v41  ;;  %v9660_v36 = vsub.f32 %v32380_v52, %v36886_v6  ;;  %v9667_v27 = vsub.f32 %v32385_v10, %v36889_v32  ;;  %v37622_v6 = vand.u32 4294901760, %v32401_v45 }
 0x7cd   : > { %v37623_v32 = vand.u32 4294901760, %v32406_v60  ;;  %v9702_v13 = vsub.f32 %v32417_v57, %v37624_v22 }
 0x7ce   : > { %v9674_v63 = vsub.f32 %v32391_v41, %v36894_v33  ;;  %v9688_v44 = vsub.f32 %v32401_v45, %v37622_v6  ;;  %v9661_v54 = vand.u32 4294901760, %v9660_v36  ;;  %v9668_v8 = vand.u32 4294901760, %v9667_v27 }
 0x7cf   : > { %v9695_v18 = vsub.f32 %v32406_v60, %v37623_v32  ;;  %v9708_v33 = vand.u32 4294901760, %v32433_v9  ;;  %v9703_v6 = vand.u32 4294901760, %v9702_v13  ;;  %v37626_v36 = vand.u32 4294901760, %v32188_v31 }
 0x7d0   : > { %v9675_v3 = vand.u32 4294901760, %v9674_v63  ;;  %v9689_v35 = vand.u32 4294901760, %v9688_v44  ;;  %26870 = vmatpush3.bf16.xpose.msra.mxu1 %v32360_v26  ;;  %v32452_v38 = vpack.c.bf16 %v9668_v8, %v9661_v54  ;;  %v37629_v44 = vand.u32 4294901760, %v32181_v5 }
 0x7d1   : > { %v9696_v61 = vand.u32 4294901760, %v9695_v18  ;;  %v9709_v29 = vsub.f32 %v32433_v9, %v9708_v33  ;;  %v9714_v27 = vsub.f32 %v32188_v31, %v37626_v36  ;;  %26872 = vmatprep.subr.bf16.mxu1 %v32410_v14  ;;  %v37630_v8 = vand.u32 4294901760, %v32224_v30 }
 0x7d2   : > { %37625 = vst [vmem:[#allocation133_spill] sm:$0xff] %v32452_v38  ;;  %v32459_v32 = vpack.c.bf16 %v9682_v16, %v9675_v3  ;;  %v9721_v18 = vsub.f32 %v32181_v5, %v37629_v44  ;;  %v37631_v13 = vand.u32 4294901760, %v32206_v55  ;;  %v37632_v36 = vand.u32 4294901760, %v32247_v15 }
 0x7d3   : > { %v32461_v22 = vpack.c.bf16 %v9696_v61, %v9689_v35  ;;  %v9728_v54 = vsub.f32 %v32224_v30, %v37630_v8  ;;  %v9710_v63 = vand.u32 4294901760, %v9709_v29  ;;  %v9715_v40 = vand.u32 4294901760, %v9714_v27 }
 0x7d4   : > { %37627 = vst [vmem:[#allocation134_spill] sm:$0xff] %v32459_v32  ;;  %v9735_v31 = vsub.f32 %v32206_v55, %v37631_v13  ;;  %v9742_v3 = vsub.f32 %v32247_v15, %v37632_v36  ;;  %v9722_v35 = vand.u32 4294901760, %v9721_v18  ;;  %v37633_v61 = vand.u32 4294901760, %v32238_v59 }
 0x7d5   : > { %37628 = vst [vmem:[#allocation135_spill] sm:$0xff] %v32461_v22  ;;  %v9729_v16 = vand.u32 4294901760, %v9728_v54  ;;  %v32480_v44 = vpack.c.bf16 %v32130_v23, %v32119_v58  ;;  %v32482_v29 = vpack.c.bf16 %v9710_v63, %v9703_v6  ;;  %v9716_v30 = vsub.f32 %v9714_v27, %v9715_v40 }
 0x7d6   : > { %v9749_v5 = vsub.f32 %v32238_v59, %v37633_v61  ;;  %v9736_v8 = vand.u32 4294901760, %v9735_v31  ;;  %v9743_v22 = vand.u32 4294901760, %v9742_v3  ;;  %v9723_v55 = vsub.f32 %v9721_v18, %v9722_v35 }
 0x7d7   : > { %37634 = vst [vmem:[#allocation136_spill] sm:$0xff] %v32480_v44  ;;  %37635 = vst [vmem:[#allocation137_spill] sm:$0xff] %v32482_v29  ;;  %v9730_v13 = vsub.f32 %v9728_v54, %v9729_v16  ;;  %v32486_v15 = vpack.c.bf16 %v32385_v10, %v32380_v52  ;;  %v9717_v36 = vand.u32 4294901760, %v9716_v30  ;;  %v32490_v59 = vpack.c.bf16 %v32396_v62, %v32391_v41 }
 0x7d8   : > { %v9750_v32 = vand.u32 4294901760, %v9749_v5  ;;  %v9737_v38 = vsub.f32 %v9735_v31, %v9736_v8  ;;  %v9744_v26 = vsub.f32 %v9742_v3, %v9743_v22  ;;  %v9724_v61 = vand.u32 4294901760, %v9723_v55  ;;  %26874 = vmatpush3.bf16.xpose.msra.mxu1 %v32410_v14 }
 0x7d9   : > { %37636 = vst [vmem:[#allocation138_spill] sm:$0xff] %v32486_v15  ;;  %37637 = vst [vmem:[#allocation139_spill] sm:$0xff] %v32490_v59  ;;  %v9731_v6 = vand.u32 4294901760, %v9730_v13  ;;  %v32494_v44 = vpack.c.bf16 %v32406_v60, %v32401_v45  ;;  %v32499_v30 = vpack.c.bf16 %v32433_v9, %v32417_v57  ;;  %v32501_v15 = vpack.c.bf16 %v9721_v18, %v9714_v27 }
 0x7da   : > { %v9751_v63 = vsub.f32 %v9749_v5, %v9750_v32  ;;  %v9738_v29 = vand.u32 4294901760, %v9737_v38  ;;  %v9745_v56 = vand.u32 4294901760, %v9744_v26  ;;  %26876 = vmatprep.subr.bf16.mxu1 %v32356_v49  ;;  %v32504_v59 = vpack.c.bf16 %v9724_v61, %v9717_v36 }
 0x7db   : > { %37638 = vst [vmem:[#allocation140_spill] sm:$0xff] %v32494_v44  ;;  %37639 = vst [vmem:[#allocation141_spill] sm:$0xff] %v32499_v30  ;;  %v32506_v13 = vpack.c.bf16 %v9735_v31, %v9728_v54  ;;  %v32508_v48 = vpack.c.bf16 %v9749_v5, %v9742_v3  ;;  %v37645_v38 = vand.u32 4294901760, %v32119_v58  ;;  %v37646_v26 = vand.u32 4294901760, %v32130_v23  ;;  %v37692_v30 = vld [vmem:[#allocation49_spill] sm:$0xff] }
 0x7dc   : > { %37640 = vst [vmem:[#allocation142_spill] sm:$0xff] %v32501_v15  ;;  %37641 = vst [vmem:[#allocation143_spill] sm:$0xff] %v32504_v59  ;;  %v9752_v55 = vand.u32 4294901760, %v9751_v63  ;;  %v32510_v44 = vpack.c.bf16 %v9738_v29, %v9731_v6  ;;  %v37648_v9 = vand.u32 4294901760, %v32380_v52  ;;  %v37649_v27 = vand.u32 4294901760, %v32385_v10  ;;  %v37690_v15 = vld [vmem:[#allocation78_spill] sm:$0xff] }
 0x7dd   : > { %37642 = vst [vmem:[#allocation144_spill] sm:$0xff] %v32506_v13  ;;  %37643 = vst [vmem:[#allocation145_spill] sm:$0xff] %v32508_v48  ;;  %v32516_v14 = vpack.c.bf16 %v37646_v26, %v37645_v38  ;;  %v37651_v36 = vand.u32 4294901760, %v32391_v41  ;;  %v37652_v54 = vand.u32 4294901760, %v32396_v62  ;;  %v37655_v58 = vand.u32 4294901760, %v32401_v45  ;;  %v37688_v48 = vld [vmem:[#allocation116_spill] sm:$0xff] }
 0x7de   : > { %37644 = vst [vmem:[#allocation146_spill] sm:$0xff] %v32510_v44  ;;  %v32522_v18 = vpack.c.bf16 %v37649_v27, %v37648_v9  ;;  %v32530_v3 = vpack.c.bf16 %v9752_v55, %v9745_v56  ;;  %v37656_v23 = vand.u32 4294901760, %v32406_v60  ;;  %v37658_v52 = vand.u32 4294901760, %v32417_v57 }
 0x7df   : > { %37647 = vst [vmem:[#allocation147_spill] sm:$0xff] %v32516_v14  ;;  %v32528_v31 = vpack.c.bf16 %v37652_v54, %v37651_v36  ;;  %v32542_v10 = vpack.c.bf16 %v9722_v35, %v9715_v40  ;;  %v32544_v61 = vpack.c.bf16 %v9736_v8, %v9729_v16  ;;  %v32546_v41 = vpack.c.bf16 %v9750_v32, %v9743_v22  ;;  %v37687_v14 = vld [vmem:[#allocation63_spill] sm:$0xff] }
 0x7e0   : > { %37650 = vst [vmem:[#allocation148_spill] sm:$0xff] %v32522_v18  ;;  %37654 = vst [vmem:[#allocation150_spill] sm:$0xff] %v32530_v3  ;;  %v32536_v5 = vpack.c.bf16 %v37656_v23, %v37655_v58  ;;  %v32540_v29 = vpack.c.bf16 %v9708_v33, %v37658_v52  ;;  %v32550_v62 = vsub.f32 %v32125_v43, %v32173_v4  ;;  %v32555_v45 = vand.u32 4294901760, %v32375_v21 }
 0x7e1   : > { %37653 = vst [vmem:[#allocation149_spill] sm:$0xff] %v32528_v31  ;;  %37660 = vst [vmem:[#allocation153_spill] sm:$0xff] %v32542_v10  ;;  %v8063_v56 = vsub.f32 %v32327_v28, %v32365_v25  ;;  %v32559_v60 = vsub.f32 %v32214_v19, %v32233_v37  ;;  %24440 = vmatmul.mubr.f32.vlgmr.msra.gmra.mrb[48].mxu1 %v32323_v34  ;;  %v26879_v57 = vpack.c.bf16 %v32371_v0, %v32362_v53  ;;  %v37686_v31 = vld [vmem:[#allocation110_spill] sm:$0xff] }
 0x7e2   : > { %37657 = vst [vmem:[#allocation151_spill] sm:$0xff] %v32536_v5  ;;  %37659 = vst [vmem:[#allocation152_spill] sm:$0xff] %v32540_v29  ;;  %v8073_v33 = vsub.f32 %v32331_v39, %v32368_v51  ;;  %24442 = vmatprep.mubr.f32.mxu1 %v32362_v53  ;;  %26878 = vmatpush3.bf16.xpose.msra.mxu1 %v32356_v49  ;;  %v32569_v43 = vand.u32 4294901760, %v32550_v62  ;;  %v32573_v19 = vsub.f32 %v32210_v17, %v32230_v7 }
 0x7e3   : > { %37661 = vst [vmem:[#allocation154_spill] sm:$0xff] %v32544_v61  ;;  %37662 = vst [vmem:[#allocation155_spill] sm:$0xff] %v32546_v41  ;;  %26880 = vmatprep.subr.bf16.mxu1 %v26879_v57  ;;  %v32575_v32 = vand.u32 4294901760, %v8063_v56  ;;  %v8083_v22 = vsub.f32 %v32375_v21, %v32555_v45  ;;  %v32580_v40 = vand.u32 4294901760, %v32559_v60  ;;  %v32584_v35 = vsub.f32 %v32266_v1, %v32284_v46  ;;  %v37679_v56 = vld [vmem:[#allocation126_spill] sm:$0xff] }
 0x7e4   : > { %37663 = vst [vmem:[#allocation156_spill] sm:$0xff] %v32550_v62  ;;  %37664 = vst [vmem:[#allocation157_spill] sm:$0xff] %v32555_v45  ;;  %v32587_v49 = vand.u32 4294901760, %v8073_v33  ;;  %v8093_v17 = vsub.f32 %v32550_v62, %v32569_v43  ;;  %v32593_v16 = vand.u32 4294901760, %v32573_v19  ;;  %v32597_v8 = vsub.f32 %v32262_v20, %v32281_v11 }
 0x7e5   : > { %37665 = vst [vmem:[#allocation158_spill] sm:$0xff] %v32559_v60  ;;  %37666 = vst [vmem:[#allocation159_spill] sm:$0xff] %v32569_v43  ;;  %24443 = vmatmul.mubr.f32.gmra.mrb[50].mxu1 %v32371_v0  ;;  %v32599_v6 = vand.u32 4294901760, %v8083_v22  ;;  %v8103_v1 = vsub.f32 %v32559_v60, %v32580_v40  ;;  %v32604_v63 = vand.u32 4294901760, %v32584_v35  ;;  %v32608_v55 = vsub.f32 %v32312_v24, %v32334_v12 }
 0x7e6   : > { %37667 = vst [vmem:[#allocation160_spill] sm:$0xff] %v32573_v19  ;;  %37668 = vst [vmem:[#allocation161_spill] sm:$0xff] %v32580_v40  ;;  %24445 = vmatprep.mubr.f32.mxu1 %v32575_v32  ;;  %v26883_v38 = vpack.c.bf16 %v32587_v49, %v32575_v32  ;;  %v32614_v20 = vand.u32 4294901760, %v8093_v17  ;;  %v8113_v26 = vsub.f32 %v32573_v19, %v32593_v16  ;;  %v32619_v9 = vand.u32 4294901760, %v32597_v8 }
 0x7e7   : > { %37669 = vst [vmem:[#allocation162_spill] sm:$0xff] %v32584_v35  ;;  %37670 = vst [vmem:[#allocation163_spill] sm:$0xff] %v32593_v16  ;;  %v32623_v24 = vsub.f32 %v32300_v47, %v32321_v42  ;;  %v32625_v27 = vand.u32 4294901760, %v8103_v1  ;;  %v8123_v36 = vsub.f32 %v32584_v35, %v32604_v63  ;;  %v32630_v54 = vand.u32 4294901760, %v32608_v55 }
 0x7e8   : > { %37671 = vst [vmem:[#allocation164_spill] sm:$0xff] %v32597_v8  ;;  %37672 = vst [vmem:[#allocation165_spill] sm:$0xff] %v32604_v63  ;;  %v32634_v58 = vsub.f32 %v32342_v50, %v32352_v2  ;;  %v32638_v23 = vand.u32 4294901760, %v8113_v26  ;;  %v8133_v47 = vsub.f32 %v32597_v8, %v32619_v9  ;;  %v26887_v1 = vpack.c.bf16 %v32614_v20, %v32599_v6 }
 0x7e9   : > { %37673 = vst [vmem:[#allocation166_spill] sm:$0xff] %v32608_v55  ;;  %24446 = vmatmul.mubr.f32.gmra.mrb[52].mxu1 %v32587_v49  ;;  %37674 = vst [vmem:[#allocation167_spill] sm:$0xff] %v32619_v9  ;;  %v32643_v52 = vand.u32 4294901760, %v32623_v24  ;;  %v32649_v22 = vand.u32 4294901760, %v8123_v36  ;;  %v8143_v50 = vsub.f32 %v32608_v55, %v32630_v54  ;;  %v26915_v3 = vpack.c.bf16 %v32331_v39, %v32327_v28 }
 0x7ea   : > { %24448 = vmatprep.mubr.f32.mxu1 %v32599_v6  ;;  %26882 = vmatpush3.bf16.xpose.msra.mxu1 %v26879_v57  ;;  %37675 = vst [vmem:[#allocation168_spill] sm:$0xff] %v32623_v24  ;;  %37676 = vst [vmem:[#allocation169_spill] sm:$0xff] %v32630_v54  ;;  %v37680_v57 = vld [vmem:[#allocation125_spill] sm:$0xff]  ;;  %v32654_v17 = vand.u32 4294901760, %v32634_v58  ;;  %v32660_v26 = vand.u32 4294901760, %v8133_v47  ;;  %v26931_v44 = vpack.c.bf16 %v32623_v24, %v32608_v55 }
 0x7eb   : > { %26884 = vmatprep.subr.bf16.mxu1 %v26883_v38  ;;  %37677 = vst [vmem:[#allocation170_spill] sm:$0xff] %v32634_v58  ;;  %37678 = vst [vmem:[#allocation171_spill] sm:$0xff] %v32643_v52  ;;  %v32647_v33 = vsub.f32 %v37680_v57, %v37679_v56  ;;  %v8153_v36 = vsub.f32 %v32623_v24, %v32643_v52  ;;  %v32667_v41 = vand.u32 4294901760, %v8143_v50 }
 0x7ec   : > { %37682 = vst [vmem:[#allocation172_spill] sm:$0xff] %v32654_v17  ;;  %v8163_v61 = vsub.f32 %v32634_v58, %v32654_v17  ;;  %v26891_v50 = vpack.c.bf16 %v32638_v23, %v32625_v27  ;;  %v26895_v5 = vpack.c.bf16 %v32660_v26, %v32649_v22 }
 0x7ed   : > { %24449 = vmatmul.mubr.f32.gmra.mrb[54].mxu1 %v32614_v20  ;;  %37681 = vst [vmem:[#allocation125_spill] sm:$0xff] %v32647_v33  ;;  %v32665_v57 = vand.u32 4294901760, %v32647_v33  ;;  %v32673_v10 = vand.u32 4294901760, %v8153_v36  ;;  %v37684_v36 = vld [vmem:[#allocation66_spill] sm:$0xff]  ;;  %v26935_v59 = vpack.c.bf16 %v32647_v33, %v32634_v58 }
 0x7ee   : > { %24451 = vmatprep.mubr.f32.mxu1 %v32625_v27  ;;  %v32677_v47 = vand.u32 4294901760, %v8163_v61 }
 0x7ef   : > { %37683 = vst [vmem:[#allocation173_spill] sm:$0xff] %v32665_v57  ;;  %v26899_v61 = vpack.c.bf16 %v32673_v10, %v32667_v41 }
 0x7f1   : > { %24452 = vmatmul.mubr.f32.gmra.mrb[56].mxu1 %v32638_v23 }
 0x7f2   : > { %24454 = vmatprep.mubr.f32.mxu1 %v32649_v22  ;;  %26886 = vmatpush3.bf16.xpose.msra.mxu1 %v26883_v38  ;;  %v8173_v38 = vsub.f32 %v32647_v33, %v32665_v57 }
 0x7f3   : > { %26888 = vmatprep.subr.bf16.mxu1 %v26887_v1 }
 0x7f4   : > { %v32683_v29 = vand.u32 4294901760, %v8173_v38  ;;  %v37685_v38 = vld [vmem:[#allocation80_spill] sm:$0xff] }
 0x7f5   : > { %24455 = vmatmul.mubr.f32.gmra.mrb[58].mxu1 %v32660_v26  ;;  %v26907_v18 = vpack.c.bf16 %v37686_v31, %v37685_v38 }
 0x7f6   : > { %24457 = vmatprep.mubr.f32.mxu1 %v32667_v41 }
 0x7f9   : > { %24458 = vmatmul.mubr.f32.gmra.mrb[60].mxu1 %v32673_v10 }
 0x7fa   : > { %24460 = vmatprep.mubr.f32.mxu1 %v32677_v47  ;;  %26890 = vmatpush3.bf16.xpose.msra.mxu1 %v26887_v1  ;;  %v26903_v1 = vpack.c.bf16 %v32683_v29, %v32677_v47 }
 0x7fb   : > { %26892 = vmatprep.subr.bf16.mxu1 %v26891_v50 }
 0x7fd   : > { %24461 = vmatmul.mubr.f32.gmra.mrb[62].mxu1 %v32683_v29 }
 0x7fe   : > { %24495 = vmatprep.mubr.f32.mxu1 %v37684_v36 }
 0x802   : > { %26894 = vmatpush3.bf16.xpose.msra.mxu1 %v26891_v50  ;;  %v37689_v50 = vld [vmem:[#allocation117_spill] sm:$0xff] }
 0x803   : > { %26896 = vmatprep.subr.bf16.mxu1 %v26895_v5  ;;  %v26911_v13 = vpack.c.bf16 %v37689_v50, %v37688_v48 }
 0x80a   : > { %26898 = vmatpush3.bf16.xpose.msra.mxu1 %v26895_v5  ;;  %v37691_v5 = vld [vmem:[#allocation75_spill] sm:$0xff] }
 0x80b   : > { %26900 = vmatprep.subr.bf16.mxu1 %v26899_v61 }
 0x812   : > { %26902 = vmatpush3.bf16.xpose.msra.mxu1 %v26899_v61  ;;  %v37693_v61 = vld [vmem:[#allocation32_spill] sm:$0xff] }
 0x813   : > { %26904 = vmatprep.subr.bf16.mxu1 %v26903_v1 }
 0x81a   : > { %26906 = vmatpush3.bf16.xpose.msra.mxu1 %v26903_v1  ;;  %v37694_v1 = vld [vmem:[#allocation102_spill] sm:$0xff] }
 0x81b   : > { %26908 = vmatprep.subr.bf16.mxu1 %v26907_v18 }
 0x821   : > { %24496 = vmatmul.mubr.f32.vlgmr.msra.gmra.mrb[48].mxu1 %v37687_v14 }
 0x822   : > { %24498 = vmatprep.mubr.f32.mxu1 %v37690_v15  ;;  %26910 = vmatpush3.bf16.xpose.msra.mxu1 %v26907_v18  ;;  %v26919_v18 = vpack.c.bf16 %v32550_v62, %v32375_v21 }
 0x823   : > { %26912 = vmatprep.subr.bf16.mxu1 %v26911_v13 }
 0x825   : > { %24499 = vmatmul.mubr.f32.gmra.mrb[50].mxu1 %v37691_v5 }
 0x826   : > { %24501 = vmatprep.mubr.f32.mxu1 %v37692_v30 }
 0x829   : > { %24502 = vmatmul.mubr.f32.gmra.mrb[52].mxu1 %v37693_v61 }
 0x82a   : > { %24504 = vmatprep.mubr.f32.mxu1 %v37694_v1  ;;  %26914 = vmatpush3.bf16.xpose.msra.mxu1 %v26911_v13  ;;  %v26923_v13 = vpack.c.bf16 %v32573_v19, %v32559_v60 }
 0x82b   : > { %26916 = vmatprep.subr.bf16.mxu1 %v26915_v3 }
 0x82d   : > { %24505 = vmatmul.mubr.f32.gmra.mrb[54].mxu1 %v32173_v4 }
 0x82e   : > { %24507 = vmatprep.mubr.f32.mxu1 %v32233_v37 }
 0x831   : > { %24508 = vmatmul.mubr.f32.gmra.mrb[56].mxu1 %v32230_v7 }
 0x832   : > { %24510 = vmatprep.mubr.f32.mxu1 %v32284_v46  ;;  %26918 = vmatpush3.bf16.xpose.msra.mxu1 %v26915_v3  ;;  %v26927_v3 = vpack.c.bf16 %v32597_v8, %v32584_v35 }
 0x833   : > { %26920 = vmatprep.subr.bf16.mxu1 %v26919_v18 }
 0x835   : > { %24511 = vmatmul.mubr.f32.gmra.mrb[58].mxu1 %v32281_v11 }
 0x836   : > { %24513 = vmatprep.mubr.f32.mxu1 %v32334_v12 }
 0x839   : > { %24514 = vmatmul.mubr.f32.gmra.mrb[60].mxu1 %v32321_v42 }
 0x83a   : > { %24516 = vmatprep.mubr.f32.mxu1 %v32352_v2  ;;  %26922 = vmatpush3.bf16.xpose.msra.mxu1 %v26919_v18  ;;  %v37695_v18 = vld [vmem:[#allocation72_spill] sm:$0xff] }
 0x83b   : > { %26924 = vmatprep.subr.bf16.mxu1 %v26923_v13 }
 0x83d   : > { %24517 = vmatmul.mubr.f32.gmra.mrb[62].mxu1 %v37679_v56 }
 0x83e   : > { %24551 = vmatprep.mubr.f32.mxu1 %v37685_v38 }
 0x842   : > { %26926 = vmatpush3.bf16.xpose.msra.mxu1 %v26923_v13  ;;  %v37696_v13 = vld [vmem:[#allocation9_spill] sm:$0xff] }
 0x843   : > { %26928 = vmatprep.subr.bf16.mxu1 %v26927_v3 }
 0x84a   : > { %26930 = vmatpush3.bf16.xpose.msra.mxu1 %v26927_v3  ;;  %v37699_v3 = vld [vmem:[#allocation111_spill] sm:$0xff] }
 0x84b   : > { %26932 = vmatprep.subr.bf16.mxu1 %v26931_v44 }
 0x852   : > { %26934 = vmatpush3.bf16.xpose.msra.mxu1 %v26931_v44  ;;  %v37697_v44 = vld [vmem:[#allocation77_spill] sm:$0xff] }
 0x853   : > { %26936 = vmatprep.subr.bf16.mxu1 %v26935_v59 }
 0x85a   : > { %26938 = vmatpush3.bf16.xpose.msra.mxu1 %v26935_v59  ;;  %v37698_v59 = vld [vmem:[#allocation104_spill] sm:$0xff] }
 0x85b   : > { %26940 = vmatprep.subr.bf16.mxu1 %v37695_v18 }
 0x861   : > { %24552 = vmatmul.mubr.f32.vlgmr.msra.gmra.mrb[48].mxu1 %v37686_v31 }
 0x862   : > { %24554 = vmatprep.mubr.f32.mxu1 %v37688_v48  ;;  %26942 = vmatpush3.bf16.xpose.msra.mxu1 %v37695_v18 }
 0x863   : > { %26944 = vmatprep.subr.bf16.mxu1 %v37696_v13 }
 0x865   : > { %24555 = vmatmul.mubr.f32.gmra.mrb[50].mxu1 %v37689_v50 }
 0x866   : > { %24557 = vmatprep.mubr.f32.mxu1 %v32327_v28 }
 0x869   : > { %24558 = vmatmul.mubr.f32.gmra.mrb[52].mxu1 %v32331_v39 }
 0x86a   : > { %24560 = vmatprep.mubr.f32.mxu1 %v32375_v21  ;;  %26946 = vmatpush3.bf16.xpose.msra.mxu1 %v37696_v13 }
 0x86b   : > { %26948 = vmatprep.subr.bf16.mxu1 %v37697_v44 }
 0x86d   : > { %24561 = vmatmul.mubr.f32.gmra.mrb[54].mxu1 %v32550_v62 }
 0x86e   : > { %24563 = vmatprep.mubr.f32.mxu1 %v32559_v60  ;;  %v37706_v60 = vld [vmem:[#allocation120_spill] sm:$0xff] }
 0x871   : > { %24564 = vmatmul.mubr.f32.gmra.mrb[56].mxu1 %v32573_v19  ;;  %v37700_v19 = vld [vmem:[#allocation68_spill] sm:$0xff] }
 0x872   : > { %24566 = vmatprep.mubr.f32.mxu1 %v32584_v35  ;;  %26950 = vmatpush3.bf16.xpose.msra.mxu1 %v37697_v44  ;;  %v37701_v35 = vld [vmem:[#allocation118_spill] sm:$0xff] }
 0x873   : > { %26952 = vmatprep.subr.bf16.mxu1 %v37698_v59 }
 0x875   : > { %24567 = vmatmul.mubr.f32.gmra.mrb[58].mxu1 %v32597_v8  ;;  %v37702_v8 = vld [vmem:[#allocation128_spill] sm:$0xff] }
 0x876   : > { %24569 = vmatprep.mubr.f32.mxu1 %v32608_v55 }
 0x879   : > { %24570 = vmatmul.mubr.f32.gmra.mrb[60].mxu1 %v32623_v24  ;;  %v37703_v24 = vld [vmem:[#allocation132_spill] sm:$0xff] }
 0x87a   : > { %24572 = vmatprep.mubr.f32.mxu1 %v32634_v58  ;;  %26954 = vmatpush3.bf16.xpose.msra.mxu1 %v37698_v59  ;;  %v37704_v58 = vld [vmem:[#allocation113_spill] sm:$0xff] }
 0x87b   : > { %26956 = vmatprep.subr.bf16.mxu1 %v37699_v3  ;;  %v26971_v55 = vpack.c.bf16 %v37704_v58, %v37700_v19 }
 0x87d   : > { %24573 = vmatmul.mubr.f32.gmra.mrb[62].mxu1 %v32647_v33  ;;  %v37705_v33 = vld [vmem:[#allocation119_spill] sm:$0xff] }
 0x87e   : > { %24607 = vmatprep.mubr.f32.mxu1 %v37700_v19  ;;  %v26975_v62 = vpack.c.bf16 %v37706_v60, %v37705_v33  ;;  %v26979_v19 = vpack.c.bf16 %v32368_v51, %v32365_v25 }
 0x882   : > { %26958 = vmatpush3.bf16.xpose.msra.mxu1 %v37699_v3 }
 0x883   : > { %26960 = vmatprep.subr.bf16.mxu1 %v37701_v35 }
 0x88a   : > { %26962 = vmatpush3.bf16.xpose.msra.mxu1 %v37701_v35 }
 0x88b   : > { %26964 = vmatprep.subr.bf16.mxu1 %v37702_v8 }
 0x892   : > { %26966 = vmatpush3.bf16.xpose.msra.mxu1 %v37702_v8 }
 0x893   : > { %26968 = vmatprep.subr.bf16.mxu1 %v37703_v24 }
 0x89a   : > { %26970 = vmatpush3.bf16.xpose.msra.mxu1 %v37703_v24 }
 0x89b   : > { %26972 = vmatprep.subr.bf16.mxu1 %v26971_v55 }
 0x8a1   : > { %24608 = vmatmul.mubr.f32.vlgmr.msra.gmra.mrb[48].mxu1 %v37704_v58 }
 0x8a2   : > { %24610 = vmatprep.mubr.f32.mxu1 %v37705_v33  ;;  %26974 = vmatpush3.bf16.xpose.msra.mxu1 %v26971_v55  ;;  %v26983_v55 = vpack.c.bf16 %v32569_v43, %v32555_v45 }
 0x8a3   : > { %26976 = vmatprep.subr.bf16.mxu1 %v26975_v62 }
 0x8a5   : > { %24611 = vmatmul.mubr.f32.gmra.mrb[50].mxu1 %v37706_v60 }
 0x8a6   : > { %24613 = vmatprep.mubr.f32.mxu1 %v32365_v25 }
 0x8a9   : > { %24614 = vmatmul.mubr.f32.gmra.mrb[52].mxu1 %v32368_v51 }
 0x8aa   : > { %24616 = vmatprep.mubr.f32.mxu1 %v32555_v45  ;;  %26978 = vmatpush3.bf16.xpose.msra.mxu1 %v26975_v62  ;;  %v26987_v62 = vpack.c.bf16 %v32593_v16, %v32580_v40 }
 0x8ab   : > { %26980 = vmatprep.subr.bf16.mxu1 %v26979_v19 }
 0x8ad   : > { %24617 = vmatmul.mubr.f32.gmra.mrb[54].mxu1 %v32569_v43  ;;  %v26995_v43 = vpack.c.bf16 %v32643_v52, %v32630_v54 }
 0x8ae   : > { %24619 = vmatprep.mubr.f32.mxu1 %v32580_v40 }
 0x8b1   : > { %24620 = vmatmul.mubr.f32.gmra.mrb[56].mxu1 %v32593_v16  ;;  %v26999_v16 = vpack.c.bf16 %v32665_v57, %v32654_v17 }
 0x8b2   : > { %24622 = vmatprep.mubr.f32.mxu1 %v32604_v63  ;;  %26982 = vmatpush3.bf16.xpose.msra.mxu1 %v26979_v19  ;;  %v26991_v19 = vpack.c.bf16 %v32619_v9, %v32604_v63 }
 0x8b3   : > { %26984 = vmatprep.subr.bf16.mxu1 %v26983_v55 }
 0x8b5   : > { %24623 = vmatmul.mubr.f32.gmra.mrb[58].mxu1 %v32619_v9 }
 0x8b6   : > { %24625 = vmatprep.mubr.f32.mxu1 %v32630_v54 }
 0x8b9   : > { %24626 = vmatmul.mubr.f32.gmra.mrb[60].mxu1 %v32643_v52 }
 0x8ba   : > { %24628 = vmatprep.mubr.f32.mxu1 %v32654_v17  ;;  %26986 = vmatpush3.bf16.xpose.msra.mxu1 %v26983_v55 }
 0x8bb   : > { %26988 = vmatprep.subr.bf16.mxu1 %v26987_v62 }
 0x8bd   : > { %24629 = vmatmul.mubr.f32.gmra.mrb[62].mxu1 %v32665_v57 }
 0x8be   : > { %24663 = vmatprep.mubr.f32.mxu1 %v37684_v36 }
 0x8c2   : > { %26990 = vmatpush3.bf16.xpose.msra.mxu1 %v26987_v62  ;;  %v7883_v62 = vld [vmem:[%s36471_s4 + $0x60] sm:$0xff] }
 0x8c3   : > { %26992 = vmatprep.subr.bf16.mxu1 %v26991_v19 }
 0x8ca   : > { %26994 = vmatpush3.bf16.xpose.msra.mxu1 %v26991_v19  ;;  %v11824_v19 = vand.u32 4294901760, %v7883_v62 }
 0x8cb   : > { %26996 = vmatprep.subr.bf16.mxu1 %v26995_v43 }
 0x8d2   : > { %26998 = vmatpush3.bf16.xpose.msra.mxu1 %v26995_v43  ;;  %v7881_v43 = vld [vmem:[%s36471_s4 + $0x50] sm:$0xff] }
 0x8d3   : > { %27000 = vmatprep.subr.bf16.mxu1 %v26999_v16 }
 0x8da   : > { %27002 = vmatpush3.bf16.xpose.msra.mxu1 %v26999_v16  ;;  %v7882_v16 = vld [vmem:[%s36471_s4 + $0x58] sm:$0xff] }
 0x8db   : > { %27004 = vmatprep.subr.bf16.mxu1 %v37695_v18 }
 0x8e1   : > { %24664 = vmatmul.mubr.f32.vlgmr.msra.gmra.mrb[48].mxu1 %v37687_v14 }
 0x8e2   : > { %24666 = vmatprep.mubr.f32.mxu1 %v37690_v15  ;;  %27006 = vmatpush3.bf16.xpose.msra.mxu1 %v37695_v18  ;;  %v11818_v18 = vand.u32 4294901760, %v7881_v43 }
 0x8e3   : > { %27008 = vmatprep.subr.bf16.mxu1 %v37696_v13 }
 0x8e5   : > { %24667 = vmatmul.mubr.f32.gmra.mrb[50].mxu1 %v37691_v5 }
 0x8e6   : > { %24669 = vmatprep.mubr.f32.mxu1 %v37692_v30 }
 0x8e9   : > { %24670 = vmatmul.mubr.f32.gmra.mrb[52].mxu1 %v37693_v61 }
 0x8ea   : > { %24672 = vmatprep.mubr.f32.mxu1 %v37694_v1  ;;  %27010 = vmatpush3.bf16.xpose.msra.mxu1 %v37696_v13  ;;  %v11821_v13 = vand.u32 4294901760, %v7882_v16 }
 0x8eb   : > { %27012 = vmatprep.subr.bf16.mxu1 %v37697_v44 }
 0x8ed   : > { %24673 = vmatmul.mubr.f32.gmra.mrb[54].mxu1 %v32173_v4 }
 0x8ee   : > { %24675 = vmatprep.mubr.f32.mxu1 %v32233_v37 }
 0x8f1   : > { %24676 = vmatmul.mubr.f32.gmra.mrb[56].mxu1 %v32230_v7 }
 0x8f2   : > { %24678 = vmatprep.mubr.f32.mxu1 %v32284_v46  ;;  %27014 = vmatpush3.bf16.xpose.msra.mxu1 %v37697_v44  ;;  %v32826_v44 = vsub.f32 %v7881_v43, %v11818_v18 }
 0x8f3   : > { %27016 = vmatprep.subr.bf16.mxu1 %v37698_v59 }
 0x8f5   : > { %24679 = vmatmul.mubr.f32.gmra.mrb[58].mxu1 %v32281_v11 }
 0x8f6   : > { %24681 = vmatprep.mubr.f32.mxu1 %v32334_v12 }
 0x8f9   : > { %24682 = vmatmul.mubr.f32.gmra.mrb[60].mxu1 %v32321_v42 }
 0x8fa   : > { %24684 = vmatprep.mubr.f32.mxu1 %v32352_v2  ;;  %27018 = vmatpush3.bf16.xpose.msra.mxu1 %v37698_v59  ;;  %v32828_v59 = vsub.f32 %v7882_v16, %v11821_v13 }
 0x8fb   : > { %27020 = vmatprep.subr.bf16.mxu1 %v37699_v3 }
 0x8fc   : > { %v36963_v55 = vand.u32 4294901760, %v32828_v59 }
 0x8fd   : > { %24685 = vmatmul.mubr.f32.gmra.mrb[62].mxu1 %v37679_v56 }
 0x8fe   : > { %24719 = vmatprep.mubr.f32.mxu1 %v37684_v36 }
 0x902   : > { %27022 = vmatpush3.bf16.xpose.msra.mxu1 %v37699_v3  ;;  %v36964_v3 = vand.u32 4294901760, %v32826_v44 }
 0x903   : > { %27024 = vmatprep.subr.bf16.mxu1 %v37701_v35 }
 0x904   : > { %v12050_v16 = vsub.f32 %v32826_v44, %v36964_v3 }
 0x906   : > { %v12051_v57 = vand.u32 4294901760, %v12050_v16  ;;  %v32861_v16 = vsub.f32 %v7883_v62, %v11824_v19 }
 0x90a   : > { %27026 = vmatpush3.bf16.xpose.msra.mxu1 %v37701_v35  ;;  %v32830_v35 = vpack.c.bf16 %v11821_v13, %v11818_v18  ;;  %v12057_v18 = vsub.f32 %v32828_v59, %v36963_v55 }
 0x90b   : > { %27028 = vmatprep.subr.bf16.mxu1 %v37702_v8 }
 0x90c   : > { %v12058_v17 = vand.u32 4294901760, %v12057_v18 }
 0x912   : > { %27030 = vmatpush3.bf16.xpose.msra.mxu1 %v37702_v8  ;;  %v7884_v8 = vld [vmem:[%s36471_s4 + $0x68] sm:$0xff] }
 0x913   : > { %27032 = vmatprep.subr.bf16.mxu1 %v37703_v24  ;;  %v11827_v43 = vand.u32 4294901760, %v7884_v8 }
 0x915   : > { %v32848_v13 = vpack.c.bf16 %v11827_v43, %v11824_v19  ;;  %v32863_v18 = vsub.f32 %v7884_v8, %v11827_v43  ;;  %v37707_v43 = vld [vmem:[#allocation11_spill] sm:$0xff] }
 0x91a   : > { %27034 = vmatpush3.bf16.xpose.msra.mxu1 %v37703_v24  ;;  %v27283_v24 = vpack.c.bf16 %v12058_v17, %v12051_v57  ;;  %v36966_v17 = vand.u32 4294901760, %v32861_v16  ;;  %v36965_v57 = vand.u32 4294901760, %v32863_v18 }
 0x91b   : > { %27276 = vmatprep.subr.bf16.mxu1 %v32830_v35 }
 0x91c   : > { %v12064_v55 = vsub.f32 %v32861_v16, %v36966_v17  ;;  %v12071_v62 = vsub.f32 %v32863_v18, %v36965_v57  ;;  %v27291_v57 = vpack.c.bf16 %v32828_v59, %v32826_v44  ;;  %v37718_v17 = vld [vmem:[#allocation125_spill] sm:$0xff] }
 0x91e   : > { %v12065_v8 = vand.u32 4294901760, %v12064_v55  ;;  %v12072_v19 = vand.u32 4294901760, %v12071_v62  ;;  %v37708_v55 = vand.u32 4294901760, %v32826_v44  ;;  %v37710_v62 = vld [vmem:[#allocation156_spill] sm:$0xff]  ;;  %v37713_v44 = vld [vmem:[#allocation162_spill] sm:$0xff] }
 0x920   : > { %v27287_v3 = vpack.c.bf16 %v12072_v19, %v12065_v8  ;;  %v37711_v8 = vld [vmem:[#allocation158_spill] sm:$0xff]  ;;  %v37712_v19 = vld [vmem:[#allocation160_spill] sm:$0xff] }
 0x921   : > { %24720 = vmatmul.mubr.f32.vlgmr.msra.gmra.mrb[48].mxu1 %v37687_v14 }
 0x922   : > { %24722 = vmatprep.mubr.f32.mxu1 %v37690_v15  ;;  %27278 = vmatpush3.bf16.msra.mxu1 %v32830_v35 }
 0x923   : > { %27280 = vmatprep.subr.bf16.mxu1 %v32848_v13 }
 0x925   : > { %24723 = vmatmul.mubr.f32.gmra.mrb[50].mxu1 %v37691_v5 }
 0x926   : > { %24725 = vmatprep.mubr.f32.mxu1 %v37692_v30  ;;  %27282 = vmatpush3.bf16.msra.mxu1 %v32848_v13 }
 0x927   : > { %27284 = vmatprep.subr.bf16.mxu1 %v27283_v24 }
 0x929   : > { %24726 = vmatmul.mubr.f32.gmra.mrb[52].mxu1 %v37693_v61 }
 0x92a   : > { %24728 = vmatprep.mubr.f32.mxu1 %v37694_v1 }
 0x92d   : > { %24729 = vmatmul.mubr.f32.gmra.mrb[54].mxu1 %v32173_v4 }
 0x92e   : > { %24731 = vmatprep.mubr.f32.mxu1 %v32233_v37 }
 0x931   : > { %24732 = vmatmul.mubr.f32.gmra.mrb[56].mxu1 %v32230_v7 }
 0x932   : > { %24734 = vmatprep.mubr.f32.mxu1 %v32284_v46 }
 0x935   : > { %24735 = vmatmul.mubr.f32.gmra.mrb[58].mxu1 %v32281_v11 }
 0x936   : > { %24737 = vmatprep.mubr.f32.mxu1 %v32334_v12 }
 0x939   : > { %24738 = vmatmul.mubr.f32.gmra.mrb[60].mxu1 %v32321_v42 }
 0x93a   : > { %24740 = vmatprep.mubr.f32.mxu1 %v32352_v2 }
 0x93d   : > { %24741 = vmatmul.mubr.f32.gmra.mrb[62].mxu1 %v37679_v56 }
 0x93e   : > { %25279 = vmatprep.mubr.f32.mxu1 %v37707_v43 }
 0x941   : > { %25280 = vmatmul.mubr.f32.vlgmr.msra.gmra.mrb[64].mxu1 %v32323_v34 }
 0x942   : > { %25282 = vmatprep.mubr.f32.mxu1 %v32362_v53  ;;  %27286 = vmatpush3.bf16.msra.mxu1 %v27283_v24  ;;  %v37709_v24 = vand.u32 4294901760, %v32828_v59  ;;  %v37714_v59 = vld [vmem:[#allocation164_spill] sm:$0xff] }
 0x943   : > { %27288 = vmatprep.subr.bf16.mxu1 %v27287_v3 }
 0x945   : > { %25283 = vmatmul.mubr.f32.gmra.mrb[66].mxu1 %v32371_v0 }
 0x946   : > { %25285 = vmatprep.mubr.f32.mxu1 %v32575_v32  ;;  %27290 = vmatpush3.bf16.msra.mxu1 %v27287_v3  ;;  %v27295_v3 = vpack.c.bf16 %v32863_v18, %v32861_v16 }
 0x947   : > { %27292 = vmatprep.subr.bf16.mxu1 %v27291_v57 }
 0x949   : > { %25286 = vmatmul.mubr.f32.gmra.mrb[68].mxu1 %v32587_v49 }
 0x94a   : > { %25288 = vmatprep.mubr.f32.mxu1 %v32599_v6 }
 0x94d   : > { %25289 = vmatmul.mubr.f32.gmra.mrb[70].mxu1 %v32614_v20 }
 0x94e   : > { %25291 = vmatprep.mubr.f32.mxu1 %v32625_v27 }
 0x951   : > { %25292 = vmatmul.mubr.f32.gmra.mrb[72].mxu1 %v32638_v23 }
 0x952   : > { %25294 = vmatprep.mubr.f32.mxu1 %v32649_v22 }
 0x955   : > { %25295 = vmatmul.mubr.f32.gmra.mrb[74].mxu1 %v32660_v26 }
 0x956   : > { %25297 = vmatprep.mubr.f32.mxu1 %v32667_v41 }
 0x959   : > { %25298 = vmatmul.mubr.f32.gmra.mrb[76].mxu1 %v32673_v10 }
 0x95a   : > { %25300 = vmatprep.mubr.f32.mxu1 %v32677_v47 }
 0x95d   : > { %25301 = vmatmul.mubr.f32.gmra.mrb[78].mxu1 %v32683_v29 }
 0x95e   : > { %25311 = vmatprep.mubr.f32.mxu1 %v37684_v36 }
 0x961   : > { %25312 = vmatmul.mubr.f32.vlgmr.msra.gmra.mrb[64].mxu1 %v37687_v14 }
 0x962   : > { %25314 = vmatprep.mubr.f32.mxu1 %v37690_v15  ;;  %27294 = vmatpush3.bf16.msra.mxu1 %v27291_v57  ;;  %v27307_v57 = vpack.c.bf16 %v37709_v24, %v37708_v55  ;;  %v37716_v55 = vld [vmem:[#allocation168_spill] sm:$0xff]  ;;  %v37717_v24 = vld [vmem:[#allocation170_spill] sm:$0xff] }
 0x963   : > { %27296 = vmatprep.subr.bf16.mxu1 %v27295_v3 }
 0x965   : > { %25315 = vmatmul.mubr.f32.gmra.mrb[66].mxu1 %v37691_v5 }
 0x966   : > { %25317 = vmatprep.mubr.f32.mxu1 %v37692_v30  ;;  %27298 = vmatpush3.bf16.msra.mxu1 %v27295_v3  ;;  %v37715_v3 = vld [vmem:[#allocation166_spill] sm:$0xff] }
 0x967   : > { %27300 = vmatprep.subr.bf16.mxu1 %v32830_v35 }
 0x969   : > { %25318 = vmatmul.mubr.f32.gmra.mrb[68].mxu1 %v37693_v61 }
 0x96a   : > { %25320 = vmatprep.mubr.f32.mxu1 %v37694_v1 }
 0x96d   : > { %25321 = vmatmul.mubr.f32.gmra.mrb[70].mxu1 %v32173_v4 }
 0x96e   : > { %25323 = vmatprep.mubr.f32.mxu1 %v32233_v37 }
 0x971   : > { %25324 = vmatmul.mubr.f32.gmra.mrb[72].mxu1 %v32230_v7 }
 0x972   : > { %25326 = vmatprep.mubr.f32.mxu1 %v32284_v46 }
 0x975   : > { %25327 = vmatmul.mubr.f32.gmra.mrb[74].mxu1 %v32281_v11 }
 0x976   : > { %25329 = vmatprep.mubr.f32.mxu1 %v32334_v12 }
 0x979   : > { %25330 = vmatmul.mubr.f32.gmra.mrb[76].mxu1 %v32321_v42 }
 0x97a   : > { %25332 = vmatprep.mubr.f32.mxu1 %v32352_v2 }
 0x97d   : > { %25333 = vmatmul.mubr.f32.gmra.mrb[78].mxu1 %v37679_v56 }
 0x97e   : > { %25343 = vmatprep.mubr.f32.mxu1 %v37685_v38 }
 0x981   : > { %25344 = vmatmul.mubr.f32.vlgmr.msra.gmra.mrb[64].mxu1 %v37686_v31 }
 0x982   : > { %25346 = vmatprep.mubr.f32.mxu1 %v37688_v48  ;;  %27302 = vmatpush3.bf16.msra.mxu1 %v32830_v35 }
 0x983   : > { %27304 = vmatprep.subr.bf16.mxu1 %v32848_v13 }
 0x985   : > { %25347 = vmatmul.mubr.f32.gmra.mrb[66].mxu1 %v37689_v50 }
 0x986   : > { %25349 = vmatprep.mubr.f32.mxu1 %v32327_v28  ;;  %27306 = vmatpush3.bf16.msra.mxu1 %v32848_v13 }
 0x987   : > { %27308 = vmatprep.subr.bf16.mxu1 %v27307_v57 }
 0x989   : > { %25350 = vmatmul.mubr.f32.gmra.mrb[68].mxu1 %v32331_v39  ;;  %v37719_v39 = vld [vmem:[#allocation68_spill] sm:$0xff] }
 0x98a   : > { %25352 = vmatprep.mubr.f32.mxu1 %v32375_v21 }
 0x98d   : > { %25353 = vmatmul.mubr.f32.gmra.mrb[70].mxu1 %v37710_v62  ;;  %v37720_v62 = vand.u32 4294901760, %v32861_v16  ;;  %v37722_v16 = vld [vmem:[#allocation159_spill] sm:$0xff] }
 0x98e   : > { %25355 = vmatprep.mubr.f32.mxu1 %v37711_v8  ;;  %v37721_v8 = vand.u32 4294901760, %v32863_v18  ;;  %v37723_v18 = vld [vmem:[#allocation163_spill] sm:$0xff] }
 0x990   : > { %v27311_v21 = vpack.c.bf16 %v37721_v8, %v37720_v62 }
 0x991   : > { %25356 = vmatmul.mubr.f32.gmra.mrb[72].mxu1 %v37712_v19 }
 0x992   : > { %25358 = vmatprep.mubr.f32.mxu1 %v37713_v44 }
 0x995   : > { %25359 = vmatmul.mubr.f32.gmra.mrb[74].mxu1 %v37714_v59 }
 0x996   : > { %25361 = vmatprep.mubr.f32.mxu1 %v37715_v3 }
 0x999   : > { %25362 = vmatmul.mubr.f32.gmra.mrb[76].mxu1 %v37716_v55 }
 0x99a   : > { %25364 = vmatprep.mubr.f32.mxu1 %v37717_v24 }
 0x99d   : > { %25365 = vmatmul.mubr.f32.gmra.mrb[78].mxu1 %v37718_v17  ;;  %v37740_v17 = vld [vmem:[#allocation97_spill] sm:$0xff] }
 0x99e   : > { %25375 = vmatprep.mubr.f32.mxu1 %v37719_v39 }
 0x9a1   : > { %25376 = vmatmul.mubr.f32.vlgmr.msra.gmra.mrb[64].mxu1 %v37704_v58 }
 0x9a2   : > { %25378 = vmatprep.mubr.f32.mxu1 %v37705_v33  ;;  %27310 = vmatpush3.bf16.msra.mxu1 %v27307_v57  ;;  %v37725_v57 = vld [vmem:[#allocation173_spill] sm:$0xff] }
 0x9a3   : > { %27312 = vmatprep.subr.bf16.mxu1 %v27311_v21 }
 0x9a5   : > { %25379 = vmatmul.mubr.f32.gmra.mrb[66].mxu1 %v37706_v60 }
 0x9a6   : > { %25381 = vmatprep.mubr.f32.mxu1 %v32365_v25  ;;  %27314 = vmatpush3.bf16.msra.mxu1 %v27311_v21  ;;  %v37724_v21 = vld [vmem:[#allocation172_spill] sm:$0xff] }
 0x9a7   : > { %27316 = vmatprep.subr.bf16.mxu1 %v32830_v35 }
 0x9a9   : > { %25382 = vmatmul.mubr.f32.gmra.mrb[68].mxu1 %v32368_v51 }
 0x9aa   : > { %25384 = vmatprep.mubr.f32.mxu1 %v32555_v45 }
 0x9ad   : > { %25385 = vmatmul.mubr.f32.gmra.mrb[70].mxu1 %v37722_v16 }
 0x9ae   : > { %25387 = vmatprep.mubr.f32.mxu1 %v32580_v40 }
 0x9b1   : > { %25388 = vmatmul.mubr.f32.gmra.mrb[72].mxu1 %v37723_v18 }
 0x9b2   : > { %25390 = vmatprep.mubr.f32.mxu1 %v32604_v63 }
 0x9b5   : > { %25391 = vmatmul.mubr.f32.gmra.mrb[74].mxu1 %v32619_v9  ;;  %v37732_v9 = vld [vmem:[#allocation5_spill] sm:$0xff] }
 0x9b6   : > { %25393 = vmatprep.mubr.f32.mxu1 %v32630_v54 }
 0x9b9   : > { %25394 = vmatmul.mubr.f32.gmra.mrb[76].mxu1 %v32643_v52 }
 0x9ba   : > { %25396 = vmatprep.mubr.f32.mxu1 %v37724_v21 }
 0x9bd   : > { %25397 = vmatmul.mubr.f32.gmra.mrb[78].mxu1 %v37725_v57 }
 0x9be   : > { %25407 = vmatprep.mubr.f32.mxu1 %v37684_v36 }
 0x9c1   : > { %25408 = vmatmul.mubr.f32.vlgmr.msra.gmra.mrb[64].mxu1 %v37687_v14 }
 0x9c2   : > { %25410 = vmatprep.mubr.f32.mxu1 %v37690_v15  ;;  %27318 = vmatpush3.bf16.msra.mxu1 %v32830_v35 }
 0x9c3   : > { %27320 = vmatprep.subr.bf16.mxu1 %v32848_v13 }
 0x9c5   : > { %25411 = vmatmul.mubr.f32.gmra.mrb[66].mxu1 %v37691_v5 }
 0x9c6   : > { %25413 = vmatprep.mubr.f32.mxu1 %v37692_v30  ;;  %27322 = vmatpush3.bf16.msra.mxu1 %v32848_v13 }
 0x9c9   : > { %25414 = vmatmul.mubr.f32.gmra.mrb[68].mxu1 %v37693_v61 }
 0x9ca   : > { %25416 = vmatprep.mubr.f32.mxu1 %v37694_v1 }
 0x9cd   : > { %25417 = vmatmul.mubr.f32.gmra.mrb[70].mxu1 %v32173_v4 }
 0x9ce   : > { %25419 = vmatprep.mubr.f32.mxu1 %v32233_v37 }
 0x9d1   : > { %25420 = vmatmul.mubr.f32.gmra.mrb[72].mxu1 %v32230_v7 }
 0x9d2   : > { %25422 = vmatprep.mubr.f32.mxu1 %v32284_v46 }
 0x9d5   : > { %25423 = vmatmul.mubr.f32.gmra.mrb[74].mxu1 %v32281_v11 }
 0x9d6   : > { %25425 = vmatprep.mubr.f32.mxu1 %v32334_v12 }
 0x9d9   : > { %25426 = vmatmul.mubr.f32.gmra.mrb[76].mxu1 %v32321_v42 }
 0x9da   : > { %25428 = vmatprep.mubr.f32.mxu1 %v32352_v2 }
 0x9dd   : > { %25429 = vmatmul.mubr.f32.gmra.mrb[78].mxu1 %v37679_v56 }
 0x9de   : > { %25439 = vmatprep.mubr.f32.mxu1 %v37684_v36 }
 0x9e1   : > { %25440 = vmatmul.mubr.f32.vlgmr.msra.gmra.mrb[64].mxu1 %v37687_v14 }
 0x9e2   : > { %25442 = vmatprep.mubr.f32.mxu1 %v37690_v15 }
 0x9e5   : > { %25443 = vmatmul.mubr.f32.gmra.mrb[66].mxu1 %v37691_v5 }
 0x9e6   : > { %25445 = vmatprep.mubr.f32.mxu1 %v37692_v30 }
 0x9e9   : > { %25446 = vmatmul.mubr.f32.gmra.mrb[68].mxu1 %v37693_v61 }
 0x9ea   : > { %25448 = vmatprep.mubr.f32.mxu1 %v37694_v1 }
 0x9ed   : > { %25449 = vmatmul.mubr.f32.gmra.mrb[70].mxu1 %v32173_v4 }
 0x9ee   : > { %25451 = vmatprep.mubr.f32.mxu1 %v32233_v37 }
 0x9f1   : > { %25452 = vmatmul.mubr.f32.gmra.mrb[72].mxu1 %v32230_v7 }
 0x9f2   : > { %25454 = vmatprep.mubr.f32.mxu1 %v32284_v46  ;;  %v37745_v46 = vld [vmem:[#allocation133_spill] sm:$0xff] }
 0x9f4   : > { %v24721_v35 = vpop.f32.mrb[48].mxu1 }
 0x9f5   : > { %v9131_v13 = vpop.f32.mrb[49].mxu1  ;;  %25455 = vmatmul.mubr.f32.gmra.mrb[74].mxu1 %v32281_v11  ;;  %v9226_v8 = vsel %vm1702_vm2, %v24721_v35, -1e+30  ;;  %vm15583_vm2 = vcmask 1041409  }
 0x9f6   : > { %25457 = vmatprep.mubr.f32.mxu1 %v32334_v12  ;;  %9243 = vmax.xlane.f32.xlu1 %v9226_v8  ;;  %v9225_v21 = vsel %vm1701_vm1, %v9131_v13, -1e+30  ;;  %vm37741_vm1 = vcmp.gt.f32.partialorder %v37740_v17, 0.0 }
 0x9f7   : > { %9241 = vmax.xlane.f32.xlu0 %v9225_v21 }
 0x9f8   : > { %v24724_v52 = vpop.f32.mrb[50].mxu1 }
 0x9f9   : > { %v9143_v54 = vpop.f32.mrb[51].mxu1  ;;  %25458 = vmatmul.mubr.f32.gmra.mrb[76].mxu1 %v32321_v42  ;;  %v9228_v63 = vsel %vm1704_vm4, %v24724_v52, -1e+30  ;;  %vm15587_vm4 = vcmask 1043459  }
 0x9fa   : > { %25460 = vmatprep.mubr.f32.mxu1 %v32352_v2  ;;  %9247 = vmax.xlane.f32.xlu1 %v9228_v63  ;;  %v9227_v35 = vsel %vm1703_vm3, %v9143_v54, -1e+30  ;;  %vm15585_vm3 = vcmask 1042434  }
 0x9fb   : > { %9245 = vmax.xlane.f32.xlu0 %v9227_v35 }
 0x9fc   : > { %v24727_v62 = vpop.f32.mrb[52].mxu1 }
 0x9fd   : > { %v9155_v40 = vpop.f32.mrb[53].mxu1  ;;  %25461 = vmatmul.mubr.f32.gmra.mrb[78].mxu1 %v37679_v56  ;;  %v9230_v13 = vsel %vm1706_vm6, %v24727_v62, -1e+30  ;;  %vm15591_vm6 = vcmask 1045509  }
 0x9fe   : > { %9251 = vmax.xlane.f32.xlu1 %v9230_v13  ;;  %v9229_v45 = vsel %vm1705_vm5, %v9155_v40, -1e+30  ;;  %25495 = vmatprep.mubr.f32.mxu1 %v37732_v9  ;;  %vm15589_vm5 = vcmask 1044484  }
 0x9ff   : > { %9249 = vmax.xlane.f32.xlu0 %v9229_v45 }
 0xa00   : > { %v24730_v52 = vpop.f32.mrb[54].mxu1 }
 0xa01   : > { %v9167_v51 = vpop.f32.mrb[55].mxu1  ;;  %v9232_v54 = vsel %vm1708_vm8, %v24730_v52, -1e+30  ;;  %vm15595_vm8 = vcmask 1047559  }
 0xa02   : > { %9255 = vmax.xlane.f32.xlu1 %v9232_v54  ;;  %v9231_v60 = vsel %vm1707_vm7, %v9167_v51, -1e+30  ;;  %vm15593_vm7 = vcmask 1046534  }
 0xa03   : > { %9253 = vmax.xlane.f32.xlu0 %v9231_v60 }
 0xa04   : > { %v24733_v33 = vpop.f32.mrb[56].mxu1 }
 0xa05   : > { %v9179_v57 = vpop.f32.mrb[57].mxu1  ;;  %v33015_v58 = vsel %vm1710_vm10, %v24733_v33, -1e+30  ;;  %vm16711_vm10 = vcmask 523264  }
 0xa06   : > { %9259 = vmax.xlane.f32.xlu1 %v33015_v58  ;;  %v33020_v16 = vsel %vm1709_vm9, %v9179_v57, -1e+30  ;;  %vm29465_vm9 = vmmov 0  }
 0xa07   : > { %9257 = vmax.xlane.f32.xlu0 %v33020_v16 }
 0xa08   : > { %v24736_v25 = vpop.f32.mrb[58].mxu1 }
 0xa09   : > { %v9191_v9 = vpop.f32.mrb[59].mxu1  ;;  %v33025_v51 = vsel %vm1712_vm12, %v24736_v25, -1e+30 }
 0xa0a   : > { %9263 = vmax.xlane.f32.xlu1 %v33025_v51  ;;  %v33030_v33 = vsel %vm1711_vm11, %v9191_v9, -1e+30  ;;  %vm16713_vm11 = vcmask 785408  }
 0xa0b   : > { %9261 = vmax.xlane.f32.xlu0 %v33030_v33 }
 0xa0c   : > { %v24739_v62 = vpop.f32.mrb[60].mxu1 }
 0xa0d   : > { %v9203_v40 = vpop.f32.mrb[61].mxu1  ;;  %v33035_v39 = vsel %vm1714_vm14, %v24739_v62, -1e+30  ;;  %vm20432_vm14 = vcmask 1040384  }
 0xa0e   : > { %9267 = vmax.xlane.f32.xlu1 %v33035_v39  ;;  %v33040_v25 = vsel %vm37741_vm1, %v9203_v40, -1e+30 }
 0xa0f   : > { %9265 = vmax.xlane.f32.xlu0 %v33040_v25 }
 0xa10   : > { %v24742_v52 = vpop.f32.mrb[62].mxu1 }
 0xa11   : > { %v9215_v18 = vpop.f32.mrb[63].mxu1  ;;  %v33045_v24 = vsel %vm1716_vm13, %v24742_v52, -1e+30 }
 0xa12   : > { %9271 = vmax.xlane.f32.xlu1 %v33045_v24  ;;  %v33050_v62 = vsel %vm1715_vm15, %v9215_v18, -1e+30  ;;  %vm20434_vm15 = vcmask 58368  }
 0xa13   : > { %9269 = vmax.xlane.f32.xlu0 %v33050_v62 }
 0xa83   : > { %v9244_v57 = vpop.xlane.xlu1 %9243 }
 0xa84   : > { %v9274_v17 = vsub.f32 %v9226_v8, %v9244_v57  ;;  %v9242_v40 = vpop.xlane.xlu0 %9241 }
 0xa85   : > { %v9273_v3 = vsub.f32 %v9225_v21, %v9242_v40 }
 0xa86   : > { %v9291_v59 = vmul.f32 1.442695, %v9274_v17 }
 0xa87   : > { %v9289_v44 = vmul.f32 1.442695, %v9273_v3  ;;  %v9248_v19 = vpop.xlane.xlu1 %9247 }
 0xa88   : > { %29308 = vpow2.f32 %v9291_v59  ;;  %v9276_v28 = vsub.f32 %v9228_v63, %v9248_v19  ;;  %v9246_v9 = vpop.xlane.xlu0 %9245 }
 0xa89   : > { %29310 = vpow2.f32 %v9289_v44  ;;  %v9275_v52 = vsub.f32 %v9227_v35, %v9246_v9 }
 0xa8a   : > { %v9295_v50 = vmul.f32 1.442695, %v9276_v28 }
 0xa8b   : > { %v9293_v48 = vmul.f32 1.442695, %v9275_v52  ;;  %v9252_v31 = vpop.xlane.xlu1 %9251 }
 0xa8c   : > { %29312 = vpow2.f32 %v9295_v50  ;;  %v9278_v55 = vsub.f32 %v9230_v13, %v9252_v31  ;;  %v9250_v18 = vpop.xlane.xlu0 %9249 }
 0xa8d   : > { %29314 = vpow2.f32 %v9293_v48  ;;  %v9277_v38 = vsub.f32 %v9229_v45, %v9250_v18 }
 0xa8e   : > { %v9299_v56 = vmul.f32 1.442695, %v9278_v55 }
 0xa8f   : > { %v9297_v8 = vmul.f32 1.442695, %v9277_v38  ;;  %v9256_v57 = vpop.xlane.xlu1 %9255 }
 0xa90   : > { %29316 = vpow2.f32 %v9299_v56  ;;  %v9280_v21 = vsub.f32 %v9232_v54, %v9256_v57  ;;  %v9254_v3 = vpop.xlane.xlu0 %9253 }
 0xa91   : > { %29318 = vpow2.f32 %v9297_v8  ;;  %v9279_v59 = vsub.f32 %v9231_v60, %v9254_v3 }
 0xa92   : > { %v33053_v63 = vpop.eup %29308  ;;  %v9303_v19 = vmul.f32 1.442695, %v9280_v21 }
 0xa93   : > { %v33055_v44 = vpop.eup %29310  ;;  %v9301_v28 = vmul.f32 1.442695, %v9279_v59  ;;  %v9260_v35 = vpop.xlane.xlu1 %9259  ;;  %9323 = vadd.xlane.f32.xlu1 %v33053_v63 }
 0xa94   : > { %29320 = vpow2.f32 %v9303_v19  ;;  %v9282_v48 = vsub.f32 %v33015_v58, %v9260_v35  ;;  %v9258_v31 = vpop.xlane.xlu0 %9257  ;;  %9321 = vadd.xlane.f32.xlu0 %v33055_v44 }
 0xa95   : > { %29322 = vpow2.f32 %v9301_v28  ;;  %v9281_v45 = vsub.f32 %v33020_v16, %v9258_v31 }
 0xa96   : > { %v33061_v56 = vpop.eup %29312  ;;  %v9307_v60 = vmul.f32 1.442695, %v9282_v48 }
 0xa97   : > { %v33063_v38 = vpop.eup %29314  ;;  %v9305_v50 = vmul.f32 1.442695, %v9281_v45  ;;  %v9264_v13 = vpop.xlane.xlu1 %9263  ;;  %9327 = vadd.xlane.f32.xlu1 %v33061_v56 }
 0xa98   : > { %29324 = vpow2.f32 %v9307_v60  ;;  %v9284_v54 = vsub.f32 %v33025_v51, %v9264_v13  ;;  %v9262_v17 = vpop.xlane.xlu0 %9261  ;;  %9325 = vadd.xlane.f32.xlu0 %v33063_v38 }
 0xa99   : > { %29326 = vpow2.f32 %v9305_v50  ;;  %v9283_v58 = vsub.f32 %v33030_v33, %v9262_v17 }
 0xa9a   : > { %v33069_v40 = vpop.eup %29316  ;;  %v9311_v16 = vmul.f32 1.442695, %v9284_v54 }
 0xa9b   : > { %v33071_v9 = vpop.eup %29318  ;;  %v9309_v52 = vmul.f32 1.442695, %v9283_v58  ;;  %v9268_v55 = vpop.xlane.xlu1 %9267  ;;  %9331 = vadd.xlane.f32.xlu1 %v33069_v40 }
 0xa9c   : > { %29328 = vpow2.f32 %v9311_v16  ;;  %v9286_v18 = vsub.f32 %v33035_v39, %v9268_v55  ;;  %v9266_v8 = vpop.xlane.xlu0 %9265  ;;  %9329 = vadd.xlane.f32.xlu0 %v33071_v9 }
 0xa9d   : > { %29330 = vpow2.f32 %v9309_v52  ;;  %v9285_v51 = vsub.f32 %v33040_v25, %v9266_v8 }
 0xa9e   : > { %v33077_v57 = vpop.eup %29320  ;;  %v9315_v33 = vmul.f32 1.442695, %v9286_v18 }
 0xa9f   : > { %v33079_v21 = vpop.eup %29322  ;;  %v9313_v3 = vmul.f32 1.442695, %v9285_v51  ;;  %9335 = vadd.xlane.f32.xlu1 %v33077_v57  ;;  %v9272_v59 = vpop.xlane.xlu1 %9271 }
 0xaa0   : > { %29332 = vpow2.f32 %v9315_v33  ;;  %v9288_v19 = vsub.f32 %v33045_v24, %v9272_v59  ;;  %9333 = vadd.xlane.f32.xlu0 %v33079_v21  ;;  %v9270_v39 = vpop.xlane.xlu0 %9269 }
 0xaa1   : > { %29334 = vpow2.f32 %v9313_v3  ;;  %v9287_v28 = vsub.f32 %v33050_v62, %v9270_v39 }
 0xaa2   : > { %v33085_v35 = vpop.eup %29324  ;;  %v9319_v25 = vmul.f32 1.442695, %v9288_v19 }
 0xaa3   : > { %v33087_v48 = vpop.eup %29326  ;;  %v9317_v31 = vmul.f32 1.442695, %v9287_v28  ;;  %9339 = vadd.xlane.f32.xlu1 %v33085_v35 }
 0xaa4   : > { %29336 = vpow2.f32 %v9319_v25  ;;  %9337 = vadd.xlane.f32.xlu0 %v33087_v48 }
 0xaa5   : > { %29338 = vpow2.f32 %v9317_v31 }
 0xaa6   : > { %v33091_v45 = vpop.eup %29328 }
 0xaa7   : > { %v33093_v24 = vpop.eup %29330  ;;  %9343 = vadd.xlane.f32.xlu1 %v33091_v45 }
 0xaa8   : > { %9341 = vadd.xlane.f32.xlu0 %v33093_v24 }
 0xaaa   : > { %v33097_v62 = vpop.eup %29332 }
 0xaab   : > { %v33099_v60 = vpop.eup %29334  ;;  %9347 = vadd.xlane.f32.xlu1 %v33097_v62 }
 0xaac   : > { %9345 = vadd.xlane.f32.xlu0 %v33099_v60 }
 0xaae   : > { %v33103_v50 = vpop.eup %29336 }
 0xaaf   : > { %v33105_v13 = vpop.eup %29338  ;;  %9351 = vadd.xlane.f32.xlu1 %v33103_v50 }
 0xab0   : > { %9349 = vadd.xlane.f32.xlu0 %v33105_v13 }
 0xb20   : > { %v9324_v54 = vpop.xlane.xlu1 %9323 }
 0xb21   : > { %29340 = vrcp.f32 %v9324_v54  ;;  %v9322_v17 = vpop.xlane.xlu0 %9321 }
 0xb22   : > { %29342 = vrcp.f32 %v9322_v17 }
 0xb24   : > { %v9328_v58 = vpop.xlane.xlu1 %9327 }
 0xb25   : > { %29344 = vrcp.f32 %v9328_v58  ;;  %v9326_v16 = vpop.xlane.xlu0 %9325 }
 0xb26   : > { %29346 = vrcp.f32 %v9326_v16 }
 0xb28   : > { %v9332_v52 = vpop.xlane.xlu1 %9331 }
 0xb29   : > { %29348 = vrcp.f32 %v9332_v52  ;;  %v9330_v55 = vpop.xlane.xlu0 %9329 }
 0xb2a   : > { %29350 = vrcp.f32 %v9330_v55 }
 0xb2b   : > { %v29341_v18 = vpop.eup %29340 }
 0xb2c   : > { %v29343_v8 = vpop.eup %29342  ;;  %v9386_v51 = vmul.f32 %v29341_v18, %v33053_v63  ;;  %v9336_v33 = vpop.xlane.xlu1 %9335 }
 0xb2d   : > { %29352 = vrcp.f32 %v9336_v33  ;;  %v9334_v3 = vpop.xlane.xlu0 %9333  ;;  %v9385_v59 = vmul.f32 %v29343_v8, %v33055_v44 }
 0xb2e   : > { %v33111_v19 = vand.u32 4294901760, %v9386_v51  ;;  %29354 = vrcp.f32 %v9334_v3 }
 0xb2f   : > { %v29345_v39 = vpop.eup %29344  ;;  %v33113_v28 = vand.u32 4294901760, %v9385_v59 }
 0xb30   : > { %v29347_v25 = vpop.eup %29346  ;;  %v33116_v31 = vsub.f32 %v9386_v51, %v33111_v19  ;;  %v9340_v54 = vpop.xlane.xlu1 %9339  ;;  %v9388_v17 = vmul.f32 %v29345_v39, %v33061_v56 }
 0xb31   : > { %29356 = vrcp.f32 %v9340_v54  ;;  %v9338_v63 = vpop.xlane.xlu0 %9337  ;;  %v33120_v58 = vsub.f32 %v9385_v59, %v33113_v28  ;;  %v9387_v44 = vmul.f32 %v29347_v25, %v33063_v38 }
 0xb32   : > { %29358 = vrcp.f32 %v9338_v63  ;;  %v36986_v16 = vand.u32 4294901760, %v33116_v31  ;;  %v33124_v52 = vand.u32 4294901760, %v9388_v17 }
 0xb33   : > { %v29349_v55 = vpop.eup %29348  ;;  %v36993_v18 = vand.u32 4294901760, %v33120_v58  ;;  %v33127_v8 = vand.u32 4294901760, %v9387_v44 }
 0xb34   : > { %v29351_v51 = vpop.eup %29350  ;;  %v9344_v33 = vpop.xlane.xlu1 %9343  ;;  %v9495_v56 = vsub.f32 %v33116_v31, %v36986_v16  ;;  %v33133_v3 = vsub.f32 %v9388_v17, %v33124_v52  ;;  %v9390_v38 = vmul.f32 %v29349_v55, %v33069_v40 }
 0xb35   : > { %29360 = vrcp.f32 %v9344_v33  ;;  %v9342_v59 = vpop.xlane.xlu0 %9341  ;;  %v9485_v39 = vsub.f32 %v33120_v58, %v36993_v18  ;;  %v33140_v25 = vsub.f32 %v9387_v44, %v33127_v8  ;;  %v9389_v54 = vmul.f32 %v29351_v51, %v33071_v9 }
 0xb36   : > { %29362 = vrcp.f32 %v9342_v59  ;;  %v36994_v63 = vand.u32 4294901760, %v33133_v3  ;;  %v33144_v16 = vand.u32 4294901760, %v9390_v38  ;;  %v9496_v12 = vand.u32 4294901760, %v9495_v56 }
 0xb37   : > { %v29353_v17 = vpop.eup %29352  ;;  %v9486_v2 = vand.u32 4294901760, %v9485_v39  ;;  %v36997_v40 = vand.u32 4294901760, %v33140_v25  ;;  %v33147_v55 = vand.u32 4294901760, %v9389_v54  ;;  %v37773_v15 = vand.u32 4294901760, %v33133_v3 }
 0xb38   : > { %v29355_v33 = vpop.eup %29354  ;;  %v9348_v42 = vpop.xlane.xlu1 %9347  ;;  %v9515_v44 = vsub.f32 %v33133_v3, %v36994_v63  ;;  %v33153_v9 = vsub.f32 %v9390_v38, %v33144_v16  ;;  %v9392_v51 = vmul.f32 %v29353_v17, %v33077_v57  ;;  %v37744_v57 = vld [vmem:[#allocation108_spill] sm:$0xff] }
 0xb39   : > { %29364 = vrcp.f32 %v9348_v42  ;;  %24775 = vmatprep.mubr.f32.mxu0 %v9486_v2  ;;  %v9346_v59 = vpop.xlane.xlu0 %9345  ;;  %v9505_v39 = vsub.f32 %v33140_v25, %v36997_v40  ;;  %v33160_v18 = vsub.f32 %v9389_v54, %v33147_v55  ;;  %v9391_v56 = vmul.f32 %v29355_v33, %v33079_v21 }
 0xb3a   : > { %29366 = vrcp.f32 %v9346_v59  ;;  %24776 = vmatmul.mubr.f32.vlgmr.msra.gmra.mrb[32].mxu0 %v9496_v12  ;;  %v37002_v63 = vand.u32 4294901760, %v33153_v9  ;;  %v33164_v38 = vand.u32 4294901760, %v9392_v51  ;;  %v9516_v7 = vand.u32 4294901760, %v9515_v44 }
 0xb3b   : > { %v29357_v11 = vpop.eup %29356  ;;  %27070 = vmatpush3.bf16.msra.mxu0 %v37744_v57  ;;  %v9506_v2 = vand.u32 4294901760, %v9505_v39  ;;  %v37005_v42 = vand.u32 4294901760, %v33160_v18  ;;  %v33168_v17 = vand.u32 4294901760, %v9391_v56 }
 0xb3c   : > { %v29359_v40 = vpop.eup %29358  ;;  %27072 = vmatprep.subr.bf16.mxu0 %v37745_v46  ;;  %v9352_v54 = vpop.xlane.xlu1 %9351  ;;  %v9535_v12 = vsub.f32 %v33153_v9, %v37002_v63  ;;  %v33175_v21 = vsub.f32 %v9392_v51, %v33164_v38  ;;  %v9394_v33 = vmul.f32 %v29357_v11, %v33085_v35 }
 0xb3d   : > { %29368 = vrcp.f32 %v9352_v54  ;;  %24778 = vmatprep.mubr.f32.mxu0 %v9506_v2  ;;  %v9350_v59 = vpop.xlane.xlu0 %9349  ;;  %v9525_v39 = vsub.f32 %v33160_v18, %v37005_v42  ;;  %v33182_v57 = vsub.f32 %v9391_v56, %v33168_v17  ;;  %v9393_v44 = vmul.f32 %v29359_v40, %v33087_v48  ;;  %v37746_v42 = vld [vmem:[#allocation134_spill] sm:$0xff] }
 0xb3e   : > { %29370 = vrcp.f32 %v9350_v59  ;;  %24779 = vmatmul.mubr.f32.gmra.mrb[34].mxu0 %v9516_v7  ;;  %v37008_v63 = vand.u32 4294901760, %v33175_v21  ;;  %v33186_v51 = vand.u32 4294901760, %v9394_v33  ;;  %v9536_v56 = vand.u32 4294901760, %v9535_v12 }
 0xb3f   : > { %v29361_v37 = vpop.eup %29360  ;;  %27074 = vmatpush3.bf16.msra.mxu0 %v37745_v46  ;;  %v9526_v11 = vand.u32 4294901760, %v9525_v39  ;;  %v37009_v35 = vand.u32 4294901760, %v33182_v57  ;;  %v33190_v2 = vand.u32 4294901760, %v9393_v44 }
 0xb40   : > { %v29363_v54 = vpop.eup %29362  ;;  %27076 = vmatprep.subr.bf16.mxu0 %v37746_v42  ;;  %v9555_v7 = vsub.f32 %v33175_v21, %v37008_v63  ;;  %v33197_v48 = vsub.f32 %v9394_v33, %v33186_v51  ;;  %v9396_v40 = vmul.f32 %v29361_v37, %v33091_v45 }
 0xb41   : > { %24781 = vmatprep.mubr.f32.mxu0 %v9526_v11  ;;  %v9545_v46 = vsub.f32 %v33182_v57, %v37009_v35  ;;  %v33204_v59 = vsub.f32 %v9393_v44, %v33190_v2  ;;  %v9395_v39 = vmul.f32 %v29363_v54, %v33093_v24  ;;  %v37747_v35 = vld [vmem:[#allocation135_spill] sm:$0xff] }
 0xb42   : > { %24782 = vmatmul.mubr.f32.gmra.mrb[36].mxu0 %v9536_v56  ;;  %v37012_v12 = vand.u32 4294901760, %v33197_v48  ;;  %v33208_v4 = vand.u32 4294901760, %v9396_v40  ;;  %v9556_v44 = vand.u32 4294901760, %v9555_v7 }
 0xb43   : > { %v29365_v63 = vpop.eup %29364  ;;  %27078 = vmatpush3.bf16.msra.mxu0 %v37746_v42  ;;  %v9546_v33 = vand.u32 4294901760, %v9545_v46  ;;  %v37013_v37 = vand.u32 4294901760, %v33204_v59  ;;  %v33212_v45 = vand.u32 4294901760, %v9395_v39 }
 0xb44   : > { %v29367_v11 = vpop.eup %29366  ;;  %27080 = vmatprep.subr.bf16.mxu0 %v37747_v35  ;;  %v9575_v24 = vsub.f32 %v33197_v48, %v37012_v12  ;;  %v33219_v54 = vsub.f32 %v9396_v40, %v33208_v4  ;;  %v9398_v56 = vmul.f32 %v29365_v63, %v33097_v62 }
 0xb45   : > { %24784 = vmatprep.mubr.f32.mxu0 %v9546_v33  ;;  %v9565_v42 = vsub.f32 %v33204_v59, %v37013_v37  ;;  %v33226_v46 = vsub.f32 %v9395_v39, %v33212_v45  ;;  %v9397_v1 = vmul.f32 %v29367_v11, %v33099_v60  ;;  %v37748_v37 = vld [vmem:[#allocation137_spill] sm:$0xff] }
 0xb46   : > { %24785 = vmatmul.mubr.f32.gmra.mrb[38].mxu0 %v9556_v44  ;;  %v37016_v7 = vand.u32 4294901760, %v33219_v54  ;;  %v33230_v61 = vand.u32 4294901760, %v9398_v56  ;;  %v9576_v39 = vand.u32 4294901760, %v9575_v24 }
 0xb47   : > { %v29369_v12 = vpop.eup %29368  ;;  %27082 = vmatpush3.bf16.msra.mxu0 %v37747_v35  ;;  %v9566_v40 = vand.u32 4294901760, %v9565_v42  ;;  %v37021_v62 = vand.u32 4294901760, %v33226_v46  ;;  %v33234_v63 = vand.u32 4294901760, %v9397_v1 }
 0xb48   : > { %v29371_v33 = vpop.eup %29370  ;;  %27084 = vmatprep.subr.bf16.mxu0 %v37748_v37  ;;  %v9595_v60 = vsub.f32 %v33219_v54, %v37016_v7  ;;  %v33241_v11 = vsub.f32 %v9398_v56, %v33230_v61  ;;  %v9400_v44 = vmul.f32 %v29369_v12, %v33103_v50 }
 0xb49   : > { %24787 = vmatprep.mubr.f32.mxu0 %v9566_v40  ;;  %v9585_v35 = vsub.f32 %v33226_v46, %v37021_v62  ;;  %v33248_v42 = vsub.f32 %v9397_v1, %v33234_v63  ;;  %v9399_v30 = vmul.f32 %v29371_v33, %v33105_v13  ;;  %v37749_v40 = vld [vmem:[#allocation143_spill] sm:$0xff]  ;;  %v37772_v62 = vld [vmem:[#allocation148_spill] sm:$0xff] }
 0xb4a   : > { %24788 = vmatmul.mubr.f32.gmra.mrb[40].mxu0 %v9576_v39  ;;  %v37017_v24 = vand.u32 4294901760, %v33241_v11  ;;  %v33252_v5 = vand.u32 4294901760, %v9400_v44  ;;  %v9596_v7 = vand.u32 4294901760, %v9595_v60 }
 0xb4b   : > { %27086 = vmatpush3.bf16.msra.mxu0 %v37748_v37  ;;  %v9586_v56 = vand.u32 4294901760, %v9585_v35  ;;  %v37020_v50 = vand.u32 4294901760, %v33248_v42  ;;  %v33256_v12 = vand.u32 4294901760, %v9399_v30 }
 0xb4c   : > { %27088 = vmatprep.subr.bf16.mxu0 %v37749_v40  ;;  %v9615_v1 = vsub.f32 %v33241_v11, %v37017_v24  ;;  %v33263_v13 = vsub.f32 %v9400_v44, %v33252_v5  ;;  %v37750_v24 = vld [vmem:[#allocation146_spill] sm:$0xff] }
 0xb4d   : > { %24790 = vmatprep.mubr.f32.mxu0 %v9586_v56  ;;  %v9605_v37 = vsub.f32 %v33248_v42, %v37020_v50  ;;  %v33269_v33 = vsub.f32 %v9399_v30, %v33256_v12  ;;  %v37771_v50 = vand.u32 4294901760, %v33140_v25 }
 0xb4e   : > { %24791 = vmatmul.mubr.f32.gmra.mrb[42].mxu0 %v9596_v7  ;;  %v37018_v39 = vand.u32 4294901760, %v33263_v13  ;;  %v9616_v44 = vand.u32 4294901760, %v9615_v1  ;;  %v37752_v1 = vld [vmem:[#allocation136_spill] sm:$0xff] }
 0xb4f   : > { %27090 = vmatpush3.bf16.msra.mxu0 %v37749_v40  ;;  %v9606_v60 = vand.u32 4294901760, %v9605_v37  ;;  %v37019_v35 = vand.u32 4294901760, %v33269_v33  ;;  %v37751_v40 = vld [vmem:[#allocation150_spill] sm:$0xff] }
 0xb50   : > { %27092 = vmatprep.subr.bf16.mxu0 %v37750_v24  ;;  %v9635_v56 = vsub.f32 %v33263_v13, %v37018_v39  ;;  %v37769_v39 = vld [vmem:[#allocation147_spill] sm:$0xff] }
 0xb51   : > { %24793 = vmatprep.mubr.f32.mxu0 %v9606_v60  ;;  %v9625_v30 = vsub.f32 %v33269_v33, %v37019_v35  ;;  %v37753_v60 = vld [vmem:[#allocation138_spill] sm:$0xff]  ;;  %v37770_v35 = vand.u32 4294901760, %v33116_v31 }
 0xb52   : > { %24794 = vmatmul.mubr.f32.gmra.mrb[44].mxu0 %v9616_v44  ;;  %v9636_v37 = vand.u32 4294901760, %v9635_v56  ;;  %v37755_v44 = vld [vmem:[#allocation140_spill] sm:$0xff]  ;;  %v37756_v56 = vld [vmem:[#allocation141_spill] sm:$0xff] }
 0xb53   : > { %27094 = vmatpush3.bf16.msra.mxu0 %v37750_v24  ;;  %v9626_v7 = vand.u32 4294901760, %v9625_v30  ;;  %v37754_v24 = vld [vmem:[#allocation139_spill] sm:$0xff]  ;;  %v37757_v30 = vld [vmem:[#allocation142_spill] sm:$0xff] }
 0xb54   : > { %27096 = vmatprep.subr.bf16.mxu0 %v37751_v40 }
 0xb55   : > { %24796 = vmatprep.mubr.f32.mxu0 %v9626_v7  ;;  %v37758_v7 = vld [vmem:[#allocation144_spill] sm:$0xff] }
 0xb56   : > { %24797 = vmatmul.mubr.f32.gmra.mrb[46].mxu0 %v9636_v37  ;;  %v37760_v37 = vld [vmem:[#allocation69_spill] sm:$0xff] }
 0xb57   : > { %27098 = vmatpush3.bf16.msra.mxu0 %v37751_v40  ;;  %24831 = vmatprep.mubr.f32.mxu0 %v33113_v28  ;;  %v37759_v40 = vld [vmem:[#allocation145_spill] sm:$0xff] }
 0xb58   : > { %27100 = vmatprep.subr.bf16.mxu0 %v37752_v1 }
 0xb5a   : > { %24832 = vmatmul.mubr.f32.vlgmr.msra.gmra.mrb[32].mxu0 %v33111_v19 }
 0xb5b   : > { %27102 = vmatpush3.bf16.msra.mxu0 %v37752_v1  ;;  %24834 = vmatprep.mubr.f32.mxu0 %v33127_v8  ;;  %v37761_v1 = vld [vmem:[#allocation58_spill] sm:$0xff] }
 0xb5c   : > { %27104 = vmatprep.subr.bf16.mxu0 %v37753_v60 }
 0xb5e   : > { %24835 = vmatmul.mubr.f32.gmra.mrb[34].mxu0 %v33124_v52 }
 0xb5f   : > { %27106 = vmatpush3.bf16.msra.mxu0 %v37753_v60  ;;  %24837 = vmatprep.mubr.f32.mxu0 %v33147_v55  ;;  %v37762_v60 = vld [vmem:[#allocation82_spill] sm:$0xff] }
 0xb60   : > { %27108 = vmatprep.subr.bf16.mxu0 %v37754_v24 }
 0xb62   : > { %24838 = vmatmul.mubr.f32.gmra.mrb[36].mxu0 %v33144_v16 }
 0xb63   : > { %27110 = vmatpush3.bf16.msra.mxu0 %v37754_v24  ;;  %24840 = vmatprep.mubr.f32.mxu0 %v33168_v17  ;;  %v37763_v24 = vld [vmem:[#allocation21_spill] sm:$0xff] }
 0xb64   : > { %27112 = vmatprep.subr.bf16.mxu0 %v37755_v44 }
 0xb66   : > { %24841 = vmatmul.mubr.f32.gmra.mrb[38].mxu0 %v33164_v38 }
 0xb67   : > { %27114 = vmatpush3.bf16.msra.mxu0 %v37755_v44  ;;  %24843 = vmatprep.mubr.f32.mxu0 %v33190_v2  ;;  %v37764_v44 = vld [vmem:[#allocation103_spill] sm:$0xff] }
 0xb68   : > { %27116 = vmatprep.subr.bf16.mxu0 %v37756_v56 }
 0xb6a   : > { %24844 = vmatmul.mubr.f32.gmra.mrb[40].mxu0 %v33186_v51 }
 0xb6b   : > { %27118 = vmatpush3.bf16.msra.mxu0 %v37756_v56  ;;  %24846 = vmatprep.mubr.f32.mxu0 %v33212_v45  ;;  %v37765_v56 = vld [vmem:[#allocation105_spill] sm:$0xff] }
 0xb6c   : > { %27120 = vmatprep.subr.bf16.mxu0 %v37757_v30 }
 0xb6e   : > { %24847 = vmatmul.mubr.f32.gmra.mrb[42].mxu0 %v33208_v4 }
 0xb6f   : > { %27122 = vmatpush3.bf16.msra.mxu0 %v37757_v30  ;;  %24849 = vmatprep.mubr.f32.mxu0 %v33234_v63  ;;  %v37766_v30 = vld [vmem:[#allocation109_spill] sm:$0xff] }
 0xb70   : > { %27124 = vmatprep.subr.bf16.mxu0 %v37758_v7 }
 0xb72   : > { %24850 = vmatmul.mubr.f32.gmra.mrb[44].mxu0 %v33230_v61 }
 0xb73   : > { %27126 = vmatpush3.bf16.msra.mxu0 %v37758_v7  ;;  %24852 = vmatprep.mubr.f32.mxu0 %v33256_v12  ;;  %v37767_v7 = vld [vmem:[#allocation112_spill] sm:$0xff] }
 0xb74   : > { %27128 = vmatprep.subr.bf16.mxu0 %v37759_v40 }
 0xb76   : > { %24853 = vmatmul.mubr.f32.gmra.mrb[46].mxu0 %v33252_v5 }
 0xb77   : > { %27130 = vmatpush3.bf16.msra.mxu0 %v37759_v40  ;;  %24887 = vmatprep.mubr.f32.mxu0 %v33120_v58  ;;  %v37768_v40 = vand.u32 4294901760, %v33120_v58  ;;  %v37774_v58 = vand.u32 4294901760, %v33160_v18 }
 0xb78   : > { %27132 = vmatprep.subr.bf16.mxu0 %v37760_v37 }
 0xb7a   : > { %24888 = vmatmul.mubr.f32.vlgmr.msra.gmra.mrb[32].mxu0 %v33116_v31  ;;  %v37776_v31 = vand.u32 4294901760, %v33153_v9 }
 0xb7b   : > { %27134 = vmatpush3.bf16.msra.mxu0 %v37760_v37  ;;  %24890 = vmatprep.mubr.f32.mxu0 %v33140_v25  ;;  %v37777_v25 = vand.u32 4294901760, %v33182_v57 }
 0xb7c   : > { %27136 = vmatprep.subr.bf16.mxu0 %v37761_v1 }
 0xb7e   : > { %24891 = vmatmul.mubr.f32.gmra.mrb[34].mxu0 %v33133_v3  ;;  %v37779_v3 = vand.u32 4294901760, %v33175_v21 }
 0xb7f   : > { %27138 = vmatpush3.bf16.msra.mxu0 %v37761_v1  ;;  %24893 = vmatprep.mubr.f32.mxu0 %v33160_v18  ;;  %v37781_v18 = vld [vmem:[#allocation152_spill] sm:$0xff] }
 0xb80   : > { %27140 = vmatprep.subr.bf16.mxu0 %v37762_v60 }
 0xb82   : > { %24894 = vmatmul.mubr.f32.gmra.mrb[36].mxu0 %v33153_v9  ;;  %v37782_v9 = vand.u32 4294901760, %v33197_v48 }
 0xb83   : > { %27142 = vmatpush3.bf16.msra.mxu0 %v37762_v60  ;;  %24896 = vmatprep.mubr.f32.mxu0 %v33182_v57  ;;  %v37783_v57 = vand.u32 4294901760, %v33226_v46 }
 0xb84   : > { %27144 = vmatprep.subr.bf16.mxu0 %v37763_v24 }
 0xb86   : > { %24897 = vmatmul.mubr.f32.gmra.mrb[38].mxu0 %v33175_v21  ;;  %v37785_v21 = vand.u32 4294901760, %v33219_v54 }
 0xb87   : > { %27146 = vmatpush3.bf16.msra.mxu0 %v37763_v24  ;;  %24899 = vmatprep.mubr.f32.mxu0 %v33204_v59 }
 0xb88   : > { %27148 = vmatprep.subr.bf16.mxu0 %v37764_v44 }
 0xb8a   : > { %24900 = vmatmul.mubr.f32.gmra.mrb[40].mxu0 %v33197_v48  ;;  %v37788_v48 = vand.u32 4294901760, %v33241_v11 }
 0xb8b   : > { %27150 = vmatpush3.bf16.msra.mxu0 %v37764_v44  ;;  %24902 = vmatprep.mubr.f32.mxu0 %v33226_v46  ;;  %v37789_v46 = vand.u32 4294901760, %v33269_v33 }
 0xb8c   : > { %27152 = vmatprep.subr.bf16.mxu0 %v37765_v56 }
 0xb8e   : > { %24903 = vmatmul.mubr.f32.gmra.mrb[42].mxu0 %v33219_v54  ;;  %v37791_v54 = vand.u32 4294901760, %v33263_v13 }
 0xb8f   : > { %27154 = vmatpush3.bf16.msra.mxu0 %v37765_v56  ;;  %24905 = vmatprep.mubr.f32.mxu0 %v33248_v42 }
 0xb90   : > { %27156 = vmatprep.subr.bf16.mxu0 %v37766_v30 }
 0xb92   : > { %24906 = vmatmul.mubr.f32.gmra.mrb[44].mxu0 %v33241_v11  ;;  %v7877_v11 = vld [vmem:[%s36471_s4 + $0x30] sm:$0xff] }
 0xb93   : > { %27158 = vmatpush3.bf16.msra.mxu0 %v37766_v30  ;;  %24908 = vmatprep.mubr.f32.mxu0 %v33269_v33 }
 0xb94   : > { %27160 = vmatprep.subr.bf16.mxu0 %v37767_v7 }
 0xb96   : > { %24909 = vmatmul.mubr.f32.gmra.mrb[46].mxu0 %v33263_v13  ;;  %v10688_v13 = vand.u32 4294901760, %v7877_v11 }
 0xb97   : > { %27162 = vmatpush3.bf16.msra.mxu0 %v37767_v7  ;;  %24943 = vmatprep.mubr.f32.mxu0 %v37768_v40  ;;  %v37775_v40 = vld [vmem:[#allocation149_spill] sm:$0xff] }
 0xb98   : > { %27164 = vmatprep.subr.bf16.mxu0 %v37769_v39 }
 0xb9a   : > { %24944 = vmatmul.mubr.f32.vlgmr.msra.gmra.mrb[32].mxu0 %v37770_v35  ;;  %v37790_v35 = vld [vmem:[#allocation155_spill] sm:$0xff] }
 0xb9b   : > { %27166 = vmatpush3.bf16.msra.mxu0 %v37769_v39  ;;  %24946 = vmatprep.mubr.f32.mxu0 %v37771_v50  ;;  %v37778_v50 = vld [vmem:[#allocation151_spill] sm:$0xff]  ;;  %v37787_v39 = vld [vmem:[#allocation154_spill] sm:$0xff] }
 0xb9c   : > { %27168 = vmatprep.subr.bf16.mxu0 %v37772_v62 }
 0xb9e   : > { %24947 = vmatmul.mubr.f32.gmra.mrb[34].mxu0 %v37773_v15  ;;  %v37780_v15 = vand.u32 4294901760, %v33204_v59  ;;  %v37786_v59 = vand.u32 4294901760, %v33248_v42  ;;  %v7878_v42 = vld [vmem:[%s36471_s4 + $0x38] sm:$0xff] }
 0xb9f   : > { %27170 = vmatpush3.bf16.msra.mxu0 %v37772_v62  ;;  %24949 = vmatprep.mubr.f32.mxu0 %v37774_v58  ;;  %v37784_v62 = vld [vmem:[#allocation153_spill] sm:$0xff]  ;;  %v10691_v33 = vand.u32 4294901760, %v7878_v42 }
 0xba0   : > { %27172 = vmatprep.subr.bf16.mxu0 %v37775_v40  ;;  %v7880_v58 = vld [vmem:[%s36471_s4 + $0x48] sm:$0xff] }
 0xba2   : > { %24950 = vmatmul.mubr.f32.gmra.mrb[36].mxu0 %v37776_v31  ;;  %v10697_v31 = vand.u32 4294901760, %v7880_v58 }
 0xba3   : > { %27174 = vmatpush3.bf16.msra.mxu0 %v37775_v40  ;;  %24952 = vmatprep.mubr.f32.mxu0 %v37777_v25 }
 0xba4   : > { %27176 = vmatprep.subr.bf16.mxu0 %v37778_v50 }
 0xba6   : > { %24953 = vmatmul.mubr.f32.gmra.mrb[38].mxu0 %v37779_v3 }
 0xba7   : > { %27178 = vmatpush3.bf16.msra.mxu0 %v37778_v50  ;;  %24955 = vmatprep.mubr.f32.mxu0 %v37780_v15 }
 0xba8   : > { %27180 = vmatprep.subr.bf16.mxu0 %v37781_v18 }
 0xbaa   : > { %24956 = vmatmul.mubr.f32.gmra.mrb[40].mxu0 %v37782_v9  ;;  %v37813_v9 = vld [vmem:[#allocation156_spill] sm:$0xff] }
 0xbab   : > { %27182 = vmatpush3.bf16.msra.mxu0 %v37781_v18  ;;  %24958 = vmatprep.mubr.f32.mxu0 %v37783_v57  ;;  %v37814_v57 = vld [vmem:[#allocation158_spill] sm:$0xff] }
 0xbac   : > { %27184 = vmatprep.subr.bf16.mxu0 %v37784_v62 }
 0xbae   : > { %24959 = vmatmul.mubr.f32.gmra.mrb[42].mxu0 %v37785_v21  ;;  %v37816_v21 = vld [vmem:[#allocation162_spill] sm:$0xff] }
 0xbaf   : > { %27186 = vmatpush3.bf16.msra.mxu0 %v37784_v62  ;;  %24961 = vmatprep.mubr.f32.mxu0 %v37786_v59  ;;  %v37815_v62 = vld [vmem:[#allocation160_spill] sm:$0xff] }
 0xbb0   : > { %27188 = vmatprep.subr.bf16.mxu0 %v37787_v39  ;;  %v37817_v59 = vld [vmem:[#allocation164_spill] sm:$0xff] }
 0xbb2   : > { %24962 = vmatmul.mubr.f32.gmra.mrb[44].mxu0 %v37788_v48  ;;  %v37819_v48 = vld [vmem:[#allocation168_spill] sm:$0xff] }
 0xbb3   : > { %27190 = vmatpush3.bf16.msra.mxu0 %v37787_v39  ;;  %24964 = vmatprep.mubr.f32.mxu0 %v37789_v46  ;;  %v37818_v39 = vld [vmem:[#allocation166_spill] sm:$0xff] }
 0xbb4   : > { %27192 = vmatprep.subr.bf16.mxu0 %v37790_v35  ;;  %v37820_v46 = vld [vmem:[#allocation170_spill] sm:$0xff] }
 0xbb6   : > { %24965 = vmatmul.mubr.f32.gmra.mrb[46].mxu0 %v37791_v54  ;;  %v37822_v54 = vld [vmem:[#allocation68_spill] sm:$0xff] }
 0xbb7   : > { %27194 = vmatpush3.bf16.msra.mxu0 %v37790_v35  ;;  %24999 = vmatprep.mubr.f32.mxu0 %v33113_v28  ;;  %v37821_v35 = vld [vmem:[#allocation125_spill] sm:$0xff] }
 0xbb8   : > { %27196 = vmatprep.subr.bf16.mxu0 %v37760_v37 }
 0xbba   : > { %25000 = vmatmul.mubr.f32.vlgmr.msra.gmra.mrb[32].mxu0 %v33111_v19 }
 0xbbb   : > { %27198 = vmatpush3.bf16.msra.mxu0 %v37760_v37  ;;  %25002 = vmatprep.mubr.f32.mxu0 %v33127_v8  ;;  %v33424_v37 = vsub.f32 %v7877_v11, %v10688_v13 }
 0xbbc   : > { %27200 = vmatprep.subr.bf16.mxu0 %v37761_v1 }
 0xbbe   : > { %25003 = vmatmul.mubr.f32.gmra.mrb[34].mxu0 %v33124_v52 }
 0xbbf   : > { %27202 = vmatpush3.bf16.msra.mxu0 %v37761_v1  ;;  %25005 = vmatprep.mubr.f32.mxu0 %v33147_v55  ;;  %v33426_v1 = vsub.f32 %v7878_v42, %v10691_v33  ;;  %v37823_v42 = vld [vmem:[#allocation113_spill] sm:$0xff] }
 0xbc0   : > { %27204 = vmatprep.subr.bf16.mxu0 %v37762_v60 }
 0xbc2   : > { %25006 = vmatmul.mubr.f32.gmra.mrb[36].mxu0 %v33144_v16 }
 0xbc3   : > { %27206 = vmatpush3.bf16.msra.mxu0 %v37762_v60  ;;  %25008 = vmatprep.mubr.f32.mxu0 %v33168_v17  ;;  %v10919_v60 = vand.u32 4294901760, %v33424_v37 }
 0xbc4   : > { %27208 = vmatprep.subr.bf16.mxu0 %v37763_v24 }
 0xbc5   : > { %v10920_v25 = vsub.f32 %v33424_v37, %v10919_v60 }
 0xbc6   : > { %25009 = vmatmul.mubr.f32.gmra.mrb[38].mxu0 %v33164_v38 }
 0xbc7   : > { %27210 = vmatpush3.bf16.msra.mxu0 %v37763_v24  ;;  %25011 = vmatprep.mubr.f32.mxu0 %v33190_v2  ;;  %v10926_v24 = vand.u32 4294901760, %v33426_v1  ;;  %v10921_v3 = vand.u32 4294901760, %v10920_v25  ;;  %v37834_v25 = vld [vmem:[#allocation169_spill] sm:$0xff] }
 0xbc8   : > { %27212 = vmatprep.subr.bf16.mxu0 %v37764_v44 }
 0xbc9   : > { %v10927_v50 = vsub.f32 %v33426_v1, %v10926_v24 }
 0xbca   : > { %25012 = vmatmul.mubr.f32.gmra.mrb[40].mxu0 %v33186_v51 }
 0xbcb   : > { %27214 = vmatpush3.bf16.msra.mxu0 %v37764_v44  ;;  %25014 = vmatprep.mubr.f32.mxu0 %v33212_v45  ;;  %v7879_v44 = vld [vmem:[%s36471_s4 + $0x40] sm:$0xff]  ;;  %v10928_v15 = vand.u32 4294901760, %v10927_v50  ;;  %v37835_v50 = vld [vmem:[#allocation171_spill] sm:$0xff] }
 0xbcc   : > { %27216 = vmatprep.subr.bf16.mxu0 %v37765_v56  ;;  %v10694_v40 = vand.u32 4294901760, %v7879_v44 }
 0xbcd   : > { %v27235_v18 = vpack.c.bf16 %v10928_v15, %v10921_v3  ;;  %v37836_v3 = vld [vmem:[#allocation172_spill] sm:$0xff]  ;;  %v7885_v15 = vld [vmem:[%s36471_s4 + $0x70] sm:$0xff] }
 0xbce   : > { %25015 = vmatmul.mubr.f32.gmra.mrb[42].mxu0 %v33208_v4 }
 0xbcf   : > { %27218 = vmatpush3.bf16.msra.mxu0 %v37765_v56  ;;  %25017 = vmatprep.mubr.f32.mxu0 %v33234_v63  ;;  %v33443_v56 = vpack.c.bf16 %v10691_v33, %v10688_v13  ;;  %v37824_v13 = vld [vmem:[#allocation119_spill] sm:$0xff]  ;;  %v37825_v33 = vld [vmem:[#allocation120_spill] sm:$0xff] }
 0xbd0   : > { %27220 = vmatprep.subr.bf16.mxu0 %v37766_v30 }
 0xbd2   : > { %25018 = vmatmul.mubr.f32.gmra.mrb[44].mxu0 %v33230_v61 }
 0xbd3   : > { %27222 = vmatpush3.bf16.msra.mxu0 %v37766_v30  ;;  %25020 = vmatprep.mubr.f32.mxu0 %v33256_v12  ;;  %v33456_v30 = vpack.c.bf16 %v10697_v31, %v10694_v40 }
 0xbd4   : > { %27224 = vmatprep.subr.bf16.mxu0 %v37767_v7 }
 0xbd6   : > { %25021 = vmatmul.mubr.f32.gmra.mrb[46].mxu0 %v33252_v5 }
 0xbd7   : > { %27226 = vmatpush3.bf16.msra.mxu0 %v37767_v7  ;;  %25055 = vmatprep.mubr.f32.mxu0 %v33113_v28  ;;  %v33471_v28 = vsub.f32 %v7880_v58, %v10697_v31  ;;  %v37812_v7 = vld [vmem:[#allocation131_spill] sm:$0xff] }
 0xbd8   : > { %27228 = vmatprep.subr.bf16.mxu0 %v33443_v56  ;;  %v37831_v58 = vld [vmem:[#allocation163_spill] sm:$0xff] }
 0xbd9   : > { %v37833_v31 = vld [vmem:[#allocation167_spill] sm:$0xff] }
 0xbda   : > { %25056 = vmatmul.mubr.f32.vlgmr.msra.gmra.mrb[32].mxu0 %v33111_v19  ;;  %v33469_v19 = vsub.f32 %v7879_v44, %v10694_v40  ;;  %v37830_v44 = vld [vmem:[#allocation161_spill] sm:$0xff] }
 0xbdb   : > { %25058 = vmatprep.mubr.f32.mxu0 %v33127_v8  ;;  %27230 = vmatpush3.bf16.msra.mxu0 %v33443_v56  ;;  %v10940_v8 = vand.u32 4294901760, %v33471_v28  ;;  %v37832_v40 = vld [vmem:[#allocation165_spill] sm:$0xff] }
 0xbdc   : > { %27232 = vmatprep.subr.bf16.mxu0 %v33456_v30 }
 0xbde   : > { %25059 = vmatmul.mubr.f32.gmra.mrb[34].mxu0 %v33124_v52  ;;  %v10933_v52 = vand.u32 4294901760, %v33469_v19 }
 0xbdf   : > { %25061 = vmatprep.mubr.f32.mxu0 %v33147_v55  ;;  %27234 = vmatpush3.bf16.msra.mxu0 %v33456_v30  ;;  %v10941_v55 = vsub.f32 %v33471_v28, %v10940_v8 }
 0xbe0   : > { %27236 = vmatprep.subr.bf16.mxu0 %v27235_v18  ;;  %v27263_v11 = vpack.c.bf16 %v10940_v8, %v10933_v52 }
 0xbe2   : > { %25062 = vmatmul.mubr.f32.gmra.mrb[36].mxu0 %v33144_v16  ;;  %v10934_v16 = vsub.f32 %v33469_v19, %v10933_v52 }
 0xbe3   : > { %25064 = vmatprep.mubr.f32.mxu0 %v33168_v17  ;;  %v10942_v17 = vand.u32 4294901760, %v10941_v55 }
 0xbe6   : > { %25065 = vmatmul.mubr.f32.gmra.mrb[38].mxu0 %v33164_v38  ;;  %v10935_v38 = vand.u32 4294901760, %v10934_v16 }
 0xbe7   : > { %25067 = vmatprep.mubr.f32.mxu0 %v33190_v2  ;;  %v27259_v2 = vpack.c.bf16 %v10926_v24, %v10919_v60  ;;  %v37828_v60 = vld [vmem:[#allocation157_spill] sm:$0xff]  ;;  %v37829_v24 = vld [vmem:[#allocation159_spill] sm:$0xff] }
 0xbea   : > { %25068 = vmatmul.mubr.f32.gmra.mrb[40].mxu0 %v33186_v51  ;;  %v27243_v51 = vpack.c.bf16 %v33426_v1, %v33424_v37  ;;  %v37826_v37 = vld [vmem:[#allocation129_spill] sm:$0xff]  ;;  %v37827_v1 = vld [vmem:[#allocation130_spill] sm:$0xff] }
 0xbeb   : > { %25070 = vmatprep.mubr.f32.mxu0 %v33212_v45  ;;  %v37809_v45 = vld [vmem:[#allocation117_spill] sm:$0xff] }
 0xbee   : > { %25071 = vmatmul.mubr.f32.gmra.mrb[42].mxu0 %v33208_v4  ;;  %v27239_v4 = vpack.c.bf16 %v10942_v17, %v10935_v38  ;;  %v7887_v38 = vld [vmem:[%s36471_s4 + $0x80] sm:$0xff]  ;;  %v7888_v17 = vld [vmem:[%s36471_s4 + $0x88] sm:$0xff] }
 0xbef   : > { %25073 = vmatprep.mubr.f32.mxu0 %v33234_v63  ;;  %v37810_v63 = vld [vmem:[#allocation122_spill] sm:$0xff] }
 0xbf2   : > { %25074 = vmatmul.mubr.f32.gmra.mrb[44].mxu0 %v33230_v61  ;;  %v37807_v61 = vld [vmem:[#allocation110_spill] sm:$0xff] }
 0xbf3   : > { %25076 = vmatprep.mubr.f32.mxu0 %v33256_v12  ;;  %v37811_v12 = vld [vmem:[#allocation123_spill] sm:$0xff] }
 0xbf6   : > { %25077 = vmatmul.mubr.f32.gmra.mrb[46].mxu0 %v33252_v5  ;;  %v37806_v5 = vld [vmem:[#allocation80_spill] sm:$0xff] }
 0xbf7   : > { %25087 = vmatprep.mubr.f32.mxu0 %v37707_v43  ;;  %v37808_v43 = vld [vmem:[#allocation116_spill] sm:$0xff] }
 0xbfa   : > { %25088 = vmatmul.mubr.f32.vlgmr.msra.gmra.mrb[48].mxu0 %v32323_v34  ;;  %v37793_v34 = vld [vmem:[#allocation75_spill] sm:$0xff] }
 0xbfb   : > { %25090 = vmatprep.mubr.f32.mxu0 %v32362_v53  ;;  %27238 = vmatpush3.bf16.msra.mxu0 %v27235_v18  ;;  %v27247_v53 = vpack.c.bf16 %v33471_v28, %v33469_v19  ;;  %v7886_v18 = vld [vmem:[%s36471_s4 + $0x78] sm:$0xff]  ;;  %v37837_v19 = vld [vmem:[#allocation173_spill] sm:$0xff]  ;;  %v14282_v28 = vand.u32 4294901760, %v7885_v15 }
 0xbfc   : > { %27240 = vmatprep.subr.bf16.mxu0 %v27239_v4  ;;  %v14285_v52 = vand.u32 4294901760, %v7886_v18 }
 0xbfe   : > { %25091 = vmatmul.mubr.f32.gmra.mrb[50].mxu0 %v32371_v0  ;;  %v37792_v0 = vld [vmem:[#allocation78_spill] sm:$0xff]  ;;  %v33580_v8 = vpack.c.bf16 %v14285_v52, %v14282_v28  ;;  %v33594_v16 = vsub.f32 %v7886_v18, %v14285_v52 }
 0xbff   : > { %25093 = vmatprep.mubr.f32.mxu0 %v32575_v32  ;;  %27242 = vmatpush3.bf16.msra.mxu0 %v27239_v4  ;;  %v37797_v32 = vld [vmem:[#allocation101_spill] sm:$0xff]  ;;  %v14288_v4 = vand.u32 4294901760, %v7887_v38 }
 0xc00   : > { %27244 = vmatprep.subr.bf16.mxu0 %v27243_v51  ;;  %v14520_v55 = vand.u32 4294901760, %v33594_v16 }
 0xc02   : > { %25094 = vmatmul.mubr.f32.gmra.mrb[52].mxu0 %v32587_v49  ;;  %v37798_v49 = vld [vmem:[#allocation107_spill] sm:$0xff] }
 0xc03   : > { %25096 = vmatprep.mubr.f32.mxu0 %v32599_v6  ;;  %v37799_v6 = vld [vmem:[#allocation106_spill] sm:$0xff] }
 0xc06   : > { %25097 = vmatmul.mubr.f32.gmra.mrb[54].mxu0 %v32614_v20  ;;  %v37800_v20 = vld [vmem:[#allocation115_spill] sm:$0xff] }
 0xc07   : > { %25099 = vmatprep.mubr.f32.mxu0 %v32625_v27  ;;  %v37801_v27 = vld [vmem:[#allocation114_spill] sm:$0xff] }
 0xc0a   : > { %25100 = vmatmul.mubr.f32.gmra.mrb[56].mxu0 %v32638_v23  ;;  %v37802_v23 = vld [vmem:[#allocation124_spill] sm:$0xff] }
 0xc0b   : > { %25102 = vmatprep.mubr.f32.mxu0 %v32649_v22  ;;  %v37803_v22 = vld [vmem:[#allocation121_spill] sm:$0xff] }
 0xc0e   : > { %25103 = vmatmul.mubr.f32.gmra.mrb[58].mxu0 %v32660_v26  ;;  %v37804_v26 = vld [vmem:[#allocation127_spill] sm:$0xff] }
 0xc0f   : > { %25105 = vmatprep.mubr.f32.mxu0 %v32667_v41  ;;  %v37794_v41 = vld [vmem:[#allocation49_spill] sm:$0xff] }
 0xc12   : > { %25106 = vmatmul.mubr.f32.gmra.mrb[60].mxu0 %v32673_v10  ;;  %v37795_v10 = vld [vmem:[#allocation32_spill] sm:$0xff] }
 0xc13   : > { %25108 = vmatprep.mubr.f32.mxu0 %v32677_v47  ;;  %v37805_v47 = vld [vmem:[#allocation126_spill] sm:$0xff] }
 0xc16   : > { %25109 = vmatmul.mubr.f32.gmra.mrb[62].mxu0 %v32683_v29  ;;  %v37796_v29 = vld [vmem:[#allocation102_spill] sm:$0xff] }
 0xc17   : > { %25119 = vmatprep.mubr.f32.mxu0 %v37684_v36 }
 0xc1a   : > { %25120 = vmatmul.mubr.f32.vlgmr.msra.gmra.mrb[48].mxu0 %v37687_v14 }
 0xc1b   : > { %25122 = vmatprep.mubr.f32.mxu0 %v37792_v0  ;;  %27246 = vmatpush3.bf16.msra.mxu0 %v27243_v51  ;;  %v14291_v51 = vand.u32 4294901760, %v7888_v17 }
 0xc1c   : > { %27248 = vmatprep.subr.bf16.mxu0 %v27247_v53 }
 0xc1e   : > { %25123 = vmatmul.mubr.f32.gmra.mrb[50].mxu0 %v37793_v34 }
 0xc1f   : > { %25125 = vmatprep.mubr.f32.mxu0 %v37794_v41  ;;  %27250 = vmatpush3.bf16.msra.mxu0 %v27247_v53 }
 0xc20   : > { %27252 = vmatprep.subr.bf16.mxu0 %v33443_v56 }
 0xc22   : > { %25126 = vmatmul.mubr.f32.gmra.mrb[52].mxu0 %v37795_v10 }
 0xc23   : > { %25128 = vmatprep.mubr.f32.mxu0 %v37796_v29 }
 0xc26   : > { %25129 = vmatmul.mubr.f32.gmra.mrb[54].mxu0 %v37797_v32 }
 0xc27   : > { %25131 = vmatprep.mubr.f32.mxu0 %v37798_v49 }
 0xc2a   : > { %25132 = vmatmul.mubr.f32.gmra.mrb[56].mxu0 %v37799_v6 }
 0xc2b   : > { %25134 = vmatprep.mubr.f32.mxu0 %v37800_v20 }
 0xc2e   : > { %25135 = vmatmul.mubr.f32.gmra.mrb[58].mxu0 %v37801_v27 }
 0xc2f   : > { %25137 = vmatprep.mubr.f32.mxu0 %v37802_v23 }
 0xc32   : > { %25138 = vmatmul.mubr.f32.gmra.mrb[60].mxu0 %v37803_v22 }
 0xc33   : > { %25140 = vmatprep.mubr.f32.mxu0 %v37804_v26 }
 0xc36   : > { %25141 = vmatmul.mubr.f32.gmra.mrb[62].mxu0 %v37805_v47 }
 0xc37   : > { %25151 = vmatprep.mubr.f32.mxu0 %v37806_v5  ;;  %v14521_v5 = vsub.f32 %v33594_v16, %v14520_v55 }
 0xc3a   : > { %25152 = vmatmul.mubr.f32.vlgmr.msra.gmra.mrb[48].mxu0 %v37807_v61  ;;  %v33616_v61 = vpack.c.bf16 %v14291_v51, %v14288_v4 }
 0xc3b   : > { %25154 = vmatprep.mubr.f32.mxu0 %v37808_v43  ;;  %27254 = vmatpush3.bf16.msra.mxu0 %v33443_v56 }
 0xc3c   : > { %27256 = vmatprep.subr.bf16.mxu0 %v33456_v30 }
 0xc3e   : > { %25155 = vmatmul.mubr.f32.gmra.mrb[50].mxu0 %v37809_v45 }
 0xc3f   : > { %25157 = vmatprep.mubr.f32.mxu0 %v37810_v63  ;;  %27258 = vmatpush3.bf16.msra.mxu0 %v33456_v30 }
 0xc40   : > { %27260 = vmatprep.subr.bf16.mxu0 %v27259_v2 }
 0xc42   : > { %25158 = vmatmul.mubr.f32.gmra.mrb[52].mxu0 %v37811_v12 }
 0xc43   : > { %25160 = vmatprep.mubr.f32.mxu0 %v37812_v7 }
 0xc46   : > { %25161 = vmatmul.mubr.f32.gmra.mrb[54].mxu0 %v37813_v9 }
 0xc47   : > { %25163 = vmatprep.mubr.f32.mxu0 %v37814_v57 }
 0xc4a   : > { %25164 = vmatmul.mubr.f32.gmra.mrb[56].mxu0 %v37815_v62 }
 0xc4b   : > { %25166 = vmatprep.mubr.f32.mxu0 %v37816_v21 }
 0xc4e   : > { %25167 = vmatmul.mubr.f32.gmra.mrb[58].mxu0 %v37817_v59 }
 0xc4f   : > { %25169 = vmatprep.mubr.f32.mxu0 %v37818_v39 }
 0xc52   : > { %25170 = vmatmul.mubr.f32.gmra.mrb[60].mxu0 %v37819_v48 }
 0xc53   : > { %25172 = vmatprep.mubr.f32.mxu0 %v37820_v46 }
 0xc56   : > { %25173 = vmatmul.mubr.f32.gmra.mrb[62].mxu0 %v37821_v35 }
 0xc57   : > { %25183 = vmatprep.mubr.f32.mxu0 %v37822_v54 }
 0xc5a   : > { %25184 = vmatmul.mubr.f32.vlgmr.msra.gmra.mrb[48].mxu0 %v37823_v42 }
 0xc5b   : > { %25186 = vmatprep.mubr.f32.mxu0 %v37824_v13  ;;  %27262 = vmatpush3.bf16.msra.mxu0 %v27259_v2  ;;  %v14522_v2 = vand.u32 4294901760, %v14521_v5 }
 0xc5c   : > { %27264 = vmatprep.subr.bf16.mxu0 %v27263_v11 }
 0xc5e   : > { %25187 = vmatmul.mubr.f32.gmra.mrb[50].mxu0 %v37825_v33 }
 0xc5f   : > { %25189 = vmatprep.mubr.f32.mxu0 %v37826_v37  ;;  %27266 = vmatpush3.bf16.msra.mxu0 %v27263_v11 }
 0xc60   : > { %27268 = vmatprep.subr.bf16.mxu0 %v33443_v56 }
 0xc62   : > { %25190 = vmatmul.mubr.f32.gmra.mrb[52].mxu0 %v37827_v1 }
 0xc63   : > { %25192 = vmatprep.mubr.f32.mxu0 %v37828_v60 }
 0xc66   : > { %25193 = vmatmul.mubr.f32.gmra.mrb[54].mxu0 %v37829_v24 }
 0xc67   : > { %25195 = vmatprep.mubr.f32.mxu0 %v37830_v44 }
 0xc6a   : > { %25196 = vmatmul.mubr.f32.gmra.mrb[56].mxu0 %v37831_v58 }
 0xc6b   : > { %25198 = vmatprep.mubr.f32.mxu0 %v37832_v40 }
 0xc6e   : > { %25199 = vmatmul.mubr.f32.gmra.mrb[58].mxu0 %v37833_v31 }
 0xc6f   : > { %25201 = vmatprep.mubr.f32.mxu0 %v37834_v25 }
 0xc72   : > { %25202 = vmatmul.mubr.f32.gmra.mrb[60].mxu0 %v37835_v50 }
 0xc73   : > { %25204 = vmatprep.mubr.f32.mxu0 %v37836_v3 }
 0xc76   : > { %25205 = vmatmul.mubr.f32.gmra.mrb[62].mxu0 %v37837_v19 }
 0xc77   : > { %25215 = vmatprep.mubr.f32.mxu0 %v37684_v36 }
 0xc7a   : > { %25216 = vmatmul.mubr.f32.vlgmr.msra.gmra.mrb[48].mxu0 %v37687_v14 }
 0xc7b   : > { %25218 = vmatprep.mubr.f32.mxu0 %v37792_v0  ;;  %27270 = vmatpush3.bf16.msra.mxu0 %v33443_v56  ;;  %v33592_v56 = vsub.f32 %v7885_v15, %v14282_v28 }
 0xc7c   : > { %27272 = vmatprep.subr.bf16.mxu0 %v33456_v30 }
 0xc7e   : > { %25219 = vmatmul.mubr.f32.gmra.mrb[50].mxu0 %v37793_v34 }
 0xc7f   : > { %25221 = vmatprep.mubr.f32.mxu0 %v37794_v41  ;;  %27274 = vmatpush3.bf16.msra.mxu0 %v33456_v30  ;;  %v14513_v30 = vand.u32 4294901760, %v33592_v56 }
 0xc80   : > { %27516 = vmatprep.subr.bf16.mxu0 %v33580_v8 }
 0xc81   : > { %v14514_v53 = vsub.f32 %v33592_v56, %v14513_v30 }
 0xc82   : > { %25222 = vmatmul.mubr.f32.gmra.mrb[52].mxu0 %v37795_v10 }
 0xc83   : > { %25224 = vmatprep.mubr.f32.mxu0 %v37796_v29  ;;  %v14515_v43 = vand.u32 4294901760, %v14514_v53 }
 0xc85   : > { %v33622_v45 = vpack.c.bf16 %v14522_v2, %v14515_v43  ;;  %v33720_v2 = vpack.c.bf16 %v33594_v16, %v33592_v56 }
 0xc86   : > { %25225 = vmatmul.mubr.f32.gmra.mrb[54].mxu0 %v37797_v32 }
 0xc87   : > { %25227 = vmatprep.mubr.f32.mxu0 %v37798_v49 }
 0xc8a   : > { %25228 = vmatmul.mubr.f32.gmra.mrb[56].mxu0 %v37799_v6 }
 0xc8b   : > { %25230 = vmatprep.mubr.f32.mxu0 %v37800_v20 }
 0xc8e   : > { %25231 = vmatmul.mubr.f32.gmra.mrb[58].mxu0 %v37801_v27 }
 0xc8f   : > { %25233 = vmatprep.mubr.f32.mxu0 %v37802_v23 }
 0xc92   : > { %25234 = vmatmul.mubr.f32.gmra.mrb[60].mxu0 %v37803_v22 }
 0xc93   : > { %25236 = vmatprep.mubr.f32.mxu0 %v37804_v26 }
 0xc96   : > { %25237 = vmatmul.mubr.f32.gmra.mrb[62].mxu0 %v37805_v47 }
 0xc97   : > { %25247 = vmatprep.mubr.f32.mxu0 %v37684_v36  ;;  %v33634_v36 = vsub.f32 %v7888_v17, %v14291_v51 }
 0xc9a   : > { %25248 = vmatmul.mubr.f32.vlgmr.msra.gmra.mrb[48].mxu0 %v37687_v14  ;;  %v33632_v14 = vsub.f32 %v7887_v38, %v14288_v4 }
 0xc9b   : > { %25250 = vmatprep.mubr.f32.mxu0 %v37792_v0  ;;  %27518 = vmatpush3.bf16.msra.mxu0 %v33580_v8 }
 0xc9c   : > { %27520 = vmatprep.subr.bf16.mxu0 %v33616_v61 }
 0xc9e   : > { %25251 = vmatmul.mubr.f32.gmra.mrb[50].mxu0 %v37793_v34  ;;  %v14527_v34 = vand.u32 4294901760, %v33632_v14 }
 0xc9f   : > { %25253 = vmatprep.mubr.f32.mxu0 %v37794_v41  ;;  %27522 = vmatpush3.bf16.msra.mxu0 %v33616_v61  ;;  %v14534_v41 = vand.u32 4294901760, %v33634_v36 }
 0xca0   : > { %27524 = vmatprep.subr.bf16.mxu0 %v33622_v45  ;;  %v14528_v12 = vsub.f32 %v33632_v14, %v14527_v34 }
 0xca1   : > { %v27551_v56 = vpack.c.bf16 %v14534_v41, %v14527_v34 }
 0xca2   : > { %25254 = vmatmul.mubr.f32.gmra.mrb[52].mxu0 %v37795_v10  ;;  %v14529_v35 = vand.u32 4294901760, %v14528_v12 }
 0xca3   : > { %25256 = vmatprep.mubr.f32.mxu0 %v37796_v29 }
 0xca6   : > { %25257 = vmatmul.mubr.f32.gmra.mrb[54].mxu0 %v37797_v32 }
 0xca7   : > { %25259 = vmatprep.mubr.f32.mxu0 %v37798_v49 }
 0xcaa   : > { %25260 = vmatmul.mubr.f32.gmra.mrb[56].mxu0 %v37799_v6 }
 0xcab   : > { %25262 = vmatprep.mubr.f32.mxu0 %v37800_v20 }
 0xcad   : > { %v25057_v0 = vpop.f32.mrb[32].mxu0 }
 0xcae   : > { %v14237_v10 = vsel %vm7890_vm0, %v25057_v0, 0  ;;  %v10593_v29 = vpop.f32.mrb[33].mxu0  ;;  %25263 = vmatmul.mubr.f32.gmra.mrb[58].mxu0 %v37801_v27  ;;  %v14535_v27 = vsub.f32 %v33634_v36, %v14534_v41 }
 0xcaf   : > { %v33642_v32 = vand.u32 4294901760, %v14237_v10  ;;  %v14234_v49 = vsel %vm7890_vm0, %v10593_v29, 0  ;;  %25265 = vmatprep.mubr.f32.mxu0 %v37802_v23 }
 0xcb0   : > { %v33646_v63 = vand.u32 4294901760, %v14234_v49  ;;  %v14536_v54 = vand.u32 4294901760, %v14535_v27 }
 0xcb1   : > { %v33649_v6 = vsub.f32 %v14237_v10, %v33642_v32  ;;  %v25060_v20 = vpop.f32.mrb[34].mxu0 }
 0xcb2   : > { %v33658_v7 = vsub.f32 %v14234_v49, %v33646_v63  ;;  %v14243_v9 = vsel %vm7890_vm0, %v25060_v20, 0  ;;  %v10605_v23 = vpop.f32.mrb[35].mxu0  ;;  %25266 = vmatmul.mubr.f32.gmra.mrb[60].mxu0 %v37803_v22  ;;  %v27527_v25 = vpack.c.bf16 %v14536_v54, %v14529_v35 }
 0xcb3   : > { %v14362_v57 = vand.u32 4294901760, %v33649_v6  ;;  %v33663_v62 = vand.u32 4294901760, %v14243_v9  ;;  %v14240_v21 = vsel %vm7890_vm0, %v10605_v23, 0  ;;  %25268 = vmatprep.mubr.f32.mxu0 %v37804_v26 }
 0xcb4   : > { %v14352_v59 = vand.u32 4294901760, %v33658_v7  ;;  %v33668_v39 = vand.u32 4294901760, %v14240_v21 }
 0xcb5   : > { %v14363_v48 = vsub.f32 %v33649_v6, %v14362_v57  ;;  %v33674_v46 = vsub.f32 %v14243_v9, %v33663_v62  ;;  %v25063_v22 = vpop.f32.mrb[36].mxu0 }
 0xcb6   : > { %v33677_v11 = vsub.f32 %v14240_v21, %v33668_v39  ;;  %v14249_v42 = vsel %vm7890_vm0, %v25063_v22, 0  ;;  %v10617_v26 = vpop.f32.mrb[37].mxu0  ;;  %25269 = vmatmul.mubr.f32.gmra.mrb[62].mxu0 %v37805_v47  ;;  %v14353_v13 = vsub.f32 %v33658_v7, %v14352_v59 }
 0xcb7   : > { %v14382_v33 = vand.u32 4294901760, %v33674_v46  ;;  %v33685_v37 = vand.u32 4294901760, %v14249_v42  ;;  %v14246_v1 = vsel %vm7890_vm0, %v10617_v26, 0  ;;  %v14364_v58 = vand.u32 4294901760, %v14363_v48 }
 0xcb8   : > { %v14372_v60 = vand.u32 4294901760, %v33677_v11  ;;  %v33689_v24 = vand.u32 4294901760, %v14246_v1  ;;  %v14354_v44 = vand.u32 4294901760, %v14353_v13 }
 0xcb9   : > { %v33692_v40 = vsub.f32 %v14249_v42, %v33685_v37  ;;  %v25066_v47 = vpop.f32.mrb[38].mxu0  ;;  %v14383_v31 = vsub.f32 %v33674_v46, %v14382_v33 }
 0xcba   : > { %v33698_v50 = vsub.f32 %v14246_v1, %v33689_v24  ;;  %v14255_v3 = vsel %vm7890_vm0, %v25066_v47, 0  ;;  %v10629_v15 = vpop.f32.mrb[39].mxu0  ;;  %25807 = vmatprep.mubr.f32.mxu0 %v14354_v44  ;;  %v14373_v18 = vsub.f32 %v33677_v11, %v14372_v60 }
 0xcbb   : > { %v14402_v19 = vand.u32 4294901760, %v33692_v40  ;;  %v33705_v28 = vand.u32 4294901760, %v14255_v3  ;;  %v14252_v52 = vsel %vm7890_vm0, %v10629_v15, 0  ;;  %25808 = vmatmul.mubr.f32.vlgmr.msra.gmra.mrb[64].mxu0 %v14364_v58  ;;  %v14384_v5 = vand.u32 4294901760, %v14383_v31 }
 0xcbc   : > { %v14392_v38 = vand.u32 4294901760, %v33698_v50  ;;  %v33709_v17 = vand.u32 4294901760, %v14252_v52  ;;  %v14374_v4 = vand.u32 4294901760, %v14373_v18  ;;  %27526 = vmatpush3.bf16.msra.mxu0 %v33622_v45 }
 0xcbd   : > { %v33713_v51 = vsub.f32 %v14255_v3, %v33705_v28  ;;  %v25069_v53 = vpop.f32.mrb[40].mxu0  ;;  %v14403_v43 = vsub.f32 %v33692_v40, %v14402_v19  ;;  %27528 = vmatprep.subr.bf16.mxu0 %v27527_v25 }
 0xcbe   : > { %v33723_v0 = vsub.f32 %v14252_v52, %v33709_v17  ;;  %v14261_v10 = vsel %vm7890_vm0, %v25069_v53, 0  ;;  %v10641_v45 = vpop.f32.mrb[41].mxu0  ;;  %25810 = vmatprep.mubr.f32.mxu0 %v14374_v4  ;;  %v14393_v29 = vsub.f32 %v33698_v50, %v14392_v38 }
 0xcbf   : > { %v14422_v49 = vand.u32 4294901760, %v33713_v51  ;;  %v33730_v20 = vand.u32 4294901760, %v14261_v10  ;;  %v14258_v12 = vsel %vm7890_vm0, %v10641_v45, 0  ;;  %25811 = vmatmul.mubr.f32.gmra.mrb[66].mxu0 %v14384_v5  ;;  %v14404_v22 = vand.u32 4294901760, %v14403_v43 }
 0xcc0   : > { %v14412_v27 = vand.u32 4294901760, %v33723_v0  ;;  %v33734_v9 = vand.u32 4294901760, %v14258_v12  ;;  %v14394_v23 = vand.u32 4294901760, %v14393_v29  ;;  %27530 = vmatpush3.bf16.msra.mxu0 %v27527_v25 }
 0xcc1   : > { %v33737_v21 = vsub.f32 %v14261_v10, %v33730_v20  ;;  %v25072_v48 = vpop.f32.mrb[42].mxu0  ;;  %v14423_v35 = vsub.f32 %v33713_v51, %v14422_v49  ;;  %27532 = vmatprep.subr.bf16.mxu0 %v33720_v2 }
 0xcc2   : > { %v33744_v54 = vsub.f32 %v14258_v12, %v33734_v9  ;;  %v14267_v42 = vsel %vm7890_vm0, %v25072_v48, 0  ;;  %v10653_v26 = vpop.f32.mrb[43].mxu0  ;;  %25813 = vmatprep.mubr.f32.mxu0 %v14394_v23  ;;  %v14413_v13 = vsub.f32 %v33723_v0, %v14412_v27 }
 0xcc3   : > { %v37025_v1 = vand.u32 4294901760, %v33737_v21  ;;  %v33751_v44 = vand.u32 4294901760, %v14267_v42  ;;  %v14264_v58 = vsel %vm7890_vm0, %v10653_v26, 0  ;;  %25814 = vmatmul.mubr.f32.gmra.mrb[68].mxu0 %v14404_v22  ;;  %v14424_v18 = vand.u32 4294901760, %v14423_v35 }
 0xcc4   : > { %v14432_v47 = vand.u32 4294901760, %v33744_v54  ;;  %v33755_v31 = vand.u32 4294901760, %v14264_v58  ;;  %v14414_v25 = vand.u32 4294901760, %v14413_v13  ;;  %v37838_v16 = vand.u32 4294901760, %v33737_v21 }
 0xcc5   : > { %v33758_v3 = vsub.f32 %v14267_v42, %v33751_v44  ;;  %v25075_v15 = vpop.f32.mrb[44].mxu0  ;;  %v14443_v52 = vsub.f32 %v33737_v21, %v37025_v1 }
 0xcc6   : > { %v33764_v4 = vsub.f32 %v14264_v58, %v33755_v31  ;;  %v14273_v53 = vsel %vm7890_vm0, %v25075_v15, 0  ;;  %v10665_v5 = vpop.f32.mrb[45].mxu0  ;;  %25816 = vmatprep.mubr.f32.mxu0 %v14414_v25  ;;  %v14433_v43 = vsub.f32 %v33744_v54, %v14432_v47 }
 0xcc7   : > { %v37023_v10 = vand.u32 4294901760, %v33758_v3  ;;  %v33771_v45 = vand.u32 4294901760, %v14273_v53  ;;  %v14270_v29 = vsel %vm7890_vm0, %v10665_v5, 0  ;;  %25817 = vmatmul.mubr.f32.gmra.mrb[70].mxu0 %v14424_v18  ;;  %v14444_v42 = vand.u32 4294901760, %v14443_v52 }
 0xcc8   : > { %v37024_v12 = vand.u32 4294901760, %v33764_v4  ;;  %v33775_v23 = vand.u32 4294901760, %v14270_v29  ;;  %v14434_v48 = vand.u32 4294901760, %v14433_v43 }
 0xcc9   : > { %v33778_v22 = vsub.f32 %v14273_v53, %v33771_v45  ;;  %v25078_v35 = vpop.f32.mrb[46].mxu0  ;;  %v14463_v26 = vsub.f32 %v33758_v3, %v37023_v10 }
 0xcca   : > { %v33784_v13 = vsub.f32 %v14270_v29, %v33775_v23  ;;  %v14279_v58 = vsel %vm7890_vm0, %v25078_v35, 0  ;;  %v10677_v25 = vpop.f32.mrb[47].mxu0  ;;  %25819 = vmatprep.mubr.f32.mxu0 %v14434_v48  ;;  %v14453_v15 = vsub.f32 %v33764_v4, %v37024_v12 }
 0xccb   : > { %v37026_v18 = vand.u32 4294901760, %v33778_v22  ;;  %v33791_v53 = vand.u32 4294901760, %v14279_v58  ;;  %v14276_v52 = vsel %vm7890_vm0, %v10677_v25, 0  ;;  %25820 = vmatmul.mubr.f32.gmra.mrb[72].mxu0 %v14444_v42  ;;  %v14464_v48 = vand.u32 4294901760, %v14463_v26 }
 0xccc   : > { %v14472_v5 = vand.u32 4294901760, %v33784_v13  ;;  %v33795_v43 = vand.u32 4294901760, %v14276_v52  ;;  %v14454_v29 = vand.u32 4294901760, %v14453_v15 }
 0xccd   : > { %v33798_v35 = vsub.f32 %v14279_v58, %v33791_v53  ;;  %v14483_v10 = vsub.f32 %v33778_v22, %v37026_v18 }
 0xcce   : > { %v33804_v12 = vsub.f32 %v14276_v52, %v33795_v43  ;;  %25822 = vmatprep.mubr.f32.mxu0 %v14454_v29  ;;  %v14473_v42 = vsub.f32 %v33784_v13, %v14472_v5 }
 0xccf   : > { %v14502_v25 = vand.u32 4294901760, %v33798_v35  ;;  %25823 = vmatmul.mubr.f32.gmra.mrb[74].mxu0 %v14464_v48  ;;  %v14484_v1 = vand.u32 4294901760, %v14483_v10  ;;  %v27535_v48 = vpack.c.bf16 %v33634_v36, %v33632_v14  ;;  %v37841_v14 = vand.u32 4294901760, %v33778_v22 }
 0xcd0   : > { %v14492_v15 = vand.u32 4294901760, %v33804_v12  ;;  %v14474_v58 = vand.u32 4294901760, %v14473_v42 }
 0xcd1   : > { %v14503_v26 = vsub.f32 %v33798_v35, %v14502_v25 }
 0xcd2   : > { %25825 = vmatprep.mubr.f32.mxu0 %v14474_v58  ;;  %v14493_v52 = vsub.f32 %v33804_v12, %v14492_v15 }
 0xcd3   : > { %25826 = vmatmul.mubr.f32.gmra.mrb[76].mxu0 %v14484_v1  ;;  %v14504_v18 = vand.u32 4294901760, %v14503_v26 }
 0xcd4   : > { %v14494_v29 = vand.u32 4294901760, %v14493_v52 }
 0xcd6   : > { %25828 = vmatprep.mubr.f32.mxu0 %v14494_v29 }
 0xcd7   : > { %25829 = vmatmul.mubr.f32.gmra.mrb[78].mxu0 %v14504_v18 }
 0xcd8   : > { %25839 = vmatprep.mubr.f32.mxu0 %v33646_v63 }
 0xcdb   : > { %25840 = vmatmul.mubr.f32.vlgmr.msra.gmra.mrb[64].mxu0 %v33642_v32 }
 0xcdc   : > { %25842 = vmatprep.mubr.f32.mxu0 %v33668_v39  ;;  %27534 = vmatpush3.bf16.msra.mxu0 %v33720_v2  ;;  %v27547_v2 = vpack.c.bf16 %v14520_v55, %v14513_v30  ;;  %v37839_v30 = vand.u32 4294901760, %v33764_v4  ;;  %v37840_v55 = vand.u32 4294901760, %v33758_v3 }
 0xcdd   : > { %27536 = vmatprep.subr.bf16.mxu0 %v27535_v48 }
 0xcdf   : > { %25843 = vmatmul.mubr.f32.gmra.mrb[66].mxu0 %v33663_v62 }
 0xce0   : > { %25845 = vmatprep.mubr.f32.mxu0 %v33689_v24  ;;  %27538 = vmatpush3.bf16.msra.mxu0 %v27535_v48 }
 0xce1   : > { %27540 = vmatprep.subr.bf16.mxu0 %v33580_v8 }
 0xce3   : > { %25846 = vmatmul.mubr.f32.gmra.mrb[68].mxu0 %v33685_v37 }
 0xce4   : > { %25848 = vmatprep.mubr.f32.mxu0 %v33709_v17 }
 0xce7   : > { %25849 = vmatmul.mubr.f32.gmra.mrb[70].mxu0 %v33705_v28 }
 0xce8   : > { %25851 = vmatprep.mubr.f32.mxu0 %v33734_v9 }
 0xceb   : > { %25852 = vmatmul.mubr.f32.gmra.mrb[72].mxu0 %v33730_v20 }
 0xcec   : > { %25854 = vmatprep.mubr.f32.mxu0 %v33755_v31 }
 0xcef   : > { %25855 = vmatmul.mubr.f32.gmra.mrb[74].mxu0 %v33751_v44 }
 0xcf0   : > { %25857 = vmatprep.mubr.f32.mxu0 %v33775_v23 }
 0xcf3   : > { %25858 = vmatmul.mubr.f32.gmra.mrb[76].mxu0 %v33771_v45 }
 0xcf4   : > { %25860 = vmatprep.mubr.f32.mxu0 %v33795_v43 }
 0xcf7   : > { %25861 = vmatmul.mubr.f32.gmra.mrb[78].mxu0 %v33791_v53 }
 0xcf8   : > { %25871 = vmatprep.mubr.f32.mxu0 %v33658_v7 }
 0xcfb   : > { %25872 = vmatmul.mubr.f32.vlgmr.msra.gmra.mrb[64].mxu0 %v33649_v6 }
 0xcfc   : > { %25874 = vmatprep.mubr.f32.mxu0 %v33677_v11  ;;  %27542 = vmatpush3.bf16.msra.mxu0 %v33580_v8 }
 0xcfd   : > { %27544 = vmatprep.subr.bf16.mxu0 %v33616_v61 }
 0xcff   : > { %25875 = vmatmul.mubr.f32.gmra.mrb[66].mxu0 %v33674_v46 }
 0xd00   : > { %25877 = vmatprep.mubr.f32.mxu0 %v33698_v50  ;;  %27546 = vmatpush3.bf16.msra.mxu0 %v33616_v61 }
 0xd01   : > { %27548 = vmatprep.subr.bf16.mxu0 %v27547_v2 }
 0xd03   : > { %25878 = vmatmul.mubr.f32.gmra.mrb[68].mxu0 %v33692_v40 }
 0xd04   : > { %25880 = vmatprep.mubr.f32.mxu0 %v33723_v0 }
 0xd07   : > { %25881 = vmatmul.mubr.f32.gmra.mrb[70].mxu0 %v33713_v51 }
 0xd08   : > { %25883 = vmatprep.mubr.f32.mxu0 %v33744_v54 }
 0xd0b   : > { %25884 = vmatmul.mubr.f32.gmra.mrb[72].mxu0 %v33737_v21 }
 0xd0c   : > { %25886 = vmatprep.mubr.f32.mxu0 %v33764_v4 }
 0xd0f   : > { %25887 = vmatmul.mubr.f32.gmra.mrb[74].mxu0 %v33758_v3 }
 0xd10   : > { %25889 = vmatprep.mubr.f32.mxu0 %v33784_v13 }
 0xd13   : > { %25890 = vmatmul.mubr.f32.gmra.mrb[76].mxu0 %v33778_v22 }
 0xd14   : > { %25892 = vmatprep.mubr.f32.mxu0 %v33804_v12 }
 0xd17   : > { %25893 = vmatmul.mubr.f32.gmra.mrb[78].mxu0 %v33798_v35 }
 0xd18   : > { %25903 = vmatprep.mubr.f32.mxu0 %v14352_v59 }
 0xd1b   : > { %25904 = vmatmul.mubr.f32.vlgmr.msra.gmra.mrb[64].mxu0 %v14362_v57 }
 0xd1c   : > { %25906 = vmatprep.mubr.f32.mxu0 %v14372_v60  ;;  %27550 = vmatpush3.bf16.msra.mxu0 %v27547_v2 }
 0xd1d   : > { %27552 = vmatprep.subr.bf16.mxu0 %v27551_v56 }
 0xd1f   : > { %25907 = vmatmul.mubr.f32.gmra.mrb[66].mxu0 %v14382_v33 }
 0xd20   : > { %25909 = vmatprep.mubr.f32.mxu0 %v14392_v38  ;;  %27554 = vmatpush3.bf16.msra.mxu0 %v27551_v56 }
 0xd21   : > { %27556 = vmatprep.subr.bf16.mxu0 %v33580_v8 }
 0xd23   : > { %25910 = vmatmul.mubr.f32.gmra.mrb[68].mxu0 %v14402_v19 }
 0xd24   : > { %25912 = vmatprep.mubr.f32.mxu0 %v14412_v27 }
 0xd27   : > { %25913 = vmatmul.mubr.f32.gmra.mrb[70].mxu0 %v14422_v49 }
 0xd28   : > { %25915 = vmatprep.mubr.f32.mxu0 %v14432_v47 }
 0xd2b   : > { %25916 = vmatmul.mubr.f32.gmra.mrb[72].mxu0 %v37838_v16 }
 0xd2c   : > { %25918 = vmatprep.mubr.f32.mxu0 %v37839_v30 }
 0xd2f   : > { %25919 = vmatmul.mubr.f32.gmra.mrb[74].mxu0 %v37840_v55 }
 0xd30   : > { %25921 = vmatprep.mubr.f32.mxu0 %v14472_v5 }
 0xd33   : > { %25922 = vmatmul.mubr.f32.gmra.mrb[76].mxu0 %v37841_v14 }
 0xd34   : > { %25924 = vmatprep.mubr.f32.mxu0 %v14492_v15 }
 0xd37   : > { %25925 = vmatmul.mubr.f32.gmra.mrb[78].mxu0 %v14502_v25 }
 0xd38   : > { %25935 = vmatprep.mubr.f32.mxu0 %v33646_v63 }
 0xd3b   : > { %25936 = vmatmul.mubr.f32.vlgmr.msra.gmra.mrb[64].mxu0 %v33642_v32 }
 0xd3c   : > { %25938 = vmatprep.mubr.f32.mxu0 %v33668_v39  ;;  %27558 = vmatpush3.bf16.msra.mxu0 %v33580_v8 }
 0xd3d   : > { %27560 = vmatprep.subr.bf16.mxu0 %v33616_v61 }
 0xd3f   : > { %25939 = vmatmul.mubr.f32.gmra.mrb[66].mxu0 %v33663_v62 }
 0xd40   : > { %25941 = vmatprep.mubr.f32.mxu0 %v33689_v24  ;;  %27562 = vmatpush3.bf16.msra.mxu0 %v33616_v61 }
 0xd43   : > { %25942 = vmatmul.mubr.f32.gmra.mrb[68].mxu0 %v33685_v37 }
 0xd44   : > { %25944 = vmatprep.mubr.f32.mxu0 %v33709_v17 }
 0xd47   : > { %25945 = vmatmul.mubr.f32.gmra.mrb[70].mxu0 %v33705_v28 }
 0xd48   : > { %25947 = vmatprep.mubr.f32.mxu0 %v33734_v9 }
 0xd4b   : > { %25948 = vmatmul.mubr.f32.gmra.mrb[72].mxu0 %v33730_v20 }
 0xd4c   : > { %25950 = vmatprep.mubr.f32.mxu0 %v33755_v31 }
 0xd4f   : > { %25951 = vmatmul.mubr.f32.gmra.mrb[74].mxu0 %v33751_v44 }
 0xd50   : > { %25953 = vmatprep.mubr.f32.mxu0 %v33775_v23 }
 0xd53   : > { %25954 = vmatmul.mubr.f32.gmra.mrb[76].mxu0 %v33771_v45 }
 0xd54   : > { %25956 = vmatprep.mubr.f32.mxu0 %v33795_v43 }
 0xd57   : > { %25957 = vmatmul.mubr.f32.gmra.mrb[78].mxu0 %v33791_v53 }
 0xd58   : > { %25967 = vmatprep.mubr.f32.mxu0 %v33646_v63 }
 0xd5b   : > { %25968 = vmatmul.mubr.f32.vlgmr.msra.gmra.mrb[64].mxu0 %v33642_v32 }
 0xd5c   : > { %25970 = vmatprep.mubr.f32.mxu0 %v33668_v39 }
 0xd5f   : > { %25971 = vmatmul.mubr.f32.gmra.mrb[66].mxu0 %v33663_v62 }
 0xd60   : > { %25973 = vmatprep.mubr.f32.mxu0 %v33689_v24 }
 0xd63   : > { %25974 = vmatmul.mubr.f32.gmra.mrb[68].mxu0 %v33685_v37 }
 0xd64   : > { %25976 = vmatprep.mubr.f32.mxu0 %v33709_v17 }
 0xd67   : > { %25977 = vmatmul.mubr.f32.gmra.mrb[70].mxu0 %v33705_v28 }
 0xd68   : > { %25979 = vmatprep.mubr.f32.mxu0 %v33734_v9 }
 0xd6b   : > { %25980 = vmatmul.mubr.f32.gmra.mrb[72].mxu0 %v33730_v20 }
 0xd6c   : > { %25982 = vmatprep.mubr.f32.mxu0 %v33755_v31 }
 0xd6d   : > { %v25249_v8 = vpop.f32.mrb[48].mxu0 }
 0xd6e   : > { %v12951_v61 = vand.u32 4294901760, %v25249_v8  ;;  %v11723_v36 = vpop.f32.mrb[49].mxu0 }
 0xd6f   : > { %v12948_v34 = vand.u32 4294901760, %v11723_v36  ;;  %25983 = vmatmul.mubr.f32.gmra.mrb[74].mxu0 %v33751_v44 }
 0xd70   : > { %v13197_v41 = vsub.f32 %v25249_v8, %v12951_v61  ;;  %25985 = vmatprep.mubr.f32.mxu0 %v33775_v23 }
 0xd71   : > { %v33929_v32 = vpack.c.bf16 %v12951_v61, %v12948_v34  ;;  %v13190_v63 = vsub.f32 %v11723_v36, %v12948_v34  ;;  %v25252_v6 = vpop.f32.mrb[50].mxu0 }
 0xd72   : > { %v13198_v7 = vand.u32 4294901760, %v13197_v41  ;;  %v12957_v57 = vand.u32 4294901760, %v25252_v6  ;;  %v11735_v62 = vpop.f32.mrb[51].mxu0 }
 0xd73   : > { %v13191_v59 = vand.u32 4294901760, %v13190_v63  ;;  %v12954_v39 = vand.u32 4294901760, %v11735_v62  ;;  %27324 = vmatprep.subr.bf16.mxu1 %v33929_v32  ;;  %25986 = vmatmul.mubr.f32.gmra.mrb[76].mxu0 %v33771_v45  ;;  %v33933_v46 = vpack.c.bf16 %v13197_v41, %v13190_v63 }
 0xd74   : > { %v13199_v11 = vsub.f32 %v13197_v41, %v13198_v7  ;;  %v13211_v33 = vsub.f32 %v25252_v6, %v12957_v57  ;;  %27326 = vmatpush3.bf16.msra.mxu1 %v33929_v32  ;;  %25988 = vmatprep.mubr.f32.mxu0 %v33795_v43 }
 0xd75   : > { %v13192_v37 = vsub.f32 %v13190_v63, %v13191_v59  ;;  %v33937_v60 = vpack.c.bf16 %v12957_v57, %v12954_v39  ;;  %v13204_v24 = vsub.f32 %v11735_v62, %v12954_v39  ;;  %v25255_v40 = vpop.f32.mrb[52].mxu0  ;;  %v33939_v50 = vpack.c.bf16 %v13198_v7, %v13191_v59 }
 0xd76   : > { %v13212_v19 = vand.u32 4294901760, %v13211_v33  ;;  %v12963_v28 = vand.u32 4294901760, %v25255_v40  ;;  %v11747_v38 = vpop.f32.mrb[53].mxu0  ;;  %v13200_v17 = vand.u32 4294901760, %v13199_v11 }
 0xd77   : > { %v13205_v51 = vand.u32 4294901760, %v13204_v24  ;;  %v12960_v0 = vand.u32 4294901760, %v11747_v38  ;;  %27328 = vmatprep.subr.bf16.mxu1 %v33937_v60  ;;  %25989 = vmatmul.mubr.f32.gmra.mrb[78].mxu0 %v33791_v53  ;;  %v13193_v49 = vand.u32 4294901760, %v13192_v37  ;;  %v33943_v20 = vpack.c.bf16 %v13211_v33, %v13204_v24 }
 0xd78   : > { %v13213_v27 = vsub.f32 %v13211_v33, %v13212_v19  ;;  %v13225_v9 = vsub.f32 %v25255_v40, %v12963_v28  ;;  %27330 = vmatpush3.bf16.msra.mxu1 %v33937_v60 }
 0xd79   : > { %v13206_v21 = vsub.f32 %v13204_v24, %v13205_v51  ;;  %v33946_v54 = vpack.c.bf16 %v12963_v28, %v12960_v0  ;;  %v13218_v1 = vsub.f32 %v11747_v38, %v12960_v0  ;;  %v25258_v44 = vpop.f32.mrb[54].mxu0  ;;  %v33948_v47 = vpack.c.bf16 %v13200_v17, %v13193_v49 }
 0xd7a   : > { %v13226_v31 = vand.u32 4294901760, %v13225_v9  ;;  %v12969_v3 = vand.u32 4294901760, %v25258_v44  ;;  %v11759_v4 = vpop.f32.mrb[55].mxu0  ;;  %v13214_v10 = vand.u32 4294901760, %v13213_v27  ;;  %v33950_v45 = vpack.c.bf16 %v13212_v19, %v13205_v51 }
 0xd7b   : > { %v13219_v12 = vand.u32 4294901760, %v13218_v1  ;;  %v12966_v23 = vand.u32 4294901760, %v11759_v4  ;;  %27332 = vmatprep.subr.bf16.mxu1 %v33946_v54  ;;  %v13207_v22 = vand.u32 4294901760, %v13206_v21  ;;  %v33953_v13 = vpack.c.bf16 %v13225_v9, %v13218_v1 }
 0xd7c   : > { %v13227_v18 = vsub.f32 %v13225_v9, %v13226_v31  ;;  %v13239_v53 = vsub.f32 %v25258_v44, %v12969_v3  ;;  %27334 = vmatpush3.bf16.msra.mxu1 %v33946_v54 }
 0xd7d   : > { %v13220_v5 = vsub.f32 %v13218_v1, %v13219_v12  ;;  %v33956_v43 = vpack.c.bf16 %v12969_v3, %v12966_v23  ;;  %v13232_v35 = vsub.f32 %v11759_v4, %v12966_v23  ;;  %v25261_v42 = vpop.f32.mrb[56].mxu0  ;;  %v33958_v25 = vpack.c.bf16 %v13214_v10, %v13207_v22 }
 0xd7e   : > { %v13240_v15 = vand.u32 4294901760, %v13239_v53  ;;  %v12975_v58 = vand.u32 4294901760, %v25261_v42  ;;  %v11771_v26 = vpop.f32.mrb[57].mxu0  ;;  %v13228_v52 = vand.u32 4294901760, %v13227_v18  ;;  %v33960_v29 = vpack.c.bf16 %v13226_v31, %v13219_v12 }
 0xd7f   : > { %v13233_v48 = vand.u32 4294901760, %v13232_v35  ;;  %v12972_v2 = vand.u32 4294901760, %v11771_v26  ;;  %27336 = vmatprep.subr.bf16.mxu1 %v33956_v43  ;;  %v13221_v56 = vand.u32 4294901760, %v13220_v5  ;;  %v33963_v16 = vpack.c.bf16 %v13239_v53, %v13232_v35 }
 0xd80   : > { %v13241_v30 = vsub.f32 %v13239_v53, %v13240_v15  ;;  %v13253_v55 = vsub.f32 %v25261_v42, %v12975_v58  ;;  %27338 = vmatpush3.bf16.msra.mxu1 %v33956_v43 }
 0xd81   : > { %v13234_v14 = vsub.f32 %v13232_v35, %v13233_v48  ;;  %v33966_v8 = vpack.c.bf16 %v12975_v58, %v12972_v2  ;;  %v13246_v61 = vsub.f32 %v11771_v26, %v12972_v2  ;;  %v25264_v36 = vpop.f32.mrb[58].mxu0  ;;  %v33968_v34 = vpack.c.bf16 %v13228_v52, %v13221_v56 }
 0xd82   : > { %v13254_v41 = vand.u32 4294901760, %v13253_v55  ;;  %v12981_v63 = vand.u32 4294901760, %v25264_v36  ;;  %v11783_v6 = vpop.f32.mrb[59].mxu0  ;;  %v13242_v7 = vand.u32 4294901760, %v13241_v30  ;;  %v33970_v57 = vpack.c.bf16 %v13240_v15, %v13233_v48 }
 0xd83   : > { %v13247_v62 = vand.u32 4294901760, %v13246_v61  ;;  %v12978_v59 = vand.u32 4294901760, %v11783_v6  ;;  %27340 = vmatprep.subr.bf16.mxu1 %v33966_v8  ;;  %v13235_v39 = vand.u32 4294901760, %v13234_v14  ;;  %v33973_v11 = vpack.c.bf16 %v13253_v55, %v13246_v61 }
 0xd84   : > { %v13255_v33 = vsub.f32 %v13253_v55, %v13254_v41  ;;  %v13267_v37 = vsub.f32 %v25264_v36, %v12981_v63  ;;  %27342 = vmatpush3.bf16.msra.mxu1 %v33966_v8 }
 0xd85   : > { %v13248_v24 = vsub.f32 %v13246_v61, %v13247_v62  ;;  %v33976_v40 = vpack.c.bf16 %v12981_v63, %v12978_v59  ;;  %v13260_v19 = vsub.f32 %v11783_v6, %v12978_v59  ;;  %v25267_v28 = vpop.f32.mrb[60].mxu0  ;;  %v33978_v38 = vpack.c.bf16 %v13242_v7, %v13235_v39 }
 0xd86   : > { %v13268_v17 = vand.u32 4294901760, %v13267_v37  ;;  %v12987_v51 = vand.u32 4294901760, %v25267_v28  ;;  %v11795_v0 = vpop.f32.mrb[61].mxu0  ;;  %v13256_v49 = vand.u32 4294901760, %v13255_v33  ;;  %v33980_v27 = vpack.c.bf16 %v13254_v41, %v13247_v62 }
 0xd87   : > { %v13261_v9 = vand.u32 4294901760, %v13260_v19  ;;  %v12984_v21 = vand.u32 4294901760, %v11795_v0  ;;  %27344 = vmatprep.subr.bf16.mxu1 %v33976_v40  ;;  %v13249_v1 = vand.u32 4294901760, %v13248_v24  ;;  %v33983_v44 = vpack.c.bf16 %v13267_v37, %v13260_v19  ;;  %v37842_v24 = vld [vmem:[#allocation28_spill] sm:$0xff] }
 0xd88   : > { %v13269_v31 = vsub.f32 %v13267_v37, %v13268_v17  ;;  %v13281_v3 = vsub.f32 %v25267_v28, %v12987_v51  ;;  %27346 = vmatpush3.bf16.msra.mxu1 %v33976_v40  ;;  %v37843_v28 = vld [vmem:[#allocation59_spill] sm:$0xff] }
 0xd89   : > { %v13262_v4 = vsub.f32 %v13260_v19, %v13261_v9  ;;  %v33986_v10 = vpack.c.bf16 %v12987_v51, %v12984_v21  ;;  %v13274_v12 = vsub.f32 %v11795_v0, %v12984_v21  ;;  %v25270_v23 = vpop.f32.mrb[62].mxu0  ;;  %v27371_v22 = vpack.c.bf16 %v13256_v49, %v13249_v1  ;;  %v37844_v51 = vld [vmem:[#allocation22_spill] sm:$0xff]  ;;  %v37845_v0 = vld [vmem:[#allocation31_spill] sm:$0xff]  ;;  %v37846_v49 = vld [vmem:[#allocation40_spill] sm:$0xff] }
 0xd8a   : > { %v13282_v18 = vand.u32 4294901760, %v13281_v3  ;;  %v12993_v53 = vand.u32 4294901760, %v25270_v23  ;;  %v11807_v5 = vpop.f32.mrb[63].mxu0  ;;  %v13270_v35 = vand.u32 4294901760, %v13269_v31  ;;  %v33988_v42 = vpack.c.bf16 %v13268_v17, %v13261_v9  ;;  %v37847_v9 = vld [vmem:[#allocation19_spill] sm:$0xff]  ;;  %v37849_v21 = vld [vmem:[#allocation64_spill] sm:$0xff] }
 0xd8b   : > { %v13275_v15 = vand.u32 4294901760, %v13274_v12  ;;  %v12990_v58 = vand.u32 4294901760, %v11807_v5  ;;  %27348 = vmatprep.subr.bf16.mxu1 %v33986_v10  ;;  %v13263_v26 = vand.u32 4294901760, %v13262_v4  ;;  %v33991_v52 = vpack.c.bf16 %v13281_v3, %v13274_v12  ;;  %v37851_v1 = vld [vmem:[#allocation41_spill] sm:$0xff]  ;;  %v37852_v31 = vld [vmem:[#allocation46_spill] sm:$0xff] }
 0xd8c   : > { %v13283_v48 = vsub.f32 %v13281_v3, %v13282_v18  ;;  %v13295_v2 = vsub.f32 %v25270_v23, %v12993_v53  ;;  %27350 = vmatpush3.bf16.msra.mxu1 %v33986_v10  ;;  %v37854_v3 = vld [vmem:[#allocation55_spill] sm:$0xff]  ;;  %v37855_v4 = vld [vmem:[#allocation57_spill] sm:$0xff]  ;;  %v37858_v23 = vld [vmem:[#allocation6_spill] sm:$0xff] }
 0xd8d   : > { %v13276_v56 = vsub.f32 %v13274_v12, %v13275_v15  ;;  %v33994_v30 = vpack.c.bf16 %v12993_v53, %v12990_v58  ;;  %v13288_v55 = vsub.f32 %v11807_v5, %v12990_v58  ;;  %v27375_v14 = vpack.c.bf16 %v13270_v35, %v13263_v26  ;;  %v37857_v12 = vld [vmem:[#allocation33_spill] sm:$0xff]  ;;  %v37862_v5 = vld [vmem:[#allocation23_spill] sm:$0xff]  ;;  %v37863_v35 = vld [vmem:[#allocation74_spill] sm:$0xff] }
 0xd8e   : > { %v13296_v61 = vand.u32 4294901760, %v13295_v2  ;;  %v13284_v36 = vand.u32 4294901760, %v13283_v48  ;;  %v33996_v41 = vpack.c.bf16 %v13282_v18, %v13275_v15  ;;  %v37860_v18 = vld [vmem:[#allocation13_spill] sm:$0xff]  ;;  %v37865_v15 = vld [vmem:[#allocation84_spill] sm:$0xff]  ;;  %v37869_v26 = vld [vmem:[#allocation39_spill] sm:$0xff] }
 0xd8f   : > { %v13289_v63 = vand.u32 4294901760, %v13288_v55  ;;  %27352 = vmatprep.subr.bf16.mxu1 %v33994_v30  ;;  %v13277_v6 = vand.u32 4294901760, %v13276_v56  ;;  %v33999_v7 = vpack.c.bf16 %v13295_v2, %v13288_v55  ;;  %v37861_v53 = vld [vmem:[#allocation25_spill] sm:$0xff]  ;;  %v37867_v58 = vld [vmem:[#allocation16_spill] sm:$0xff] }
 0xd90   : > { %v13297_v62 = vsub.f32 %v13295_v2, %v13296_v61  ;;  %27354 = vmatpush3.bf16.msra.mxu1 %v33994_v30  ;;  %v37871_v48 = vld [vmem:[#allocation53_spill] sm:$0xff]  ;;  %v37873_v2 = vld [vmem:[#allocation36_spill] sm:$0xff] }
 0xd91   : > { %v13290_v59 = vsub.f32 %v13288_v55, %v13289_v63  ;;  %27356 = vmatprep.subr.bf16.mxu1 %v33948_v47  ;;  %v27379_v39 = vpack.c.bf16 %v13284_v36, %v13277_v6  ;;  %v34003_v33 = vpack.c.bf16 %v13296_v61, %v13289_v63  ;;  %v37875_v56 = vld [vmem:[#allocation17_spill] sm:$0xff]  ;;  %v37877_v55 = vld [vmem:[#allocation44_spill] sm:$0xff]  ;;  %v37879_v61 = vld [vmem:[#allocation79_spill] sm:$0xff] }
 0xd92   : > { %v13298_v37 = vand.u32 4294901760, %v13297_v62  ;;  %v37880_v36 = vld [vmem:[#allocation83_spill] sm:$0xff]  ;;  %v37884_v62 = vld [vmem:[#allocation42_spill] sm:$0xff] }
 0xd93   : > { %25496 = vmatmul.mubr.f32.vlgmr.msra.gmra.mrb[64].mxu1 %v37842_v24  ;;  %v13291_v19 = vand.u32 4294901760, %v13290_v59  ;;  %v37881_v63 = vld [vmem:[#allocation15_spill] sm:$0xff]  ;;  %v37885_v59 = vld [vmem:[#allocation48_spill] sm:$0xff] }
 0xd94   : > { %27358 = vmatpush3.bf16.msra.mxu1 %v33948_v47  ;;  %25498 = vmatprep.mubr.f32.mxu1 %v37843_v28  ;;  %v37848_v47 = vld [vmem:[#allocation54_spill] sm:$0xff]  ;;  %v37882_v6 = vld [vmem:[#allocation27_spill] sm:$0xff]  ;;  %v37888_v24 = vld [vmem:[#allocation20_spill] sm:$0xff] }
 0xd95   : > { %27360 = vmatprep.subr.bf16.mxu1 %v33958_v25  ;;  %v27383_v17 = vpack.c.bf16 %v13298_v37, %v13291_v19  ;;  %v37887_v37 = vld [vmem:[#allocation70_spill] sm:$0xff]  ;;  %v37889_v19 = vld [vmem:[#allocation37_spill] sm:$0xff]  ;;  %v37890_v28 = vld [vmem:[#allocation12_spill] sm:$0xff] }
 0xd97   : > { %25499 = vmatmul.mubr.f32.gmra.mrb[66].mxu1 %v37844_v51  ;;  %v37892_v51 = vld [vmem:[#allocation29_spill] sm:$0xff] }
 0xd98   : > { %27362 = vmatpush3.bf16.msra.mxu1 %v33958_v25  ;;  %25501 = vmatprep.mubr.f32.mxu1 %v37845_v0  ;;  %v37850_v25 = vld [vmem:[#allocation73_spill] sm:$0xff] }
 0xd99   : > { %27364 = vmatprep.subr.bf16.mxu1 %v33968_v34  ;;  %v37893_v0 = vld [vmem:[#allocation65_spill] sm:$0xff] }
 0xd9b   : > { %25502 = vmatmul.mubr.f32.gmra.mrb[68].mxu1 %v37846_v49  ;;  %v37894_v49 = vld [vmem:[#allocation71_spill] sm:$0xff] }
 0xd9c   : > { %27366 = vmatpush3.bf16.msra.mxu1 %v33968_v34  ;;  %25504 = vmatprep.mubr.f32.mxu1 %v37847_v9  ;;  %v37853_v34 = vld [vmem:[#allocation52_spill] sm:$0xff]  ;;  %v37895_v9 = vld [vmem:[#allocation10_spill] sm:$0xff] }
 0xd9d   : > { %27368 = vmatprep.subr.bf16.mxu1 %v33978_v38 }
 0xd9f   : > { %25505 = vmatmul.mubr.f32.gmra.mrb[70].mxu1 %v37848_v47  ;;  %v37897_v47 = vld [vmem:[#allocation34_spill] sm:$0xff] }
 0xda0   : > { %27370 = vmatpush3.bf16.msra.mxu1 %v33978_v38  ;;  %25507 = vmatprep.mubr.f32.mxu1 %v37849_v21  ;;  %v37856_v38 = vld [vmem:[#allocation61_spill] sm:$0xff]  ;;  %v37899_v21 = vld [vmem:[#allocation47_spill] sm:$0xff] }
 0xda1   : > { %27372 = vmatprep.subr.bf16.mxu1 %v27371_v22 }
 0xda3   : > { %25508 = vmatmul.mubr.f32.gmra.mrb[72].mxu1 %v37850_v25  ;;  %v37901_v25 = vld [vmem:[#allocation67_spill] sm:$0xff] }
 0xda4   : > { %27374 = vmatpush3.bf16.msra.mxu1 %v27371_v22  ;;  %25510 = vmatprep.mubr.f32.mxu1 %v37851_v1  ;;  %v37859_v22 = vld [vmem:[#allocation8_spill] sm:$0xff]  ;;  %v37903_v1 = vld [vmem:[#allocation45_spill] sm:$0xff] }
 0xda5   : > { %27376 = vmatprep.subr.bf16.mxu1 %v27375_v14 }
 0xda7   : > { %25511 = vmatmul.mubr.f32.gmra.mrb[74].mxu1 %v37852_v31 }
 0xda8   : > { %27378 = vmatpush3.bf16.msra.mxu1 %v27375_v14  ;;  %25513 = vmatprep.mubr.f32.mxu1 %v37853_v34  ;;  %v37878_v14 = vld [vmem:[#allocation50_spill] sm:$0xff] }
 0xda9   : > { %27380 = vmatprep.subr.bf16.mxu1 %v27379_v39 }
 0xdab   : > { %25514 = vmatmul.mubr.f32.gmra.mrb[76].mxu1 %v37854_v3 }
 0xdac   : > { %27382 = vmatpush3.bf16.msra.mxu1 %v27379_v39  ;;  %25516 = vmatprep.mubr.f32.mxu1 %v37855_v4  ;;  %v37886_v39 = vld [vmem:[#allocation60_spill] sm:$0xff] }
 0xdad   : > { %27384 = vmatprep.subr.bf16.mxu1 %v27383_v17 }
 0xdaf   : > { %25517 = vmatmul.mubr.f32.gmra.mrb[78].mxu1 %v37856_v38 }
 0xdb0   : > { %27386 = vmatpush3.bf16.msra.mxu1 %v27383_v17  ;;  %25551 = vmatprep.mubr.f32.mxu1 %v37857_v12  ;;  %v37891_v17 = vld [vmem:[#allocation24_spill] sm:$0xff] }
 0xdb1   : > { %27388 = vmatprep.subr.bf16.mxu1 %v33933_v46 }
 0xdb3   : > { %25552 = vmatmul.mubr.f32.vlgmr.msra.gmra.mrb[64].mxu1 %v37858_v23 }
 0xdb4   : > { %27390 = vmatpush3.bf16.msra.mxu1 %v33933_v46  ;;  %25554 = vmatprep.mubr.f32.mxu1 %v37859_v22  ;;  %v37864_v46 = vld [vmem:[#allocation81_spill] sm:$0xff] }
 0xdb5   : > { %27392 = vmatprep.subr.bf16.mxu1 %v33943_v20 }
 0xdb7   : > { %25555 = vmatmul.mubr.f32.gmra.mrb[66].mxu1 %v37860_v18 }
 0xdb8   : > { %27394 = vmatpush3.bf16.msra.mxu1 %v33943_v20  ;;  %25557 = vmatprep.mubr.f32.mxu1 %v37861_v53  ;;  %v37866_v20 = vld [vmem:[#allocation14_spill] sm:$0xff] }
 0xdb9   : > { %27396 = vmatprep.subr.bf16.mxu1 %v33953_v13 }
 0xdbb   : > { %25558 = vmatmul.mubr.f32.gmra.mrb[68].mxu1 %v37862_v5 }
 0xdbc   : > { %27398 = vmatpush3.bf16.msra.mxu1 %v33953_v13  ;;  %25560 = vmatprep.mubr.f32.mxu1 %v37863_v35  ;;  %v37868_v13 = vld [vmem:[#allocation30_spill] sm:$0xff] }
 0xdbd   : > { %27400 = vmatprep.subr.bf16.mxu1 %v33963_v16 }
 0xdbf   : > { %25561 = vmatmul.mubr.f32.gmra.mrb[70].mxu1 %v37864_v46 }
 0xdc0   : > { %27402 = vmatpush3.bf16.msra.mxu1 %v33963_v16  ;;  %25563 = vmatprep.mubr.f32.mxu1 %v37865_v15  ;;  %v37870_v16 = vld [vmem:[#allocation43_spill] sm:$0xff] }
 0xdc1   : > { %27404 = vmatprep.subr.bf16.mxu1 %v33973_v11 }
 0xdc3   : > { %25564 = vmatmul.mubr.f32.gmra.mrb[72].mxu1 %v37866_v20 }
 0xdc4   : > { %27406 = vmatpush3.bf16.msra.mxu1 %v33973_v11  ;;  %25566 = vmatprep.mubr.f32.mxu1 %v37867_v58  ;;  %v37872_v11 = vld [vmem:[#allocation62_spill] sm:$0xff] }
 0xdc5   : > { %27408 = vmatprep.subr.bf16.mxu1 %v33983_v44 }
 0xdc7   : > { %25567 = vmatmul.mubr.f32.gmra.mrb[74].mxu1 %v37868_v13 }
 0xdc8   : > { %27410 = vmatpush3.bf16.msra.mxu1 %v33983_v44  ;;  %25569 = vmatprep.mubr.f32.mxu1 %v37869_v26  ;;  %v37874_v44 = vld [vmem:[#allocation7_spill] sm:$0xff] }
 0xdc9   : > { %27412 = vmatprep.subr.bf16.mxu1 %v33991_v52 }
 0xdcb   : > { %25570 = vmatmul.mubr.f32.gmra.mrb[76].mxu1 %v37870_v16 }
 0xdcc   : > { %27414 = vmatpush3.bf16.msra.mxu1 %v33991_v52  ;;  %25572 = vmatprep.mubr.f32.mxu1 %v37871_v48  ;;  %v37876_v52 = vld [vmem:[#allocation18_spill] sm:$0xff] }
 0xdcd   : > { %27416 = vmatprep.subr.bf16.mxu1 %v33999_v7 }
 0xdcf   : > { %25573 = vmatmul.mubr.f32.gmra.mrb[78].mxu1 %v37872_v11 }
 0xdd0   : > { %27418 = vmatpush3.bf16.msra.mxu1 %v33999_v7  ;;  %25607 = vmatprep.mubr.f32.mxu1 %v37873_v2  ;;  %v37883_v7 = vld [vmem:[#allocation35_spill] sm:$0xff] }
 0xdd1   : > { %27420 = vmatprep.subr.bf16.mxu1 %v33929_v32 }
 0xdd3   : > { %25608 = vmatmul.mubr.f32.vlgmr.msra.gmra.mrb[64].mxu1 %v37874_v44 }
 0xdd4   : > { %27422 = vmatpush3.bf16.msra.mxu1 %v33929_v32  ;;  %25610 = vmatprep.mubr.f32.mxu1 %v37875_v56  ;;  %v15571_v56 = vld [vmem:[%s36472_s5 + $0x60] sm:$0xff] }
 0xdd5   : > { %27424 = vmatprep.subr.bf16.mxu1 %v33937_v60 }
 0xdd7   : > { %25611 = vmatmul.mubr.f32.gmra.mrb[66].mxu1 %v37876_v52 }
 0xdd8   : > { %27426 = vmatpush3.bf16.msra.mxu1 %v33937_v60  ;;  %25613 = vmatprep.mubr.f32.mxu1 %v37877_v55  ;;  %v15562_v55 = vld [vmem:[%s36472_s5 + $0x18] sm:$0xff] }
 0xdd9   : > { %27428 = vmatprep.subr.bf16.mxu1 %v33946_v54 }
 0xddb   : > { %25614 = vmatmul.mubr.f32.gmra.mrb[68].mxu1 %v37878_v14  ;;  %v15566_v14 = vld [vmem:[%s36472_s5 + $0x38] sm:$0xff] }
 0xddc   : > { %27430 = vmatpush3.bf16.msra.mxu1 %v33946_v54  ;;  %25616 = vmatprep.mubr.f32.mxu1 %v37879_v61  ;;  %v37027_v61 = vmov 0.0  }
 0xddd   : > { %27432 = vmatprep.subr.bf16.mxu1 %v33956_v43  ;;  %15671 = vmatprep.mubr.f32.mxu0 %v37027_v61 }
 0xddf   : > { %25617 = vmatmul.mubr.f32.gmra.mrb[70].mxu1 %v37880_v36 }
 0xde0   : > { %27434 = vmatpush3.bf16.msra.mxu1 %v33956_v43  ;;  %25619 = vmatprep.mubr.f32.mxu1 %v37881_v63  ;;  %v15613_v63 = vand.u32 4294901760, %v15571_v56 }
 0xde1   : > { %27436 = vmatprep.subr.bf16.mxu1 %v33966_v8 }
 0xde3   : > { %25620 = vmatmul.mubr.f32.gmra.mrb[72].mxu1 %v37882_v6  ;;  %v16142_v6 = vand.u32 4294901760, %v15562_v55 }
 0xde4   : > { %27438 = vmatpush3.bf16.msra.mxu1 %v33966_v8  ;;  %25622 = vmatprep.mubr.f32.mxu1 %v37883_v7  ;;  %v16146_v7 = vand.u32 4294901760, %v15566_v14 }
 0xde5   : > { %27440 = vmatprep.subr.bf16.mxu1 %v33976_v40 }
 0xde7   : > { %25623 = vmatmul.mubr.f32.gmra.mrb[74].mxu1 %v37884_v62  ;;  %v15561_v62 = vld [vmem:[%s36472_s5 + $0x10] sm:$0xff] }
 0xde8   : > { %27442 = vmatpush3.bf16.msra.mxu1 %v33976_v40  ;;  %25625 = vmatprep.mubr.f32.mxu1 %v37885_v59  ;;  %v15565_v59 = vld [vmem:[%s36472_s5 + $0x30] sm:$0xff] }
 0xde9   : > { %27444 = vmatprep.subr.bf16.mxu1 %v33986_v10 }
 0xdeb   : > { %25626 = vmatmul.mubr.f32.gmra.mrb[76].mxu1 %v37886_v39  ;;  %v15570_v39 = vld [vmem:[%s36472_s5 + $0x58] sm:$0xff] }
 0xdec   : > { %27446 = vmatpush3.bf16.msra.mxu1 %v33986_v10  ;;  %25628 = vmatprep.mubr.f32.mxu1 %v37887_v37 }
 0xded   : > { %27448 = vmatprep.subr.bf16.mxu1 %v33994_v30 }
 0xdef   : > { %25629 = vmatmul.mubr.f32.gmra.mrb[78].mxu1 %v37888_v24 }
 0xdf0   : > { %27450 = vmatpush3.bf16.msra.mxu1 %v33994_v30  ;;  %25663 = vmatprep.mubr.f32.mxu1 %v37889_v19 }
 0xdf1   : > { %27452 = vmatprep.subr.bf16.mxu1 %v33939_v50 }
 0xdf3   : > { %25664 = vmatmul.mubr.f32.vlgmr.msra.gmra.mrb[64].mxu1 %v37890_v28 }
 0xdf4   : > { %27454 = vmatpush3.bf16.msra.mxu1 %v33939_v50  ;;  %25666 = vmatprep.mubr.f32.mxu1 %v37891_v17  ;;  %v37896_v50 = vld [vmem:[#allocation26_spill] sm:$0xff]  ;;  %v15574_v17 = vld [vmem:[%s36472_s5 + $0x78] sm:$0xff] }
 0xdf5   : > { %27456 = vmatprep.subr.bf16.mxu1 %v33950_v45 }
 0xdf7   : > { %25667 = vmatmul.mubr.f32.gmra.mrb[66].mxu1 %v37892_v51  ;;  %v15569_v51 = vld [vmem:[%s36472_s5 + $0x50] sm:$0xff] }
 0xdf8   : > { %27458 = vmatpush3.bf16.msra.mxu1 %v33950_v45  ;;  %25669 = vmatprep.mubr.f32.mxu1 %v37893_v0  ;;  %v37898_v45 = vld [vmem:[#allocation38_spill] sm:$0xff] }
 0xdf9   : > { %27460 = vmatprep.subr.bf16.mxu1 %v33960_v29  ;;  %v15573_v0 = vld [vmem:[%s36472_s5 + $0x70] sm:$0xff] }
 0xdfb   : > { %25670 = vmatmul.mubr.f32.gmra.mrb[68].mxu1 %v37894_v49 }
 0xdfc   : > { %27462 = vmatpush3.bf16.msra.mxu1 %v33960_v29  ;;  %25672 = vmatprep.mubr.f32.mxu1 %v37895_v9  ;;  %v37900_v29 = vld [vmem:[#allocation56_spill] sm:$0xff]  ;;  %v34277_v9 = vsub.f32 %v15571_v56, %v15613_v63 }
 0xdfd   : > { %27464 = vmatprep.subr.bf16.mxu1 %v33970_v57 }
 0xdff   : > { %25673 = vmatmul.mubr.f32.gmra.mrb[70].mxu1 %v37896_v50  ;;  %v34279_v50 = vpack.c.bf16 %v16146_v7, %v16142_v6 }
 0xe00   : > { %27466 = vmatpush3.bf16.msra.mxu1 %v33970_v57  ;;  %25675 = vmatprep.mubr.f32.mxu1 %v37897_v47  ;;  %v37902_v57 = vld [vmem:[#allocation76_spill] sm:$0xff]  ;;  %v34281_v47 = vsub.f32 %v15562_v55, %v16142_v6 }
 0xe01   : > { %27468 = vmatprep.subr.bf16.mxu1 %v33980_v27 }
 0xe03   : > { %25676 = vmatmul.mubr.f32.gmra.mrb[72].mxu1 %v37898_v45  ;;  %v34284_v45 = vsub.f32 %v15566_v14, %v16146_v7 }
 0xe04   : > { %27470 = vmatpush3.bf16.msra.mxu1 %v33980_v27  ;;  %25678 = vmatprep.mubr.f32.mxu1 %v37899_v21  ;;  %v37904_v27 = vld [vmem:[#allocation51_spill] sm:$0xff]  ;;  %v16144_v21 = vand.u32 4294901760, %v15561_v62 }
 0xe05   : > { %27472 = vmatprep.subr.bf16.mxu1 %v33988_v42  ;;  %v37031_v56 = vand.u32 4294901760, %v34284_v45 }
 0xe07   : > { %25679 = vmatmul.mubr.f32.gmra.mrb[74].mxu1 %v37900_v29  ;;  %v16148_v29 = vand.u32 4294901760, %v15565_v59 }
 0xe08   : > { %27474 = vmatpush3.bf16.msra.mxu1 %v33988_v42  ;;  %25681 = vmatprep.mubr.f32.mxu1 %v37901_v25  ;;  %v16150_v25 = vand.u32 4294901760, %v15570_v39 }
 0xe09   : > { %27476 = vmatprep.subr.bf16.mxu1 %v33996_v41 }
 0xe0b   : > { %25682 = vmatmul.mubr.f32.gmra.mrb[76].mxu1 %v37902_v57  ;;  %v16154_v57 = vand.u32 4294901760, %v15574_v17 }
 0xe0c   : > { %27478 = vmatpush3.bf16.msra.mxu1 %v33996_v41  ;;  %25684 = vmatprep.mubr.f32.mxu1 %v37903_v1  ;;  %v16152_v1 = vand.u32 4294901760, %v15569_v51 }
 0xe0d   : > { %27480 = vmatprep.subr.bf16.mxu1 %v34003_v33 }
 0xe0f   : > { %25685 = vmatmul.mubr.f32.gmra.mrb[78].mxu1 %v37904_v27  ;;  %v16156_v27 = vand.u32 4294901760, %v15573_v0 }
 0xe10   : > { %27482 = vmatpush3.bf16.msra.mxu1 %v34003_v33  ;;  %25719 = vmatprep.mubr.f32.mxu1 %v37857_v12 }
 0xe11   : > { %27484 = vmatprep.subr.bf16.mxu1 %v33929_v32 }
 0xe13   : > { %25720 = vmatmul.mubr.f32.vlgmr.msra.gmra.mrb[64].mxu1 %v37858_v23 }
 0xe14   : > { %27486 = vmatpush3.bf16.msra.mxu1 %v33929_v32  ;;  %25722 = vmatprep.mubr.f32.mxu1 %v37859_v22 }
 0xe15   : > { %27488 = vmatprep.subr.bf16.mxu1 %v33937_v60 }
 0xe17   : > { %25723 = vmatmul.mubr.f32.gmra.mrb[66].mxu1 %v37860_v18 }
 0xe18   : > { %27490 = vmatpush3.bf16.msra.mxu1 %v33937_v60  ;;  %25725 = vmatprep.mubr.f32.mxu1 %v37861_v53 }
 0xe19   : > { %27492 = vmatprep.subr.bf16.mxu1 %v33946_v54 }
 0xe1b   : > { %25726 = vmatmul.mubr.f32.gmra.mrb[68].mxu1 %v37862_v5 }
 0xe1c   : > { %27494 = vmatpush3.bf16.msra.mxu1 %v33946_v54  ;;  %25728 = vmatprep.mubr.f32.mxu1 %v37863_v35 }
 0xe1d   : > { %27496 = vmatprep.subr.bf16.mxu1 %v33956_v43 }
 0xe1f   : > { %25729 = vmatmul.mubr.f32.gmra.mrb[70].mxu1 %v37864_v46 }
 0xe20   : > { %27498 = vmatpush3.bf16.msra.mxu1 %v33956_v43  ;;  %25731 = vmatprep.mubr.f32.mxu1 %v37865_v15 }
 0xe21   : > { %27500 = vmatprep.subr.bf16.mxu1 %v33966_v8 }
 0xe23   : > { %25732 = vmatmul.mubr.f32.gmra.mrb[72].mxu1 %v37866_v20 }
 0xe24   : > { %27502 = vmatpush3.bf16.msra.mxu1 %v33966_v8  ;;  %25734 = vmatprep.mubr.f32.mxu1 %v37867_v58 }
 0xe25   : > { %27504 = vmatprep.subr.bf16.mxu1 %v33976_v40 }
 0xe27   : > { %25735 = vmatmul.mubr.f32.gmra.mrb[74].mxu1 %v37868_v13 }
 0xe28   : > { %27506 = vmatpush3.bf16.msra.mxu1 %v33976_v40  ;;  %25737 = vmatprep.mubr.f32.mxu1 %v37869_v26 }
 0xe29   : > { %27508 = vmatprep.subr.bf16.mxu1 %v33986_v10 }
 0xe2b   : > { %25738 = vmatmul.mubr.f32.gmra.mrb[76].mxu1 %v37870_v16 }
 0xe2c   : > { %27510 = vmatpush3.bf16.msra.mxu1 %v33986_v10  ;;  %25740 = vmatprep.mubr.f32.mxu1 %v37871_v48 }
 0xe2d   : > { %27512 = vmatprep.subr.bf16.mxu1 %v33994_v30 }
 0xe2e   : > { %v34153_v32 = vpop.f32.mrb[64].mxu0 }
 0xe2f   : > { %25741 = vmatmul.mubr.f32.gmra.mrb[78].mxu1 %v37872_v11  ;;  %v34156_v60 = vpop.f32.mrb[65].mxu0 }
 0xe30   : > { %27514 = vmatpush3.bf16.msra.mxu1 %v33994_v30  ;;  %25775 = vmatprep.mubr.f32.mxu1 %v37857_v12  ;;  %v15560_v12 = vld [vmem:[%s36472_s5 + $0x8] sm:$0xff] }
 0xe31   : > { %27612 = vmatprep.subr.bf16.mxu1 %v34279_v50 }
 0xe32   : > { %v34160_v54 = vpop.f32.mrb[66].mxu0 }
 0xe33   : > { %25776 = vmatmul.mubr.f32.vlgmr.msra.gmra.mrb[64].mxu1 %v37858_v23  ;;  %v34163_v43 = vpop.f32.mrb[67].mxu0  ;;  %v15564_v23 = vld [vmem:[%s36472_s5 + $0x28] sm:$0xff] }
 0xe34   : > { %25778 = vmatprep.mubr.f32.mxu1 %v37859_v22  ;;  %v15559_v22 = vld [vmem:[%s36472_s5] sm:$0xff] }
 0xe36   : > { %v34166_v8 = vpop.f32.mrb[68].mxu0 }
 0xe37   : > { %25779 = vmatmul.mubr.f32.gmra.mrb[66].mxu1 %v37860_v18  ;;  %v34169_v40 = vpop.f32.mrb[69].mxu0  ;;  %v15599_v18 = vand.u32 4294901760, %v15560_v12 }
 0xe38   : > { %25781 = vmatprep.mubr.f32.mxu1 %v37861_v53  ;;  %v15603_v53 = vand.u32 4294901760, %v15564_v23 }
 0xe3a   : > { %v34172_v10 = vpop.f32.mrb[70].mxu0  ;;  %v34247_v36 = vsub.f32 %v15564_v23, %v15603_v53  ;;  %v34289_v23 = vpack.c.bf16 %v16148_v29, %v16144_v21 }
 0xe3b   : > { %25782 = vmatmul.mubr.f32.gmra.mrb[68].mxu1 %v37862_v5  ;;  %v34175_v42 = vpop.f32.mrb[71].mxu0  ;;  %v15563_v5 = vld [vmem:[%s36472_s5 + $0x20] sm:$0xff] }
 0xe3c   : > { %25784 = vmatprep.mubr.f32.mxu1 %v37863_v35  ;;  %v15601_v35 = vand.u32 4294901760, %v15559_v22  ;;  %37907 = vst [vmem:[#allocation72_spill] sm:$0xff] %v34289_v23  ;;  %27614 = vmatpush1.bf16.msra.mxu1 %v34289_v23 }
 0xe3e   : > { %v34178_v30 = vpop.f32.mrb[72].mxu0 }
 0xe3f   : > { %25785 = vmatmul.mubr.f32.gmra.mrb[70].mxu1 %v37864_v46  ;;  %v34181_v41 = vpop.f32.mrb[73].mxu0  ;;  %v15605_v46 = vand.u32 4294901760, %v15563_v5 }
 0xe40   : > { %25787 = vmatprep.mubr.f32.mxu1 %v37865_v15  ;;  %v34215_v15 = vpack.c.bf16 %v15603_v53, %v15599_v18  ;;  %v34295_v53 = vsub.f32 %v15570_v39, %v16150_v25 }
 0xe42   : > { %v34184_v33 = vpop.f32.mrb[74].mxu0  ;;  %27564 = vmatprep.subr.bf16.mxu0 %v34215_v15 }
 0xe43   : > { %25788 = vmatmul.mubr.f32.gmra.mrb[72].mxu1 %v37866_v20  ;;  %v34187_v31 = vpop.f32.mrb[75].mxu0  ;;  %v34217_v20 = vsub.f32 %v15559_v22, %v15601_v35  ;;  %v34291_v22 = vsub.f32 %v15561_v62, %v16144_v21 }
 0xe44   : > { %25790 = vmatprep.mubr.f32.mxu1 %v37867_v58  ;;  %v34219_v58 = vpack.c.bf16 %v15605_v46, %v15601_v35  ;;  %v34299_v35 = vsub.f32 %v15574_v17, %v16154_v57 }
 0xe45   : > { %v37033_v14 = vand.u32 4294901760, %v34291_v22 }
 0xe46   : > { %v34190_v34 = vpop.f32.mrb[76].mxu0  ;;  %27566 = vmatpush1.bf16.msra.mxu0 %v34219_v58 }
 0xe47   : > { %25791 = vmatmul.mubr.f32.gmra.mrb[74].mxu1 %v37868_v13  ;;  %v34193_v3 = vpop.f32.mrb[77].mxu0  ;;  %v34221_v13 = vsub.f32 %v15563_v5, %v15605_v46  ;;  %v34297_v5 = vpack.c.bf16 %v16154_v57, %v16150_v25  ;;  %v34301_v46 = vpack.c.bf16 %v16156_v27, %v16152_v1 }
 0xe48   : > { %25793 = vmatprep.mubr.f32.mxu1 %v37869_v26  ;;  %v15568_v26 = vld [vmem:[%s36472_s5 + $0x48] sm:$0xff] }
 0xe49   : > { %v15607_v2 = vand.u32 4294901760, %v15568_v26  ;;  %37908 = vst [vmem:[#allocation9_spill] sm:$0xff] %v34297_v5  ;;  %37909 = vst [vmem:[#allocation77_spill] sm:$0xff] %v34301_v46  ;;  %27616 = vmatprep.subr.bf16.mxu1 %v34297_v5  ;;  %v37030_v55 = vand.u32 4294901760, %v34221_v13 }
 0xe4a   : > { %v34196_v4 = vpop.f32.mrb[78].mxu0  ;;  %27618 = vmatpush1.bf16.msra.mxu1 %v34301_v46 }
 0xe4b   : > { %25794 = vmatmul.mubr.f32.gmra.mrb[76].mxu1 %v37870_v16  ;;  %v34199_v38 = vpop.f32.mrb[79].mxu0  ;;  %v15572_v16 = vld [vmem:[%s36472_s5 + $0x68] sm:$0xff]  ;;  %v34260_v24 = vsub.f32 %v15568_v26, %v15607_v2  ;;  %v34303_v26 = vsub.f32 %v15569_v51, %v16152_v1  ;;  %v15704_v17 = vsub.f32 %v34221_v13, %v37030_v55  ;;  %v16235_v51 = vsub.f32 %v34291_v22, %v37033_v14 }
 0xe4c   : > { %25796 = vmatprep.mubr.f32.mxu1 %v37871_v48  ;;  %v15567_v48 = vld [vmem:[%s36472_s5 + $0x40] sm:$0xff]  ;;  %v15611_v44 = vand.u32 4294901760, %v15572_v16 }
 0xe4d   : > { %v15609_v52 = vand.u32 4294901760, %v15567_v48  ;;  %v15709_v25 = vand.u32 4294901760, %v34260_v24 }
 0xe4e   : > { %v34258_v37 = vpack.c.bf16 %v15611_v44, %v15607_v2  ;;  %v34262_v19 = vsub.f32 %v15572_v16, %v15611_v44  ;;  %v34306_v16 = vsub.f32 %v15573_v0, %v16156_v27  ;;  %v37034_v2 = vand.u32 4294901760, %v34247_v36 }
 0xe4f   : > { %25797 = vmatmul.mubr.f32.gmra.mrb[78].mxu1 %v37872_v11  ;;  %v34234_v11 = vsub.f32 %v15560_v12, %v15599_v18  ;;  %v34264_v28 = vsub.f32 %v15567_v48, %v15609_v52  ;;  %v34275_v49 = vpack.c.bf16 %v15613_v63, %v15609_v52  ;;  %v34293_v18 = vsub.f32 %v15565_v59, %v16148_v29 }
 0xe50   : > { %16214 = vmatprep.mubr.f32.mxu1 %v37027_v61  ;;  %37905 = vst [vmem:[#allocation66_spill] sm:$0xff] %v34258_v37  ;;  %27568 = vmatprep.subr.bf16.mxu0 %v34258_v37  ;;  %v37032_v44 = vand.u32 4294901760, %v34281_v47  ;;  %v37029_v52 = vand.u32 4294901760, %v34217_v20  ;;  %v15698_v6 = vsub.f32 %v34247_v36, %v37034_v2  ;;  %v16241_v59 = vsub.f32 %v34284_v45, %v37031_v56 }
 0xe51   : > { %37906 = vst [vmem:[#allocation63_spill] sm:$0xff] %v34275_v49  ;;  %27570 = vmatpush1.bf16.msra.mxu0 %v34275_v49  ;;  %v37035_v12 = vand.u32 4294901760, %v34234_v11  ;;  %v16246_v62 = vand.u32 4294901760, %v34293_v18  ;;  %v15705_v27 = vand.u32 4294901760, %v15704_v17  ;;  %v15710_v55 = vsub.f32 %v34260_v24, %v15709_v25 }
 0xe52   : > { %v16229_v7 = vsub.f32 %v34281_v47, %v37032_v44  ;;  %v15692_v39 = vsub.f32 %v34217_v20, %v37029_v52  ;;  %v15699_v0 = vand.u32 4294901760, %v15698_v6  ;;  %v16242_v57 = vand.u32 4294901760, %v16241_v59 }
 0xe53   : > { %v15686_v48 = vsub.f32 %v34234_v11, %v37035_v12  ;;  %v16247_v29 = vsub.f32 %v34293_v18, %v16246_v62  ;;  %v15721_v56 = vand.u32 4294901760, %v34262_v19  ;;  %v16252_v6 = vand.u32 4294901760, %v34295_v53 }
 0xe54   : > { %v16230_v21 = vand.u32 4294901760, %v16229_v7  ;;  %v15693_v1 = vand.u32 4294901760, %v15692_v39  ;;  %v16264_v7 = vand.u32 4294901760, %v34299_v35  ;;  %v15711_v59 = vand.u32 4294901760, %v15710_v55 }
 0xe55   : > { %v15687_v63 = vand.u32 4294901760, %v15686_v48  ;;  %v16236_v48 = vand.u32 4294901760, %v16235_v51  ;;  %v16248_v52 = vand.u32 4294901760, %v16247_v29  ;;  %v15722_v39 = vsub.f32 %v34262_v19, %v15721_v56 }
 0xe56   : > { %v27619_v44 = vpack.c.bf16 %v16242_v57, %v16230_v21  ;;  %v34342_v14 = vpack.c.bf16 %v15705_v27, %v15693_v1  ;;  %v16253_v17 = vsub.f32 %v34295_v53, %v16252_v6  ;;  %v16265_v51 = vsub.f32 %v34299_v35, %v16264_v7 }
 0xe57   : > { %v27571_v61 = vpack.c.bf16 %v15699_v0, %v15687_v63  ;;  %v34346_v2 = vpack.c.bf16 %v16248_v52, %v16236_v48  ;;  %v15715_v63 = vand.u32 4294901760, %v34264_v28  ;;  %v15727_v0 = vand.u32 4294901760, %v34277_v9 }
 0xe58   : > { %27620 = vmatprep.subr.bf16.mxu1 %v27619_v44  ;;  %v16258_v21 = vand.u32 4294901760, %v34303_v26  ;;  %v15723_v29 = vand.u32 4294901760, %v15722_v39  ;;  %v16254_v55 = vand.u32 4294901760, %v16253_v17  ;;  %v16266_v1 = vand.u32 4294901760, %v16265_v51 }
 0xe59   : > { %27572 = vmatprep.subr.bf16.mxu0 %v27571_v61  ;;  %v15716_v57 = vsub.f32 %v34264_v28, %v15715_v63  ;;  %v16270_v61 = vand.u32 4294901760, %v34306_v16  ;;  %v15728_v44 = vsub.f32 %v34277_v9, %v15727_v0 }
 0xe5a   : > { %v16259_v27 = vsub.f32 %v34303_v26, %v16258_v21  ;;  %v34360_v48 = vpack.c.bf16 %v15723_v29, %v15711_v59  ;;  %v34365_v49 = vpack.c.bf16 %v16266_v1, %v16254_v55  ;;  %v37913_v59 = vand.u32 4294901760, %v34281_v47 }
 0xe5b   : > { %v15717_v12 = vand.u32 4294901760, %v15716_v57  ;;  %v16271_v46 = vsub.f32 %v34306_v16, %v16270_v61  ;;  %v15729_v5 = vand.u32 4294901760, %v15728_v44  ;;  %v37914_v29 = vand.u32 4294901760, %v34284_v45 }
 0xe5c   : > { %v16260_v37 = vand.u32 4294901760, %v16259_v27  ;;  %v37911_v27 = vand.u32 4294901760, %v34247_v36  ;;  %v37917_v55 = vand.u32 4294901760, %v34221_v13  ;;  %v34405_v1 = vpack.c.bf16 %v15721_v56, %v15709_v25 }
 0xe5d   : > { %v16272_v51 = vand.u32 4294901760, %v16271_v46  ;;  %v34375_v57 = vpack.c.bf16 %v15729_v5, %v15717_v12  ;;  %v37910_v46 = vand.u32 4294901760, %v34234_v11  ;;  %v34393_v12 = vpack.c.bf16 %v37914_v29, %v37913_v59  ;;  %v34416_v59 = vld [vmem:[%s36471_s4 + $0x98] ss:$0 sm:$0xff] }
 0xe5e   : > { %v37916_v5 = vand.u32 4294901760, %v34217_v20  ;;  %37921 = vst [vmem:[#allocation132_spill] sm:$0xff] %v34405_v1  ;;  %v34411_v39 = vpack.c.bf16 %v16270_v61, %v16258_v21 }
 0xe5f   : > { %v34381_v44 = vpack.c.bf16 %v16272_v51, %v16260_v37  ;;  %v34387_v52 = vpack.c.bf16 %v37911_v27, %v37910_v46  ;;  %37915 = vst [vmem:[#allocation111_spill] sm:$0xff] %v34393_v12  ;;  %v37919_v37 = vand.u32 4294901760, %v34291_v22  ;;  %v34407_v46 = vpack.c.bf16 %v16264_v7, %v16252_v6 }
 0xe60   : > { %v34399_v17 = vpack.c.bf16 %v37917_v55, %v37916_v5  ;;  %v34409_v27 = vpack.c.bf16 %v15727_v0, %v15715_v63  ;;  %37924 = vst [vmem:[#allocation85_spill] sm:$0xff] %v34411_v39 }
 0xe61   : > { %37912 = vst [vmem:[#allocation104_spill] sm:$0xff] %v34387_v52  ;;  %v34403_v51 = vpack.c.bf16 %v16246_v62, %v37919_v37  ;;  %37922 = vst [vmem:[#allocation11_spill] sm:$0xff] %v34407_v46 }
 0xe62   : > { %37918 = vst [vmem:[#allocation118_spill] sm:$0xff] %v34399_v17  ;;  %37923 = vst [vmem:[#allocation86_spill] sm:$0xff] %v34409_v27 }
 0xe63   : > { %37920 = vst [vmem:[#allocation128_spill] sm:$0xff] %v34403_v51 }
 0xf06   : > { %v25777_v29 = vpop.f32.mrb[64].mxu1 }
 0xf07   : > { %v15412_v55 = vsub.f32 %v25777_v29, %v34153_v32  ;;  %v14139_v5 = vpop.f32.mrb[65].mxu1 }
 0xf08   : > { %v15411_v62 = vsub.f32 %v14139_v5, %v34156_v60 }
 0xf09   : > { %v15432_v56 = vadd.f32 %v34416_v59, %v15412_v55 }
 0xf0a   : > { %v15431_v25 = vadd.f32 %v34416_v59, %v15411_v62  ;;  %v25780_v6 = vpop.f32.mrb[66].mxu1 }
 0xf0b   : > { %v15454_v7 = vsel %vm7890_vm0, %v15432_v56, -inf  ;;  %v15414_v63 = vsub.f32 %v25780_v6, %v34160_v54  ;;  %v14151_v0 = vpop.f32.mrb[67].mxu1 }
 0xf0c   : > { %v15455_v21 = vrot.slane %v15454_v7, 4  ;;  %v15447_v61 = vsel %vm7890_vm0, %v15431_v25, -inf  ;;  %v15413_v37 = vsub.f32 %v14151_v0, %v34163_v43 }
 0xf0d   : > { %v15448_v39 = vrot.slane %v15447_v61, 4  ;;  %v15434_v32 = vadd.f32 %v34416_v59, %v15414_v63 }
 0xf0e   : > { %v15456_v29 = vmax.f32 %v15454_v7, %v15455_v21  ;;  %v15433_v60 = vadd.f32 %v34416_v59, %v15413_v37  ;;  %v25783_v55 = vpop.f32.mrb[68].mxu1 }
 0xf0f   : > { %v15449_v5 = vmax.f32 %v15447_v61, %v15448_v39  ;;  %v15468_v62 = vsel %vm7890_vm0, %v15434_v32, -inf  ;;  %v15416_v56 = vsub.f32 %v25783_v55, %v34166_v8  ;;  %v14163_v27 = vpop.f32.mrb[69].mxu1 }
 0xf10   : > { %v15457_v54 = vrot.slane %v15456_v29, 2  ;;  %v15469_v6 = vrot.slane %v15468_v62, 4  ;;  %v15461_v46 = vsel %vm7890_vm0, %v15433_v60, -inf  ;;  %v15415_v25 = vsub.f32 %v14163_v27, %v34169_v40 }
 0xf11   : > { %v15450_v43 = vrot.slane %v15449_v5, 2  ;;  %v15462_v0 = vrot.slane %v15461_v46, 4  ;;  %v15436_v63 = vadd.f32 %v34416_v59, %v15416_v56 }
 0xf12   : > { %v15458_v7 = vmax.f32 %v15456_v29, %v15457_v54  ;;  %v15470_v21 = vmax.f32 %v15468_v62, %v15469_v6  ;;  %v15435_v39 = vadd.f32 %v34416_v59, %v15415_v25  ;;  %v25786_v61 = vpop.f32.mrb[70].mxu1 }
 0xf13   : > { %v15451_v37 = vmax.f32 %v15449_v5, %v15450_v43  ;;  %v15463_v32 = vmax.f32 %v15461_v46, %v15462_v0  ;;  %v15482_v8 = vsel %vm7890_vm0, %v15436_v63, -inf  ;;  %v15418_v55 = vsub.f32 %v25786_v61, %v34172_v10  ;;  %v14175_v1 = vpop.f32.mrb[71].mxu1 }
 0xf14   : > { %v15459_v60 = vrot.slane %v15458_v7, 1  ;;  %v15471_v51 = vrot.slane %v15470_v21, 2  ;;  %v15483_v40 = vrot.slane %v15482_v8, 4  ;;  %v15475_v27 = vsel %vm7890_vm0, %v15435_v39, -inf }
 0xf15   : > { %v15452_v17 = vrot.slane %v15451_v37, 1  ;;  %v15464_v56 = vrot.slane %v15463_v32, 2  ;;  %v15476_v29 = vrot.slane %v15475_v27, 4  ;;  %v15438_v62 = vadd.f32 %v34416_v59, %v15418_v55 }
 0xf16   : > { %v15460_v54 = vmax.f32 %v15458_v7, %v15459_v60  ;;  %v15472_v6 = vmax.f32 %v15470_v21, %v15471_v51  ;;  %v15484_v25 = vmax.f32 %v15482_v8, %v15483_v40  ;;  %v15417_v46 = vsub.f32 %v14175_v1, %v34175_v42  ;;  %v25789_v5 = vpop.f32.mrb[72].mxu1 }
 0xf17   : > { %v15453_v43 = vmax.f32 %v15451_v37, %v15452_v17  ;;  %v15465_v0 = vmax.f32 %v15463_v32, %v15464_v56  ;;  %v15477_v10 = vmax.f32 %v15475_v27, %v15476_v29  ;;  %v15496_v63 = vsel %vm7890_vm0, %v15438_v62, -inf  ;;  %v14187_v61 = vpop.f32.mrb[73].mxu1 }
 0xf18   : > { %v15485_v12 = vrot.slane %v15484_v25, 2  ;;  %v15497_v39 = vrot.slane %v15496_v63, 4  ;;  %v15437_v52 = vadd.f32 %v34416_v59, %v15417_v46  ;;  %v15420_v51 = vsub.f32 %v25789_v5, %v34178_v30 }
 0xf19   : > { %v16693_v23 = vsel %vm15583_vm2, %v15460_v54, %v15453_v43  ;;  %v15466_v55 = vrot.slane %v15465_v0, 1  ;;  %v15478_v7 = vrot.slane %v15477_v10, 2  ;;  %v15473_v21 = vrot.slane %v15472_v6, 1 }
 0xf1a   : > { %v34443_v42 = vmax.f32 %v15484_v25, %v15485_v12  ;;  %v15498_v17 = vmax.f32 %v15496_v63, %v15497_v39  ;;  %v15489_v1 = vsel %vm7890_vm0, %v15437_v52, -inf  ;;  %v25792_v37 = vpop.f32.mrb[74].mxu1  ;;  %v15440_v40 = vadd.f32 %v34416_v59, %v15420_v51 }
 0xf1b   : > { %v15467_v32 = vmax.f32 %v15465_v0, %v15466_v55  ;;  %v15479_v8 = vmax.f32 %v15477_v10, %v15478_v7  ;;  %v15490_v60 = vrot.slane %v15489_v1, 4  ;;  %v14199_v27 = vpop.f32.mrb[75].mxu1  ;;  %v15419_v29 = vsub.f32 %v14187_v61, %v34181_v41 }
 0xf1c   : > { %v15499_v56 = vrot.slane %v15498_v17, 2  ;;  %v15422_v62 = vsub.f32 %v25792_v37, %v34184_v33  ;;  %v15510_v25 = vsel %vm7890_vm0, %v15440_v40, -inf  ;;  %v15474_v52 = vmax.f32 %v15472_v6, %v15473_v21 }
 0xf1d   : > { %v34450_v30 = vsel %vm15585_vm3, %v15467_v32, %v16693_v23  ;;  %v15480_v12 = vrot.slane %v15479_v8, 1  ;;  %v15491_v54 = vmax.f32 %v15489_v1, %v15490_v60  ;;  %v15511_v5 = vrot.slane %v15510_v25, 4 }
 0xf1e   : > { %v34453_v46 = vmax.f32 %v15498_v17, %v15499_v56  ;;  %v15439_v43 = vadd.f32 %v34416_v59, %v15419_v29  ;;  %v25795_v0 = vpop.f32.mrb[76].mxu1  ;;  %v15487_v10 = vrot.slane %v34443_v42, 1  ;;  %v15442_v41 = vadd.f32 %v34416_v59, %v15422_v62 }
 0xf1f   : > { %v15492_v63 = vrot.slane %v15491_v54, 2  ;;  %v15421_v33 = vsub.f32 %v14199_v27, %v34187_v31  ;;  %v14211_v23 = vpop.f32.mrb[77].mxu1  ;;  %v15481_v61 = vmax.f32 %v15479_v8, %v15480_v12  ;;  %v15512_v39 = vmax.f32 %v15510_v25, %v15511_v5 }
 0xf20   : > { %v15503_v55 = vsel %vm7890_vm0, %v15439_v43, -inf  ;;  %v15424_v6 = vsub.f32 %v25795_v0, %v34190_v34  ;;  %v15524_v21 = vsel %vm7890_vm0, %v15442_v41, -inf  ;;  %v15501_v1 = vrot.slane %v34453_v46, 1 }
 0xf21   : > { %v15493_v7 = vmax.f32 %v15491_v54, %v15492_v63  ;;  %v15504_v51 = vrot.slane %v15503_v55, 4  ;;  %v15441_v17 = vadd.f32 %v34416_v59, %v15421_v33  ;;  %v15513_v37 = vrot.slane %v15512_v39, 2 }
 0xf22   : > { %v15525_v32 = vrot.slane %v15524_v21, 4  ;;  %v15444_v31 = vadd.f32 %v34416_v59, %v15424_v6  ;;  %v25798_v60 = vpop.f32.mrb[78].mxu1  ;;  %v15423_v34 = vsub.f32 %v14211_v23, %v34193_v3 }
 0xf23   : > { %v15494_v8 = vrot.slane %v15493_v7, 1  ;;  %v15505_v40 = vmax.f32 %v15503_v55, %v15504_v51  ;;  %v15517_v27 = vsel %vm7890_vm0, %v15441_v17, -inf  ;;  %v14223_v56 = vpop.f32.mrb[79].mxu1  ;;  %v15514_v29 = vmax.f32 %v15512_v39, %v15513_v37 }
 0xf24   : > { %v15526_v62 = vmax.f32 %v15524_v21, %v15525_v32  ;;  %v15518_v12 = vrot.slane %v15517_v27, 4  ;;  %v15538_v54 = vsel %vm7890_vm0, %v15444_v31, -inf  ;;  %v15443_v0 = vadd.f32 %v34416_v59, %v15423_v34 }
 0xf25   : > { %v15495_v25 = vmax.f32 %v15493_v7, %v15494_v8  ;;  %v15506_v5 = vrot.slane %v15505_v40, 2  ;;  %v15539_v43 = vrot.slane %v15538_v54, 4  ;;  %v15515_v63 = vrot.slane %v15514_v29, 1 }
 0xf26   : > { %v15527_v41 = vrot.slane %v15526_v62, 2  ;;  %v15519_v33 = vmax.f32 %v15517_v27, %v15518_v12  ;;  %v15426_v55 = vsub.f32 %v25798_v60, %v34196_v4  ;;  %v15531_v39 = vsel %vm7890_vm0, %v15443_v0, -inf }
 0xf27   : > { %v15507_v3 = vmax.f32 %v15505_v40, %v15506_v5  ;;  %v15540_v23 = vmax.f32 %v15538_v54, %v15539_v43  ;;  %v15425_v6 = vsub.f32 %v14223_v56, %v34199_v38  ;;  %v15516_v51 = vmax.f32 %v15514_v29, %v15515_v63 }
 0xf28   : > { %v15528_v21 = vmax.f32 %v15526_v62, %v15527_v41  ;;  %v15520_v17 = vrot.slane %v15519_v33, 2  ;;  %v15532_v7 = vrot.slane %v15531_v39, 4  ;;  %v15446_v31 = vadd.f32 %v34416_v59, %v15426_v55 }
 0xf29   : > { %v15508_v37 = vrot.slane %v15507_v3, 1  ;;  %v15541_v32 = vrot.slane %v15540_v23, 2  ;;  %v15445_v8 = vadd.f32 %v34416_v59, %v15425_v6  ;;  %v16695_v4 = vsel %vm15587_vm4, %v15474_v52, %v34450_v30 }
 0xf2a   : > { %v15529_v34 = vrot.slane %v15528_v21, 1  ;;  %v15521_v27 = vmax.f32 %v15519_v33, %v15520_v17  ;;  %v15533_v12 = vmax.f32 %v15531_v39, %v15532_v7  ;;  %v15552_v38 = vsel %vm7890_vm0, %v15446_v31, -inf }
 0xf2b   : > { %v15509_v60 = vmax.f32 %v15507_v3, %v15508_v37  ;;  %v15542_v40 = vmax.f32 %v15540_v23, %v15541_v32  ;;  %v15545_v56 = vsel %vm7890_vm0, %v15445_v8, -inf  ;;  %v15488_v29 = vmax.f32 %v34443_v42, %v15487_v10 }
 0xf2c   : > { %v15522_v62 = vrot.slane %v15521_v27, 1  ;;  %v15534_v54 = vrot.slane %v15533_v12, 2  ;;  %v15553_v5 = vrot.slane %v15552_v38, 4  ;;  %v15502_v43 = vmax.f32 %v34453_v46, %v15501_v1 }
 0xf2d   : > { %v15584_v59 = vsel %vm15583_vm2, %v15516_v51, %v15509_v60  ;;  %v15546_v0 = vrot.slane %v15545_v56, 4  ;;  %v16696_v63 = vsel %vm15589_vm5, %v15481_v61, %v16695_v4  ;;  %v15530_v55 = vmax.f32 %v15528_v21, %v15529_v34 }
 0xf2e   : > { %v15523_v41 = vmax.f32 %v15521_v27, %v15522_v62  ;;  %v15535_v30 = vmax.f32 %v15533_v12, %v15534_v54  ;;  %v15554_v52 = vmax.f32 %v15552_v38, %v15553_v5  ;;  %v16697_v33 = vsel %vm15591_vm6, %v15488_v29, %v16696_v63  ;;  %v37939_v5 = vld [vmem:[#allocation104_spill] sm:$0xff] }
 0xf2f   : > { %v15543_v3 = vrot.slane %v15542_v40, 1  ;;  %v15547_v23 = vmax.f32 %v15545_v56, %v15546_v0  ;;  %v16698_v42 = vsel %vm15593_vm7, %v15495_v25, %v16697_v33  ;;  %v37925_v62 = vmov 0.0   ;;  %v37942_v0 = vld [vmem:[#allocation128_spill] sm:$0xff] }
 0xf30   : > { %v15586_v10 = vsel %vm15585_vm3, %v15523_v41, %v15584_v59  ;;  %v15536_v39 = vrot.slane %v15535_v30, 1  ;;  %v15555_v6 = vrot.slane %v15554_v52, 2  ;;  %v34486_v46 = vsel %vm15595_vm8, %v15502_v43, %v16698_v42  ;;  %v37940_v43 = vld [vmem:[#allocation111_spill] sm:$0xff]  ;;  %v37941_v59 = vld [vmem:[#allocation118_spill] sm:$0xff]  ;;  %v37943_v33 = vld [vmem:[#allocation132_spill] sm:$0xff] }
 0xf31   : > { %v15588_v1 = vsel %vm15587_vm4, %v15530_v55, %v15586_v10  ;;  %v15548_v61 = vrot.slane %v15547_v23, 2  ;;  %16704 = vrot.lane.b32.xlu1 %v34486_v46, %s29461_s9  ;;  %16701 = vrot.lane.b32.xlu0 %v34486_v46, %s29462_s15  ;;  %v15544_v17 = vmax.f32 %v15542_v40, %v15543_v3  ;;  %v37926_v54 = vpack.c.bf16 %v34247_v36, %v34234_v11  ;;  %v37944_v55 = vld [vmem:[#allocation11_spill] sm:$0xff]  ;;  %v37945_v3 = vld [vmem:[#allocation86_spill] sm:$0xff]  ;;  %s36425_s9 = scalar_lea.hbm %s36474_s7, %s20544_s21  ;;  %s29396_s15 = scalar_lea.vmem %s36427_s23, 32 }
 0xf32   : > { %v15537_v51 = vmax.f32 %v15535_v30, %v15536_v39  ;;  %v15556_v21 = vmax.f32 %v15554_v52, %v15555_v6  ;;  %v37930_v11 = vpack.c.bf16 %v34262_v19, %v34260_v24  ;;  %v37931_v36 = vpack.c.bf16 %v34299_v35, %v34295_v53  ;;  %v16787_v24 = vld [vmem:[%s36473_s6 + $0x20] sm:$0xff]  ;;  %v16788_v19 = vld [vmem:[%s36473_s6 + $0x28] sm:$0xff]  ;;  %v16790_v53 = vld [vmem:[%s36473_s6 + $0x38] sm:$0xff]  ;;  %p29397_p11 = scmp.ne.s32.totalorder %s36427_s23, %s29396_s15 }
 0xf33   : > { %v15549_v25 = vmax.f32 %v15547_v23, %v15548_v61  ;;  %v37937_v35 = vld [vmem:[#allocation63_spill] sm:$0xff]  ;;  %v37946_v23 = vld [vmem:[#allocation85_spill] sm:$0xff] }
 0xf34   : > { %v15590_v7 = vsel %vm15589_vm5, %v15537_v51, %v15588_v1  ;;  %v15557_v37 = vrot.slane %v15556_v21, 1  ;;  %p29398_p12 = pnand %p29397_p11, %p29545_p5 }
 0xf35   : > { %v15550_v32 = vrot.slane %v15549_v25, 1  ;;  %v15592_v31 = vsel %vm15591_vm6, %v15544_v17, %v15590_v7  ;;  %16707 = vrot.lane.b32.xlu1 %v34486_v46, %s29463_s17  ;;  %v34626_v7 = vld [vmem:[%s36473_s6] sm:$0xff]  ;;  %s29400_s17 = sshll.u32 %s29466_s28, 4  ;;  %s29401_s17 = int_to_ptr.vmem [resolvable:$false] %s29400_s17 }
 0xf36   : > { %v15558_v34 = vmax.f32 %v15556_v21, %v15557_v37  ;;  %v34631_v37 = vld [vmem:[%s36473_s6 + $0x8] sm:$0xff]  ;;  %p29399_p13 = pneg %p29398_p12  ;;  %s29402_s18 = scalar_lea.vmem %s29401_s17, 64 }
 0xf37   : > { %v15551_v8 = vmax.f32 %v15549_v25, %v15550_v32  ;;  %v37068_v25 = vmov 0.0|0.0   ;;  %p29403_p0 = scmp.lt.s32.totalorder %s36427_s23, %s29401_s17  ;;  %p29404_p1 = scmp.lt.s32.totalorder %s29402_s18, %s29396_s15 }
 0xf39   : > { %v15594_v27 = vsel %vm15593_vm7, %v15551_v8, %v15592_v31  ;;  %v17279_v8 = vand.u32 4294901760, %v34626_v7  ;;  %p29405_p2 = por %p29404_p1, %p29403_p0 }
 0xf3a   : > { %v15596_v12 = vsel %vm15595_vm8, %v15558_v34, %v15594_v27  ;;  %v17282_v34 = vand.u32 4294901760, %v34631_v37  ;;  %v34645_v27 = vld [vmem:[%s36473_s6 + $0x10] sm:$0xff] }
 0xf3b   : > { %v15597_v4 = vsel %vm7890_vm0, %v15596_v12, 0  ;;  %v34650_v12 = vld [vmem:[%s36473_s6 + $0x18] sm:$0xff]  ;;  %p29406_p3 = pnand %p29405_p2, %p29399_p13 }
 0xf3c   : > { %v34497_v60 = vand.u32 4294901760, %v15597_v4 }
 0xf3e   : > { %v34500_v40 = vsub.f32 %v15597_v4, %v34497_v60 }
 0xf40   : > { %v34503_v38 = vand.u32 4294901760, %v34500_v40 }
 0xf42   : > { %v15675_v56 = vsub.f32 %v34500_v40, %v34503_v38 }
 0xf44   : > { %v34507_v29 = vand.u32 4294901760, %v15675_v56  ;;  %v34662_v56 = vsub.f32 %v34626_v7, %v17279_v8 }
 0xf46   : > { %15677 = vmatmul.mubr.f32.vlgmr.msra.gmra.mrb[80].mxu0 %v34507_v29  ;;  %16220 = vmatmul.mubr.f32.vlgmr.msra.gmra.mrb[80].mxu1 %v34507_v29 }
 0xf47   : > { %27574 = vmatpush1.bf16.msra.mxu0 %v34342_v14  ;;  %27622 = vmatpush1.bf16.msra.mxu1 %v34346_v2  ;;  %v37927_v14 = vpack.c.bf16 %v34284_v45, %v34281_v47  ;;  %v37929_v2 = vpack.c.bf16 %v34293_v18, %v34291_v22  ;;  %v16795_v47 = vand.u32 4294901760, %v16788_v19  ;;  %v37935_v45 = vld [vmem:[#allocation66_spill] sm:$0xff]  ;;  %v37936_v22 = vld [vmem:[#allocation9_spill] sm:$0xff] }
 0xf48   : > { %27576 = vmatprep.subr.bf16.mxu0 %v34360_v48  ;;  %27624 = vmatprep.subr.bf16.mxu1 %v34365_v49  ;;  %v37928_v49 = vpack.c.bf16 %v34221_v13, %v34217_v20  ;;  %v37932_v20 = vpack.c.bf16 %v34277_v9, %v34264_v28  ;;  %v37933_v13 = vpack.c.bf16 %v34306_v16, %v34303_v26  ;;  %v37934_v28 = vld [vmem:[#allocation72_spill] sm:$0xff]  ;;  %v16792_v9 = vand.u32 4294901760, %v16787_v24  ;;  %v16789_v18 = vld [vmem:[%s36473_s6 + $0x30] sm:$0xff]  ;;  %v37938_v26 = vld [vmem:[#allocation77_spill] sm:$0xff] }
 0xf49   : > { %15787 = vmatprep.mubr.f32.mxu0 %v37925_v62  ;;  %16330 = vmatprep.mubr.f32.mxu1 %v37925_v62  ;;  %v34573_v48 = vsub.f32 %v16788_v19, %v16795_v47  ;;  %v34700_v19 = vld [vmem:[%s36473_s6 + $0xf8] sm:$0xff] }
 0xf4a   : > { %v34571_v16 = vsub.f32 %v16787_v24, %v16792_v9 }
 0xf4b   : > { %27578 = vmatpush1.bf16.msra.mxu0 %v34375_v57  ;;  %27626 = vmatpush1.bf16.msra.mxu1 %v34381_v44  ;;  %v16798_v57 = vand.u32 4294901760, %v16789_v18  ;;  %v16801_v44 = vand.u32 4294901760, %v16790_v53  ;;  %v16880_v41 = vand.u32 4294901760, %v34573_v48 }
 0xf4c   : > { %27580 = vmatprep.subr.bf16.mxu0 %v37926_v54  ;;  %27628 = vmatprep.subr.bf16.mxu1 %v37927_v14  ;;  %v16873_v63 = vand.u32 4294901760, %v34571_v16  ;;  %v27672_v4 = vpack.c.bf16 %v34573_v48, %v34571_v16  ;;  %v34667_v54 = vsub.f32 %v34631_v37, %v17282_v34  ;;  %v17285_v14 = vand.u32 4294901760, %v34645_v27 }
 0xf4d   : > { %v34583_v30 = vsub.f32 %v16789_v18, %v16798_v57  ;;  %v34585_v52 = vsub.f32 %v16790_v53, %v16801_v44  ;;  %v16881_v10 = vsub.f32 %v34573_v48, %v16880_v41  ;;  %v34636_v32 = vpack.c.bf16 %v16801_v44, %v16798_v57 }
 0xf4e   : > { %15789 = vmatmul.mubr.f32.vlgmr.msra.gmra.mrb[80].mxu0 %v34497_v60  ;;  %16332 = vmatmul.mubr.f32.vlgmr.msra.gmra.mrb[80].mxu1 %v34497_v60  ;;  %v16874_v42 = vsub.f32 %v34571_v16, %v16873_v63  ;;  %v17815_v18 = vand.u32 4294901760, %v34700_v19 }
 0xf4f   : > { %27582 = vmatpush1.bf16.msra.mxu0 %v37928_v49  ;;  %27630 = vmatpush1.bf16.msra.mxu1 %v37929_v2  ;;  %v16887_v39 = vand.u32 4294901760, %v34583_v30  ;;  %v16894_v6 = vand.u32 4294901760, %v34585_v52  ;;  %v16882_v61 = vand.u32 4294901760, %v16881_v10  ;;  %v17288_v49 = vand.u32 4294901760, %v34650_v12 }
 0xf50   : > { %27584 = vmatprep.subr.bf16.mxu0 %v37930_v11  ;;  %27632 = vmatprep.subr.bf16.mxu1 %v37931_v36  ;;  %v16875_v1 = vand.u32 4294901760, %v16874_v42  ;;  %v17276_v2 = vsel %vm7890_vm0, %v34486_v46, 0  ;;  %v27675_v11 = vpack.c.bf16 %v34585_v52, %v34583_v30  ;;  %v34682_v36 = vld [vmem:[%s36473_s6 + $0xf0] sm:$0xff]  ;;  %v34797_v42 = vld [vmem:[%s36473_s6 + $0x88] sm:$0xff] }
 0xf51   : > { %15875 = vmatprep.mubr.f32.mxu0 %v37925_v62  ;;  %16418 = vmatprep.mubr.f32.mxu1 %v37925_v62  ;;  %v16888_v51 = vsub.f32 %v34583_v30, %v16887_v39  ;;  %v34695_v24 = vsub.f32 %v34650_v12, %v17288_v49  ;;  %v37051_v7 = vand.u32 4294901760, %v34797_v42 }
 0xf53   : > { %27586 = vmatpush1.bf16.msra.mxu0 %v37932_v20  ;;  %27634 = vmatpush1.bf16.msra.mxu1 %v37933_v13  ;;  %v16889_v21 = vand.u32 4294901760, %v16888_v51  ;;  %v17360_v20 = vand.u32 4294901760, %v34662_v56  ;;  %v17367_v13 = vand.u32 4294901760, %v34667_v54  ;;  %v17381_v48 = vand.u32 4294901760, %v34695_v24 }
 0xf54   : > { %27588 = vmatprep.subr.bf16.mxu0 %v34215_v15  ;;  %27636 = vmatprep.subr.bf16.mxu1 %v34279_v50 }
 0xf56   : > { %15878 = vmatmul.mubr.f32.vlgmr.msra.gmra.mrb[80].mxu0 %v34500_v40  ;;  %16421 = vmatmul.mubr.f32.vlgmr.msra.gmra.mrb[80].mxu1 %v34500_v40 }
 0xf57   : > { %27590 = vmatpush1.bf16.msra.mxu0 %v34219_v58  ;;  %27638 = vmatpush1.bf16.msra.mxu1 %v37934_v28 }
 0xf58   : > { %27592 = vmatprep.subr.bf16.mxu0 %v37935_v45  ;;  %27640 = vmatprep.subr.bf16.mxu1 %v37936_v22 }
 0xf59   : > { %15956 = vmatprep.mubr.f32.mxu0 %v37925_v62  ;;  %16499 = vmatprep.mubr.f32.mxu1 %v37925_v62 }
 0xf5b   : > { %27594 = vmatpush1.bf16.msra.mxu0 %v37937_v35  ;;  %27642 = vmatpush1.bf16.msra.mxu1 %v37938_v26 }
 0xf5c   : > { %27596 = vmatprep.subr.bf16.mxu0 %v37939_v5  ;;  %27644 = vmatprep.subr.bf16.mxu1 %v37940_v43  ;;  %v34750_v43 = vld [vmem:[%s36473_s6 + $0x100] sm:$0xff] }
 0xf5e   : > { %15960 = vmatmul.mubr.f32.vlgmr.msra.gmra.mrb[80].mxu0 %v34503_v38  ;;  %16503 = vmatmul.mubr.f32.vlgmr.msra.gmra.mrb[80].mxu1 %v34503_v38 }
 0xf5f   : > { %27598 = vmatpush1.bf16.msra.mxu0 %v37941_v59  ;;  %27646 = vmatpush1.bf16.msra.mxu1 %v37942_v0  ;;  %v34755_v59 = vld [vmem:[%s36473_s6 + $0x108] sm:$0xff]  ;;  %v27687_v0 = vpack.c.bf16 %v16894_v6, %v16887_v39 }
 0xf60   : > { %27600 = vmatprep.subr.bf16.mxu0 %v37943_v33  ;;  %27648 = vmatprep.subr.bf16.mxu1 %v37944_v55  ;;  %v34783_v33 = vld [vmem:[%s36473_s6 + $0x80] sm:$0xff] }
 0xf61   : > { %16054 = vmatprep.mubr.f32.mxu0 %v37925_v62  ;;  %16597 = vmatprep.mubr.f32.mxu1 %v37925_v62 }
 0xf63   : > { %27602 = vmatpush1.bf16.msra.mxu0 %v37945_v3  ;;  %27650 = vmatpush1.bf16.msra.mxu1 %v37946_v23  ;;  %v17818_v3 = vand.u32 4294901760, %v34750_v43  ;;  %v37057_v23 = vand.u32 4294901760, %v34755_v59 }
 0xf64   : > { %27604 = vmatprep.subr.bf16.mxu0 %v34215_v15  ;;  %27652 = vmatprep.subr.bf16.mxu1 %v34279_v50  ;;  %v16895_v15 = vsub.f32 %v34585_v52, %v16894_v6  ;;  %v27666_v50 = vpack.c.bf16 %v16882_v61, %v16875_v1  ;;  %v17382_v52 = vsub.f32 %v34695_v24, %v17381_v48  ;;  %v34808_v6 = vld [vmem:[%s36473_s6 + $0x110] sm:$0xff] }
 0xf65   : > { %v34814_v1 = vpack.c.bf16 %v17282_v34, %v17279_v8  ;;  %v37050_v8 = vand.u32 4294901760, %v34808_v6  ;;  %v34843_v34 = vld [vmem:[%s36473_s6 + $0x90] sm:$0xff] }
 0xf66   : > { %16056 = vmatmul.mubr.f32.vlgmr.msra.gmra.mrb[80].mxu0 %v34497_v60  ;;  %16599 = vmatmul.mubr.f32.vlgmr.msra.gmra.mrb[80].mxu1 %v34497_v60  ;;  %v16896_v17 = vand.u32 4294901760, %v16895_v15  ;;  %v37054_v15 = vand.u32 4294901760, %v34783_v33 }
 0xf67   : > { %27606 = vmatpush1.bf16.msra.mxu0 %v34219_v58  ;;  %27654 = vmatpush1.bf16.msra.mxu1 %v37934_v28  ;;  %v34619_v58 = vpack.c.bf16 %v16795_v47, %v16792_v9  ;;  %v34705_v28 = vld [vmem:[%s36473_s6 + $0x70] sm:$0xff]  ;;  %v34709_v9 = vand.u32 4294901760, %v17276_v2  ;;  %v17812_v47 = vand.u32 4294901760, %v34682_v36 }
 0xf68   : > { %27608 = vmatprep.subr.bf16.mxu0 %v37935_v45  ;;  %27656 = vmatprep.subr.bf16.mxu1 %v37936_v22  ;;  %v27669_v31 = vpack.c.bf16 %v16896_v17, %v16889_v21  ;;  %v34719_v45 = vld [vmem:[%s36473_s6 + $0x78] sm:$0xff]  ;;  %v27684_v22 = vpack.c.bf16 %v16880_v41, %v16873_v63  ;;  %v17764_v53 = vand.u32 4294901760, %v34705_v28  ;;  %v34766_v63 = vsub.f32 %v34700_v19, %v17815_v18 }
 0xf69   : > { %16134 = vmatprep.mubr.f32.mxu0 %v37925_v62  ;;  %16677 = vmatprep.mubr.f32.mxu1 %v37925_v62  ;;  %v17767_v57 = vand.u32 4294901760, %v34719_v45  ;;  %v34740_v44 = vsub.f32 %v17276_v2, %v34709_v9  ;;  %v34745_v5 = vsub.f32 %v34682_v36, %v17812_v47  ;;  %v17383_v17 = vand.u32 4294901760, %v17382_v52 }
 0xf6a   : > { %37948 = vst [vmem:[#allocation87_spill] sm:$0xff] %v34766_v63  ;;  %v34771_v41 = vsub.f32 %v34705_v28, %v17764_v53  ;;  %v37048_v61 = vand.u32 4294901760, %v34766_v63  ;;  %v34854_v2 = vpack.c.bf16 %v17288_v49, %v17285_v14  ;;  %v34894_v52 = vsub.f32 %v34808_v6, %v37050_v8 }
 0xf6b   : > { %27610 = vmatpush1.bf16.msra.mxu0 %v37937_v35  ;;  %27658 = vmatpush1.bf16.msra.mxu1 %v37938_v26  ;;  %v17361_v35 = vsub.f32 %v34662_v56, %v17360_v20  ;;  %v17368_v26 = vsub.f32 %v34667_v54, %v17367_v13  ;;  %37947 = vst [vmem:[#allocation88_spill] sm:$0xff] %v34745_v5  ;;  %v37056_v10 = vand.u32 4294901760, %v34740_v44  ;;  %v37049_v39 = vand.u32 4294901760, %v34745_v5 }
 0xf6c   : > { %27659 = vmatprep.subr.bf16.mxu0 %v37068_v25  ;;  %27665 = vmatprep.subr.bf16.mxu1 %v37068_v25  ;;  %v34790_v55 = vsub.f32 %v34719_v45, %v17767_v57  ;;  %v37047_v51 = vand.u32 4294901760, %v34771_v41  ;;  %v35068_v45 = vld [vmem:[%s36473_s6 + $0x140] sm:$0xff] }
 0xf6e   : > { %16136 = vmatmul.mubr.f32.vlgmr.msra.gmra.mrb[80].mxu0 %v34497_v60  ;;  %16679 = vmatmul.mubr.f32.vlgmr.msra.gmra.mrb[80].mxu1 %v34497_v60  ;;  %v37046_v37 = vand.u32 4294901760, %v34790_v55  ;;  %v17879_v12 = vsub.f32 %v34771_v41, %v37047_v51 }
 0xf6f   : > { %27661 = vmatpush3.bf16.msra.mxu0 %v34619_v58  ;;  %27667 = vmatpush3.bf16.msra.mxu1 %v27666_v50 }
 0xf70   : > { %27662 = vmatprep.subr.bf16.mxu0 %v37068_v25  ;;  %27668 = vmatprep.subr.bf16.mxu1 %v37068_v25 }
 0xf71   : > { %25999 = vmatprep.mubr.msk.f32.mxu0 %vm29465_vm9, %v37925_v62  ;;  %26010 = vmatprep.mubr.msk.f32.mxu1 %vm29465_vm9, %v37925_v62 }
 0xf73   : > { %27664 = vmatpush3.bf16.msra.mxu0 %v34636_v32  ;;  %27670 = vmatpush3.bf16.msra.mxu1 %v27669_v31  ;;  %v34832_v31 = vsub.f32 %v34750_v43, %v17818_v3 }
 0xf74   : > { %27671 = vmatprep.subr.bf16.mxu0 %v37068_v25  ;;  %27677 = vmatprep.subr.bf16.mxu1 %v37068_v25 }
 0xf76   : > { %26000 = vmatmul.mubr.f32.vlgmr.msra.gmra.mrb[82].mxu0 %v34507_v29  ;;  %26011 = vmatmul.mubr.f32.vlgmr.msra.gmra.mrb[82].mxu1 %v34497_v60  ;;  %v34690_v29 = vsub.f32 %v34645_v27, %v17285_v14  ;;  %v17998_v27 = vsub.f32 %v34766_v63, %v37048_v61  ;;  %v34874_v14 = vsub.f32 %v34783_v33, %v37054_v15  ;;  %v37062_v15 = vand.u32 4294901760, %v34894_v52 }
 0xf77   : > { %27673 = vmatpush3.bf16.msra.mxu0 %v27672_v4  ;;  %27679 = vmatpush3.bf16.msra.mxu1 %v34619_v58  ;;  %v34848_v4 = vld [vmem:[%s36473_s6 + $0x98] sm:$0xff] }
 0xf78   : > { %27674 = vmatprep.subr.bf16.mxu0 %v37068_v25  ;;  %27680 = vmatprep.subr.bf16.mxu1 %v37068_v25  ;;  %v17374_v16 = vand.u32 4294901760, %v34690_v29  ;;  %v17999_v61 = vand.u32 4294901760, %v17998_v27  ;;  %v37061_v8 = vand.u32 4294901760, %v34874_v14 }
 0xf79   : > { %26021 = vmatprep.mubr.msk.f32.mxu0 %vm29465_vm9, %v37925_v62  ;;  %26032 = vmatprep.mubr.msk.f32.mxu1 %vm29465_vm9, %v37925_v62 }
 0xf7a   : > { %v17375_v30 = vsub.f32 %v34690_v29, %v17374_v16 }
 0xf7b   : > { %27676 = vmatpush3.bf16.msra.mxu0 %v27675_v11  ;;  %27682 = vmatpush3.bf16.msra.mxu1 %v34636_v32  ;;  %v17350_v11 = vsub.f32 %v34740_v44, %v37056_v10  ;;  %v27720_v10 = vpack.c.bf16 %v17367_v13, %v17360_v20  ;;  %v34968_v20 = vld [vmem:[%s36473_s6 + $0xa8] sm:$0xff] }
 0xf7c   : > { %27683 = vmatprep.subr.bf16.mxu0 %v37068_v25  ;;  %27689 = vmatprep.subr.bf16.mxu1 %v37068_v25  ;;  %v17376_v21 = vand.u32 4294901760, %v17375_v30 }
 0xf7e   : > { %26022 = vmatmul.mubr.f32.vlgmr.msra.gmra.mrb[84].mxu0 %v34500_v40  ;;  %26033 = vmatmul.mubr.f32.vlgmr.msra.gmra.mrb[84].mxu1 %v34503_v38  ;;  %v17362_v40 = vand.u32 4294901760, %v17361_v35  ;;  %v17369_v38 = vand.u32 4294901760, %v17368_v26  ;;  %v27705_v49 = vpack.c.bf16 %v17383_v17, %v17376_v21  ;;  %v37053_v26 = vand.u32 4294901760, %v34843_v34 }
 0xf7f   : > { %27685 = vmatpush3.bf16.msra.mxu0 %v27684_v22  ;;  %27691 = vmatpush3.bf16.msra.mxu1 %v34619_v58  ;;  %v34822_v58 = vld [vmem:[%s36473_s6 + $0x118] sm:$0xff]  ;;  %v17991_v22 = vsub.f32 %v34745_v5, %v37049_v39  ;;  %v17351_v21 = vand.u32 4294901760, %v17350_v11  ;;  %v27708_v17 = vpack.c.bf16 %v34667_v54, %v34662_v56  ;;  %v17880_v39 = vand.u32 4294901760, %v17879_v12  ;;  %v34963_v54 = vld [vmem:[%s36473_s6 + $0xa0] sm:$0xff] }
 0xf80   : > { %27686 = vmatprep.subr.bf16.mxu0 %v37068_v25  ;;  %27692 = vmatprep.subr.bf16.mxu1 %v37068_v25  ;;  %v27702_v50 = vpack.c.bf16 %v17369_v38, %v17362_v40  ;;  %v37052_v35 = vand.u32 4294901760, %v34822_v58  ;;  %v17886_v40 = vsub.f32 %v34790_v55, %v37046_v37  ;;  %v37059_v38 = vand.u32 4294901760, %v34832_v31 }
 0xf81   : > { %26043 = vmatprep.mubr.msk.f32.mxu0 %vm29465_vm9, %v37925_v62  ;;  %26054 = vmatprep.mubr.msk.f32.mxu1 %vm29465_vm9, %v37925_v62  ;;  %v17992_v51 = vand.u32 4294901760, %v17991_v22  ;;  %v17893_v56 = vsub.f32 %v34874_v14, %v37061_v8 }
 0xf82   : > { %v34910_v37 = vsub.f32 %v34822_v58, %v37052_v35  ;;  %v34923_v35 = vsub.f32 %v34843_v34, %v37053_v26  ;;  %v17887_v12 = vand.u32 4294901760, %v17886_v40 }
 0xf83   : > { %27688 = vmatpush3.bf16.msra.mxu0 %v27687_v0  ;;  %27694 = vmatpush3.bf16.msra.mxu1 %v34636_v32  ;;  %v34837_v32 = vsub.f32 %v34755_v59, %v37057_v23  ;;  %v37055_v0 = vand.u32 4294901760, %v34848_v4 }
 0xf84   : > { %27695 = vmatprep.subr.bf16.mxu0 %v37068_v25  ;;  %27701 = vmatprep.subr.bf16.mxu1 %v37068_v25  ;;  %v37064_v40 = vand.u32 4294901760, %v34910_v37 }
 0xf85   : > { %v37058_v30 = vand.u32 4294901760, %v34837_v32  ;;  %v34928_v22 = vsub.f32 %v34848_v4, %v37055_v0  ;;  %v27711_v0 = vpack.c.bf16 %v34695_v24, %v34690_v29  ;;  %v37067_v29 = vand.u32 4294901760, %v34923_v35 }
 0xf86   : > { %26044 = vmatmul.mubr.f32.vlgmr.msra.gmra.mrb[86].mxu0 %v34497_v60  ;;  %26055 = vmatmul.mubr.f32.vlgmr.msra.gmra.mrb[86].mxu1 %v34497_v60  ;;  %v34880_v60 = vsub.f32 %v34797_v42, %v37051_v7  ;;  %v34916_v7 = vld [vmem:[%s36473_s6 + $0x128] sm:$0xff]  ;;  %v18026_v8 = vsub.f32 %v34910_v37, %v37064_v40 }
 0xf87   : > { %27697 = vmatpush3.bf16.msra.mxu0 %v34814_v1  ;;  %27703 = vmatpush3.bf16.msra.mxu1 %v27702_v50  ;;  %v34899_v50 = vld [vmem:[%s36473_s6 + $0x120] sm:$0xff]  ;;  %v18012_v26 = vsub.f32 %v34837_v32, %v37058_v30  ;;  %v37065_v23 = vand.u32 4294901760, %v34916_v7  ;;  %v34953_v30 = vpack.c.bf16 %v17381_v48, %v17374_v16  ;;  %v37066_v24 = vand.u32 4294901760, %v34928_v22  ;;  %v34984_v48 = vld [vmem:[%s36473_s6 + $0x130] sm:$0xff] }
 0xf88   : > { %27698 = vmatprep.subr.bf16.mxu0 %v37068_v25  ;;  %27704 = vmatprep.subr.bf16.mxu1 %v37068_v25  ;;  %v37060_v11 = vand.u32 4294901760, %v34880_v60  ;;  %v37063_v27 = vand.u32 4294901760, %v34899_v50  ;;  %v18027_v19 = vand.u32 4294901760, %v18026_v8 }
 0xf89   : > { %26065 = vmatprep.mubr.msk.f32.mxu0 %vm29465_vm9, %v37925_v62  ;;  %26076 = vmatprep.mubr.msk.f32.mxu1 %vm29465_vm9, %v37925_v62  ;;  %v17914_v36 = vsub.f32 %v34928_v22, %v37066_v24  ;;  %v37951_v24 = vand.u32 4294901760, %v34755_v59 }
 0xf8a   : > { %v17900_v13 = vsub.f32 %v34880_v60, %v37060_v11  ;;  %v34979_v16 = vsub.f32 %v34899_v50, %v37063_v27  ;;  %v18019_v11 = vsub.f32 %v34894_v52, %v37062_v15  ;;  %v35016_v15 = vpack.c.bf16 %v17815_v18, %v17812_v47  ;;  %v35031_v47 = vld [vmem:[%s36473_s6 + $0xb0] sm:$0xff]  ;;  %v35036_v18 = vld [vmem:[%s36473_s6 + $0xb8] sm:$0xff] }
 0xf8b   : > { %27700 = vmatpush3.bf16.msra.mxu0 %v34854_v2  ;;  %27706 = vmatpush3.bf16.msra.mxu1 %v27705_v49  ;;  %v18005_v49 = vsub.f32 %v34832_v31, %v37059_v38  ;;  %v34955_v38 = vpack.c.bf16 %v17999_v61, %v17992_v51  ;;  %v34989_v61 = vld [vmem:[%s36473_s6 + $0x138] sm:$0xff]  ;;  %v34993_v51 = vpack.c.bf16 %v17887_v12, %v17880_v39  ;;  %v37071_v12 = vand.u32 4294901760, %v34968_v20 }
 0xf8c   : > { %27707 = vmatprep.subr.bf16.mxu0 %v37068_v25  ;;  %27713 = vmatprep.subr.bf16.mxu1 %v37068_v25  ;;  %37949 = vst [vmem:[#allocation90_spill] sm:$0xff] %v34979_v16  ;;  %v35008_v39 = vsub.f32 %v34916_v7, %v37065_v23  ;;  %v37070_v27 = vand.u32 4294901760, %v34984_v48  ;;  %v17901_v23 = vand.u32 4294901760, %v17900_v13  ;;  %v35046_v13 = vpack.c.bf16 %v17767_v57, %v17764_v53  ;;  %v35073_v53 = vld [vmem:[%s36473_s6 + $0x148] sm:$0xff] }
 0xf8d   : > { %v35063_v28 = vsub.f32 %v34968_v20, %v37071_v12  ;;  %v37958_v43 = vand.u32 4294901760, %v34989_v61  ;;  %v37963_v12 = vand.u32 4294901760, %v34797_v42 }
 0xf8e   : > { %26066 = vmatmul.mubr.f32.vlgmr.msra.gmra.mrb[88].mxu0 %v17351_v21  ;;  %26077 = vmatmul.mubr.f32.vlgmr.msra.gmra.mrb[88].mxu1 %v34709_v9  ;;  %v18006_v21 = vand.u32 4294901760, %v18005_v49  ;;  %37950 = vst [vmem:[#allocation89_spill] sm:$0xff] %v35008_v39  ;;  %v17894_v49 = vand.u32 4294901760, %v17893_v56  ;;  %v18020_v56 = vand.u32 4294901760, %v18019_v11  ;;  %v37072_v40 = vand.u32 4294901760, %v35008_v39 }
 0xf8f   : > { %27709 = vmatpush3.bf16.msra.mxu0 %v27708_v17  ;;  %27715 = vmatpush3.bf16.msra.mxu1 %v34814_v1  ;;  %v18013_v17 = vand.u32 4294901760, %v18012_v26  ;;  %v17907_v26 = vsub.f32 %v34923_v35, %v37067_v29  ;;  %v35052_v29 = vpack.c.bf16 %v37951_v24, %v17818_v3  ;;  %37955 = vst [vmem:[#allocation91_spill] sm:$0xff] %v35063_v28  ;;  %v37073_v3 = vand.u32 4294901760, %v35031_v47 }
 0xf90   : > { %27710 = vmatprep.subr.bf16.mxu0 %v37068_v25  ;;  %27716 = vmatprep.subr.bf16.mxu1 %v37068_v25  ;;  %v35081_v57 = vsub.f32 %v34984_v48, %v37070_v27  ;;  %v35086_v59 = vsub.f32 %v34989_v61, %v37958_v43  ;;  %v35091_v11 = vpack.c.bf16 %v17901_v23, %v17894_v49  ;;  %v17915_v24 = vand.u32 4294901760, %v17914_v36  ;;  %v35115_v36 = vld [vmem:[%s36473_s6 + $0xc0] sm:$0xff] }
 0xf91   : > { %26087 = vmatprep.mubr.msk.f32.mxu0 %vm29465_vm9, %v37925_v62  ;;  %26098 = vmatprep.mubr.msk.f32.mxu1 %vm29465_vm9, %v37925_v62  ;;  %37952 = vst [vmem:[#allocation5_spill] sm:$0xff] %v35052_v29  ;;  %v37961_v27 = vmov 0.0|0.0   ;;  %v37962_v43 = vand.u32 4294901760, %v34783_v33  ;;  %v37966_v23 = vand.u32 4294901760, %v34822_v58  ;;  %v37074_v49 = vand.u32 4294901760, %v35073_v53  ;;  %v35120_v33 = vld [vmem:[%s36473_s6 + $0xc8] sm:$0xff] }
 0xf92   : > { %37957 = vst [vmem:[#allocation94_spill] sm:$0xff] %v35081_v57  ;;  %37959 = vst [vmem:[#allocation93_spill] sm:$0xff] %v35086_v59  ;;  %v27771_v42 = vpack.c.bf16 %v18027_v19, %v18020_v56  ;;  %v37976_v56 = vand.u32 4294901760, %v34848_v4  ;;  %v37979_v4 = vand.u32 4294901760, %v35115_v36 }
 0xf93   : > { %27712 = vmatpush3.bf16.msra.mxu0 %v27711_v0  ;;  %27718 = vmatpush3.bf16.msra.mxu1 %v34854_v2  ;;  %v35040_v0 = vpack.c.bf16 %v18013_v17, %v18006_v21  ;;  %v37960_v17 = vand.u32 4294901760, %v34979_v16  ;;  %v35102_v8 = vpack.c.bf16 %v37963_v12, %v37962_v43  ;;  %v35139_v43 = vld [vmem:[%s36473_s6 + $0x158] sm:$0xff] }
 0xf94   : > { %27719 = vmatprep.subr.bf16.mxu0 %v37068_v25  ;;  %27725 = vmatprep.subr.bf16.mxu1 %v37068_v25  ;;  %v37953_v25 = vand.u32 4294901760, %v34963_v54 }
 0xf95   : > { %37964 = vst [vmem:[#allocation96_spill] sm:$0xff] %v35102_v8 }
 0xf96   : > { %v35058_v21 = vsub.f32 %v34963_v54, %v37953_v25  ;;  %26088 = vmatmul.mubr.f32.vlgmr.msra.gmra.mrb[90].mxu0 %v34740_v44  ;;  %v37956_v25 = vand.u32 4294901760, %v34740_v44  ;;  %v17908_v44 = vand.u32 4294901760, %v17907_v26  ;;  %v37075_v26 = vand.u32 4294901760, %v35068_v45 }
 0xf97   : > { %27721 = vmatpush3.bf16.msra.mxu0 %v27720_v10  ;;  %v37965_v10 = vand.u32 4294901760, %v34808_v6  ;;  %26109 = vmatprep.mubr.msk.f32.mxu0 %vm29465_vm9, %v37925_v62  ;;  %v18040_v6 = vsub.f32 %v35008_v39, %v37072_v40 }
 0xf98   : > { %37954 = vst [vmem:[#allocation92_spill] sm:$0xff] %v35058_v21  ;;  %26099 = vmatmul.mubr.f32.vlgmr.msra.gmra.mrb[90].mxu1 %v37956_v25  ;;  %v18033_v25 = vsub.f32 %v34979_v16, %v37960_v17  ;;  %27722 = vmatprep.subr.bf16.mxu0 %v37961_v27  ;;  %v35134_v17 = vld [vmem:[%s36473_s6 + $0x150] sm:$0xff]  ;;  %v27773_v12 = vpack.c.bf16 %v17915_v24, %v17908_v44  ;;  %v35179_v24 = vld [vmem:[%s36473_s6 + $0xd8] sm:$0xff]  ;;  %v37975_v44 = vand.u32 4294901760, %v34843_v34 }
 0xf99   : > { %27727 = vmatpush3.bf16.msra.mxu1 %v34814_v1  ;;  %v35108_v1 = vpack.c.bf16 %v37966_v23, %v37965_v10  ;;  %26120 = vmatprep.mubr.msk.f32.mxu1 %vm29465_vm9, %v37925_v62  ;;  %v35146_v10 = vsub.f32 %v35031_v47, %v37073_v3  ;;  %v37969_v23 = vand.u32 4294901760, %v35036_v18  ;;  %v35162_v3 = vsub.f32 %v35068_v45, %v37075_v26 }
 0xf9a   : > { %27728 = vmatprep.subr.bf16.mxu1 %v37961_v27  ;;  %v18034_v58 = vand.u32 4294901760, %v18033_v25  ;;  %v18041_v25 = vand.u32 4294901760, %v18040_v6  ;;  %v37974_v26 = vand.u32 4294901760, %v35063_v28  ;;  %v35191_v19 = vpack.c.bf16 %v37976_v56, %v37975_v44 }
 0xf9b   : > { %37967 = vst [vmem:[#allocation95_spill] sm:$0xff] %v35108_v1  ;;  %37968 = vst [vmem:[#allocation98_spill] sm:$0xff] %v35146_v10  ;;  %v35151_v40 = vsub.f32 %v35036_v18, %v37969_v23  ;;  %27724 = vmatpush3.bf16.msra.mxu0 %v34953_v30  ;;  %v35167_v30 = vsub.f32 %v35073_v53, %v37074_v49  ;;  %v37973_v23 = vand.u32 4294901760, %v35058_v21  ;;  %v37977_v6 = vand.u32 4294901760, %v35081_v57 }
 0xf9c   : > { %27732 = vmatprep.subr.bf16.mxu0 %v35016_v15  ;;  %37971 = vst [vmem:[#allocation100_spill] sm:$0xff] %v35162_v3  ;;  %v37980_v56 = vand.u32 4294901760, %v35120_v33  ;;  %v37985_v39 = vand.u32 4294901760, %v35146_v10 }
 0xf9d   : > { %37970 = vst [vmem:[#allocation97_spill] sm:$0xff] %v35151_v40  ;;  %27730 = vmatpush3.bf16.msra.mxu1 %v34854_v2  ;;  %37972 = vst [vmem:[#allocation99_spill] sm:$0xff] %v35167_v30  ;;  %v17921_v49 = vsub.f32 %v35058_v21, %v37973_v23  ;;  %v17928_v2 = vsub.f32 %v35063_v28, %v37974_v26  ;;  %v18047_v27 = vsub.f32 %v35081_v57, %v37977_v6 }
 0xf9e   : > { %27764 = vmatprep.subr.bf16.mxu1 %v34955_v38  ;;  %v35174_v38 = vld [vmem:[%s36473_s6 + $0xd0] sm:$0xff]  ;;  %26110 = vmatmul.mubr.f32.vlgmr.msra.gmra.mrb[92].mxu0 %v34709_v9  ;;  %v37978_v23 = vand.u32 4294901760, %v35086_v59  ;;  %v35213_v44 = vsub.f32 %v35120_v33, %v37980_v56  ;;  %v37982_v56 = vand.u32 4294901760, %v35139_v43  ;;  %v27775_v6 = vpack.c.bf16 %v18041_v25, %v18034_v58 }
 0xf9f   : > { %27734 = vmatpush3.bf16.msra.mxu0 %v35046_v13  ;;  %v17929_v57 = vand.u32 4294901760, %v17928_v2  ;;  %v37984_v28 = vand.u32 4294901760, %v34916_v7  ;;  %v18048_v34 = vand.u32 4294901760, %v18047_v27  ;;  %v37986_v16 = vand.u32 4294901760, %v35151_v40 }
 0xfa0   : > { %26121 = vmatmul.mubr.f32.vlgmr.msra.gmra.mrb[92].mxu1 %v34709_v9  ;;  %v18054_v62 = vsub.f32 %v35086_v59, %v37978_v23  ;;  %v35208_v9 = vsub.f32 %v35115_v36, %v37979_v4  ;;  %27736 = vmatprep.subr.bf16.mxu0 %v35052_v29  ;;  %v37981_v4 = vand.u32 4294901760, %v35134_v17  ;;  %v35229_v59 = vsub.f32 %v35139_v43, %v37982_v56 }
 0xfa1   : > { %27766 = vmatpush3.bf16.msra.mxu1 %v34993_v51  ;;  %v17922_v23 = vand.u32 4294901760, %v17921_v49  ;;  %v17942_v56 = vsub.f32 %v35151_v40, %v37986_v16  ;;  %v37988_v27 = vand.u32 4294901760, %v35179_v24  ;;  %v37989_v16 = vand.u32 4294901760, %v35162_v3 }
 0xfa2   : > { %27768 = vmatprep.subr.bf16.mxu1 %v35040_v0  ;;  %v35224_v26 = vsub.f32 %v35134_v17, %v37981_v4  ;;  %v37983_v0 = vand.u32 4294901760, %v34899_v50  ;;  %v18055_v21 = vand.u32 4294901760, %v18054_v62  ;;  %v17935_v4 = vsub.f32 %v35146_v10, %v37985_v39 }
 0xfa3   : > { %27738 = vmatpush3.bf16.msra.mxu0 %v35102_v8  ;;  %v35255_v39 = vsub.f32 %v35179_v24, %v37988_v27  ;;  %v37990_v49 = vand.u32 4294901760, %v35167_v30  ;;  %v37098_v25 = vand.u32 4294901760, %v35229_v59  ;;  %v37992_v27 = vand.u32 4294901760, %v34968_v20 }
 0xfa4   : > { %v35235_v51 = vpack.c.bf16 %v37984_v28, %v37983_v0  ;;  %v37987_v28 = vand.u32 4294901760, %v35174_v38  ;;  %27740 = vmatprep.subr.bf16.mxu0 %v35108_v1  ;;  %v37099_v2 = vand.u32 4294901760, %v35224_v26  ;;  %v27777_v0 = vpack.c.bf16 %v17929_v57, %v17922_v23 }
 0xfa5   : > { %27770 = vmatpush3.bf16.msra.mxu1 %v35091_v11  ;;  %v18061_v11 = vsub.f32 %v35162_v3, %v37989_v16  ;;  %v18068_v58 = vsub.f32 %v35167_v30, %v37990_v49  ;;  %v27779_v7 = vpack.c.bf16 %v18055_v21, %v18048_v34  ;;  %v17936_v50 = vand.u32 4294901760, %v17935_v4 }
 0xfa6   : > { %v35250_v62 = vsub.f32 %v35174_v38, %v37987_v28  ;;  %27772 = vmatprep.subr.bf16.mxu1 %v27771_v42  ;;  %v37991_v28 = vand.u32 4294901760, %v34963_v54  ;;  %v17943_v40 = vand.u32 4294901760, %v17942_v56  ;;  %v37993_v16 = vand.u32 4294901760, %v34984_v48 }
 0xfa7   : > { %v37994_v3 = vand.u32 4294901760, %v34989_v61  ;;  %27742 = vmatpush3.bf16.msra.mxu0 %v35191_v19  ;;  %v37995_v57 = vand.u32 4294901760, %v35208_v9  ;;  %v37996_v20 = vand.u32 4294901760, %v35213_v44  ;;  %v37096_v34 = vand.u32 4294901760, %v35255_v39 }
 0xfa8   : > { %v35270_v42 = vpack.c.bf16 %v37992_v27, %v37991_v28  ;;  %v37097_v21 = vand.u32 4294901760, %v35250_v62  ;;  %27744 = vmatprep.subr.bf16.mxu0 %v35235_v51  ;;  %v18062_v48 = vand.u32 4294901760, %v18061_v11  ;;  %v18069_v61 = vand.u32 4294901760, %v18068_v58 }
 0xfa9   : > { %v35276_v10 = vpack.c.bf16 %v37994_v3, %v37993_v16  ;;  %27774 = vmatpush3.bf16.msra.mxu1 %v27773_v12  ;;  %v17949_v54 = vsub.f32 %v35208_v9, %v37995_v57  ;;  %v17956_v23 = vsub.f32 %v35213_v44, %v37996_v20  ;;  %v18075_v3 = vsub.f32 %v35224_v26, %v37099_v2 }
 0xfaa   : > { %27776 = vmatprep.subr.bf16.mxu1 %v27775_v6  ;;  %v18082_v12 = vsub.f32 %v35229_v59, %v37098_v25  ;;  %v27781_v4 = vpack.c.bf16 %v17943_v40, %v17936_v50  ;;  %v37997_v56 = vand.u32 4294901760, %v35031_v47  ;;  %v37998_v49 = vand.u32 4294901760, %v35036_v18 }
 0xfab   : > { %27746 = vmatpush3.bf16.msra.mxu0 %v35270_v42  ;;  %v17950_v6 = vand.u32 4294901760, %v17949_v54  ;;  %v17957_v11 = vand.u32 4294901760, %v17956_v23  ;;  %v17963_v58 = vsub.f32 %v35250_v62, %v37097_v21  ;;  %v17970_v27 = vsub.f32 %v35255_v39, %v37096_v34  ;;  %v35431_v34 = vld [vmem:[%s36473_s6 + $0x180] sm:$0xff] }
 0xfac   : > { %v35298_v28 = vpack.c.bf16 %v37998_v49, %v37997_v56  ;;  %v27783_v40 = vpack.c.bf16 %v18069_v61, %v18062_v48  ;;  %27748 = vmatprep.subr.bf16.mxu0 %v35276_v10  ;;  %v18076_v47 = vand.u32 4294901760, %v18075_v3  ;;  %v18083_v18 = vand.u32 4294901760, %v18082_v12  ;;  %v16749_v48 = vld [vmem:[%s36473_s6 + $0x160] sm:$0xff]  ;;  %v16750_v61 = vld [vmem:[%s36473_s6 + $0x168] sm:$0xff]  ;;  %38024 = vst [vmem:[#allocation58_spill] sm:$0xff] %v35431_v34 }
 0xfad   : > { %27778 = vmatpush3.bf16.msra.mxu1 %v27777_v0  ;;  %v27785_v50 = vpack.c.bf16 %v17957_v11, %v17950_v6  ;;  %v17964_v0 = vand.u32 4294901760, %v17963_v58  ;;  %v17971_v16 = vand.u32 4294901760, %v17970_v27  ;;  %v38000_v20 = vand.u32 4294901760, %v35068_v45  ;;  %v16733_v45 = vld [vmem:[%s36473_s6 + $0xe0] sm:$0xff] }
 0xfae   : > { %37999 = vst [vmem:[#allocation108_spill] sm:$0xff] %v35298_v28  ;;  %27780 = vmatprep.subr.bf16.mxu1 %v27779_v7  ;;  %v27787_v57 = vpack.c.bf16 %v18083_v18, %v18076_v47  ;;  %v38001_v7 = vand.u32 4294901760, %v35073_v53  ;;  %v38003_v3 = vand.u32 4294901760, %v35115_v36  ;;  %v38004_v12 = vand.u32 4294901760, %v35120_v33  ;;  %v16734_v36 = vld [vmem:[%s36473_s6 + $0xe8] sm:$0xff] }
 0xfaf   : > { %27750 = vmatpush3.bf16.msra.mxu0 %v35298_v28  ;;  %v27789_v54 = vpack.c.bf16 %v17971_v16, %v17964_v0  ;;  %v38005_v53 = vand.u32 4294901760, %v35134_v17  ;;  %v38006_v56 = vand.u32 4294901760, %v35139_v43  ;;  %v17854_v6 = vand.u32 4294901760, %v16749_v48 }
 0xfb0   : > { %v35313_v23 = vpack.c.bf16 %v38001_v7, %v38000_v20  ;;  %v17857_v11 = vand.u32 4294901760, %v16750_v61  ;;  %v17806_v58 = vand.u32 4294901760, %v16733_v45  ;;  %v17809_v33 = vand.u32 4294901760, %v16734_v36 }
 0xfb1   : > { %27782 = vmatpush3.bf16.msra.mxu1 %v27781_v4  ;;  %v35325_v4 = vpack.c.bf16 %v38004_v12, %v38003_v3  ;;  %v35334_v49 = vpack.c.bf16 %v38006_v56, %v38005_v53  ;;  %v35340_v27 = vsub.f32 %v16749_v48, %v17854_v6  ;;  %v38010_v43 = vand.u32 4294901760, %v35174_v38 }
 0xfb2   : > { %27784 = vmatprep.subr.bf16.mxu1 %v27783_v40  ;;  %38002 = vst [vmem:[#allocation133_spill] sm:$0xff] %v35313_v23  ;;  %27752 = vmatprep.subr.bf16.mxu0 %v35313_v23  ;;  %v35342_v40 = vsub.f32 %v16750_v61, %v17857_v11  ;;  %v35345_v17 = vsub.f32 %v16733_v45, %v17806_v58  ;;  %v38011_v47 = vand.u32 4294901760, %v35179_v24 }
 0xfb3   : > { %38007 = vst [vmem:[#allocation134_spill] sm:$0xff] %v35334_v49  ;;  %38008 = vst [vmem:[#allocation135_spill] sm:$0xff] %v35340_v27  ;;  %27754 = vmatpush3.bf16.msra.mxu0 %v35325_v4  ;;  %v35356_v0 = vpack.c.bf16 %v17857_v11, %v17854_v6  ;;  %v18088_v16 = vand.u32 4294901760, %v35340_v27  ;;  %v27795_v20 = vpack.c.bf16 %v34766_v63, %v34745_v5 }
 0xfb4   : > { %38009 = vst [vmem:[#allocation137_spill] sm:$0xff] %v35345_v17  ;;  %v35351_v18 = vpack.c.bf16 %v38011_v47, %v38010_v43  ;;  %27756 = vmatprep.subr.bf16.mxu0 %v35334_v49  ;;  %v35368_v61 = vpack.c.bf16 %v17809_v33, %v17806_v58  ;;  %v16705_v47 = vpop.permute.xlu1 %16704  ;;  %v35461_v58 = vld [vmem:[%s36473_s6 + $0x210] sm:$0xff] }
 0xfb5   : > { %27786 = vmatpush3.bf16.msra.mxu1 %v27785_v50  ;;  %v35353_v50 = vsub.f32 %v16734_v36, %v17809_v33  ;;  %v18089_v24 = vsub.f32 %v35340_v27, %v18088_v16  ;;  %v35445_v36 = vld [vmem:[%s36473_s6 + $0x188] sm:$0xff]  ;;  %38027 = vst [vmem:[#allocation103_spill] sm:$0xff] %v35461_v58 }
 0xfb6   : > { %27788 = vmatprep.subr.bf16.mxu1 %v27787_v57  ;;  %v18095_v57 = vand.u32 4294901760, %v35342_v40  ;;  %38025 = vst [vmem:[#allocation82_spill] sm:$0xff] %v35445_v36  ;;  %v38046_v63 = vand.u32 4294901760, %v35445_v36 }
 0xfb7   : > { %38012 = vst [vmem:[#allocation143_spill] sm:$0xff] %v35353_v50  ;;  %v17983_v38 = vand.u32 4294901760, %v35353_v50  ;;  %27758 = vmatpush3.bf16.msra.mxu0 %v35351_v18  ;;  %v18090_v12 = vand.u32 4294901760, %v18089_v24  ;;  %v16702_v24 = vpop.permute.xlu0 %16701 }
 0xfb8   : > { %v18096_v7 = vsub.f32 %v35342_v40, %v18095_v57  ;;  %27760 = vmatprep.subr.bf16.mxu0 %v35356_v0  ;;  %v35378_v33 = vpack.c.bf16 %v18095_v57, %v18088_v16  ;;  %v35392_v57 = vld [vmem:[%s36473_s6 + $0x1f8] sm:$0xff] }
 0xfb9   : > { %27790 = vmatpush3.bf16.msra.mxu1 %v27789_v54  ;;  %v17976_v54 = vand.u32 4294901760, %v35345_v17  ;;  %v17984_v3 = vsub.f32 %v35353_v50, %v17983_v38  ;;  %38016 = vst [vmem:[#allocation138_spill] sm:$0xff] %v35392_v57  ;;  %v35542_v50 = vsub.f32 %v35445_v36, %v38046_v63  ;;  %v38050_v36 = vand.u32 4294901760, %v35461_v58 }
 0xfba   : > { %v18097_v45 = vand.u32 4294901760, %v18096_v7  ;;  %38013 = vst [vmem:[#allocation146_spill] sm:$0xff] %v35378_v33  ;;  %v16710_v7 = vsel %vm7890_vm0, %v34486_v46, %v16702_v24  ;;  %v35397_v46 = vld [vmem:[%s36473_s6 + $0x170] sm:$0xff]  ;;  %vm38350_vm0 = vcmask 130048  }
 0xfbb   : > { %v17977_v48 = vsub.f32 %v35345_v17, %v17976_v54  ;;  %v17985_v56 = vand.u32 4294901760, %v17984_v3  ;;  %27762 = vmatpush3.bf16.msra.mxu0 %v35368_v61  ;;  %v35380_v43 = vpack.c.bf16 %v17983_v38, %v17976_v54  ;;  %v35387_v3 = vld [vmem:[%s36473_s6 + $0x1f0] sm:$0xff]  ;;  %38017 = vst [vmem:[#allocation139_spill] sm:$0xff] %v35397_v46  ;;  %38047 = vst [vmem:[#allocation78_spill] sm:$0xff] %v35542_v50 }
 0xfbc   : > { %v27791_v6 = vpack.c.bf16 %v18097_v45, %v18090_v12  ;;  %27796 = vmatprep.subr.bf16.mxu0 %v27795_v20  ;;  %v16708_v20 = vpop.permute.xlu1 %16707  ;;  %38015 = vst [vmem:[#allocation136_spill] sm:$0xff] %v35387_v3  ;;  %v37100_v24 = vand.u32 4294901760, %v35387_v3  ;;  %vm38351_vm12 = vmmov %vm38350_vm0 }
 0xfbd   : > { %v17978_v53 = vand.u32 4294901760, %v17977_v48  ;;  %38014 = vst [vmem:[#allocation150_spill] sm:$0xff] %v35380_v43  ;;  %v16712_v48 = vsel %vm16711_vm10, %v16710_v7, %v16705_v47  ;;  %vm38352_vm13 = vmmov %vm38350_vm0 }
 0xfbe   : > { %27792 = vmatprep.subr.bf16.mxu1 %v27791_v6  ;;  %v16714_v12 = vsel %vm16713_vm11, %v16712_v48, %v16708_v20  ;;  %v35404_v6 = vld [vmem:[%s36473_s6 + $0x178] sm:$0xff]  ;;  %v37103_v20 = vand.u32 4294901760, %v35392_v57  ;;  %v37105_v48 = vand.u32 4294901760, %v35397_v46 }
 0xfbf   : > { %v27793_v11 = vpack.c.bf16 %v17985_v56, %v17978_v53  ;;  %38019 = vst [vmem:[#allocation141_spill] sm:$0xff] %v35404_v6 }
 0xfc0   : > { %v35478_v25 = vsub.f32 %v35397_v46, %v37105_v48 }
 0xfc1   : > { %27794 = vmatpush3.bf16.msra.mxu1 %v27793_v11 }
 0xfc2   : > { %27828 = vmatprep.subr.bf16.mxu1 %v35016_v15  ;;  %38030 = vst [vmem:[#allocation112_spill] sm:$0xff] %v35478_v25 }
0x1041   : > { %v16137_v45 = vpop.f32.mrb[80].mxu0  ;;  %v16680_v16 = vpop.f32.mrb[80].mxu1 }
0x1042   : > { %v16715_v54 = vmul.f32 %v16714_v12, %v16137_v45  ;;  %v35399_v38 = vmul.f32 %v16714_v12, %v16680_v16  ;;  %v16139_v53 = vpop.f32.mrb[81].mxu0  ;;  %v16682_v56 = vpop.f32.mrb[81].mxu1  ;;  %v35416_v45 = vld [vmem:[%s36473_s6 + $0x200] sm:$0xff]  ;;  %v35421_v16 = vld [vmem:[%s36473_s6 + $0x208] sm:$0xff] }
0x1043   : > { %v16716_v11 = vmul.f32 %v16714_v12, %v16139_v53  ;;  %v35406_v47 = vmul.f32 %v16714_v12, %v16682_v56  ;;  %38022 = vst [vmem:[#allocation145_spill] sm:$0xff] %v35416_v45  ;;  %38023 = vst [vmem:[#allocation69_spill] sm:$0xff] %v35421_v16  ;;  %v38040_v17 = vand.u32 4294901760, %v35421_v16 }
0x1044   : > { %38018 = vst [vmem:[#allocation140_spill] sm:$0xff] %v35399_v38  ;;  %v35409_v7 = vand.u32 4294901760, %v16715_v54 }
0x1045   : > { %38020 = vst [vmem:[#allocation142_spill] sm:$0xff] %v35406_v47  ;;  %v35423_v12 = vand.u32 4294901760, %v16716_v11 }
0x1046   : > { %38021 = vst [vmem:[#allocation144_spill] sm:$0xff] %v35409_v7  ;;  %v35434_v21 = vsub.f32 %v16715_v54, %v35409_v7  ;;  %v35454_v54 = vsub.f32 %v35387_v3, %v37100_v24  ;;  %v35473_v24 = vsub.f32 %v35392_v57, %v37103_v20  ;;  %v38031_v3 = vand.u32 4294901760, %v35404_v6  ;;  %v35505_v57 = vld [vmem:[%s36473_s6 + $0x198] sm:$0xff] }
0x1047   : > { %v35448_v53 = vsub.f32 %v16716_v11, %v35423_v12  ;;  %18100 = vmatprep.mubr.f32.mxu1 %v35423_v12  ;;  %v35466_v11 = vld [vmem:[%s36473_s6 + $0x218] sm:$0xff]  ;;  %38035 = vst [vmem:[#allocation149_spill] sm:$0xff] %v35505_v57 }
0x1048   : > { %38026 = vst [vmem:[#allocation21_spill] sm:$0xff] %v35454_v54  ;;  %38028 = vst [vmem:[#allocation105_spill] sm:$0xff] %v35466_v11  ;;  %18102 = vmatmul.mubr.f32.vlgmr.msra.gmra.mrb[94].mxu1 %v35409_v7  ;;  %v35488_v20 = vsub.f32 %v35404_v6, %v38031_v3  ;;  %v38033_v48 = vand.u32 4294901760, %v35434_v21  ;;  %v35500_v3 = vld [vmem:[%s36473_s6 + $0x190] sm:$0xff]  ;;  %v35518_v6 = vsub.f32 %v35421_v16, %v38040_v17  ;;  %v35536_v17 = vld [vmem:[%s36473_s6 + $0x228] sm:$0xff] }
0x1049   : > { %38029 = vst [vmem:[#allocation109_spill] sm:$0xff] %v35473_v24  ;;  %v16866_v38 = vpop.f32.mrb[82].mxu0  ;;  %v16957_v43 = vpop.f32.mrb[82].mxu1  ;;  %27830 = vmatpush3.bf16.msra.mxu1 %v35046_v13  ;;  %v17861_v56 = vand.u32 4294901760, %v35448_v53  ;;  %38034 = vst [vmem:[#allocation148_spill] sm:$0xff] %v35500_v3  ;;  %v35549_v16 = vld [vmem:[%s36473_s6 + $0x1a0] sm:$0xff] }
0x104a   : > { %38032 = vst [vmem:[#allocation147_spill] sm:$0xff] %v35488_v20  ;;  %v17868_v2 = vsub.f32 %v35434_v21, %v38033_v48  ;;  %v16958_v46 = vadd.f32 %v16957_v43, %v16866_v38  ;;  %v26001_v7 = vpop.f32.mrb[83].mxu0  ;;  %v26012_v47 = vpop.f32.mrb[83].mxu1  ;;  %27832 = vmatprep.subr.bf16.mxu1 %v35052_v29  ;;  %v38036_v38 = vld [vmem:[#allocation90_spill] sm:$0xff]  ;;  %v38038_v48 = vand.u32 4294901760, %v35416_v45  ;;  %38041 = vst [vmem:[#allocation152_spill] sm:$0xff] %v35518_v6 }
0x104b   : > { %18344 = vmatprep.mubr.f32.mxu1 %v17861_v56  ;;  %v17862_v43 = vsub.f32 %v35448_v53, %v17861_v56  ;;  %v38037_v47 = vld [vmem:[#allocation89_spill] sm:$0xff]  ;;  %v38042_v56 = vand.u32 4294901760, %v35431_v34  ;;  %38045 = vst [vmem:[#allocation155_spill] sm:$0xff] %v35536_v17  ;;  %38048 = vst [vmem:[#allocation75_spill] sm:$0xff] %v35549_v16 }
0x104c   : > { %v35513_v33 = vsub.f32 %v35416_v45, %v38038_v48  ;;  %v35531_v48 = vld [vmem:[%s36473_s6 + $0x220] sm:$0xff]  ;;  %v35554_v45 = vld [vmem:[%s36473_s6 + $0x1a8] sm:$0xff] }
0x104d   : > { %v35526_v7 = vsub.f32 %v35431_v34, %v38042_v56  ;;  %38044 = vst [vmem:[#allocation154_spill] sm:$0xff] %v35531_v48  ;;  %27834 = vmatpush3.bf16.msra.mxu1 %v35102_v8  ;;  %v17863_v29 = vand.u32 4294901760, %v17862_v43  ;;  %38049 = vst [vmem:[#allocation49_spill] sm:$0xff] %v35554_v45  ;;  %v17869_v43 = vand.u32 4294901760, %v17868_v2  ;;  %v35561_v56 = vsub.f32 %v35461_v58, %v38050_v36  ;;  %v35577_v58 = vld [vmem:[%s36473_s6 + $0x230] sm:$0xff] }
0x104e   : > { %38039 = vst [vmem:[#allocation151_spill] sm:$0xff] %v35513_v33  ;;  %27836 = vmatprep.subr.bf16.mxu1 %v35108_v1  ;;  %v38052_v34 = vand.u32 4294901760, %v35466_v11  ;;  %38054 = vst [vmem:[#allocation101_spill] sm:$0xff] %v35577_v58  ;;  %v38058_v1 = vand.u32 4294901760, %v35478_v25  ;;  %v38059_v2 = vand.u32 4294901760, %v35488_v20  ;;  %v38061_v36 = vpack.c.bf16 %v34790_v55, %v34771_v41 }
0x104f   : > { %38043 = vst [vmem:[#allocation153_spill] sm:$0xff] %v35526_v7  ;;  %38051 = vst [vmem:[#allocation32_spill] sm:$0xff] %v35561_v56  ;;  %17864 = vmatprep.mubr.f32.mxu0 %v17863_v29  ;;  %v38055_v29 = vand.u32 4294901760, %v35454_v54  ;;  %v38097_v54 = vand.u32 4294901760, %v35577_v58 }
0x1050   : > { %v35566_v8 = vsub.f32 %v35466_v11, %v38052_v34  ;;  %17870 = vmatmul.mubr.f32.vlgmr.msra.gmra.mrb[94].mxu0 %v17869_v43  ;;  %v38056_v34 = vand.u32 4294901760, %v35473_v24  ;;  %v35589_v43 = vpack.c.bf16 %v38059_v2, %v38058_v1  ;;  %v38064_v1 = vand.u32 4294901760, %v35505_v57 }
0x1051   : > { %v17037_v63 = vpop.f32.mrb[84].mxu0  ;;  %v17114_v27 = vpop.f32.mrb[84].mxu1  ;;  %27798 = vmatpush3.bf16.msra.mxu0 %v38061_v36  ;;  %27838 = vmatpush3.bf16.msra.mxu1 %v35191_v19  ;;  %v35610_v36 = vld [vmem:[%s36473_s6 + $0x238] sm:$0xff]  ;;  %v38067_v24 = vpack.c.bf16 %v34837_v32, %v34832_v31 }
0x1052   : > { %38053 = vst [vmem:[#allocation102_spill] sm:$0xff] %v35566_v8  ;;  %v35583_v5 = vpack.c.bf16 %v38056_v34, %v38055_v29  ;;  %38060 = vst [vmem:[#allocation106_spill] sm:$0xff] %v35589_v43  ;;  %v38062_v29 = vand.u32 4294901760, %v35500_v3  ;;  %v35605_v2 = vsub.f32 %v35505_v57, %v38064_v1  ;;  %v17038_v43 = vadd.f32 %v17037_v63, %v16958_v46  ;;  %v26034_v11 = vpop.f32.mrb[85].mxu1  ;;  %v35621_v1 = vld [vmem:[%s36473_s6 + $0x1b0] sm:$0xff] }
0x1053   : > { %38066 = vst [vmem:[#allocation124_spill] sm:$0xff] %v35610_v36  ;;  %18237 = vmatprep.mubr.f32.mxu0 %v35448_v53  ;;  %27800 = vmatprep.subr.bf16.mxu0 %v38067_v24  ;;  %38068 = vst [vmem:[#allocation121_spill] sm:$0xff] %v35621_v1  ;;  %v38070_v46 = vand.u32 4294901760, %v35513_v33  ;;  %v38071_v53 = vand.u32 4294901760, %v35518_v6  ;;  %v38073_v24 = vand.u32 4294901760, %v35531_v48  ;;  %v35649_v6 = vld [vmem:[%s36473_s6 + $0x240] sm:$0xff] }
0x1054   : > { %38057 = vst [vmem:[#allocation107_spill] sm:$0xff] %v35583_v5  ;;  %v35600_v34 = vsub.f32 %v35500_v3, %v38062_v29  ;;  %38065 = vst [vmem:[#allocation114_spill] sm:$0xff] %v35605_v2  ;;  %v26023_v5 = vpop.f32.mrb[85].mxu0  ;;  %27840 = vmatprep.subr.bf16.mxu1 %v35235_v51  ;;  %v38075_v3 = vand.u32 4294901760, %v35536_v17  ;;  %v38102_v25 = vand.u32 4294901760, %v35610_v36 }
0x1055   : > { %v35626_v5 = vld [vmem:[%s36473_s6 + $0x1b8] sm:$0xff]  ;;  %v35632_v11 = vpack.c.bf16 %v38071_v53, %v38070_v46  ;;  %v35638_v63 = vsub.f32 %v35531_v48, %v38073_v24  ;;  %38077 = vst [vmem:[#allocation116_spill] sm:$0xff] %v35649_v6  ;;  %v38078_v46 = vand.u32 4294901760, %v35526_v7  ;;  %v38079_v53 = vand.u32 4294901760, %v35542_v50  ;;  %27842 = vmatpush3.bf16.msra.mxu1 %v35270_v42 }
0x1056   : > { %38063 = vst [vmem:[#allocation115_spill] sm:$0xff] %v35600_v34  ;;  %38069 = vst [vmem:[#allocation127_spill] sm:$0xff] %v35626_v5  ;;  %v35643_v29 = vsub.f32 %v35536_v17, %v38075_v3  ;;  %v17115_v24 = vadd.f32 %v17114_v27, %v17038_v43  ;;  %v38081_v48 = vand.u32 4294901760, %v35549_v16  ;;  %v38083_v3 = vand.u32 4294901760, %v35554_v45  ;;  %27844 = vmatprep.subr.bf16.mxu1 %v35276_v10  ;;  %v38089_v17 = vld [vmem:[#allocation91_spill] sm:$0xff]  ;;  %v38091_v43 = vld [vmem:[#allocation93_spill] sm:$0xff] }
0x1057   : > { %38072 = vst [vmem:[#allocation126_spill] sm:$0xff] %v35632_v11  ;;  %38074 = vst [vmem:[#allocation80_spill] sm:$0xff] %v35638_v63  ;;  %v35655_v11 = vpack.c.bf16 %v38079_v53, %v38078_v46  ;;  %v38085_v7 = vpack.c.bf16 %v34880_v60, %v34874_v14  ;;  %v35679_v53 = vld [vmem:[%s36473_s6 + $0x248] sm:$0xff]  ;;  %v35693_v46 = vld [vmem:[%s36473_s6 + $0x1c0] sm:$0xff]  ;;  %v38095_v50 = vand.u32 4294901760, %v35566_v8  ;;  %v38100_v8 = vand.u32 4294901760, %v35605_v2 }
0x1058   : > { %38076 = vst [vmem:[#allocation110_spill] sm:$0xff] %v35643_v29  ;;  %v35660_v33 = vsub.f32 %v35549_v16, %v38081_v48  ;;  %v35665_v57 = vsub.f32 %v35554_v45, %v38083_v3  ;;  %38086 = vst [vmem:[#allocation131_spill] sm:$0xff] %v35679_v53  ;;  %v38087_v3 = vpack.c.bf16 %v34910_v37, %v34894_v52  ;;  %v35698_v16 = vld [vmem:[%s36473_s6 + $0x1c8] sm:$0xff]  ;;  %v38106_v48 = vand.u32 4294901760, %v35626_v5 }
0x1059   : > { %38080 = vst [vmem:[#allocation117_spill] sm:$0xff] %v35655_v11  ;;  %27802 = vmatpush3.bf16.msra.mxu0 %v38085_v7  ;;  %v38088_v7 = vld [vmem:[#allocation92_spill] sm:$0xff]  ;;  %v38090_v11 = vld [vmem:[#allocation94_spill] sm:$0xff]  ;;  %38092 = vst [vmem:[#allocation156_spill] sm:$0xff] %v35693_v46  ;;  %27846 = vmatpush3.bf16.msra.mxu1 %v35298_v28 }
0x105a   : > { %38082 = vst [vmem:[#allocation122_spill] sm:$0xff] %v35660_v33  ;;  %38084 = vst [vmem:[#allocation123_spill] sm:$0xff] %v35665_v57  ;;  %27804 = vmatprep.subr.bf16.mxu0 %v38087_v3  ;;  %v27809_v27 = vpack.c.bf16 %v38089_v17, %v38088_v7  ;;  %v27811_v45 = vpack.c.bf16 %v38091_v43, %v38090_v11  ;;  %v38094_v3 = vand.u32 4294901760, %v35561_v56  ;;  %v35716_v11 = vld [vmem:[%s36473_s6 + $0x250] sm:$0xff]  ;;  %v38099_v56 = vand.u32 4294901760, %v35600_v34  ;;  %v17272_v17 = vpop.f32.mrb[86].mxu1 }
0x105b   : > { %38093 = vst [vmem:[#allocation158_spill] sm:$0xff] %v35698_v16  ;;  %v35711_v43 = vsub.f32 %v35577_v58, %v38097_v54  ;;  %38098 = vst [vmem:[#allocation162_spill] sm:$0xff] %v35716_v11  ;;  %v35729_v54 = vsub.f32 %v35610_v36, %v38102_v25  ;;  %v17197_v58 = vpop.f32.mrb[86].mxu0  ;;  %v38104_v34 = vpack.c.bf16 %v34928_v22, %v34923_v35  ;;  %v26056_v2 = vpop.f32.mrb[87].mxu1  ;;  %27848 = vmatprep.subr.bf16.mxu1 %v35313_v23  ;;  %v38116_v28 = vld [vmem:[#allocation100_spill] sm:$0xff] }
0x105c   : > { %v35704_v20 = vpack.c.bf16 %v38095_v50, %v38094_v3  ;;  %v35722_v50 = vpack.c.bf16 %v38100_v8, %v38099_v56  ;;  %v38105_v8 = vand.u32 4294901760, %v35621_v1  ;;  %v35744_v25 = vsub.f32 %v35626_v5, %v38106_v48  ;;  %v26045_v36 = vpop.f32.mrb[87].mxu0  ;;  %v38114_v2 = vld [vmem:[#allocation98_spill] sm:$0xff] }
0x105d   : > { %38103 = vst [vmem:[#allocation166_spill] sm:$0xff] %v35729_v54  ;;  %27806 = vmatpush3.bf16.msra.mxu0 %v38104_v34  ;;  %v35751_v34 = vld [vmem:[%s36473_s6 + $0x258] sm:$0xff]  ;;  %v38110_v48 = vand.u32 4294901760, %v35649_v6  ;;  %v38111_v5 = vand.u32 4294901760, %v35638_v63  ;;  %v38115_v36 = vld [vmem:[#allocation97_spill] sm:$0xff]  ;;  %v38118_v3 = vand.u32 4294901760, %v35660_v33  ;;  %27850 = vmatpush3.bf16.msra.mxu1 %v35325_v4 }
0x105e   : > { %38096 = vst [vmem:[#allocation160_spill] sm:$0xff] %v35704_v20  ;;  %38101 = vst [vmem:[#allocation164_spill] sm:$0xff] %v35722_v50  ;;  %v35739_v56 = vsub.f32 %v35621_v1, %v38105_v8  ;;  %v17198_v50 = vadd.f32 %v17197_v58, %v17115_v24  ;;  %v38109_v8 = vpack.c.bf16 %v38037_v47, %v38036_v38  ;;  %v38112_v1 = vand.u32 4294901760, %v35643_v29 }
0x105f   : > { %38107 = vst [vmem:[#allocation168_spill] sm:$0xff] %v35744_v25  ;;  %38108 = vst [vmem:[#allocation170_spill] sm:$0xff] %v35751_v34  ;;  %v35760_v20 = vsub.f32 %v35649_v6, %v38110_v48  ;;  %v27813_v24 = vpack.c.bf16 %v38115_v36, %v38114_v2  ;;  %v35777_v48 = vld [vmem:[%s36473_s6 + $0x1d0] sm:$0xff]  ;;  %v38119_v6 = vand.u32 4294901760, %v35665_v57  ;;  %27852 = vmatprep.subr.bf16.mxu1 %v35334_v49 }
0x1060   : > { %27808 = vmatprep.subr.bf16.mxu0 %v38109_v8  ;;  %v35767_v58 = vpack.c.bf16 %v38112_v1, %v38111_v5  ;;  %v27815_v8 = vpack.c.bf16 %v35167_v30, %v38116_v28  ;;  %38117 = vst [vmem:[#allocation68_spill] sm:$0xff] %v35777_v48  ;;  %v17273_v1 = vadd.f32 %v17272_v17, %v17198_v50  ;;  %v35795_v30 = vld [vmem:[%s36473_s6 + $0x1d8] sm:$0xff]  ;;  %v35805_v17 = vld [vmem:[%s36473_s6 + $0x268] sm:$0xff]  ;;  %v38126_v5 = vand.u32 4294901760, %v35698_v16 }
0x1061   : > { %v35783_v29 = vpack.c.bf16 %v38119_v6, %v38118_v3  ;;  %38122 = vst [vmem:[#allocation119_spill] sm:$0xff] %v35795_v30  ;;  %v35800_v6 = vld [vmem:[%s36473_s6 + $0x260] sm:$0xff]  ;;  %38124 = vst [vmem:[#allocation129_spill] sm:$0xff] %v35805_v17  ;;  %27810 = vmatpush3.bf16.msra.mxu0 %v27809_v27  ;;  %v35828_v50 = vld [vmem:[%s36473_s6 + $0x1e8] sm:$0xff]  ;;  %v38129_v3 = vand.u32 4294901760, %v35716_v11  ;;  %v38134_v28 = vand.u32 4294901760, %v35744_v25  ;;  %27854 = vmatpush3.bf16.msra.mxu1 %v35351_v18 }
0x1062   : > { %38113 = vst [vmem:[#allocation125_spill] sm:$0xff] %v35767_v58  ;;  %v38121_v58 = vand.u32 4294901760, %v35679_v53  ;;  %38123 = vst [vmem:[#allocation120_spill] sm:$0xff] %v35800_v6  ;;  %v35823_v27 = vld [vmem:[%s36473_s6 + $0x1e0] sm:$0xff]  ;;  %27812 = vmatprep.subr.bf16.mxu0 %v27811_v45  ;;  %v17353_v45 = vpop.f32.mrb[88].mxu0  ;;  %v17444_v33 = vpop.f32.mrb[88].mxu1  ;;  %27856 = vmatprep.subr.bf16.mxu1 %v35356_v0 }
0x1063   : > { %38120 = vst [vmem:[#allocation113_spill] sm:$0xff] %v35783_v29  ;;  %v35818_v29 = vsub.f32 %v35698_v16, %v38126_v5  ;;  %38127 = vst [vmem:[#allocation130_spill] sm:$0xff] %v35823_v27  ;;  %v35835_v5 = vsub.f32 %v35716_v11, %v38129_v3  ;;  %v38136_v11 = vand.u32 4294901760, %v35751_v34  ;;  %v17354_v16 = vadd.f32 %v17353_v45, %v17273_v1 }
0x1064   : > { %v35789_v63 = vsub.f32 %v35679_v53, %v38121_v58  ;;  %v38125_v58 = vand.u32 4294901760, %v35693_v46  ;;  %38128 = vst [vmem:[#allocation157_spill] sm:$0xff] %v35828_v50  ;;  %v38131_v53 = vand.u32 4294901760, %v35729_v54  ;;  %v38141_v1 = vand.u32 4294901760, %v35795_v30 }
0x1065   : > { %v35857_v54 = vsub.f32 %v35751_v34, %v38136_v11  ;;  %27814 = vmatpush3.bf16.msra.mxu0 %v27813_v24  ;;  %v37183_v11 = vand.u32 4294901760, %v35818_v29  ;;  %v38138_v34 = vand.u32 4294901760, %v35760_v20  ;;  %27858 = vmatpush3.bf16.msra.mxu1 %v35368_v61 }
0x1066   : > { %v35813_v23 = vsub.f32 %v35693_v46, %v38125_v58  ;;  %v38130_v46 = vand.u32 4294901760, %v35711_v43  ;;  %v38133_v58 = vand.u32 4294901760, %v35739_v56  ;;  %27816 = vmatprep.subr.bf16.mxu0 %v27815_v8  ;;  %v38139_v25 = vand.u32 4294901760, %v35789_v63  ;;  %27892 = vmatprep.subr.bf16.mxu1 %v35016_v15 }
0x1067   : > { %v35884_v45 = vsub.f32 %v35795_v30, %v38141_v1  ;;  %v38142_v8 = vand.u32 4294901760, %v35800_v6  ;;  %v37185_v1 = vand.u32 4294901760, %v35857_v54 }
0x1068   : > { %v35842_v57 = vpack.c.bf16 %v38131_v53, %v38130_v46  ;;  %v35851_v3 = vpack.c.bf16 %v38134_v28, %v38133_v58  ;;  %v27817_v28 = vpack.c.bf16 %v35213_v44, %v35208_v9  ;;  %v27819_v58 = vpack.c.bf16 %v35229_v59, %v35224_v26  ;;  %v26078_v46 = vpop.f32.mrb[89].mxu1 }
0x1069   : > { %v38137_v53 = vand.u32 4294901760, %v35777_v48  ;;  %v35879_v49 = vpack.c.bf16 %v38139_v25, %v38138_v34  ;;  %v38144_v46 = vand.u32 4294901760, %v35805_v17  ;;  %v38146_v24 = vand.u32 4294901760, %v35813_v23 }
0x106a   : > { %38132 = vst [vmem:[#allocation159_spill] sm:$0xff] %v35842_v57  ;;  %38135 = vst [vmem:[#allocation161_spill] sm:$0xff] %v35851_v3  ;;  %v26067_v3 = vpop.f32.mrb[89].mxu0  ;;  %v17445_v34 = vadd.f32 %v17444_v33, %v17354_v16  ;;  %27818 = vmatpush3.bf16.msra.mxu0 %v27817_v28  ;;  %v38151_v33 = vand.u32 4294901760, %v35835_v5 }
0x106b   : > { %v35873_v57 = vsub.f32 %v35777_v48, %v38137_v53  ;;  %38140 = vst [vmem:[#allocation163_spill] sm:$0xff] %v35879_v49  ;;  %v35889_v3 = vsub.f32 %v35800_v6, %v38142_v8  ;;  %v35894_v53 = vsub.f32 %v35805_v17, %v38144_v46  ;;  %v35900_v25 = vpack.c.bf16 %v37183_v11, %v38146_v24  ;;  %v38160_v17 = vld [vmem:[#allocation87_spill] sm:$0xff] }
0x106c   : > { %v38148_v49 = vand.u32 4294901760, %v35823_v27  ;;  %v38150_v8 = vand.u32 4294901760, %v35828_v50  ;;  %v27821_v24 = vpack.c.bf16 %v35255_v39, %v35250_v62  ;;  %27820 = vmatprep.subr.bf16.mxu0 %v27819_v58  ;;  %v37188_v46 = vand.u32 4294901760, %v35884_v45 }
0x106d   : > { %38143 = vst [vmem:[#allocation165_spill] sm:$0xff] %v35889_v3  ;;  %38145 = vst [vmem:[#allocation167_spill] sm:$0xff] %v35894_v53  ;;  %v37189_v16 = vand.u32 4294901760, %v35873_v57  ;;  %v37192_v28 = vand.u32 4294901760, %v35889_v3  ;;  %v38153_v11 = vand.u32 4294901760, %v35434_v21 }
0x106e   : > { %38147 = vst [vmem:[#allocation169_spill] sm:$0xff] %v35900_v25  ;;  %v35906_v30 = vsub.f32 %v35823_v27, %v38148_v49  ;;  %v35911_v6 = vsub.f32 %v35828_v50, %v38150_v8  ;;  %v35921_v49 = vpack.c.bf16 %v37185_v1, %v38151_v33  ;;  %v37191_v8 = vand.u32 4294901760, %v35894_v53  ;;  %v17524_v25 = vpop.f32.mrb[90].mxu0  ;;  %v17601_v50 = vpop.f32.mrb[90].mxu1  ;;  %27822 = vmatpush3.bf16.msra.mxu0 %v27821_v24  ;;  %v38156_v24 = vld [vmem:[#allocation135_spill] sm:$0xff] }
0x106f   : > { %18348 = vmatmul.mubr.f32.vlgmr.msra.gmra.mrb[96].mxu1 %v38153_v11  ;;  %v35936_v33 = vpack.c.bf16 %v37188_v46, %v37189_v16  ;;  %v17525_v1 = vadd.f32 %v17524_v25, %v17445_v34  ;;  %v26089_v15 = vpop.f32.mrb[91].mxu0  ;;  %v26100_v58 = vpop.f32.mrb[91].mxu1  ;;  %v38161_v46 = vand.u32 4294901760, %v38160_v17  ;;  %v38165_v25 = vld [vmem:[#allocation5_spill] sm:$0xff]  ;;  %v38171_v17 = vand.u32 4294901760, %v34790_v55 }
0x1070   : > { %38149 = vst [vmem:[#allocation171_spill] sm:$0xff] %v35906_v30  ;;  %38152 = vst [vmem:[#allocation172_spill] sm:$0xff] %v35921_v49  ;;  %27894 = vmatpush3.bf16.msra.mxu1 %v35046_v13  ;;  %v35942_v11 = vpack.c.bf16 %v37191_v8, %v37192_v28  ;;  %18618 = vmatprep.mubr.f32.mxu1 %v35423_v12  ;;  %v38157_v13 = vpack.c.bf16 %v35342_v40, %v38156_v24  ;;  %v38158_v49 = vld [vmem:[#allocation88_spill] sm:$0xff]  ;;  %v38163_v48 = vand.u32 4294901760, %v35911_v6  ;;  %v38166_v15 = vld [vmem:[#allocation143_spill] sm:$0xff] }
0x1071   : > { %38154 = vst [vmem:[#allocation173_spill] sm:$0xff] %v35936_v33  ;;  %v38159_v27 = vand.u32 4294901760, %v38158_v49  ;;  %v38162_v33 = vand.u32 4294901760, %v35906_v30  ;;  %27896 = vmatprep.subr.bf16.mxu1 %v38165_v25  ;;  %v17602_v34 = vadd.f32 %v17601_v50, %v17525_v1  ;;  %v38167_v58 = vld [vmem:[#allocation137_spill] sm:$0xff]  ;;  %v38169_v40 = vld [vmem:[#allocation96_spill] sm:$0xff]  ;;  %v38170_v49 = vand.u32 4294901760, %v34771_v41 }
0x1072   : > { %38155 = vst [vmem:[#allocation28_spill] sm:$0xff] %v35942_v11  ;;  %27824 = vmatprep.subr.bf16.mxu0 %v38157_v13  ;;  %v38168_v28 = vpack.c.bf16 %v38166_v15, %v38167_v58  ;;  %v17684_v50 = vpop.f32.mrb[92].mxu0  ;;  %v38175_v41 = vand.u32 4294901760, %v34874_v14  ;;  %v38176_v55 = vand.u32 4294901760, %v34880_v60  ;;  %v38180_v14 = vand.u32 4294901760, %v34923_v35  ;;  %v38187_v35 = vld [vmem:[#allocation108_spill] sm:$0xff] }
0x1073   : > { %v27859_v16 = vpack.c.bf16 %v38161_v46, %v38159_v27  ;;  %v35956_v8 = vpack.c.bf16 %v38163_v48, %v38162_v33  ;;  %v27861_v27 = vpack.c.bf16 %v38171_v17, %v38170_v49  ;;  %v38172_v46 = vld [vmem:[#allocation95_spill] sm:$0xff]  ;;  %v38173_v48 = vand.u32 4294901760, %v34832_v31  ;;  %v17759_v1 = vpop.f32.mrb[92].mxu1  ;;  %v26111_v13 = vpop.f32.mrb[93].mxu0 }
0x1074   : > { %27826 = vmatpush3.bf16.msra.mxu0 %v38168_v28  ;;  %27898 = vmatpush3.bf16.msra.mxu1 %v38169_v40  ;;  %v38174_v33 = vand.u32 4294901760, %v34837_v32  ;;  %v27865_v28 = vpack.c.bf16 %v38176_v55, %v38175_v41  ;;  %v26122_v31 = vpop.f32.mrb[93].mxu1  ;;  %v38177_v32 = vand.u32 4294901760, %v34894_v52  ;;  %v38181_v60 = vand.u32 4294901760, %v34928_v22  ;;  %v38188_v22 = vld [vmem:[#allocation94_spill] sm:$0xff]  ;;  %v38199_v41 = vld [vmem:[#allocation100_spill] sm:$0xff] }
0x1075   : > { %38164 = vst [vmem:[#allocation59_spill] sm:$0xff] %v35956_v8  ;;  %27860 = vmatprep.subr.bf16.mxu0 %v27859_v16  ;;  %27900 = vmatprep.subr.bf16.mxu1 %v38172_v46  ;;  %v17685_v16 = vadd.f32 %v17684_v50, %v17602_v34  ;;  %v38183_v52 = vand.u32 4294901760, %v38037_v47  ;;  %v38189_v49 = vand.u32 4294901760, %v38188_v22  ;;  %v38198_v50 = vand.u32 4294901760, %v38115_v36 }
0x1076   : > { %v27863_v24 = vpack.c.bf16 %v38174_v33, %v38173_v48  ;;  %v38194_v48 = vld [vmem:[#allocation133_spill] sm:$0xff]  ;;  %v38200_v55 = vand.u32 4294901760, %v38199_v41  ;;  %v38215_v22 = vand.u32 4294901760, %v35213_v44  ;;  %v38222_v44 = vld [vmem:[#allocation32_spill] sm:$0xff]  ;;  %v38224_v41 = vld [vmem:[#allocation102_spill] sm:$0xff] }
0x1077   : > { %18240 = vmatmul.mubr.f32.vlgmr.msra.gmra.mrb[96].mxu0 %v35434_v21  ;;  %v38178_v21 = vand.u32 4294901760, %v34910_v37  ;;  %v35984_v15 = vadd.f32 %v17759_v1, %v17685_v16  ;;  %v38184_v37 = vand.u32 4294901760, %v38088_v7 }
0x1078   : > { %27862 = vmatpush3.bf16.msra.mxu0 %v27861_v27  ;;  %18514 = vmatprep.mubr.f32.mxu0 %v35423_v12  ;;  %v27869_v12 = vpack.c.bf16 %v38181_v60, %v38180_v14  ;;  %v38205_v14 = vld [vmem:[#allocation147_spill] sm:$0xff] }
0x1079   : > { %27902 = vmatpush3.bf16.msra.mxu1 %v35191_v19  ;;  %27864 = vmatprep.subr.bf16.mxu0 %v27863_v24  ;;  %v27867_v25 = vpack.c.bf16 %v38178_v21, %v38177_v32  ;;  %38179 = vst [vmem:[#allocation22_spill] sm:$0xff] %v35984_v15  ;;  %v38182_v19 = vand.u32 4294901760, %v38036_v38  ;;  %v38192_v38 = vld [vmem:[#allocation21_spill] sm:$0xff]  ;;  %v38197_v24 = vand.u32 4294901760, %v38114_v2  ;;  %v38203_v32 = vld [vmem:[#allocation112_spill] sm:$0xff]  ;;  %v38206_v60 = vand.u32 4294901760, %v38205_v14 }
0x107a   : > { %27904 = vmatprep.subr.bf16.mxu1 %v35235_v51  ;;  %v38185_v51 = vld [vmem:[#allocation91_spill] sm:$0xff]  ;;  %v38193_v46 = vand.u32 4294901760, %v38192_v38  ;;  %v38204_v21 = vand.u32 4294901760, %v38203_v32 }
0x107b   : > { %v27871_v34 = vpack.c.bf16 %v38183_v52, %v38182_v19  ;;  %v38186_v58 = vand.u32 4294901760, %v38185_v51  ;;  %v27877_v1 = vpack.c.bf16 %v38198_v50, %v38197_v24  ;;  %v18748_v2 = vsub.f32 %v38205_v14, %v38206_v60  ;;  %v38209_v19 = vld [vmem:[#allocation134_spill] sm:$0xff]  ;;  %v38210_v52 = vld [vmem:[#allocation151_spill] sm:$0xff]  ;;  %v38212_v51 = vld [vmem:[#allocation152_spill] sm:$0xff] }
0x107c   : > { %27866 = vmatpush3.bf16.msra.mxu0 %v27865_v28  ;;  %v18853_v47 = vsub.f32 %v38192_v38, %v38193_v46  ;;  %v38201_v28 = vld [vmem:[#allocation99_spill] sm:$0xff]  ;;  %v38218_v46 = vld [vmem:[#allocation153_spill] sm:$0xff] }
0x107d   : > { %27906 = vmatpush3.bf16.msra.mxu1 %v35270_v42  ;;  %27868 = vmatprep.subr.bf16.mxu0 %v27867_v25  ;;  %v27873_v40 = vpack.c.bf16 %v38186_v58, %v38184_v37  ;;  %v38190_v42 = vld [vmem:[#allocation93_spill] sm:$0xff]  ;;  %v38202_v16 = vand.u32 4294901760, %v38201_v28  ;;  %v18741_v25 = vsub.f32 %v38203_v32, %v38204_v21  ;;  %v38213_v58 = vand.u32 4294901760, %v38212_v51 }
0x107e   : > { %27908 = vmatprep.subr.bf16.mxu1 %v35276_v10  ;;  %v38191_v17 = vand.u32 4294901760, %v38190_v42  ;;  %v38195_v10 = vld [vmem:[#allocation109_spill] sm:$0xff]  ;;  %v18854_v31 = vand.u32 4294901760, %v18853_v47  ;;  %v38216_v42 = vand.u32 4294901760, %v35224_v26  ;;  %v38219_v47 = vand.u32 4294901760, %v38218_v46 }
0x107f   : > { %v38196_v33 = vand.u32 4294901760, %v38195_v10  ;;  %v27879_v13 = vpack.c.bf16 %v38202_v16, %v38200_v55  ;;  %v18749_v50 = vand.u32 4294901760, %v18748_v2 }
0x1080   : > { %27870 = vmatpush3.bf16.msra.mxu0 %v27869_v12  ;;  %v27875_v27 = vpack.c.bf16 %v38191_v17, %v38189_v49  ;;  %v38207_v12 = vld [vmem:[#allocation142_spill] sm:$0xff]  ;;  %v38217_v17 = vand.u32 4294901760, %v35229_v59  ;;  %v38225_v59 = vand.u32 4294901760, %v38224_v41 }
0x1081   : > { %27910 = vmatpush3.bf16.msra.mxu1 %v38187_v35  ;;  %27872 = vmatprep.subr.bf16.mxu0 %v27871_v34  ;;  %v18860_v7 = vsub.f32 %v38195_v10, %v38196_v33  ;;  %v36028_v36 = vand.u32 4294901760, %v38207_v12  ;;  %v38211_v34 = vand.u32 4294901760, %v38210_v52  ;;  %v38214_v35 = vand.u32 4294901760, %v35208_v9  ;;  %v38220_v33 = vld [vmem:[#allocation78_spill] sm:$0xff] }
0x1082   : > { %27912 = vmatprep.subr.bf16.mxu1 %v38194_v48  ;;  %v18755_v48 = vsub.f32 %v38218_v46, %v38219_v47  ;;  %v18742_v9 = vand.u32 4294901760, %v18741_v25  ;;  %v18888_v55 = vsub.f32 %v38224_v41, %v38225_v59  ;;  %v38227_v25 = vand.u32 4294901760, %v35255_v39 }
0x1083   : > { %38208 = vst [vmem:[#allocation31_spill] sm:$0xff] %v36028_v36  ;;  %v18867_v37 = vsub.f32 %v38210_v52, %v38211_v34  ;;  %v27881_v49 = vpack.c.bf16 %v38215_v22, %v38214_v35  ;;  %v36060_v28 = vsub.f32 %v38207_v12, %v36028_v36  ;;  %v38228_v34 = vld [vmem:[#allocation115_spill] sm:$0xff]  ;;  %v38230_v22 = vld [vmem:[#allocation114_spill] sm:$0xff] }
0x1084   : > { %27874 = vmatpush3.bf16.msra.mxu0 %v27873_v40  ;;  %v18874_v40 = vsub.f32 %v38212_v51, %v38213_v58  ;;  %v18756_v2 = vand.u32 4294901760, %v18755_v48  ;;  %v38229_v58 = vand.u32 4294901760, %v38228_v34  ;;  %v38231_v12 = vand.u32 4294901760, %v38230_v22 }
0x1085   : > { %27914 = vmatpush3.bf16.msra.mxu1 %v35325_v4  ;;  %27876 = vmatprep.subr.bf16.mxu0 %v27875_v27  ;;  %v18861_v4 = vand.u32 4294901760, %v18860_v7  ;;  %v27883_v27 = vpack.c.bf16 %v38217_v17, %v38216_v42  ;;  %v38221_v7 = vand.u32 4294901760, %v38220_v33  ;;  %v18868_v21 = vand.u32 4294901760, %v18867_v37  ;;  %v38234_v17 = vld [vmem:[#allocation110_spill] sm:$0xff] }
0x1086   : > { %27916 = vmatprep.subr.bf16.mxu1 %v38209_v19  ;;  %v18769_v35 = vsub.f32 %v38228_v34, %v38229_v58  ;;  %v18776_v42 = vsub.f32 %v38230_v22, %v38231_v12  ;;  %v38235_v47 = vand.u32 4294901760, %v38234_v17  ;;  %v38246_v12 = vand.u32 4294901760, %v35711_v43 }
0x1087   : > { %v18762_v24 = vsub.f32 %v38220_v33, %v38221_v7  ;;  %v27955_v16 = vpack.c.bf16 %v18861_v4, %v18854_v31  ;;  %v38232_v4 = vld [vmem:[#allocation80_spill] sm:$0xff] }
0x1088   : > { %27878 = vmatpush3.bf16.msra.mxu0 %v27877_v1  ;;  %v38223_v1 = vand.u32 4294901760, %v38222_v44  ;;  %v38233_v39 = vand.u32 4294901760, %v38232_v4  ;;  %v18902_v48 = vsub.f32 %v38234_v17, %v38235_v47  ;;  %v38236_v7 = vld [vmem:[#allocation144_spill] sm:$0xff]  ;;  %v18777_v59 = vand.u32 4294901760, %v18776_v42  ;;  %v38251_v47 = vld [vmem:[#allocation141_spill] sm:$0xff] }
0x1089   : > { %27918 = vmatpush3.bf16.msra.mxu1 %v35351_v18  ;;  %27880 = vmatprep.subr.bf16.mxu0 %v27879_v13  ;;  %v18875_v18 = vand.u32 4294901760, %v18874_v40  ;;  %v38226_v13 = vand.u32 4294901760, %v35250_v62  ;;  %v18763_v19 = vand.u32 4294901760, %v18762_v24  ;;  %v18889_v62 = vand.u32 4294901760, %v18888_v55 }
0x108a   : > { %v18881_v26 = vsub.f32 %v38222_v44, %v38223_v1  ;;  %27920 = vmatprep.subr.bf16.mxu1 %v35356_v0  ;;  %v27957_v0 = vpack.c.bf16 %v18749_v50, %v18742_v9  ;;  %v18895_v37 = vsub.f32 %v38232_v4, %v38233_v39  ;;  %v38239_v9 = vld [vmem:[#allocation138_spill] sm:$0xff]  ;;  %v18909_v42 = vsub.f32 %v35711_v43, %v38246_v12  ;;  %v38249_v39 = vld [vmem:[#allocation139_spill] sm:$0xff] }
0x108b   : > { %v27885_v60 = vpack.c.bf16 %v38227_v25, %v38226_v13  ;;  %v27959_v40 = vpack.c.bf16 %v18875_v18, %v18868_v21  ;;  %v38240_v50 = vand.u32 4294901760, %v38239_v9  ;;  %v38241_v21 = vld [vmem:[#allocation122_spill] sm:$0xff]  ;;  %v38243_v25 = vld [vmem:[#allocation123_spill] sm:$0xff]  ;;  %v38258_v12 = vand.u32 4294901760, %v35739_v56 }
0x108c   : > { %27882 = vmatpush3.bf16.msra.mxu0 %v27881_v49  ;;  %v18882_v31 = vand.u32 4294901760, %v18881_v26  ;;  %v37193_v49 = vand.u32 4294901760, %v36060_v28  ;;  %v18770_v26 = vand.u32 4294901760, %v18769_v35  ;;  %v38242_v18 = vand.u32 4294901760, %v38241_v21 }
0x108d   : > { %27922 = vmatpush3.bf16.msra.mxu1 %v35368_v61  ;;  %27884 = vmatprep.subr.bf16.mxu0 %v27883_v27  ;;  %v27961_v61 = vpack.c.bf16 %v18763_v19, %v18756_v2  ;;  %v38237_v27 = vld [vmem:[#allocation136_spill] sm:$0xff]  ;;  %v38245_v19 = vld [vmem:[#allocation146_spill] sm:$0xff]  ;;  %v18903_v35 = vand.u32 4294901760, %v18902_v48  ;;  %v38256_v48 = vld [vmem:[#allocation69_spill] sm:$0xff] }
0x108e   : > { %27956 = vmatprep.subr.bf16.mxu1 %v27955_v16  ;;  %v38238_v24 = vand.u32 4294901760, %v38237_v27  ;;  %v27963_v55 = vpack.c.bf16 %v18889_v62, %v18882_v31  ;;  %v18896_v16 = vand.u32 4294901760, %v18895_v37  ;;  %v18783_v13 = vsub.f32 %v38241_v21, %v38242_v18 }
0x108f   : > { %v18724_v58 = vsub.f32 %v36060_v28, %v37193_v49  ;;  %v38250_v37 = vand.u32 4294901760, %v38249_v39  ;;  %v38252_v27 = vand.u32 4294901760, %v38251_v47  ;;  %v27965_v9 = vpack.c.bf16 %v18777_v59, %v18770_v26 }
0x1090   : > { %18620 = vmatmul.mubr.f32.vlgmr.msra.gmra.mrb[98].mxu1 %v38236_v7  ;;  %27886 = vmatpush3.bf16.msra.mxu0 %v27885_v60  ;;  %v36086_v1 = vpack.c.bf16 %v38240_v50, %v38238_v24  ;;  %v38244_v60 = vand.u32 4294901760, %v38243_v25  ;;  %v38254_v50 = vld [vmem:[#allocation145_spill] sm:$0xff]  ;;  %v18797_v49 = vsub.f32 %v35739_v56, %v38258_v12  ;;  %v38261_v26 = vand.u32 4294901760, %v35760_v20  ;;  %v38265_v12 = vld [vmem:[#allocation82_spill] sm:$0xff] }
0x1091   : > { %27958 = vmatpush3.bf16.msra.mxu1 %v27957_v0  ;;  %18962 = vmatprep.mubr.f32.mxu1 %v36028_v36  ;;  %v38247_v0 = vld [vmem:[#allocation166_spill] sm:$0xff]  ;;  %v36109_v24 = vpack.c.bf16 %v38252_v27, %v38250_v37  ;;  %v38255_v18 = vand.u32 4294901760, %v38254_v50  ;;  %v18784_v37 = vand.u32 4294901760, %v18783_v13  ;;  %v38262_v27 = vand.u32 4294901760, %v35789_v63 }
0x1092   : > { %v18790_v2 = vsub.f32 %v38243_v25, %v38244_v60  ;;  %27888 = vmatprep.subr.bf16.mxu0 %v38245_v19  ;;  %27960 = vmatprep.subr.bf16.mxu1 %v27959_v40  ;;  %v38248_v31 = vand.u32 4294901760, %v38247_v0  ;;  %v38253_v40 = vld [vmem:[#allocation150_spill] sm:$0xff]  ;;  %v38257_v60 = vand.u32 4294901760, %v38256_v48  ;;  %v18923_v59 = vsub.f32 %v35760_v20, %v38261_v26 }
0x1093   : > { %v18725_v50 = vand.u32 4294901760, %v18724_v58  ;;  %v18910_v48 = vand.u32 4294901760, %v18909_v42  ;;  %v38266_v13 = vand.u32 4294901760, %v38265_v12  ;;  %v18798_v26 = vand.u32 4294901760, %v18797_v49 }
0x1094   : > { %v18916_v62 = vsub.f32 %v38247_v0, %v38248_v31  ;;  %27890 = vmatpush3.bf16.msra.mxu0 %v38253_v40  ;;  %v36116_v19 = vpack.c.bf16 %v38257_v60, %v38255_v18  ;;  %v38259_v31 = vld [vmem:[#allocation168_spill] sm:$0xff]  ;;  %v18791_v47 = vand.u32 4294901760, %v18790_v2  ;;  %v18930_v40 = vsub.f32 %v35789_v63, %v38262_v27 }
0x1095   : > { %v38260_v15 = vand.u32 4294901760, %v38259_v31  ;;  %27962 = vmatpush3.bf16.msra.mxu1 %v27961_v61  ;;  %27924 = vmatprep.subr.bf16.mxu0 %v36086_v1  ;;  %v27967_v18 = vpack.c.bf16 %v18903_v35, %v18896_v16  ;;  %v38267_v27 = vand.u32 4294901760, %v35813_v23  ;;  %v38268_v16 = vand.u32 4294901760, %v35818_v29  ;;  %v38269_v35 = vld [vmem:[#allocation103_spill] sm:$0xff] }
0x1096   : > { %27964 = vmatprep.subr.bf16.mxu1 %v27963_v55  ;;  %v18917_v60 = vand.u32 4294901760, %v18916_v62  ;;  %v38270_v42 = vand.u32 4294901760, %v38269_v35  ;;  %v38271_v62 = vld [vmem:[#allocation105_spill] sm:$0xff]  ;;  %v18924_v49 = vand.u32 4294901760, %v18923_v59  ;;  %v38273_v12 = vand.u32 4294901760, %v35835_v5 }
0x1097   : > { %v18804_v39 = vsub.f32 %v38259_v31, %v38260_v15  ;;  %18516 = vmatmul.mubr.f32.vlgmr.msra.gmra.mrb[98].mxu0 %v38236_v7  ;;  %v38263_v15 = vld [vmem:[#allocation58_spill] sm:$0xff]  ;;  %v18811_v55 = vsub.f32 %v35813_v23, %v38267_v27  ;;  %v18818_v58 = vsub.f32 %v35818_v29, %v38268_v16  ;;  %v27969_v7 = vpack.c.bf16 %v18791_v47, %v18784_v37  ;;  %v38275_v16 = vld [vmem:[#allocation148_spill] sm:$0xff]  ;;  %v38277_v47 = vld [vmem:[#allocation149_spill] sm:$0xff] }
0x1098   : > { %v38264_v61 = vand.u32 4294901760, %v38263_v15  ;;  %27926 = vmatpush3.bf16.msra.mxu0 %v36109_v24  ;;  %18726 = vmatprep.mubr.f32.mxu0 %v18725_v50  ;;  %v38272_v15 = vand.u32 4294901760, %v38271_v62  ;;  %v27971_v50 = vpack.c.bf16 %v18917_v60, %v18910_v48  ;;  %v38274_v27 = vand.u32 4294901760, %v35857_v54  ;;  %v38281_v48 = vld [vmem:[#allocation155_spill] sm:$0xff] }
0x1099   : > { %v18805_v8 = vand.u32 4294901760, %v18804_v39  ;;  %27966 = vmatpush3.bf16.msra.mxu1 %v27965_v9  ;;  %27928 = vmatprep.subr.bf16.mxu0 %v36116_v19  ;;  %v18931_v39 = vand.u32 4294901760, %v18930_v40  ;;  %v38276_v37 = vand.u32 4294901760, %v38275_v16  ;;  %v38278_v35 = vand.u32 4294901760, %v38277_v47  ;;  %v38279_v40 = vld [vmem:[#allocation154_spill] sm:$0xff] }
0x109a   : > { %v36136_v2 = vpack.c.bf16 %v38266_v13, %v38264_v61  ;;  %v36150_v61 = vpack.c.bf16 %v38272_v15, %v38270_v42  ;;  %27968 = vmatprep.subr.bf16.mxu1 %v27967_v18  ;;  %v18937_v13 = vsub.f32 %v35835_v5, %v38273_v12  ;;  %v18944_v9 = vsub.f32 %v35857_v54, %v38274_v27 }
0x109b   : > { %v36162_v11 = vpack.c.bf16 %v38278_v35, %v38276_v37  ;;  %v27973_v59 = vpack.c.bf16 %v18805_v8, %v18798_v26  ;;  %v38280_v18 = vand.u32 4294901760, %v38279_v40  ;;  %v38282_v60 = vand.u32 4294901760, %v38281_v48  ;;  %v38289_v40 = vld [vmem:[#allocation49_spill] sm:$0xff] }
0x109c   : > { %27930 = vmatpush3.bf16.msra.mxu0 %v36136_v2  ;;  %v18812_v62 = vand.u32 4294901760, %v18811_v55  ;;  %v18819_v15 = vand.u32 4294901760, %v18818_v58  ;;  %v27975_v12 = vpack.c.bf16 %v18931_v39, %v18924_v49  ;;  %v38283_v27 = vand.u32 4294901760, %v35873_v57  ;;  %v38287_v49 = vld [vmem:[#allocation75_spill] sm:$0xff] }
0x109d   : > { %v36169_v42 = vpack.c.bf16 %v38282_v60, %v38280_v18  ;;  %27970 = vmatpush3.bf16.msra.mxu1 %v27969_v7  ;;  %27932 = vmatprep.subr.bf16.mxu0 %v36150_v61  ;;  %v38284_v37 = vand.u32 4294901760, %v35884_v45  ;;  %v18938_v26 = vand.u32 4294901760, %v18937_v13  ;;  %v18945_v47 = vand.u32 4294901760, %v18944_v9  ;;  %v38293_v9 = vld [vmem:[#allocation124_spill] sm:$0xff] }
0x109e   : > { %v18825_v16 = vsub.f32 %v35873_v57, %v38283_v27  ;;  %27972 = vmatprep.subr.bf16.mxu1 %v27971_v50  ;;  %v38285_v35 = vand.u32 4294901760, %v35889_v3  ;;  %v38286_v58 = vand.u32 4294901760, %v35894_v53  ;;  %v38288_v39 = vand.u32 4294901760, %v38287_v49  ;;  %v38291_v50 = vld [vmem:[#allocation101_spill] sm:$0xff] }
0x109f   : > { %v18832_v8 = vsub.f32 %v35884_v45, %v38284_v37  ;;  %v38290_v18 = vand.u32 4294901760, %v38289_v40  ;;  %v27977_v60 = vpack.c.bf16 %v18819_v15, %v18812_v62  ;;  %v38292_v13 = vand.u32 4294901760, %v38291_v50  ;;  %v38297_v50 = vld [vmem:[#allocation121_spill] sm:$0xff] }
0x10a0   : > { %v18951_v55 = vsub.f32 %v35889_v3, %v38285_v35  ;;  %v18958_v7 = vsub.f32 %v35894_v53, %v38286_v58  ;;  %27934 = vmatpush3.bf16.msra.mxu0 %v36162_v11  ;;  %v38294_v27 = vand.u32 4294901760, %v38293_v9  ;;  %v18826_v35 = vand.u32 4294901760, %v18825_v16  ;;  %v38303_v53 = vld [vmem:[#allocation131_spill] sm:$0xff]  ;;  %v38305_v3 = vld [vmem:[#allocation140_spill] sm:$0xff] }
0x10a1   : > { %v36189_v48 = vpack.c.bf16 %v38290_v18, %v38288_v39  ;;  %27974 = vmatpush3.bf16.msra.mxu1 %v27973_v59  ;;  %27936 = vmatprep.subr.bf16.mxu0 %v36169_v42  ;;  %v18833_v58 = vand.u32 4294901760, %v18832_v8  ;;  %v38295_v36 = vand.u32 4294901760, %v35906_v30  ;;  %v38296_v40 = vand.u32 4294901760, %v35911_v6  ;;  %v38301_v8 = vld [vmem:[#allocation116_spill] sm:$0xff] }
0x10a2   : > { %v36195_v37 = vpack.c.bf16 %v38294_v27, %v38292_v13  ;;  %27976 = vmatprep.subr.bf16.mxu1 %v27975_v12  ;;  %v27979_v62 = vpack.c.bf16 %v18945_v47, %v18938_v26  ;;  %v18952_v15 = vand.u32 4294901760, %v18951_v55  ;;  %v18959_v18 = vand.u32 4294901760, %v18958_v7  ;;  %v38299_v13 = vld [vmem:[#allocation127_spill] sm:$0xff]  ;;  %v38306_v7 = vld [vmem:[#allocation156_spill] sm:$0xff] }
0x10a3   : > { %v18839_v49 = vsub.f32 %v35906_v30, %v38295_v36  ;;  %v18846_v39 = vsub.f32 %v35911_v6, %v38296_v40  ;;  %v38298_v59 = vand.u32 4294901760, %v38297_v50  ;;  %v38300_v9 = vand.u32 4294901760, %v38299_v13 }
0x10a4   : > { %27938 = vmatpush3.bf16.msra.mxu0 %v36189_v48  ;;  %v38302_v27 = vand.u32 4294901760, %v38301_v8  ;;  %v38304_v36 = vand.u32 4294901760, %v38303_v53  ;;  %v36218_v40 = vand.u32 4294901760, %v38305_v3  ;;  %v27981_v12 = vpack.c.bf16 %v18833_v58, %v18826_v35  ;;  %v38310_v35 = vld [vmem:[#allocation162_spill] sm:$0xff]  ;;  %v38316_v8 = vld [vmem:[#allocation119_spill] sm:$0xff] }
0x10a5   : > { %v36209_v16 = vpack.c.bf16 %v38300_v9, %v38298_v59  ;;  %27978 = vmatpush3.bf16.msra.mxu1 %v27977_v60  ;;  %27940 = vmatprep.subr.bf16.mxu0 %v36195_v37  ;;  %v18840_v26 = vand.u32 4294901760, %v18839_v49  ;;  %v18847_v47 = vand.u32 4294901760, %v18846_v39  ;;  %v27983_v55 = vpack.c.bf16 %v18959_v18, %v18952_v15  ;;  %v38308_v59 = vld [vmem:[#allocation158_spill] sm:$0xff]  ;;  %v38314_v15 = vld [vmem:[#allocation68_spill] sm:$0xff] }
0x10a6   : > { %v36215_v30 = vpack.c.bf16 %v38304_v36, %v38302_v27  ;;  %27980 = vmatprep.subr.bf16.mxu1 %v27979_v62  ;;  %v38307_v50 = vand.u32 4294901760, %v38306_v7  ;;  %v38309_v13 = vand.u32 4294901760, %v38308_v59  ;;  %v36230_v9 = vsub.f32 %v38305_v3, %v36218_v40  ;;  %v38312_v49 = vld [vmem:[#allocation170_spill] sm:$0xff] }
0x10a7   : > { %v27985_v60 = vpack.c.bf16 %v18847_v47, %v18840_v26  ;;  %v38311_v58 = vand.u32 4294901760, %v38310_v35  ;;  %v38313_v39 = vand.u32 4294901760, %v38312_v49  ;;  %v38315_v18 = vand.u32 4294901760, %v38314_v15  ;;  %v38320_v47 = vld [vmem:[#allocation129_spill] sm:$0xff] }
0x10a8   : > { %27942 = vmatpush3.bf16.msra.mxu0 %v36209_v16  ;;  %v36226_v53 = vpack.c.bf16 %v38309_v13, %v38307_v50  ;;  %v38317_v27 = vand.u32 4294901760, %v38316_v8  ;;  %v18729_v3 = vand.u32 4294901760, %v36230_v9  ;;  %v38321_v7 = vand.u32 4294901760, %v38320_v47  ;;  %v38322_v50 = vld [vmem:[#allocation130_spill] sm:$0xff]  ;;  %v38324_v13 = vld [vmem:[#allocation157_spill] sm:$0xff] }
0x10a9   : > { %27982 = vmatpush3.bf16.msra.mxu1 %v27981_v12  ;;  %27944 = vmatprep.subr.bf16.mxu0 %v36215_v30  ;;  %v36237_v62 = vpack.c.bf16 %v38313_v39, %v38311_v58  ;;  %v38318_v12 = vld [vmem:[#allocation120_spill] sm:$0xff]  ;;  %v38323_v59 = vand.u32 4294901760, %v38322_v50  ;;  %v38325_v35 = vand.u32 4294901760, %v38324_v13  ;;  %v38326_v49 = vand.u32 4294901760, %v36060_v28  ;;  %v19495_v50 = vld [vmem:[%s36473_s6 + $0x48] sm:$0xff] }
0x10aa   : > { %27984 = vmatprep.subr.bf16.mxu1 %v27983_v55  ;;  %v36244_v36 = vpack.c.bf16 %v38317_v27, %v38315_v18  ;;  %v38319_v26 = vand.u32 4294901760, %v38318_v12  ;;  %v27987_v39 = vpack.c.bf16 %v38195_v10, %v38192_v38  ;;  %v27989_v15 = vpack.c.bf16 %v38205_v14, %v38203_v32 }
0x10ab   : > { %v36261_v58 = vpack.c.bf16 %v38325_v35, %v38323_v59  ;;  %v27991_v8 = vpack.c.bf16 %v38212_v51, %v38210_v52  ;;  %v27993_v38 = vpack.c.bf16 %v38220_v33, %v38218_v46  ;;  %v27995_v10 = vpack.c.bf16 %v38224_v41, %v38222_v44 }
0x10ac   : > { %27946 = vmatpush3.bf16.msra.mxu0 %v36226_v53  ;;  %v36253_v55 = vpack.c.bf16 %v38321_v7, %v38319_v26  ;;  %v27997_v32 = vpack.c.bf16 %v38230_v22, %v38228_v34  ;;  %v27999_v14 = vpack.c.bf16 %v38234_v17, %v38232_v4  ;;  %v28001_v52 = vpack.c.bf16 %v38243_v25, %v38241_v21  ;;  %v38336_v34 = vld [vmem:[#allocation164_spill] sm:$0xff]  ;;  %v38337_v22 = vld [vmem:[#allocation125_spill] sm:$0xff]  ;;  %v38339_v4 = vld [vmem:[#allocation159_spill] sm:$0xff] }
0x10ad   : > { %27986 = vmatpush3.bf16.msra.mxu1 %v27985_v60  ;;  %27948 = vmatprep.subr.bf16.mxu0 %v36237_v62  ;;  %v18730_v60 = vsub.f32 %v36230_v9, %v18729_v3  ;;  %v28003_v51 = vpack.c.bf16 %v38247_v0, %v35711_v43  ;;  %v28005_v46 = vpack.c.bf16 %v38259_v31, %v35739_v56  ;;  %v38340_v17 = vld [vmem:[#allocation161_spill] sm:$0xff]  ;;  %v38344_v25 = vmov 0.0  }
0x10ae   : > { %28020 = vmatprep.subr.bf16.mxu1 %v36086_v1  ;;  %v28007_v33 = vpack.c.bf16 %v35789_v63, %v35760_v20  ;;  %v28009_v44 = vpack.c.bf16 %v35818_v29, %v35813_v23  ;;  %v28011_v43 = vpack.c.bf16 %v35857_v54, %v35835_v5  ;;  %v28013_v56 = vpack.c.bf16 %v35884_v45, %v35873_v57  ;;  %v38327_v20 = vld [vmem:[#allocation165_spill] sm:$0xff]  ;;  %v38328_v63 = vld [vmem:[#allocation167_spill] sm:$0xff]  ;;  %v38332_v5 = vld [vmem:[#allocation106_spill] sm:$0xff] }
0x10af   : > { %v18731_v18 = vand.u32 4294901760, %v18730_v60  ;;  %v28015_v23 = vpack.c.bf16 %v38328_v63, %v38327_v20  ;;  %v38329_v29 = vld [vmem:[#allocation171_spill] sm:$0xff]  ;;  %v38334_v45 = vld [vmem:[#allocation117_spill] sm:$0xff]  ;;  %v38348_v31 = vmov 0.0|0.0   ;;  %v19508_v13 = vand.u32 4294901760, %v19495_v50 }
0x10b0   : > { %18964 = vmatmul.mubr.f32.vlgmr.msra.gmra.mrb[100].mxu1 %v36218_v40  ;;  %27950 = vmatpush3.bf16.msra.mxu0 %v36244_v36  ;;  %v28017_v41 = vpack.c.bf16 %v35911_v6, %v38329_v29  ;;  %v38330_v54 = vld [vmem:[#allocation31_spill] sm:$0xff]  ;;  %v38333_v6 = vld [vmem:[#allocation126_spill] sm:$0xff]  ;;  %v38342_v21 = vld [vmem:[#allocation169_spill] sm:$0xff] }
0x10b1   : > { %28022 = vmatpush3.bf16.msra.mxu1 %v36109_v24  ;;  %19206 = vmatprep.mubr.f32.mxu1 %v38326_v49  ;;  %v38331_v57 = vld [vmem:[#allocation107_spill] sm:$0xff]  ;;  %v38345_v0 = vld [vmem:[#allocation173_spill] sm:$0xff]  ;;  %v19590_v60 = vsub.f32 %v19495_v50, %v19508_v13 }
0x10b2   : > { %27952 = vmatprep.subr.bf16.mxu0 %v36253_v55  ;;  %28024 = vmatprep.subr.bf16.mxu1 %v36116_v19 }
0x10b4   : > { %27954 = vmatpush3.bf16.msra.mxu0 %v36261_v58 }
0x10b5   : > { %28026 = vmatpush3.bf16.msra.mxu1 %v36136_v2  ;;  %27988 = vmatprep.subr.bf16.mxu0 %v27987_v39  ;;  %v19591_v39 = vand.u32 4294901760, %v19590_v60 }
0x10b6   : > { %28028 = vmatprep.subr.bf16.mxu1 %v36150_v61 }
0x10b7   : > { %18732 = vmatmul.mubr.f32.vlgmr.msra.gmra.mrb[100].mxu0 %v18731_v18 }
0x10b8   : > { %27990 = vmatpush3.bf16.msra.mxu0 %v27989_v15  ;;  %19099 = vmatprep.mubr.f32.mxu0 %v36060_v28  ;;  %v38335_v28 = vld [vmem:[#allocation160_spill] sm:$0xff] }
0x10b9   : > { %28030 = vmatpush3.bf16.msra.mxu1 %v36162_v11  ;;  %27992 = vmatprep.subr.bf16.mxu0 %v27991_v8  ;;  %v19592_v8 = vsub.f32 %v19590_v60, %v19591_v39 }
0x10ba   : > { %28032 = vmatprep.subr.bf16.mxu1 %v36169_v42 }
0x10bc   : > { %27994 = vmatpush3.bf16.msra.mxu0 %v27993_v38 }
0x10bd   : > { %28034 = vmatpush3.bf16.msra.mxu1 %v36189_v48  ;;  %27996 = vmatprep.subr.bf16.mxu0 %v27995_v10 }
0x10be   : > { %28036 = vmatprep.subr.bf16.mxu1 %v36195_v37 }
0x10c0   : > { %27998 = vmatpush3.bf16.msra.mxu0 %v27997_v32 }
0x10c1   : > { %28038 = vmatpush3.bf16.msra.mxu1 %v36209_v16  ;;  %28000 = vmatprep.subr.bf16.mxu0 %v27999_v14  ;;  %v19593_v14 = vand.u32 4294901760, %v19592_v8 }
0x10c2   : > { %28040 = vmatprep.subr.bf16.mxu1 %v36215_v30 }
0x10c4   : > { %28002 = vmatpush3.bf16.msra.mxu0 %v28001_v52 }
0x10c5   : > { %28042 = vmatpush3.bf16.msra.mxu1 %v36226_v53  ;;  %28004 = vmatprep.subr.bf16.mxu0 %v28003_v51 }
0x10c6   : > { %28044 = vmatprep.subr.bf16.mxu1 %v36237_v62 }
0x10c8   : > { %28006 = vmatpush3.bf16.msra.mxu0 %v28005_v46 }
0x10c9   : > { %28046 = vmatpush3.bf16.msra.mxu1 %v36244_v36  ;;  %28008 = vmatprep.subr.bf16.mxu0 %v28007_v33 }
0x10ca   : > { %28048 = vmatprep.subr.bf16.mxu1 %v36253_v55 }
0x10cc   : > { %28010 = vmatpush3.bf16.msra.mxu0 %v28009_v44 }
0x10cd   : > { %28050 = vmatpush3.bf16.msra.mxu1 %v36261_v58  ;;  %28012 = vmatprep.subr.bf16.mxu0 %v28011_v43 }
0x10ce   : > { %28084 = vmatprep.subr.bf16.mxu1 %v36086_v1  ;;  %v38341_v1 = vld [vmem:[#allocation163_spill] sm:$0xff] }
0x10d0   : > { %19210 = vmatmul.mubr.f32.vlgmr.msra.gmra.mrb[102].mxu1 %v18729_v3  ;;  %28014 = vmatpush3.bf16.msra.mxu0 %v28013_v56 }
0x10d1   : > { %28086 = vmatpush3.bf16.msra.mxu1 %v36109_v24  ;;  %19480 = vmatprep.mubr.f32.mxu1 %v38330_v54  ;;  %v38346_v24 = vld [vmem:[#allocation28_spill] sm:$0xff] }
0x10d2   : > { %28016 = vmatprep.subr.bf16.mxu0 %v28015_v23  ;;  %28088 = vmatprep.subr.bf16.mxu1 %v36116_v19  ;;  %v38347_v19 = vld [vmem:[#allocation59_spill] sm:$0xff] }
0x10d4   : > { %28018 = vmatpush3.bf16.msra.mxu0 %v28017_v41 }
0x10d5   : > { %28090 = vmatpush3.bf16.msra.mxu1 %v36136_v2  ;;  %28052 = vmatprep.subr.bf16.mxu0 %v38331_v57 }
0x10d6   : > { %28092 = vmatprep.subr.bf16.mxu1 %v36150_v61 }
0x10d7   : > { %19102 = vmatmul.mubr.f32.vlgmr.msra.gmra.mrb[102].mxu0 %v36230_v9 }
0x10d8   : > { %28054 = vmatpush3.bf16.msra.mxu0 %v38332_v5  ;;  %19376 = vmatprep.mubr.f32.mxu0 %v38330_v54 }
0x10d9   : > { %28094 = vmatpush3.bf16.msra.mxu1 %v36162_v11  ;;  %28056 = vmatprep.subr.bf16.mxu0 %v38333_v6  ;;  %v38338_v11 = vld [vmem:[#allocation113_spill] sm:$0xff] }
0x10da   : > { %28096 = vmatprep.subr.bf16.mxu1 %v36169_v42 }
0x10dc   : > { %28058 = vmatpush3.bf16.msra.mxu0 %v38334_v45 }
0x10dd   : > { %28098 = vmatpush3.bf16.msra.mxu1 %v36189_v48  ;;  %28060 = vmatprep.subr.bf16.mxu0 %v38335_v28 }
0x10de   : > { %28100 = vmatprep.subr.bf16.mxu1 %v36195_v37 }
0x10e0   : > { %28062 = vmatpush3.bf16.msra.mxu0 %v38336_v34 }
0x10e1   : > { %28102 = vmatpush3.bf16.msra.mxu1 %v36209_v16  ;;  %28064 = vmatprep.subr.bf16.mxu0 %v38337_v22 }
0x10e2   : > { %28104 = vmatprep.subr.bf16.mxu1 %v36215_v30  ;;  %v38343_v30 = vld [vmem:[#allocation172_spill] sm:$0xff] }
0x10e4   : > { %28066 = vmatpush3.bf16.msra.mxu0 %v38338_v11 }
0x10e5   : > { %28106 = vmatpush3.bf16.msra.mxu1 %v36226_v53  ;;  %28068 = vmatprep.subr.bf16.mxu0 %v38339_v4  ;;  %v38349_v53 = vld [vmem:[#allocation22_spill] sm:$0xff] }
0x10e6   : > { %28108 = vmatprep.subr.bf16.mxu1 %v36237_v62 }
0x10e8   : > { %28070 = vmatpush3.bf16.msra.mxu0 %v38340_v17 }
0x10e9   : > { %28110 = vmatpush3.bf16.msra.mxu1 %v36244_v36  ;;  %28072 = vmatprep.subr.bf16.mxu0 %v38341_v1 }
0x10ea   : > { %28112 = vmatprep.subr.bf16.mxu1 %v36253_v55  ;;  %v19494_v55 = vld [vmem:[%s36473_s6 + $0x40] sm:$0xff] }
0x10eb   : > { %v19505_v59 = vand.u32 4294901760, %v19494_v55 }
0x10ec   : > { %28074 = vmatpush3.bf16.msra.mxu0 %v38342_v21 }
0x10ed   : > { %28114 = vmatpush3.bf16.msra.mxu1 %v36261_v58  ;;  %28076 = vmatprep.subr.bf16.mxu0 %v38343_v30  ;;  %v36366_v35 = vpack.c.bf16 %v19508_v13, %v19505_v59  ;;  %v19583_v58 = vsub.f32 %v19494_v55, %v19505_v59 }
0x10ee   : > { %26165 = vmatprep.subr.mxu1 %v38344_v25 }
0x10ef   : > { %v19584_v49 = vand.u32 4294901760, %v19583_v58  ;;  %v28122_v51 = vpack.c.bf16 %v19590_v60, %v19583_v58 }
0x10f0   : > { %19482 = vmatmul.mubr.f32.vlgmr.msra.gmra.mrb[104].mxu1 %v36218_v40  ;;  %28078 = vmatpush3.bf16.msra.mxu0 %v38345_v0 }
0x10f1   : > { %28080 = vmatprep.subr.bf16.mxu0 %v38346_v24  ;;  %26167 = vmatprep.mubr.msk.f32.mxu1 %vm29465_vm9, %v38344_v25  ;;  %v19585_v18 = vsub.f32 %v19583_v58, %v19584_v49  ;;  %v28128_v20 = vpack.c.bf16 %v19591_v39, %v19584_v49 }
0x10f3   : > { %v19586_v32 = vand.u32 4294901760, %v19585_v18 }
0x10f4   : > { %28082 = vmatpush3.bf16.msra.mxu0 %v38347_v19 }
0x10f5   : > { %28115 = vmatprep.subr.bf16.mxu0 %v38348_v31  ;;  %v28119_v52 = vpack.c.bf16 %v19593_v14, %v19586_v32 }
0x10f7   : > { %19378 = vmatmul.mubr.f32.vlgmr.msra.gmra.mrb[104].mxu0 %v36218_v40 }
0x10f8   : > { %26127 = vmatprep.mubr.msk.f32.mxu0 %vm29465_vm9, %v38344_v25  ;;  %28117 = vmatpush3.bf16.msra.mxu0 %v36366_v35 }
0x10f9   : > { %28118 = vmatprep.subr.bf16.mxu0 %v38348_v31 }
0x111b   : > { %v22512_v2 = vpop.f32.mrb[94].mxu1 }
0x111c   : > { %v22513_v61 = vpop.f32.mrb[95].mxu1 }
0x111d   : > { %v22514_v42 = vadd.f32 %v22513_v61, %v22512_v2 }
0x1123   : > { %v22477_v48 = vpop.f32.mrb[94].mxu0 }
0x1124   : > { %v22478_v37 = vpop.f32.mrb[95].mxu0 }
0x1125   : > { %v22479_v16 = vadd.f32 %v22478_v37, %v22477_v48 }
0x1127   : > { %v17872_v9 = vadd.f32 %v22479_v16, %v38349_v53 }
0x1129   : > { %v18104_v62 = vadd.f32 %v22514_v42, %v17872_v9  ;;  %v20541_v42 = vld [vmem:[%s36473_s6 + $0x50] ss:$0 sm:$0xff] }
0x1142   : > { %v22582_v27 = vpop.f32.mrb[96].mxu1 }
0x1143   : > { %v22583_v36 = vpop.f32.mrb[97].mxu1 }
0x1144   : > { %v22584_v3 = vadd.f32 %v22583_v36, %v22582_v27 }
0x114a   : > { %v22547_v12 = vpop.f32.mrb[96].mxu0 }
0x114b   : > { %v22548_v26 = vpop.f32.mrb[97].mxu0 }
0x114c   : > { %v22549_v47 = vadd.f32 %v22548_v26, %v22547_v12  ;;  %v19964_v12 = vld [vmem:[%s36473_s6 + $0x60] sm:$0x1] }
0x114d   : > { %v19967_v26 = vsel %vm38351_vm12, %v19964_v12, 0 }
0x114e   : > { %v18242_v7 = vadd.f32 %v22549_v47, %v18104_v62  ;;  %v20542_v47 = vld [vmem:[%s36473_s6 + $0x58] ss:$0 sm:$0xff] }
0x1150   : > { %v18350_v40 = vadd.f32 %v22584_v3, %v18242_v7 }
0x1163   : > { %v22652_v15 = vpop.f32.mrb[98].mxu1 }
0x1164   : > { %v22653_v38 = vpop.f32.mrb[99].mxu1 }
0x1165   : > { %v22654_v10 = vadd.f32 %v22653_v38, %v22652_v15  ;;  %v19965_v38 = vld [vmem:[%s36473_s6 + $0x68] sm:$0x1] }
0x116a   : > { %v22617_v46 = vpop.f32.mrb[98].mxu0 }
0x116b   : > { %v22618_v33 = vpop.f32.mrb[99].mxu0 }
0x116c   : > { %v22619_v44 = vadd.f32 %v22618_v33, %v22617_v46 }
0x116e   : > { %v18518_v43 = vadd.f32 %v22619_v44, %v18350_v40  ;;  %v20038_v40 = vand.u32 4294901760, %v19967_v26 }
0x1170   : > { %v18622_v56 = vadd.f32 %v22654_v10, %v18518_v43  ;;  %v20039_v50 = vsub.f32 %v19967_v26, %v20038_v40 }
0x1172   : > { %v20040_v59 = vand.u32 4294901760, %v20039_v50 }
0x1174   : > { %v20041_v13 = vsub.f32 %v20039_v50, %v20040_v59 }
0x1176   : > { %v20042_v49 = vand.u32 4294901760, %v20041_v13 }
0x1183   : > { %v22722_v63 = vpop.f32.mrb[100].mxu1 }
0x1184   : > { %v22723_v23 = vpop.f32.mrb[101].mxu1 }
0x1185   : > { %v22724_v29 = vadd.f32 %v22723_v23, %v22722_v63 }
0x118a   : > { %v22687_v41 = vpop.f32.mrb[100].mxu0 }
0x118b   : > { %v22688_v54 = vpop.f32.mrb[101].mxu0 }
0x118c   : > { %v22689_v57 = vadd.f32 %v22688_v54, %v22687_v41 }
0x118e   : > { %v18734_v5 = vadd.f32 %v22689_v57, %v18622_v56  ;;  %v20427_v56 = vld [vmem:[%s310_s20] sm:$0x1] }
0x1190   : > { %v18966_v6 = vadd.f32 %v22724_v29, %v18734_v5 }
0x11a3   : > { %v22792_v45 = vpop.f32.mrb[102].mxu1 }
0x11a4   : > { %v22793_v28 = vpop.f32.mrb[103].mxu1 }
0x11a5   : > { %v22794_v34 = vadd.f32 %v22793_v28, %v22792_v45 }
0x11aa   : > { %v22757_v22 = vpop.f32.mrb[102].mxu0 }
0x11ab   : > { %v22758_v11 = vpop.f32.mrb[103].mxu0 }
0x11ac   : > { %v22759_v4 = vadd.f32 %v22758_v11, %v22757_v22 }
0x11ae   : > { %v19104_v17 = vadd.f32 %v22759_v4, %v18966_v6 }
0x11b0   : > { %v19212_v1 = vadd.f32 %v22794_v34, %v19104_v17 }
0x11c3   : > { %v22862_v21 = vpop.f32.mrb[104].mxu1 }
0x11c4   : > { %v22863_v30 = vpop.f32.mrb[105].mxu1 }
0x11c5   : > { %v22864_v0 = vadd.f32 %v22863_v30, %v22862_v21 }
0x11ca   : > { %v22827_v24 = vpop.f32.mrb[104].mxu0 }
0x11cb   : > { %v22828_v19 = vpop.f32.mrb[105].mxu0 }
0x11cc   : > { %v22829_v2 = vadd.f32 %v22828_v19, %v22827_v24 }
0x11ce   : > { %v19380_v61 = vadd.f32 %v22829_v2, %v19212_v1 }
0x11d0   : > { %v19484_v48 = vadd.f32 %v22864_v0, %v19380_v61 }
0x11d2   : > { %v19492_v37 = vadd.f32 %v20541_v42, %v19484_v48 }
0x11d4   : > { %v19493_v16 = vmax.f32 %v19492_v37, 0.0 }
0x11d6   : > { %v19502_v53 = vsel %vm38350_vm0, %v19493_v16, 0 }
0x11d7   : > { %v19571_v9 = vand.u32 4294901760, %v19502_v53 }
0x11d9   : > { %v19572_v62 = vsub.f32 %v19502_v53, %v19571_v9 }
0x11db   : > { %v19573_v27 = vand.u32 4294901760, %v19572_v62 }
0x11dd   : > { %v19574_v36 = vsub.f32 %v19572_v62, %v19573_v27 }
0x11df   : > { %v19575_v3 = vand.u32 4294901760, %v19574_v36 }
0x11e1   : > { %26128 = vmatmul.mubr.f32.vlgmr.msra.gmra.mrb[106].mxu0 %v19575_v3 }
0x11e2   : > { %28120 = vmatpush3.bf16.msra.mxu0 %v28119_v52  ;;  %26134 = vmatprep.mubr.msk.f32.mxu0 %vm29465_vm9, %v38344_v25 }
0x11e3   : > { %28121 = vmatprep.subr.bf16.mxu0 %v38348_v31 }
0x11e9   : > { %26135 = vmatmul.mubr.f32.vlgmr.msra.gmra.mrb[106].mxu0 %v19571_v9 }
0x11ea   : > { %28123 = vmatpush3.bf16.msra.mxu0 %v28122_v51  ;;  %26141 = vmatprep.mubr.msk.f32.mxu0 %vm29465_vm9, %v38344_v25 }
0x11eb   : > { %28124 = vmatprep.subr.bf16.mxu0 %v38348_v31 }
0x11f1   : > { %26142 = vmatmul.mubr.f32.vlgmr.msra.gmra.mrb[106].mxu0 %v19572_v62 }
0x11f2   : > { %28126 = vmatpush3.bf16.msra.mxu0 %v36366_v35  ;;  %26148 = vmatprep.mubr.msk.f32.mxu0 %vm29465_vm9, %v38344_v25 }
0x11f3   : > { %28127 = vmatprep.subr.bf16.mxu0 %v38348_v31 }
0x11f9   : > { %26149 = vmatmul.mubr.f32.vlgmr.msra.gmra.mrb[106].mxu0 %v19573_v27 }
0x11fa   : > { %28129 = vmatpush3.bf16.msra.mxu0 %v28128_v20  ;;  %26155 = vmatprep.mubr.msk.f32.mxu0 %vm29465_vm9, %v38344_v25 }
0x11fb   : > { %28130 = vmatprep.subr.bf16.mxu0 %v38348_v31 }
0x1201   : > { %26156 = vmatmul.mubr.f32.vlgmr.msra.gmra.mrb[106].mxu0 %v19571_v9 }
0x1202   : > { %28132 = vmatpush3.bf16.msra.mxu0 %v36366_v35  ;;  %26162 = vmatprep.mubr.msk.f32.mxu0 %vm29465_vm9, %v38344_v25 }
0x1209   : > { %26163 = vmatmul.mubr.f32.vlgmr.msra.gmra.mrb[106].mxu0 %v19571_v9 }
0x12dc   : > { %v19959_v7 = vpop.f32.mrb[106].mxu0 }
0x12dd   : > { %v28133_v31 = vadd.f32 %v20542_v47, %v19959_v7  ;;  %v26164_v55 = vpop.f32.mrb[107].mxu0 }
0x12df   : > { %29372 = vtanh.f32 %v28133_v31 }
0x12e9   : > { %v29373_v35 = vpop.eup %29372 }
0x12ea   : > { %v19970_v58 = vsel %vm38352_vm13, %v29373_v35, 0 }
0x12eb   : > { %v19973_v60 = vand.u32 4294901760, %v19970_v58 }
0x12ed   : > { %26166 = vmatpush3.xpose.msra.mxu1 %v19973_v60  ;;  %v20050_v39 = vsub.f32 %v19970_v58, %v19973_v60 }
0x12ee   : > { %26170 = vmatprep.subr.mxu1 %v38344_v25 }
0x12ef   : > { %v20051_v15 = vand.u32 4294901760, %v20050_v39 }
0x12f0   : > { %26168 = vmatmul.mubr.f32.vlgmr.msra.gmra.mrb[106].mxu1 %v20042_v49 }
0x12f1   : > { %v20052_v18 = vsub.f32 %v20050_v39, %v20051_v15  ;;  %26172 = vmatprep.mubr.msk.f32.mxu1 %vm29465_vm9, %v38344_v25 }
0x12f3   : > { %v20053_v8 = vand.u32 4294901760, %v20052_v18 }
0x12f5   : > { %26171 = vmatpush3.xpose.msra.mxu1 %v20053_v8 }
0x12f6   : > { %26175 = vmatprep.subr.mxu1 %v38344_v25 }
0x12f8   : > { %26173 = vmatmul.mubr.f32.vlgmr.msra.gmra.mrb[106].mxu1 %v20038_v40 }
0x12f9   : > { %26176 = vmatpush3.xpose.msra.mxu1 %v20050_v39  ;;  %26177 = vmatprep.mubr.msk.f32.mxu1 %vm29465_vm9, %v38344_v25 }
0x12fa   : > { %26180 = vmatprep.subr.mxu1 %v38344_v25 }
0x1300   : > { %26178 = vmatmul.mubr.f32.vlgmr.msra.gmra.mrb[106].mxu1 %v20039_v50 }
0x1301   : > { %26181 = vmatpush3.xpose.msra.mxu1 %v19973_v60  ;;  %26182 = vmatprep.mubr.msk.f32.mxu1 %vm29465_vm9, %v38344_v25 }
0x1302   : > { %26185 = vmatprep.subr.mxu1 %v38344_v25 }
0x1308   : > { %26183 = vmatmul.mubr.f32.vlgmr.msra.gmra.mrb[106].mxu1 %v20040_v59 }
0x1309   : > { %26186 = vmatpush3.xpose.msra.mxu1 %v20051_v15  ;;  %26187 = vmatprep.mubr.msk.f32.mxu1 %vm29465_vm9, %v38344_v25 }
0x130a   : > { %26190 = vmatprep.subr.mxu1 %v38344_v25 }
0x1310   : > { %26188 = vmatmul.mubr.f32.vlgmr.msra.gmra.mrb[106].mxu1 %v20038_v40 }
0x1311   : > { %26191 = vmatpush3.xpose.msra.mxu1 %v19973_v60  ;;  %26192 = vmatprep.mubr.msk.f32.mxu1 %vm29465_vm9, %v38344_v25 }
0x1318   : > { %26193 = vmatmul.mubr.f32.vlgmr.msra.gmra.mrb[106].mxu1 %v20038_v40 }
0x13eb   : > { %v20414_v10 = vpop.f32.mrb[106].mxu1 }
0x13ec   : > { %v28134_v32 = vadd.f32 %v20414_v10, %v19965_v38  ;;  %v26194_v14 = vpop.f32.mrb[107].mxu1 }
0x13ee   : > { %v20418_v52 = vsub.f32 0.0, %v28134_v32 }
0x13f0   : > { %v20419_v51 = vmul.f32 1.442695, %v20418_v52 }
0x13f2   : > { %29374 = vpow2.f32 %v20419_v51 }
0x13fc   : > { %v29375_v46 = vpop.eup %29374 }
0x13fd   : > { %v20421_v33 = vadd.f32 1.0, %v29375_v46 }
0x13ff   : > { %29376 = vrcp.f32 %v20421_v33 }
0x1409   : > { %v29377_v44 = vpop.eup %29376 }
0x140a   : > { %29378 = vlog2.f32 %v29377_v44 }
0x1414   : > { %v29379_v25 = vpop.eup %29378 }
0x1415   : > { %v20425_v43 = vmul.f32 0.6931472, %v29379_v25 }
0x1417   : > { %v20426_v20 = vsub.f32 0.0, %v20425_v43 }
0x1419   : > { %v20428_v63 = vmul.f32 %v20427_v56, %v20426_v20 }
0x141b   : > { %v20430_v23 = vrot.slane %v20428_v63, 7 }
0x141d   : > { %v20433_v29 = vsel %vm20432_vm14, %v29377_v44, %v20430_v23 }
0x141e   : > { %20435 = vst.msk [vmem:[%s297_s22] sm:$0x3] %vm20434_vm15, %v20433_v29 }
0x141f   : > { %29409 = shalt.err (!%p29406_p3)
}
0x1420   : > { %s29410_s16 = scalar_lea.hbm %s36425_s9, 32  ;;  %s29414_s20 = scalar_lea.hbm %s36474_s7, 256 }
0x1421   : > { %p29411_p4 = scmp.ne.s32.totalorder %s36425_s9, %s29410_s16  ;;  %p29415_p9 = scmp.lt.u32.totalorder %s36425_s9, %s36474_s7 }
0x1422   : > { %p29416_p10 = scmp.lt.u32.totalorder %s29414_s20, %s29410_s16  ;;  %p29418_p12 = scmp.lt.u32.totalorder %s29410_s16, %s36425_s9 }
0x1423   : > { %p29412_p7 = pnand %p29411_p4, %p29545_p5 }
0x1424   : > { %p29417_p11 = por %p29416_p10, %p29415_p9 }
0x1425   : > { %p29413_p8 = pneg %p29412_p7 }
0x1426   : > { %p29419_p13 = por %p29418_p12, %p29417_p11 }
0x1428   : > { %p29420_p0 = pnand %p29419_p13, %p29413_p8 }
0x142a   : > { %29423 = shalt.err (!%p29420_p0)
}
0x142b   : > { %29167 = dma.vmem_to_hbm [thread:$0]  (%p29545_p5), %s36427_s23, 32, %s36425_s9, %s20437_s13  }
0x142c PF: > { %p29173_p1 = scmp.ge.s32.totalorder %s29458_s27, 2  ;;  %s20462_s29 = sand.u32 1, %s29446_s24  }
0x142d   : > { %s20463_s8 = scalar_lea.sflag [#allocation3], %s20462_s29 }
0x142e   : > { %p29170_p2 = pnand %p29173_p1, %p29549_p6 }
0x1430   : > { %29441 = dma.done.wait (!%p29170_p2), %s20463_s8, 32  }
0x1431   : > { %29443 = vsyncadd (!%p29170_p2), %s20463_s8, 4294967264  ;;  %p17_p3 = scmp.ge.s32.totalorder %s29532_s30, 10   ;;  %s38353_s24 = smov %s29450_s25 }
0x1432   : > { %s38354_s25 = smov %s29454_s26  ;;  %s38355_s26 = smov %s29543_s10 }
0x1433   : > { %s38356_s27 = smov %s29532_s30  ;;  %19 = sbr.rel (!%p17_p3) target bundleno = 3 (0x3), region = 89 }
0x143a   :  { %20468 = vsyncpa [#allocation3], 1 }
0x143b   :  { %20470 = vsyncpa [#allocation3 + $0x1], 1 }

</bundles_post_ra>
